<compile_context>
chip_gen: v6e
topology: v6e:2x2x1
jax: 0.10.0
libtpu: 0.0.40
codegen_flags: <defaults>
</compile_context>

<pallas_src>
import numpy as np
import jax
import jax.numpy as jnp
from jax.experimental import pallas as pl
from jax.experimental.pallas import tpu as pltpu


# ----------------------------------------------------------------------------- wrapper
def encoder_decoder_tconvmt_forward(params, x, future_seq, *, batch_block=1):
    """x: (b, seq_len, c=1, l, h, w) as in the torch forward; returns (b, future_seq, l, h, 28)."""
    nf = params["nf"]
    b, seq_len, _, L, Hs, cx = x.shape            # torch permute makes `w` the channel dim
    H, W = L, Hs
    Hp, Wp = H + 2, W + 2
    NP = 128 * ((Hp * Wp + 127) // 128)           # per-element padded-flat spatial, lane aligned
    out_chan = params["cnn_b"].shape[0]           # 28
    OC = ((out_chan + 7) // 8) * 8                # 32: sublane-aligned output rows
    assert b % batch_block == 0
    nb = b // batch_block
    NPT = batch_block * NP
    G4 = 4 * nf
    KX = 9 * cx
    KH = 9 * nf
    f32 = jnp.float32

    # Tap enumeration k = dy*3 + dx; flat-coordinate offset of tap k inside the padded image.
    OFFS = [(dy - 1) * Wp + (dx - 1) for dy in range(3) for dx in range(3)]

    # ---------------- wrapper-side preprocessing (one-time XLA ops) ----------------
    # x-side im2col hoisted out of the kernel: (b, S, 9*cx, NPT), padded-coordinate,
    # channel-major, zero outside the interior columns.
    xf = x[:, :, 0].astype(f32)                                        # (b, S, H, W, cx)
    xpad = jnp.pad(xf, ((0, 0), (0, 0), (1, 1), (1, 1), (0, 0)))       # zero halo
    cols = [xpad[:, :, dy:dy + H, dx:dx + W, :] for dy in range(3) for dx in range(3)]
    pat = jnp.stack(cols, axis=2)                                      # (b, S, 9, H, W, cx)
    pat = jnp.moveaxis(pat, 5, 3).reshape(b, seq_len, KX, H, W)        # (b, S, 9cx, H, W)
    pat = jnp.pad(pat, ((0, 0), (0, 0), (0, 0), (1, 1), (1, 1)))       # -> padded coords
    pat = pat.reshape(b, seq_len, KX, Hp * Wp)
    pat = jnp.pad(pat, ((0, 0), (0, 0), (0, 0), (0, NP - Hp * Wp)))    # lane-pad to NP
    pat = pat.reshape(nb, batch_block, seq_len, KX, NP)
    pat = jnp.transpose(pat, (0, 2, 3, 1, 4)).reshape(nb, seq_len, KX, NPT)

    def split_wT(w, cin_x):
        # (3,3,Cin,Cout) HWIO -> transposed (Cout, 9*cin_x) and (Cout, 9*(Cin-cin_x)),
        # columns ordered tap-major / channel-minor (matches patch-row ordering).
        cin, co = w.shape[2], w.shape[3]
        w9 = w.reshape(9, cin, co)
        wxT = jnp.transpose(w9[:, :cin_x, :], (2, 0, 1)).reshape(co, 9 * cin_x)
        whT = jnp.transpose(w9[:, cin_x:, :], (2, 0, 1)).reshape(co, 9 * (cin - cin_x))
        return wxT, whT

    wx1T, wh1T = split_wT(params["enc1_w"], cx)
    wx2T, wh2T = split_wT(params["enc2_w"], nf)
    wx3T, wh3T = split_wT(params["dec1_w"], nf)
    wx4T, wh4T = split_wT(params["dec2_w"], nf)
    wcT = jnp.transpose(params["cnn_w"].reshape(9, nf, out_chan), (2, 0, 1)).reshape(out_chan, KH)
    wcT = jnp.pad(wcT, ((0, OC - out_chan), (0, 0)))                   # pad rows 28 -> 32
    b1 = params["enc1_b"].reshape(G4, 1)
    b2 = params["enc2_b"].reshape(G4, 1)
    b3 = params["dec1_b"].reshape(G4, 1)
    b4 = params["dec2_b"].reshape(G4, 1)
    bc = jnp.pad(params["cnn_b"], (0, OC - out_chan)).reshape(OC, 1)

    # Interior-column mask (1 at valid output pixels of the padded-flat layout, 0 at the
    # halo / lane-pad columns).  Precomputed host-side; one multiply per cell keeps the
    # halo of h at zero, which is what implements SAME padding for free.
    q = np.arange(NP)
    yy, xx = q // Wp, q % Wp
    m = ((q < Hp * Wp) & (yy >= 1) & (yy <= H) & (xx >= 1) & (xx <= W)).astype(np.float32)
    mask = jnp.asarray(np.tile(m, batch_block).reshape(1, NPT))

    # ---------------- the fused kernel ----------------
    def kernel(x_ref, mask_ref,
               wx1_ref, wh1_ref, b1_ref, wx2_ref, wh2_ref, b2_ref,
               wx3_ref, wh3_ref, b3_ref, wx4_ref, wh4_ref, b4_ref,
               wc_ref, bc_ref,
               out_ref,
               ph1, ph2, ph3, ph4, c1, c2, c3, c4):
        # Fresh state per grid step (each block is an independent batch slice).
        for r in (ph1, ph2, ph3, ph4, c1, c2, c3, c4):
            r[...] = jnp.zeros(r.shape, r.dtype)

        msk = mask_ref[...]                                            # (1, NPT)
        # Hoisted bias broadcasts (JAX does not CSE broadcast_in_dim across unrolled loops).
        b1b = jnp.broadcast_to(b1_ref[...], (G4, NPT))
        b2b = jnp.broadcast_to(b2_ref[...], (G4, NPT))
        b3b = jnp.broadcast_to(b3_ref[...], (G4, NPT))
        b4b = jnp.broadcast_to(b4_ref[...], (G4, NPT))
        bcb = jnp.broadcast_to(bc_ref[...], (OC, NPT))

        def mm(wT, p):
            return jnp.dot(wT, p, preferred_element_type=jnp.float32)

        def cell_update(acc, c_ref, ph_ref):
            # acc: (4nf, NPT) channel-major preactivation; gate slices are sublane-aligned.
            sig = jax.nn.sigmoid(acc[:3 * nf])        # fused i,f,o sigmoid
            g = jnp.tanh(acc[3 * nf:])                # fused g tanh
            i_g, f_g, o_g = sig[:nf], sig[nf:2 * nf], sig[2 * nf:3 * nf]
            c_new = f_g * c_ref[...] + i_g * g
            c_ref[...] = c_new
            h_new = msk * (o_g * jnp.tanh(c_new))     # zero halo => SAME padding next step
            # Rebuild this state's 9-tap patch matrix: 9 lane rolls + 9 aligned stores.
            for k, off in enumerate(OFFS):
                ph_ref[k * nf:(k + 1) * nf, :] = (
                    h_new if off == 0 else pltpu.roll(h_new, (-off) % NPT, axis=1))

        # ---------------- encoder (state resident in VMEM across all steps) ----------------
        for t in range(seq_len):
            acc1 = mm(wx1_ref[...], x_ref[t]) + mm(wh1_ref[...], ph1[...]) + b1b
            cell_update(acc1, c1, ph1)
            acc2 = mm(wx2_ref[...], ph1[...]) + mm(wh2_ref[...], ph2[...]) + b2b
            cell_update(acc2, c2, ph2)

        # ---------------- decoder + fused Conv3d(1,3,3)+sigmoid head ----------------
        ev = ph2[...]                                  # encoder_vector patch matrix
        for td in range(future_seq):
            acc3 = mm(wx3_ref[...], ev) + mm(wh3_ref[...], ph3[...]) + b3b
            cell_update(acc3, c3, ph3)
            acc4 = mm(wx4_ref[...], ph3[...]) + mm(wh4_ref[...], ph4[...]) + b4b
            cell_update(acc4, c4, ph4)
            p4 = ph4[...]                              # reused: head now + ev next step
            out_ref[td] = jax.nn.sigmoid(mm(wc_ref[...], p4) + bcb)
            ev = p4

    def w_spec(a):
        nd = a.ndim
        return pl.BlockSpec(a.shape, lambda bi, _n=nd: (0,) * _n)

    out = pl.pallas_call(
        kernel,
        out_shape=jax.ShapeDtypeStruct((nb, future_seq, OC, NPT), jnp.float32),
        grid=(nb,),
        in_specs=[
            pl.BlockSpec((None, seq_len, KX, NPT), lambda bi: (bi, 0, 0, 0)),
            w_spec(mask),
            w_spec(wx1T), w_spec(wh1T), w_spec(b1),
            w_spec(wx2T), w_spec(wh2T), w_spec(b2),
            w_spec(wx3T), w_spec(wh3T), w_spec(b3),
            w_spec(wx4T), w_spec(wh4T), w_spec(b4),
            w_spec(wcT), w_spec(bc),
        ],
        out_specs=pl.BlockSpec((None, future_seq, OC, NPT), lambda bi: (bi, 0, 0, 0)),
        scratch_shapes=[pltpu.VMEM((KH, NPT), jnp.float32)] * 4      # 9-tap patch matrices
                     + [pltpu.VMEM((nf, NPT), jnp.float32)] * 4,     # cell states
        compiler_params=pltpu.CompilerParams(dimension_semantics=("parallel",)),
    )(pat, mask, wx1T, wh1T, b1, wx2T, wh2T, b2, wx3T, wh3T, b3, wx4T, wh4T, b4, wcT, bc)

    # ---------------- post-processing: unpack batch, drop pad rows / halo columns ----------------
    out = out.reshape(nb, future_seq, OC, batch_block, NP)
    out = jnp.transpose(out, (0, 3, 1, 2, 4)).reshape(b, future_seq, OC, NP)
    out = out[:, :, :out_chan, :Hp * Wp].reshape(b, future_seq, out_chan, Hp, Wp)
    out = out[:, :, :, 1:H + 1, 1:W + 1]
    return jnp.transpose(out, (0, 1, 3, 4, 2))        # (b, future_seq, L, Hs, 28)


# ----------------------------------------------------------------------------- params
def init_params(key, nf, in_chan, out_chan=28):
    ks = jax.random.split(key, 10)

    def cw(k, cin, cout, scale=0.1):
        return scale * jax.random.normal(k, (3, 3, cin, cout), jnp.float32)  # HWIO

    def cb(k, cout, scale=0.1):
        return scale * jax.random.normal(k, (cout,), jnp.float32)

    return {
        "nf": nf,
        "enc1_w": cw(ks[0], in_chan + nf, 4 * nf), "enc1_b": cb(ks[1], 4 * nf),
        "enc2_w": cw(ks[2], nf + nf, 4 * nf),      "enc2_b": cb(ks[3], 4 * nf),
        "dec1_w": cw(ks[4], nf + nf, 4 * nf),      "dec1_b": cb(ks[5], 4 * nf),
        "dec2_w": cw(ks[6], nf + nf, 4 * nf),      "dec2_b": cb(ks[7], 4 * nf),
        "cnn_w":  cw(ks[8], nf, out_chan),         "cnn_b":  cb(ks[9], out_chan),
    }


# ----------------------------------------------------------------------------- pure-JAX reference
def ref_forward(params, x, future_seq):
    nf = params["nf"]
    b, seq_len, _, L, Hs, Wc = x.shape
    xp = x[:, :, 0]                                  # (b, t, L, Hs, cx) NHWC frames
    z = jnp.zeros((b, L, Hs, nf), jnp.float32)
    h_t = c_t = h_t2 = c_t2 = h_t3 = c_t3 = h_t4 = c_t4 = z

    def conv(a, w, bias):
        return jax.lax.conv_general_dilated(
            a, w, (1, 1), "SAME", dimension_numbers=("NHWC", "HWIO", "NHWC")) + bias

    def cell(xin, h, c, w, bias):
        cc = conv(jnp.concatenate([xin, h], -1), w, bias)
        i = jax.nn.sigmoid(cc[..., :nf]); f = jax.nn.sigmoid(cc[..., nf:2 * nf])
        o = jax.nn.sigmoid(cc[..., 2 * nf:3 * nf]); g = jnp.tanh(cc[..., 3 * nf:])
        c_next = f * c + i * g
        return o * jnp.tanh(c_next), c_next

    for t in range(seq_len):
        h_t, c_t = cell(xp[:, t], h_t, c_t, params["enc1_w"], params["enc1_b"])
        h_t2, c_t2 = cell(h_t, h_t2, c_t2, params["enc2_w"], params["enc2_b"])
    enc = h_t2
    outs = []
    for _ in range(future_seq):
        h_t3, c_t3 = cell(enc, h_t3, c_t3, params["dec1_w"], params["dec1_b"])
        h_t4, c_t4 = cell(h_t3, h_t4, c_t4, params["dec2_w"], params["dec2_b"])
        enc = h_t4
        outs.append(h_t4)
    out = jnp.stack(outs, 1)
    y = jax.nn.sigmoid(conv(out.reshape(b * future_seq, L, Hs, nf),
                            params["cnn_w"], params["cnn_b"]))
    return y.reshape(b, future_seq, L, Hs, 28)


# ----------------------------------------------------------------------------- main
if __name__ == "__main__":
    nf, in_chan = 8, 4
    b, seq_len, L, Hs = 2, 5, 8, 8
    future_seq = 4

    key = jax.random.PRNGKey(0)
    kx, kp = jax.random.split(key)
    # torch forward signature: x is (b, t, c, l, h, w) with c == 1 and w == in_chan
    x = jax.random.normal(kx, (b, seq_len, 1, L, Hs, in_chan), jnp.float32)
    params = init_params(kp, nf, in_chan)

    # batch_block=1 keeps grid=(2,) => both v7x TensorCores stay busy; on v5e/v6e a
    # larger batch could be packed into one block (batch_block=b) for lane density.
    out = encoder_decoder_tconvmt_forward(params, x, future_seq, batch_block=1)
    out = jax.block_until_ready(out)

    assert out.shape == (b, future_seq, L, Hs, 28), out.shape
    ref = jax.block_until_ready(ref_forward(params, x, future_seq))
    np.testing.assert_allclose(np.asarray(out), np.asarray(ref), rtol=1e-4, atol=1e-4)

    print("KERNEL_OK")
</pallas_src>

<mosaic_0001>
module attributes {stable_mosaic.version = 11 : i64} {
  func.func @kernel(%arg0: i32, %arg1: memref<1x5x36x128xf32, #tpu.memory_space<vmem>>, %arg2: memref<1x128xf32, #tpu.memory_space<vmem>>, %arg3: memref<32x36xf32, #tpu.memory_space<vmem>>, %arg4: memref<32x72xf32, #tpu.memory_space<vmem>>, %arg5: memref<32x1xf32, #tpu.memory_space<vmem>>, %arg6: memref<32x72xf32, #tpu.memory_space<vmem>>, %arg7: memref<32x72xf32, #tpu.memory_space<vmem>>, %arg8: memref<32x1xf32, #tpu.memory_space<vmem>>, %arg9: memref<32x72xf32, #tpu.memory_space<vmem>>, %arg10: memref<32x72xf32, #tpu.memory_space<vmem>>, %arg11: memref<32x1xf32, #tpu.memory_space<vmem>>, %arg12: memref<32x72xf32, #tpu.memory_space<vmem>>, %arg13: memref<32x72xf32, #tpu.memory_space<vmem>>, %arg14: memref<32x1xf32, #tpu.memory_space<vmem>>, %arg15: memref<32x72xf32, #tpu.memory_space<vmem>>, %arg16: memref<32x1xf32, #tpu.memory_space<vmem>>, %arg17: memref<1x4x32x128xf32, #tpu.memory_space<vmem>>, %arg18: memref<72x128xf32, #tpu.memory_space<vmem>>, %arg19: memref<72x128xf32, #tpu.memory_space<vmem>>, %arg20: memref<72x128xf32, #tpu.memory_space<vmem>>, %arg21: memref<72x128xf32, #tpu.memory_space<vmem>>, %arg22: memref<8x128xf32, #tpu.memory_space<vmem>>, %arg23: memref<8x128xf32, #tpu.memory_space<vmem>>, %arg24: memref<8x128xf32, #tpu.memory_space<vmem>>, %arg25: memref<8x128xf32, #tpu.memory_space<vmem>>) attributes {dimension_semantics = [#tpu.dimension_semantics<parallel>], iteration_bounds = array<i64: 2>, scalar_prefetch = 0 : i64, scratch_operands = 8 : i64, tpu.core_type = #tpu.core_type<tc>, window_params = [{transform_indices = @transform_0, window_bounds = array<i64: 1, 5, 36, 128>}, {pipeline_mode = #tpu.pipeline_mode<synchronous>, transform_indices = @transform_1, window_bounds = array<i64: 1, 128>}, {pipeline_mode = #tpu.pipeline_mode<synchronous>, transform_indices = @transform_2, window_bounds = array<i64: 32, 36>}, {pipeline_mode = #tpu.pipeline_mode<synchronous>, transform_indices = @transform_3, window_bounds = array<i64: 32, 72>}, {pipeline_mode = #tpu.pipeline_mode<synchronous>, transform_indices = @transform_4, window_bounds = array<i64: 32, 1>}, {pipeline_mode = #tpu.pipeline_mode<synchronous>, transform_indices = @transform_5, window_bounds = array<i64: 32, 72>}, {pipeline_mode = #tpu.pipeline_mode<synchronous>, transform_indices = @transform_6, window_bounds = array<i64: 32, 72>}, {pipeline_mode = #tpu.pipeline_mode<synchronous>, transform_indices = @transform_7, window_bounds = array<i64: 32, 1>}, {pipeline_mode = #tpu.pipeline_mode<synchronous>, transform_indices = @transform_8, window_bounds = array<i64: 32, 72>}, {pipeline_mode = #tpu.pipeline_mode<synchronous>, transform_indices = @transform_9, window_bounds = array<i64: 32, 72>}, {pipeline_mode = #tpu.pipeline_mode<synchronous>, transform_indices = @transform_10, window_bounds = array<i64: 32, 1>}, {pipeline_mode = #tpu.pipeline_mode<synchronous>, transform_indices = @transform_11, window_bounds = array<i64: 32, 72>}, {pipeline_mode = #tpu.pipeline_mode<synchronous>, transform_indices = @transform_12, window_bounds = array<i64: 32, 72>}, {pipeline_mode = #tpu.pipeline_mode<synchronous>, transform_indices = @transform_13, window_bounds = array<i64: 32, 1>}, {pipeline_mode = #tpu.pipeline_mode<synchronous>, transform_indices = @transform_14, window_bounds = array<i64: 32, 72>}, {pipeline_mode = #tpu.pipeline_mode<synchronous>, transform_indices = @transform_15, window_bounds = array<i64: 32, 1>}, {transform_indices = @transform_16, window_bounds = array<i64: 1, 4, 32, 128>}]} {
    %cst = arith.constant 0.000000e+00 : f32
    %0 = vector.broadcast %cst : f32 to vector<72x128xf32>
    %c0 = arith.constant 0 : index
    %c0_0 = arith.constant 0 : index
    %1 = vector.load %arg18[%c0, %c0_0] : memref<72x128xf32, #tpu.memory_space<vmem>>, vector<72x128xf32>
    tpu.vector_store %arg18[%c0, %c0_0], %0 {strides = array<i32>} : memref<72x128xf32, #tpu.memory_space<vmem>>, vector<72x128xf32>,
    %cst_1 = arith.constant 0.000000e+00 : f32
    %2 = vector.broadcast %cst_1 : f32 to vector<72x128xf32>
    %c0_2 = arith.constant 0 : index
    %c0_3 = arith.constant 0 : index
    %3 = vector.load %arg19[%c0_2, %c0_3] : memref<72x128xf32, #tpu.memory_space<vmem>>, vector<72x128xf32>
    tpu.vector_store %arg19[%c0_2, %c0_3], %2 {strides = array<i32>} : memref<72x128xf32, #tpu.memory_space<vmem>>, vector<72x128xf32>,
    %cst_4 = arith.constant 0.000000e+00 : f32
    %4 = vector.broadcast %cst_4 : f32 to vector<72x128xf32>
    %c0_5 = arith.constant 0 : index
    %c0_6 = arith.constant 0 : index
    %5 = vector.load %arg20[%c0_5, %c0_6] : memref<72x128xf32, #tpu.memory_space<vmem>>, vector<72x128xf32>
    tpu.vector_store %arg20[%c0_5, %c0_6], %4 {strides = array<i32>} : memref<72x128xf32, #tpu.memory_space<vmem>>, vector<72x128xf32>,
    %cst_7 = arith.constant 0.000000e+00 : f32
    %6 = vector.broadcast %cst_7 : f32 to vector<72x128xf32>
    %c0_8 = arith.constant 0 : index
    %c0_9 = arith.constant 0 : index
    %7 = vector.load %arg21[%c0_8, %c0_9] : memref<72x128xf32, #tpu.memory_space<vmem>>, vector<72x128xf32>
    tpu.vector_store %arg21[%c0_8, %c0_9], %6 {strides = array<i32>} : memref<72x128xf32, #tpu.memory_space<vmem>>, vector<72x128xf32>,
    %cst_10 = arith.constant 0.000000e+00 : f32
    %8 = vector.broadcast %cst_10 : f32 to vector<8x128xf32>
    %c0_11 = arith.constant 0 : index
    %c0_12 = arith.constant 0 : index
    %9 = vector.load %arg22[%c0_11, %c0_12] : memref<8x128xf32, #tpu.memory_space<vmem>>, vector<8x128xf32>
    tpu.vector_store %arg22[%c0_11, %c0_12], %8 {strides = array<i32>} : memref<8x128xf32, #tpu.memory_space<vmem>>, vector<8x128xf32>,
    %cst_13 = arith.constant 0.000000e+00 : f32
    %10 = vector.broadcast %cst_13 : f32 to vector<8x128xf32>
    %c0_14 = arith.constant 0 : index
    %c0_15 = arith.constant 0 : index
    %11 = vector.load %arg23[%c0_14, %c0_15] : memref<8x128xf32, #tpu.memory_space<vmem>>, vector<8x128xf32>
    tpu.vector_store %arg23[%c0_14, %c0_15], %10 {strides = array<i32>} : memref<8x128xf32, #tpu.memory_space<vmem>>, vector<8x128xf32>,
    %cst_16 = arith.constant 0.000000e+00 : f32
    %12 = vector.broadcast %cst_16 : f32 to vector<8x128xf32>
    %c0_17 = arith.constant 0 : index
    %c0_18 = arith.constant 0 : index
    %13 = vector.load %arg24[%c0_17, %c0_18] : memref<8x128xf32, #tpu.memory_space<vmem>>, vector<8x128xf32>
    tpu.vector_store %arg24[%c0_17, %c0_18], %12 {strides = array<i32>} : memref<8x128xf32, #tpu.memory_space<vmem>>, vector<8x128xf32>,
    %cst_19 = arith.constant 0.000000e+00 : f32
    %14 = vector.broadcast %cst_19 : f32 to vector<8x128xf32>
    %c0_20 = arith.constant 0 : index
    %c0_21 = arith.constant 0 : index
    %15 = vector.load %arg25[%c0_20, %c0_21] : memref<8x128xf32, #tpu.memory_space<vmem>>, vector<8x128xf32>
    tpu.vector_store %arg25[%c0_20, %c0_21], %14 {strides = array<i32>} : memref<8x128xf32, #tpu.memory_space<vmem>>, vector<8x128xf32>,
    %c0_22 = arith.constant 0 : index
    %c0_23 = arith.constant 0 : index
    %16 = vector.load %arg2[%c0_22, %c0_23] : memref<1x128xf32, #tpu.memory_space<vmem>>, vector<1x128xf32>
    %c0_24 = arith.constant 0 : index
    %c0_25 = arith.constant 0 : index
    %17 = vector.load %arg5[%c0_24, %c0_25] : memref<32x1xf32, #tpu.memory_space<vmem>>, vector<32x1xf32>
    %18 = vector.shape_cast %17 : vector<32x1xf32> to vector<32x1xf32>
    %19 = vector.broadcast %18 : vector<32x1xf32> to vector<32x128xf32>
    %c0_26 = arith.constant 0 : index
    %c0_27 = arith.constant 0 : index
    %20 = vector.load %arg8[%c0_26, %c0_27] : memref<32x1xf32, #tpu.memory_space<vmem>>, vector<32x1xf32>
    %21 = vector.shape_cast %20 : vector<32x1xf32> to vector<32x1xf32>
    %22 = vector.broadcast %21 : vector<32x1xf32> to vector<32x128xf32>
    %c0_28 = arith.constant 0 : index
    %c0_29 = arith.constant 0 : index
    %23 = vector.load %arg11[%c0_28, %c0_29] : memref<32x1xf32, #tpu.memory_space<vmem>>, vector<32x1xf32>
    %24 = vector.shape_cast %23 : vector<32x1xf32> to vector<32x1xf32>
    %25 = vector.broadcast %24 : vector<32x1xf32> to vector<32x128xf32>
    %c0_30 = arith.constant 0 : index
    %c0_31 = arith.constant 0 : index
    %26 = vector.load %arg14[%c0_30, %c0_31] : memref<32x1xf32, #tpu.memory_space<vmem>>, vector<32x1xf32>
    %27 = vector.shape_cast %26 : vector<32x1xf32> to vector<32x1xf32>
    %28 = vector.broadcast %27 : vector<32x1xf32> to vector<32x128xf32>
    %c0_32 = arith.constant 0 : index
    %c0_33 = arith.constant 0 : index
    %29 = vector.load %arg16[%c0_32, %c0_33] : memref<32x1xf32, #tpu.memory_space<vmem>>, vector<32x1xf32>
    %30 = vector.shape_cast %29 : vector<32x1xf32> to vector<32x1xf32>
    %31 = vector.broadcast %30 : vector<32x1xf32> to vector<32x128xf32>
    %c0_34 = arith.constant 0 : index
    %c0_35 = arith.constant 0 : index
    %32 = vector.load %arg3[%c0_34, %c0_35] : memref<32x36xf32, #tpu.memory_space<vmem>>, vector<32x36xf32>
    %c0_36 = arith.constant 0 : index
    %c0_37 = arith.constant 0 : index
    %c0_38 = arith.constant 0 : index
    %c0_39 = arith.constant 0 : index
    %33 = vector.load %arg1[%c0_36, %c0_37, %c0_38, %c0_39] : memref<1x5x36x128xf32, #tpu.memory_space<vmem>>, vector<1x1x36x128xf32>
    %34 = vector.shape_cast %33 : vector<1x1x36x128xf32> to vector<36x128xf32>
    %cst_40 = arith.constant dense<0.000000e+00> : vector<32x128xf32>
    %35 = tpu.matmul %32, %34, %cst_40 {dimension_numbers = #tpu.dot_dimension_numbers<[1], [0], [0], [1], [0, 0, 1, 1], [], []>} : vector<32x36xf32>, vector<36x128xf32>, vector<32x128xf32> -> vector<32x128xf32>
    %c0_41 = arith.constant 0 : index
    %c0_42 = arith.constant 0 : index
    %36 = vector.load %arg4[%c0_41, %c0_42] : memref<32x72xf32, #tpu.memory_space<vmem>>, vector<32x72xf32>
    %c0_43 = arith.constant 0 : index
    %c0_44 = arith.constant 0 : index
    %37 = vector.load %arg18[%c0_43, %c0_44] : memref<72x128xf32, #tpu.memory_space<vmem>>, vector<72x128xf32>
    %cst_45 = arith.constant dense<0.000000e+00> : vector<32x128xf32>
    %38 = tpu.matmul %36, %37, %cst_45 {dimension_numbers = #tpu.dot_dimension_numbers<[1], [0], [0], [1], [0, 0, 1, 1], [], []>} : vector<32x72xf32>, vector<72x128xf32>, vector<32x128xf32> -> vector<32x128xf32>
    %39 = arith.addf %35, %38 : vector<32x128xf32>
    %40 = arith.addf %39, %19 : vector<32x128xf32>
    %41 = vector.extract_strided_slice %40 {offsets = [0, 0], sizes = [24, 128], strides = [1, 1]} : vector<32x128xf32> to vector<24x128xf32>
    %42 = arith.negf %41 : vector<24x128xf32>
    %43 = math.exp %42 : vector<24x128xf32>
    %cst_46 = arith.constant 1.000000e+00 : f32
    %44 = vector.broadcast %cst_46 : f32 to vector<24x128xf32>
    %45 = arith.addf %44, %43 : vector<24x128xf32>
    %46 = arith.divf %44, %45 : vector<24x128xf32>
    %47 = vector.extract_strided_slice %40 {offsets = [24, 0], sizes = [8, 128], strides = [1, 1]} : vector<32x128xf32> to vector<8x128xf32>
    %48 = math.tanh %47 : vector<8x128xf32>
    %49 = vector.extract_strided_slice %46 {offsets = [0, 0], sizes = [8, 128], strides = [1, 1]} : vector<24x128xf32> to vector<8x128xf32>
    %50 = vector.extract_strided_slice %46 {offsets = [8, 0], sizes = [8, 128], strides = [1, 1]} : vector<24x128xf32> to vector<8x128xf32>
    %51 = vector.extract_strided_slice %46 {offsets = [16, 0], sizes = [8, 128], strides = [1, 1]} : vector<24x128xf32> to vector<8x128xf32>
    %c0_47 = arith.constant 0 : index
    %c0_48 = arith.constant 0 : index
    %52 = vector.load %arg22[%c0_47, %c0_48] : memref<8x128xf32, #tpu.memory_space<vmem>>, vector<8x128xf32>
    %53 = arith.mulf %50, %52 : vector<8x128xf32>
    %54 = arith.mulf %49, %48 : vector<8x128xf32>
    %55 = arith.addf %53, %54 : vector<8x128xf32>
    %c0_49 = arith.constant 0 : index
    %c0_50 = arith.constant 0 : index
    %56 = vector.load %arg22[%c0_49, %c0_50] : memref<8x128xf32, #tpu.memory_space<vmem>>, vector<8x128xf32>
    tpu.vector_store %arg22[%c0_49, %c0_50], %55 {strides = array<i32>} : memref<8x128xf32, #tpu.memory_space<vmem>>, vector<8x128xf32>,
    %57 = math.tanh %55 : vector<8x128xf32>
    %58 = arith.mulf %51, %57 : vector<8x128xf32>
    %59 = vector.broadcast %16 : vector<1x128xf32> to vector<8x128xf32>
    %60 = arith.mulf %59, %58 : vector<8x128xf32>
    %c11_i32 = arith.constant 11 : i32
    %61 = tpu.dynamic_rotate %60 by %c11_i32 dim 1 : vector<8x128xf32>, i32 -> vector<8x128xf32>
    %c0_51 = arith.constant 0 : index
    %c0_52 = arith.constant 0 : index
    %62 = vector.load %arg18[%c0_51, %c0_52] : memref<72x128xf32, #tpu.memory_space<vmem>>, vector<8x128xf32>
    tpu.vector_store %arg18[%c0_51, %c0_52], %61 {strides = array<i32>} : memref<72x128xf32, #tpu.memory_space<vmem>>, vector<8x128xf32>,
    %c10_i32 = arith.constant 10 : i32
    %63 = tpu.dynamic_rotate %60 by %c10_i32 dim 1 : vector<8x128xf32>, i32 -> vector<8x128xf32>
    %c8 = arith.constant 8 : index
    %c0_53 = arith.constant 0 : index
    %64 = vector.load %arg18[%c8, %c0_53] : memref<72x128xf32, #tpu.memory_space<vmem>>, vector<8x128xf32>
    tpu.vector_store %arg18[%c8, %c0_53], %63 {strides = array<i32>} : memref<72x128xf32, #tpu.memory_space<vmem>>, vector<8x128xf32>,
    %c9_i32 = arith.constant 9 : i32
    %65 = tpu.dynamic_rotate %60 by %c9_i32 dim 1 : vector<8x128xf32>, i32 -> vector<8x128xf32>
    %c16 = arith.constant 16 : index
    %c0_54 = arith.constant 0 : index
    %66 = vector.load %arg18[%c16, %c0_54] : memref<72x128xf32, #tpu.memory_space<vmem>>, vector<8x128xf32>
    tpu.vector_store %arg18[%c16, %c0_54], %65 {strides = array<i32>} : memref<72x128xf32, #tpu.memory_space<vmem>>, vector<8x128xf32>,
    %c1_i32 = arith.constant 1 : i32
    %67 = tpu.dynamic_rotate %60 by %c1_i32 dim 1 : vector<8x128xf32>, i32 -> vector<8x128xf32>
    %c24 = arith.constant 24 : index
    %c0_55 = arith.constant 0 : index
    %68 = vector.load %arg18[%c24, %c0_55] : memref<72x128xf32, #tpu.memory_space<vmem>>, vector<8x128xf32>
    tpu.vector_store %arg18[%c24, %c0_55], %67 {strides = array<i32>} : memref<72x128xf32, #tpu.memory_space<vmem>>, vector<8x128xf32>,
    %c32 = arith.constant 32 : index
    %c0_56 = arith.constant 0 : index
    %69 = vector.load %arg18[%c32, %c0_56] : memref<72x128xf32, #tpu.memory_space<vmem>>, vector<8x128xf32>
    tpu.vector_store %arg18[%c32, %c0_56], %60 {strides = array<i32>} : memref<72x128xf32, #tpu.memory_space<vmem>>, vector<8x128xf32>,
    %c127_i32 = arith.constant 127 : i32
    %70 = tpu.dynamic_rotate %60 by %c127_i32 dim 1 : vector<8x128xf32>, i32 -> vector<8x128xf32>
    %c40 = arith.constant 40 : index
    %c0_57 = arith.constant 0 : index
    %71 = vector.load %arg18[%c40, %c0_57] : memref<72x128xf32, #tpu.memory_space<vmem>>, vector<8x128xf32>
    tpu.vector_store %arg18[%c40, %c0_57], %70 {strides = array<i32>} : memref<72x128xf32, #tpu.memory_space<vmem>>, vector<8x128xf32>,
    %c119_i32 = arith.constant 119 : i32
    %72 = tpu.dynamic_rotate %60 by %c119_i32 dim 1 : vector<8x128xf32>, i32 -> vector<8x128xf32>
    %c48 = arith.constant 48 : index
    %c0_58 = arith.constant 0 : index
    %73 = vector.load %arg18[%c48, %c0_58] : memref<72x128xf32, #tpu.memory_space<vmem>>, vector<8x128xf32>
    tpu.vector_store %arg18[%c48, %c0_58], %72 {strides = array<i32>} : memref<72x128xf32, #tpu.memory_space<vmem>>, vector<8x128xf32>,
    %c118_i32 = arith.constant 118 : i32
    %74 = tpu.dynamic_rotate %60 by %c118_i32 dim 1 : vector<8x128xf32>, i32 -> vector<8x128xf32>
    %c56 = arith.constant 56 : index
    %c0_59 = arith.constant 0 : index
    %75 = vector.load %arg18[%c56, %c0_59] : memref<72x128xf32, #tpu.memory_space<vmem>>, vector<8x128xf32>
    tpu.vector_store %arg18[%c56, %c0_59], %74 {strides = array<i32>} : memref<72x128xf32, #tpu.memory_space<vmem>>, vector<8x128xf32>,
    %c117_i32 = arith.constant 117 : i32
    %76 = tpu.dynamic_rotate %60 by %c117_i32 dim 1 : vector<8x128xf32>, i32 -> vector<8x128xf32>
    %c64 = arith.constant 64 : index
    %c0_60 = arith.constant 0 : index
    %77 = vector.load %arg18[%c64, %c0_60] : memref<72x128xf32, #tpu.memory_space<vmem>>, vector<8x128xf32>
    tpu.vector_store %arg18[%c64, %c0_60], %76 {strides = array<i32>} : memref<72x128xf32, #tpu.memory_space<vmem>>, vector<8x128xf32>,
    %c0_61 = arith.constant 0 : index
    %c0_62 = arith.constant 0 : index
    %78 = vector.load %arg6[%c0_61, %c0_62] : memref<32x72xf32, #tpu.memory_space<vmem>>, vector<32x72xf32>
    %c0_63 = arith.constant 0 : index
    %c0_64 = arith.constant 0 : index
    %79 = vector.load %arg18[%c0_63, %c0_64] : memref<72x128xf32, #tpu.memory_space<vmem>>, vector<72x128xf32>
    %cst_65 = arith.constant dense<0.000000e+00> : vector<32x128xf32>
    %80 = tpu.matmul %78, %79, %cst_65 {dimension_numbers = #tpu.dot_dimension_numbers<[1], [0], [0], [1], [0, 0, 1, 1], [], []>} : vector<32x72xf32>, vector<72x128xf32>, vector<32x128xf32> -> vector<32x128xf32>
    %c0_66 = arith.constant 0 : index
    %c0_67 = arith.constant 0 : index
    %81 = vector.load %arg7[%c0_66, %c0_67] : memref<32x72xf32, #tpu.memory_space<vmem>>, vector<32x72xf32>
    %c0_68 = arith.constant 0 : index
    %c0_69 = arith.constant 0 : index
    %82 = vector.load %arg19[%c0_68, %c0_69] : memref<72x128xf32, #tpu.memory_space<vmem>>, vector<72x128xf32>
    %cst_70 = arith.constant dense<0.000000e+00> : vector<32x128xf32>
    %83 = tpu.matmul %81, %82, %cst_70 {dimension_numbers = #tpu.dot_dimension_numbers<[1], [0], [0], [1], [0, 0, 1, 1], [], []>} : vector<32x72xf32>, vector<72x128xf32>, vector<32x128xf32> -> vector<32x128xf32>
    %84 = arith.addf %80, %83 : vector<32x128xf32>
    %85 = arith.addf %84, %22 : vector<32x128xf32>
    %86 = vector.extract_strided_slice %85 {offsets = [0, 0], sizes = [24, 128], strides = [1, 1]} : vector<32x128xf32> to vector<24x128xf32>
    %87 = arith.negf %86 : vector<24x128xf32>
    %88 = math.exp %87 : vector<24x128xf32>
    %cst_71 = arith.constant 1.000000e+00 : f32
    %89 = vector.broadcast %cst_71 : f32 to vector<24x128xf32>
    %90 = arith.addf %89, %88 : vector<24x128xf32>
    %91 = arith.divf %89, %90 : vector<24x128xf32>
    %92 = vector.extract_strided_slice %85 {offsets = [24, 0], sizes = [8, 128], strides = [1, 1]} : vector<32x128xf32> to vector<8x128xf32>
    %93 = math.tanh %92 : vector<8x128xf32>
    %94 = vector.extract_strided_slice %91 {offsets = [0, 0], sizes = [8, 128], strides = [1, 1]} : vector<24x128xf32> to vector<8x128xf32>
    %95 = vector.extract_strided_slice %91 {offsets = [8, 0], sizes = [8, 128], strides = [1, 1]} : vector<24x128xf32> to vector<8x128xf32>
    %96 = vector.extract_strided_slice %91 {offsets = [16, 0], sizes = [8, 128], strides = [1, 1]} : vector<24x128xf32> to vector<8x128xf32>
    %c0_72 = arith.constant 0 : index
    %c0_73 = arith.constant 0 : index
    %97 = vector.load %arg23[%c0_72, %c0_73] : memref<8x128xf32, #tpu.memory_space<vmem>>, vector<8x128xf32>
    %98 = arith.mulf %95, %97 : vector<8x128xf32>
    %99 = arith.mulf %94, %93 : vector<8x128xf32>
    %100 = arith.addf %98, %99 : vector<8x128xf32>
    %c0_74 = arith.constant 0 : index
    %c0_75 = arith.constant 0 : index
    %101 = vector.load %arg23[%c0_74, %c0_75] : memref<8x128xf32, #tpu.memory_space<vmem>>, vector<8x128xf32>
    tpu.vector_store %arg23[%c0_74, %c0_75], %100 {strides = array<i32>} : memref<8x128xf32, #tpu.memory_space<vmem>>, vector<8x128xf32>,
    %102 = math.tanh %100 : vector<8x128xf32>
    %103 = arith.mulf %96, %102 : vector<8x128xf32>
    %104 = vector.broadcast %16 : vector<1x128xf32> to vector<8x128xf32>
    %105 = arith.mulf %104, %103 : vector<8x128xf32>
    %c11_i32_76 = arith.constant 11 : i32
    %106 = tpu.dynamic_rotate %105 by %c11_i32_76 dim 1 : vector<8x128xf32>, i32 -> vector<8x128xf32>
    %c0_77 = arith.constant 0 : index
    %c0_78 = arith.constant 0 : index
    %107 = vector.load %arg19[%c0_77, %c0_78] : memref<72x128xf32, #tpu.memory_space<vmem>>, vector<8x128xf32>
    tpu.vector_store %arg19[%c0_77, %c0_78], %106 {strides = array<i32>} : memref<72x128xf32, #tpu.memory_space<vmem>>, vector<8x128xf32>,
    %c10_i32_79 = arith.constant 10 : i32
    %108 = tpu.dynamic_rotate %105 by %c10_i32_79 dim 1 : vector<8x128xf32>, i32 -> vector<8x128xf32>
    %c8_80 = arith.constant 8 : index
    %c0_81 = arith.constant 0 : index
    %109 = vector.load %arg19[%c8_80, %c0_81] : memref<72x128xf32, #tpu.memory_space<vmem>>, vector<8x128xf32>
    tpu.vector_store %arg19[%c8_80, %c0_81], %108 {strides = array<i32>} : memref<72x128xf32, #tpu.memory_space<vmem>>, vector<8x128xf32>,
    %c9_i32_82 = arith.constant 9 : i32
    %110 = tpu.dynamic_rotate %105 by %c9_i32_82 dim 1 : vector<8x128xf32>, i32 -> vector<8x128xf32>
    %c16_83 = arith.constant 16 : index
    %c0_84 = arith.constant 0 : index
    %111 = vector.load %arg19[%c16_83, %c0_84] : memref<72x128xf32, #tpu.memory_space<vmem>>, vector<8x128xf32>
    tpu.vector_store %arg19[%c16_83, %c0_84], %110 {strides = array<i32>} : memref<72x128xf32, #tpu.memory_space<vmem>>, vector<8x128xf32>,
    %c1_i32_85 = arith.constant 1 : i32
    %112 = tpu.dynamic_rotate %105 by %c1_i32_85 dim 1 : vector<8x128xf32>, i32 -> vector<8x128xf32>
    %c24_86 = arith.constant 24 : index
    %c0_87 = arith.constant 0 : index
    %113 = vector.load %arg19[%c24_86, %c0_87] : memref<72x128xf32, #tpu.memory_space<vmem>>, vector<8x128xf32>
    tpu.vector_store %arg19[%c24_86, %c0_87], %112 {strides = array<i32>} : memref<72x128xf32, #tpu.memory_space<vmem>>, vector<8x128xf32>,
    %c32_88 = arith.constant 32 : index
    %c0_89 = arith.constant 0 : index
    %114 = vector.load %arg19[%c32_88, %c0_89] : memref<72x128xf32, #tpu.memory_space<vmem>>, vector<8x128xf32>
    tpu.vector_store %arg19[%c32_88, %c0_89], %105 {strides = array<i32>} : memref<72x128xf32, #tpu.memory_space<vmem>>, vector<8x128xf32>,
    %c127_i32_90 = arith.constant 127 : i32
    %115 = tpu.dynamic_rotate %105 by %c127_i32_90 dim 1 : vector<8x128xf32>, i32 -> vector<8x128xf32>
    %c40_91 = arith.constant 40 : index
    %c0_92 = arith.constant 0 : index
    %116 = vector.load %arg19[%c40_91, %c0_92] : memref<72x128xf32, #tpu.memory_space<vmem>>, vector<8x128xf32>
    tpu.vector_store %arg19[%c40_91, %c0_92], %115 {strides = array<i32>} : memref<72x128xf32, #tpu.memory_space<vmem>>, vector<8x128xf32>,
    %c119_i32_93 = arith.constant 119 : i32
    %117 = tpu.dynamic_rotate %105 by %c119_i32_93 dim 1 : vector<8x128xf32>, i32 -> vector<8x128xf32>
    %c48_94 = arith.constant 48 : index
    %c0_95 = arith.constant 0 : index
    %118 = vector.load %arg19[%c48_94, %c0_95] : memref<72x128xf32, #tpu.memory_space<vmem>>, vector<8x128xf32>
    tpu.vector_store %arg19[%c48_94, %c0_95], %117 {strides = array<i32>} : memref<72x128xf32, #tpu.memory_space<vmem>>, vector<8x128xf32>,
    %c118_i32_96 = arith.constant 118 : i32
    %119 = tpu.dynamic_rotate %105 by %c118_i32_96 dim 1 : vector<8x128xf32>, i32 -> vector<8x128xf32>
    %c56_97 = arith.constant 56 : index
    %c0_98 = arith.constant 0 : index
    %120 = vector.load %arg19[%c56_97, %c0_98] : memref<72x128xf32, #tpu.memory_space<vmem>>, vector<8x128xf32>
    tpu.vector_store %arg19[%c56_97, %c0_98], %119 {strides = array<i32>} : memref<72x128xf32, #tpu.memory_space<vmem>>, vector<8x128xf32>,
    %c117_i32_99 = arith.constant 117 : i32
    %121 = tpu.dynamic_rotate %105 by %c117_i32_99 dim 1 : vector<8x128xf32>, i32 -> vector<8x128xf32>
    %c64_100 = arith.constant 64 : index
    %c0_101 = arith.constant 0 : index
    %122 = vector.load %arg19[%c64_100, %c0_101] : memref<72x128xf32, #tpu.memory_space<vmem>>, vector<8x128xf32>
    tpu.vector_store %arg19[%c64_100, %c0_101], %121 {strides = array<i32>} : memref<72x128xf32, #tpu.memory_space<vmem>>, vector<8x128xf32>,
    %c0_102 = arith.constant 0 : index
    %c0_103 = arith.constant 0 : index
    %123 = vector.load %arg3[%c0_102, %c0_103] : memref<32x36xf32, #tpu.memory_space<vmem>>, vector<32x36xf32>
    %c0_104 = arith.constant 0 : index
    %c1 = arith.constant 1 : index
    %c0_105 = arith.constant 0 : index
    %c0_106 = arith.constant 0 : index
    %124 = vector.load %arg1[%c0_104, %c1, %c0_105, %c0_106] : memref<1x5x36x128xf32, #tpu.memory_space<vmem>>, vector<1x1x36x128xf32>
    %125 = vector.shape_cast %124 : vector<1x1x36x128xf32> to vector<36x128xf32>
    %cst_107 = arith.constant dense<0.000000e+00> : vector<32x128xf32>
    %126 = tpu.matmul %123, %125, %cst_107 {dimension_numbers = #tpu.dot_dimension_numbers<[1], [0], [0], [1], [0, 0, 1, 1], [], []>} : vector<32x36xf32>, vector<36x128xf32>, vector<32x128xf32> -> vector<32x128xf32>
    %c0_108 = arith.constant 0 : index
    %c0_109 = arith.constant 0 : index
    %127 = vector.load %arg4[%c0_108, %c0_109] : memref<32x72xf32, #tpu.memory_space<vmem>>, vector<32x72xf32>
    %c0_110 = arith.constant 0 : index
    %c0_111 = arith.constant 0 : index
    %128 = vector.load %arg18[%c0_110, %c0_111] : memref<72x128xf32, #tpu.memory_space<vmem>>, vector<72x128xf32>
    %cst_112 = arith.constant dense<0.000000e+00> : vector<32x128xf32>
    %129 = tpu.matmul %127, %128, %cst_112 {dimension_numbers = #tpu.dot_dimension_numbers<[1], [0], [0], [1], [0, 0, 1, 1], [], []>} : vector<32x72xf32>, vector<72x128xf32>, vector<32x128xf32> -> vector<32x128xf32>
    %130 = arith.addf %126, %129 : vector<32x128xf32>
    %131 = arith.addf %130, %19 : vector<32x128xf32>
    %132 = vector.extract_strided_slice %131 {offsets = [0, 0], sizes = [24, 128], strides = [1, 1]} : vector<32x128xf32> to vector<24x128xf32>
    %133 = arith.negf %132 : vector<24x128xf32>
    %134 = math.exp %133 : vector<24x128xf32>
    %cst_113 = arith.constant 1.000000e+00 : f32
    %135 = vector.broadcast %cst_113 : f32 to vector<24x128xf32>
    %136 = arith.addf %135, %134 : vector<24x128xf32>
    %137 = arith.divf %135, %136 : vector<24x128xf32>
    %138 = vector.extract_strided_slice %131 {offsets = [24, 0], sizes = [8, 128], strides = [1, 1]} : vector<32x128xf32> to vector<8x128xf32>
    %139 = math.tanh %138 : vector<8x128xf32>
    %140 = vector.extract_strided_slice %137 {offsets = [0, 0], sizes = [8, 128], strides = [1, 1]} : vector<24x128xf32> to vector<8x128xf32>
    %141 = vector.extract_strided_slice %137 {offsets = [8, 0], sizes = [8, 128], strides = [1, 1]} : vector<24x128xf32> to vector<8x128xf32>
    %142 = vector.extract_strided_slice %137 {offsets = [16, 0], sizes = [8, 128], strides = [1, 1]} : vector<24x128xf32> to vector<8x128xf32>
    %c0_114 = arith.constant 0 : index
    %c0_115 = arith.constant 0 : index
    %143 = vector.load %arg22[%c0_114, %c0_115] : memref<8x128xf32, #tpu.memory_space<vmem>>, vector<8x128xf32>
    %144 = arith.mulf %141, %143 : vector<8x128xf32>
    %145 = arith.mulf %140, %139 : vector<8x128xf32>
    %146 = arith.addf %144, %145 : vector<8x128xf32>
    %c0_116 = arith.constant 0 : index
    %c0_117 = arith.constant 0 : index
    %147 = vector.load %arg22[%c0_116, %c0_117] : memref<8x128xf32, #tpu.memory_space<vmem>>, vector<8x128xf32>
    tpu.vector_store %arg22[%c0_116, %c0_117], %146 {strides = array<i32>} : memref<8x128xf32, #tpu.memory_space<vmem>>, vector<8x128xf32>,
    %148 = math.tanh %146 : vector<8x128xf32>
    %149 = arith.mulf %142, %148 : vector<8x128xf32>
    %150 = vector.broadcast %16 : vector<1x128xf32> to vector<8x128xf32>
    %151 = arith.mulf %150, %149 : vector<8x128xf32>
    %c11_i32_118 = arith.constant 11 : i32
    %152 = tpu.dynamic_rotate %151 by %c11_i32_118 dim 1 : vector<8x128xf32>, i32 -> vector<8x128xf32>
    %c0_119 = arith.constant 0 : index
    %c0_120 = arith.constant 0 : index
    %153 = vector.load %arg18[%c0_119, %c0_120] : memref<72x128xf32, #tpu.memory_space<vmem>>, vector<8x128xf32>
    tpu.vector_store %arg18[%c0_119, %c0_120], %152 {strides = array<i32>} : memref<72x128xf32, #tpu.memory_space<vmem>>, vector<8x128xf32>,
    %c10_i32_121 = arith.constant 10 : i32
    %154 = tpu.dynamic_rotate %151 by %c10_i32_121 dim 1 : vector<8x128xf32>, i32 -> vector<8x128xf32>
    %c8_122 = arith.constant 8 : index
    %c0_123 = arith.constant 0 : index
    %155 = vector.load %arg18[%c8_122, %c0_123] : memref<72x128xf32, #tpu.memory_space<vmem>>, vector<8x128xf32>
    tpu.vector_store %arg18[%c8_122, %c0_123], %154 {strides = array<i32>} : memref<72x128xf32, #tpu.memory_space<vmem>>, vector<8x128xf32>,
    %c9_i32_124 = arith.constant 9 : i32
    %156 = tpu.dynamic_rotate %151 by %c9_i32_124 dim 1 : vector<8x128xf32>, i32 -> vector<8x128xf32>
    %c16_125 = arith.constant 16 : index
    %c0_126 = arith.constant 0 : index
    %157 = vector.load %arg18[%c16_125, %c0_126] : memref<72x128xf32, #tpu.memory_space<vmem>>, vector<8x128xf32>
    tpu.vector_store %arg18[%c16_125, %c0_126], %156 {strides = array<i32>} : memref<72x128xf32, #tpu.memory_space<vmem>>, vector<8x128xf32>,
    %c1_i32_127 = arith.constant 1 : i32
    %158 = tpu.dynamic_rotate %151 by %c1_i32_127 dim 1 : vector<8x128xf32>, i32 -> vector<8x128xf32>
    %c24_128 = arith.constant 24 : index
    %c0_129 = arith.constant 0 : index
    %159 = vector.load %arg18[%c24_128, %c0_129] : memref<72x128xf32, #tpu.memory_space<vmem>>, vector<8x128xf32>
    tpu.vector_store %arg18[%c24_128, %c0_129], %158 {strides = array<i32>} : memref<72x128xf32, #tpu.memory_space<vmem>>, vector<8x128xf32>,
    %c32_130 = arith.constant 32 : index
    %c0_131 = arith.constant 0 : index
    %160 = vector.load %arg18[%c32_130, %c0_131] : memref<72x128xf32, #tpu.memory_space<vmem>>, vector<8x128xf32>
    tpu.vector_store %arg18[%c32_130, %c0_131], %151 {strides = array<i32>} : memref<72x128xf32, #tpu.memory_space<vmem>>, vector<8x128xf32>,
    %c127_i32_132 = arith.constant 127 : i32
    %161 = tpu.dynamic_rotate %151 by %c127_i32_132 dim 1 : vector<8x128xf32>, i32 -> vector<8x128xf32>
    %c40_133 = arith.constant 40 : index
    %c0_134 = arith.constant 0 : index
    %162 = vector.load %arg18[%c40_133, %c0_134] : memref<72x128xf32, #tpu.memory_space<vmem>>, vector<8x128xf32>
    tpu.vector_store %arg18[%c40_133, %c0_134], %161 {strides = array<i32>} : memref<72x128xf32, #tpu.memory_space<vmem>>, vector<8x128xf32>,
    %c119_i32_135 = arith.constant 119 : i32
    %163 = tpu.dynamic_rotate %151 by %c119_i32_135 dim 1 : vector<8x128xf32>, i32 -> vector<8x128xf32>
    %c48_136 = arith.constant 48 : index
    %c0_137 = arith.constant 0 : index
    %164 = vector.load %arg18[%c48_136, %c0_137] : memref<72x128xf32, #tpu.memory_space<vmem>>, vector<8x128xf32>
    tpu.vector_store %arg18[%c48_136, %c0_137], %163 {strides = array<i32>} : memref<72x128xf32, #tpu.memory_space<vmem>>, vector<8x128xf32>,
    %c118_i32_138 = arith.constant 118 : i32
    %165 = tpu.dynamic_rotate %151 by %c118_i32_138 dim 1 : vector<8x128xf32>, i32 -> vector<8x128xf32>
    %c56_139 = arith.constant 56 : index
    %c0_140 = arith.constant 0 : index
    %166 = vector.load %arg18[%c56_139, %c0_140] : memref<72x128xf32, #tpu.memory_space<vmem>>, vector<8x128xf32>
    tpu.vector_store %arg18[%c56_139, %c0_140], %165 {strides = array<i32>} : memref<72x128xf32, #tpu.memory_space<vmem>>, vector<8x128xf32>,
    %c117_i32_141 = arith.constant 117 : i32
    %167 = tpu.dynamic_rotate %151 by %c117_i32_141 dim 1 : vector<8x128xf32>, i32 -> vector<8x128xf32>
    %c64_142 = arith.constant 64 : index
    %c0_143 = arith.constant 0 : index
    %168 = vector.load %arg18[%c64_142, %c0_143] : memref<72x128xf32, #tpu.memory_space<vmem>>, vector<8x128xf32>
    tpu.vector_store %arg18[%c64_142, %c0_143], %167 {strides = array<i32>} : memref<72x128xf32, #tpu.memory_space<vmem>>, vector<8x128xf32>,
    %c0_144 = arith.constant 0 : index
    %c0_145 = arith.constant 0 : index
    %169 = vector.load %arg6[%c0_144, %c0_145] : memref<32x72xf32, #tpu.memory_space<vmem>>, vector<32x72xf32>
    %c0_146 = arith.constant 0 : index
    %c0_147 = arith.constant 0 : index
    %170 = vector.load %arg18[%c0_146, %c0_147] : memref<72x128xf32, #tpu.memory_space<vmem>>, vector<72x128xf32>
    %cst_148 = arith.constant dense<0.000000e+00> : vector<32x128xf32>
    %171 = tpu.matmul %169, %170, %cst_148 {dimension_numbers = #tpu.dot_dimension_numbers<[1], [0], [0], [1], [0, 0, 1, 1], [], []>} : vector<32x72xf32>, vector<72x128xf32>, vector<32x128xf32> -> vector<32x128xf32>
    %c0_149 = arith.constant 0 : index
    %c0_150 = arith.constant 0 : index
    %172 = vector.load %arg7[%c0_149, %c0_150] : memref<32x72xf32, #tpu.memory_space<vmem>>, vector<32x72xf32>
    %c0_151 = arith.constant 0 : index
    %c0_152 = arith.constant 0 : index
    %173 = vector.load %arg19[%c0_151, %c0_152] : memref<72x128xf32, #tpu.memory_space<vmem>>, vector<72x128xf32>
    %cst_153 = arith.constant dense<0.000000e+00> : vector<32x128xf32>
    %174 = tpu.matmul %172, %173, %cst_153 {dimension_numbers = #tpu.dot_dimension_numbers<[1], [0], [0], [1], [0, 0, 1, 1], [], []>} : vector<32x72xf32>, vector<72x128xf32>, vector<32x128xf32> -> vector<32x128xf32>
    %175 = arith.addf %171, %174 : vector<32x128xf32>
    %176 = arith.addf %175, %22 : vector<32x128xf32>
    %177 = vector.extract_strided_slice %176 {offsets = [0, 0], sizes = [24, 128], strides = [1, 1]} : vector<32x128xf32> to vector<24x128xf32>
    %178 = arith.negf %177 : vector<24x128xf32>
    %179 = math.exp %178 : vector<24x128xf32>
    %cst_154 = arith.constant 1.000000e+00 : f32
    %180 = vector.broadcast %cst_154 : f32 to vector<24x128xf32>
    %181 = arith.addf %180, %179 : vector<24x128xf32>
    %182 = arith.divf %180, %181 : vector<24x128xf32>
    %183 = vector.extract_strided_slice %176 {offsets = [24, 0], sizes = [8, 128], strides = [1, 1]} : vector<32x128xf32> to vector<8x128xf32>
    %184 = math.tanh %183 : vector<8x128xf32>
    %185 = vector.extract_strided_slice %182 {offsets = [0, 0], sizes = [8, 128], strides = [1, 1]} : vector<24x128xf32> to vector<8x128xf32>
    %186 = vector.extract_strided_slice %182 {offsets = [8, 0], sizes = [8, 128], strides = [1, 1]} : vector<24x128xf32> to vector<8x128xf32>
    %187 = vector.extract_strided_slice %182 {offsets = [16, 0], sizes = [8, 128], strides = [1, 1]} : vector<24x128xf32> to vector<8x128xf32>
    %c0_155 = arith.constant 0 : index
    %c0_156 = arith.constant 0 : index
    %188 = vector.load %arg23[%c0_155, %c0_156] : memref<8x128xf32, #tpu.memory_space<vmem>>, vector<8x128xf32>
    %189 = arith.mulf %186, %188 : vector<8x128xf32>
    %190 = arith.mulf %185, %184 : vector<8x128xf32>
    %191 = arith.addf %189, %190 : vector<8x128xf32>
    %c0_157 = arith.constant 0 : index
    %c0_158 = arith.constant 0 : index
    %192 = vector.load %arg23[%c0_157, %c0_158] : memref<8x128xf32, #tpu.memory_space<vmem>>, vector<8x128xf32>
    tpu.vector_store %arg23[%c0_157, %c0_158], %191 {strides = array<i32>} : memref<8x128xf32, #tpu.memory_space<vmem>>, vector<8x128xf32>,
    %193 = math.tanh %191 : vector<8x128xf32>
    %194 = arith.mulf %187, %193 : vector<8x128xf32>
    %195 = vector.broadcast %16 : vector<1x128xf32> to vector<8x128xf32>
    %196 = arith.mulf %195, %194 : vector<8x128xf32>
    %c11_i32_159 = arith.constant 11 : i32
    %197 = tpu.dynamic_rotate %196 by %c11_i32_159 dim 1 : vector<8x128xf32>, i32 -> vector<8x128xf32>
    %c0_160 = arith.constant 0 : index
    %c0_161 = arith.constant 0 : index
    %198 = vector.load %arg19[%c0_160, %c0_161] : memref<72x128xf32, #tpu.memory_space<vmem>>, vector<8x128xf32>
    tpu.vector_store %arg19[%c0_160, %c0_161], %197 {strides = array<i32>} : memref<72x128xf32, #tpu.memory_space<vmem>>, vector<8x128xf32>,
    %c10_i32_162 = arith.constant 10 : i32
    %199 = tpu.dynamic_rotate %196 by %c10_i32_162 dim 1 : vector<8x128xf32>, i32 -> vector<8x128xf32>
    %c8_163 = arith.constant 8 : index
    %c0_164 = arith.constant 0 : index
    %200 = vector.load %arg19[%c8_163, %c0_164] : memref<72x128xf32, #tpu.memory_space<vmem>>, vector<8x128xf32>
    tpu.vector_store %arg19[%c8_163, %c0_164], %199 {strides = array<i32>} : memref<72x128xf32, #tpu.memory_space<vmem>>, vector<8x128xf32>,
    %c9_i32_165 = arith.constant 9 : i32
    %201 = tpu.dynamic_rotate %196 by %c9_i32_165 dim 1 : vector<8x128xf32>, i32 -> vector<8x128xf32>
    %c16_166 = arith.constant 16 : index
    %c0_167 = arith.constant 0 : index
    %202 = vector.load %arg19[%c16_166, %c0_167] : memref<72x128xf32, #tpu.memory_space<vmem>>, vector<8x128xf32>
    tpu.vector_store %arg19[%c16_166, %c0_167], %201 {strides = array<i32>} : memref<72x128xf32, #tpu.memory_space<vmem>>, vector<8x128xf32>,
    %c1_i32_168 = arith.constant 1 : i32
    %203 = tpu.dynamic_rotate %196 by %c1_i32_168 dim 1 : vector<8x128xf32>, i32 -> vector<8x128xf32>
    %c24_169 = arith.constant 24 : index
    %c0_170 = arith.constant 0 : index
    %204 = vector.load %arg19[%c24_169, %c0_170] : memref<72x128xf32, #tpu.memory_space<vmem>>, vector<8x128xf32>
    tpu.vector_store %arg19[%c24_169, %c0_170], %203 {strides = array<i32>} : memref<72x128xf32, #tpu.memory_space<vmem>>, vector<8x128xf32>,
    %c32_171 = arith.constant 32 : index
    %c0_172 = arith.constant 0 : index
    %205 = vector.load %arg19[%c32_171, %c0_172] : memref<72x128xf32, #tpu.memory_space<vmem>>, vector<8x128xf32>
    tpu.vector_store %arg19[%c32_171, %c0_172], %196 {strides = array<i32>} : memref<72x128xf32, #tpu.memory_space<vmem>>, vector<8x128xf32>,
    %c127_i32_173 = arith.constant 127 : i32
    %206 = tpu.dynamic_rotate %196 by %c127_i32_173 dim 1 : vector<8x128xf32>, i32 -> vector<8x128xf32>
    %c40_174 = arith.constant 40 : index
    %c0_175 = arith.constant 0 : index
    %207 = vector.load %arg19[%c40_174, %c0_175] : memref<72x128xf32, #tpu.memory_space<vmem>>, vector<8x128xf32>
    tpu.vector_store %arg19[%c40_174, %c0_175], %206 {strides = array<i32>} : memref<72x128xf32, #tpu.memory_space<vmem>>, vector<8x128xf32>,
    %c119_i32_176 = arith.constant 119 : i32
    %208 = tpu.dynamic_rotate %196 by %c119_i32_176 dim 1 : vector<8x128xf32>, i32 -> vector<8x128xf32>
    %c48_177 = arith.constant 48 : index
    %c0_178 = arith.constant 0 : index
    %209 = vector.load %arg19[%c48_177, %c0_178] : memref<72x128xf32, #tpu.memory_space<vmem>>, vector<8x128xf32>
    tpu.vector_store %arg19[%c48_177, %c0_178], %208 {strides = array<i32>} : memref<72x128xf32, #tpu.memory_space<vmem>>, vector<8x128xf32>,
    %c118_i32_179 = arith.constant 118 : i32
    %210 = tpu.dynamic_rotate %196 by %c118_i32_179 dim 1 : vector<8x128xf32>, i32 -> vector<8x128xf32>
    %c56_180 = arith.constant 56 : index
    %c0_181 = arith.constant 0 : index
    %211 = vector.load %arg19[%c56_180, %c0_181] : memref<72x128xf32, #tpu.memory_space<vmem>>, vector<8x128xf32>
    tpu.vector_store %arg19[%c56_180, %c0_181], %210 {strides = array<i32>} : memref<72x128xf32, #tpu.memory_space<vmem>>, vector<8x128xf32>,
    %c117_i32_182 = arith.constant 117 : i32
    %212 = tpu.dynamic_rotate %196 by %c117_i32_182 dim 1 : vector<8x128xf32>, i32 -> vector<8x128xf32>
    %c64_183 = arith.constant 64 : index
    %c0_184 = arith.constant 0 : index
    %213 = vector.load %arg19[%c64_183, %c0_184] : memref<72x128xf32, #tpu.memory_space<vmem>>, vector<8x128xf32>
    tpu.vector_store %arg19[%c64_183, %c0_184], %212 {strides = array<i32>} : memref<72x128xf32, #tpu.memory_space<vmem>>, vector<8x128xf32>,
    %c0_185 = arith.constant 0 : index
    %c0_186 = arith.constant 0 : index
    %214 = vector.load %arg3[%c0_185, %c0_186] : memref<32x36xf32, #tpu.memory_space<vmem>>, vector<32x36xf32>
    %c0_187 = arith.constant 0 : index
    %c2 = arith.constant 2 : index
    %c0_188 = arith.constant 0 : index
    %c0_189 = arith.constant 0 : index
    %215 = vector.load %arg1[%c0_187, %c2, %c0_188, %c0_189] : memref<1x5x36x128xf32, #tpu.memory_space<vmem>>, vector<1x1x36x128xf32>
    %216 = vector.shape_cast %215 : vector<1x1x36x128xf32> to vector<36x128xf32>
    %cst_190 = arith.constant dense<0.000000e+00> : vector<32x128xf32>
    %217 = tpu.matmul %214, %216, %cst_190 {dimension_numbers = #tpu.dot_dimension_numbers<[1], [0], [0], [1], [0, 0, 1, 1], [], []>} : vector<32x36xf32>, vector<36x128xf32>, vector<32x128xf32> -> vector<32x128xf32>
    %c0_191 = arith.constant 0 : index
    %c0_192 = arith.constant 0 : index
    %218 = vector.load %arg4[%c0_191, %c0_192] : memref<32x72xf32, #tpu.memory_space<vmem>>, vector<32x72xf32>
    %c0_193 = arith.constant 0 : index
    %c0_194 = arith.constant 0 : index
    %219 = vector.load %arg18[%c0_193, %c0_194] : memref<72x128xf32, #tpu.memory_space<vmem>>, vector<72x128xf32>
    %cst_195 = arith.constant dense<0.000000e+00> : vector<32x128xf32>
    %220 = tpu.matmul %218, %219, %cst_195 {dimension_numbers = #tpu.dot_dimension_numbers<[1], [0], [0], [1], [0, 0, 1, 1], [], []>} : vector<32x72xf32>, vector<72x128xf32>, vector<32x128xf32> -> vector<32x128xf32>
    %221 = arith.addf %217, %220 : vector<32x128xf32>
    %222 = arith.addf %221, %19 : vector<32x128xf32>
    %223 = vector.extract_strided_slice %222 {offsets = [0, 0], sizes = [24, 128], strides = [1, 1]} : vector<32x128xf32> to vector<24x128xf32>
    %224 = arith.negf %223 : vector<24x128xf32>
    %225 = math.exp %224 : vector<24x128xf32>
    %cst_196 = arith.constant 1.000000e+00 : f32
    %226 = vector.broadcast %cst_196 : f32 to vector<24x128xf32>
    %227 = arith.addf %226, %225 : vector<24x128xf32>
    %228 = arith.divf %226, %227 : vector<24x128xf32>
    %229 = vector.extract_strided_slice %222 {offsets = [24, 0], sizes = [8, 128], strides = [1, 1]} : vector<32x128xf32> to vector<8x128xf32>
    %230 = math.tanh %229 : vector<8x128xf32>
    %231 = vector.extract_strided_slice %228 {offsets = [0, 0], sizes = [8, 128], strides = [1, 1]} : vector<24x128xf32> to vector<8x128xf32>
    %232 = vector.extract_strided_slice %228 {offsets = [8, 0], sizes = [8, 128], strides = [1, 1]} : vector<24x128xf32> to vector<8x128xf32>
    %233 = vector.extract_strided_slice %228 {offsets = [16, 0], sizes = [8, 128], strides = [1, 1]} : vector<24x128xf32> to vector<8x128xf32>
    %c0_197 = arith.constant 0 : index
    %c0_198 = arith.constant 0 : index
    %234 = vector.load %arg22[%c0_197, %c0_198] : memref<8x128xf32, #tpu.memory_space<vmem>>, vector<8x128xf32>
    %235 = arith.mulf %232, %234 : vector<8x128xf32>
    %236 = arith.mulf %231, %230 : vector<8x128xf32>
    %237 = arith.addf %235, %236 : vector<8x128xf32>
    %c0_199 = arith.constant 0 : index
    %c0_200 = arith.constant 0 : index
    %238 = vector.load %arg22[%c0_199, %c0_200] : memref<8x128xf32, #tpu.memory_space<vmem>>, vector<8x128xf32>
    tpu.vector_store %arg22[%c0_199, %c0_200], %237 {strides = array<i32>} : memref<8x128xf32, #tpu.memory_space<vmem>>, vector<8x128xf32>,
    %239 = math.tanh %237 : vector<8x128xf32>
    %240 = arith.mulf %233, %239 : vector<8x128xf32>
    %241 = vector.broadcast %16 : vector<1x128xf32> to vector<8x128xf32>
    %242 = arith.mulf %241, %240 : vector<8x128xf32>
    %c11_i32_201 = arith.constant 11 : i32
    %243 = tpu.dynamic_rotate %242 by %c11_i32_201 dim 1 : vector<8x128xf32>, i32 -> vector<8x128xf32>
    %c0_202 = arith.constant 0 : index
    %c0_203 = arith.constant 0 : index
    %244 = vector.load %arg18[%c0_202, %c0_203] : memref<72x128xf32, #tpu.memory_space<vmem>>, vector<8x128xf32>
    tpu.vector_store %arg18[%c0_202, %c0_203], %243 {strides = array<i32>} : memref<72x128xf32, #tpu.memory_space<vmem>>, vector<8x128xf32>,
    %c10_i32_204 = arith.constant 10 : i32
    %245 = tpu.dynamic_rotate %242 by %c10_i32_204 dim 1 : vector<8x128xf32>, i32 -> vector<8x128xf32>
    %c8_205 = arith.constant 8 : index
    %c0_206 = arith.constant 0 : index
    %246 = vector.load %arg18[%c8_205, %c0_206] : memref<72x128xf32, #tpu.memory_space<vmem>>, vector<8x128xf32>
    tpu.vector_store %arg18[%c8_205, %c0_206], %245 {strides = array<i32>} : memref<72x128xf32, #tpu.memory_space<vmem>>, vector<8x128xf32>,
    %c9_i32_207 = arith.constant 9 : i32
    %247 = tpu.dynamic_rotate %242 by %c9_i32_207 dim 1 : vector<8x128xf32>, i32 -> vector<8x128xf32>
    %c16_208 = arith.constant 16 : index
    %c0_209 = arith.constant 0 : index
    %248 = vector.load %arg18[%c16_208, %c0_209] : memref<72x128xf32, #tpu.memory_space<vmem>>, vector<8x128xf32>
    tpu.vector_store %arg18[%c16_208, %c0_209], %247 {strides = array<i32>} : memref<72x128xf32, #tpu.memory_space<vmem>>, vector<8x128xf32>,
    %c1_i32_210 = arith.constant 1 : i32
    %249 = tpu.dynamic_rotate %242 by %c1_i32_210 dim 1 : vector<8x128xf32>, i32 -> vector<8x128xf32>
    %c24_211 = arith.constant 24 : index
    %c0_212 = arith.constant 0 : index
    %250 = vector.load %arg18[%c24_211, %c0_212] : memref<72x128xf32, #tpu.memory_space<vmem>>, vector<8x128xf32>
    tpu.vector_store %arg18[%c24_211, %c0_212], %249 {strides = array<i32>} : memref<72x128xf32, #tpu.memory_space<vmem>>, vector<8x128xf32>,
    %c32_213 = arith.constant 32 : index
    %c0_214 = arith.constant 0 : index
    %251 = vector.load %arg18[%c32_213, %c0_214] : memref<72x128xf32, #tpu.memory_space<vmem>>, vector<8x128xf32>
    tpu.vector_store %arg18[%c32_213, %c0_214], %242 {strides = array<i32>} : memref<72x128xf32, #tpu.memory_space<vmem>>, vector<8x128xf32>,
    %c127_i32_215 = arith.constant 127 : i32
    %252 = tpu.dynamic_rotate %242 by %c127_i32_215 dim 1 : vector<8x128xf32>, i32 -> vector<8x128xf32>
    %c40_216 = arith.constant 40 : index
    %c0_217 = arith.constant 0 : index
    %253 = vector.load %arg18[%c40_216, %c0_217] : memref<72x128xf32, #tpu.memory_space<vmem>>, vector<8x128xf32>
    tpu.vector_store %arg18[%c40_216, %c0_217], %252 {strides = array<i32>} : memref<72x128xf32, #tpu.memory_space<vmem>>, vector<8x128xf32>,
    %c119_i32_218 = arith.constant 119 : i32
    %254 = tpu.dynamic_rotate %242 by %c119_i32_218 dim 1 : vector<8x128xf32>, i32 -> vector<8x128xf32>
    %c48_219 = arith.constant 48 : index
    %c0_220 = arith.constant 0 : index
    %255 = vector.load %arg18[%c48_219, %c0_220] : memref<72x128xf32, #tpu.memory_space<vmem>>, vector<8x128xf32>
    tpu.vector_store %arg18[%c48_219, %c0_220], %254 {strides = array<i32>} : memref<72x128xf32, #tpu.memory_space<vmem>>, vector<8x128xf32>,
    %c118_i32_221 = arith.constant 118 : i32
    %256 = tpu.dynamic_rotate %242 by %c118_i32_221 dim 1 : vector<8x128xf32>, i32 -> vector<8x128xf32>
    %c56_222 = arith.constant 56 : index
    %c0_223 = arith.constant 0 : index
    %257 = vector.load %arg18[%c56_222, %c0_223] : memref<72x128xf32, #tpu.memory_space<vmem>>, vector<8x128xf32>
    tpu.vector_store %arg18[%c56_222, %c0_223], %256 {strides = array<i32>} : memref<72x128xf32, #tpu.memory_space<vmem>>, vector<8x128xf32>,
    %c117_i32_224 = arith.constant 117 : i32
    %258 = tpu.dynamic_rotate %242 by %c117_i32_224 dim 1 : vector<8x128xf32>, i32 -> vector<8x128xf32>
    %c64_225 = arith.constant 64 : index
    %c0_226 = arith.constant 0 : index
    %259 = vector.load %arg18[%c64_225, %c0_226] : memref<72x128xf32, #tpu.memory_space<vmem>>, vector<8x128xf32>
    tpu.vector_store %arg18[%c64_225, %c0_226], %258 {strides = array<i32>} : memref<72x128xf32, #tpu.memory_space<vmem>>, vector<8x128xf32>,
    %c0_227 = arith.constant 0 : index
    %c0_228 = arith.constant 0 : index
    %260 = vector.load %arg6[%c0_227, %c0_228] : memref<32x72xf32, #tpu.memory_space<vmem>>, vector<32x72xf32>
    %c0_229 = arith.constant 0 : index
    %c0_230 = arith.constant 0 : index
    %261 = vector.load %arg18[%c0_229, %c0_230] : memref<72x128xf32, #tpu.memory_space<vmem>>, vector<72x128xf32>
    %cst_231 = arith.constant dense<0.000000e+00> : vector<32x128xf32>
    %262 = tpu.matmul %260, %261, %cst_231 {dimension_numbers = #tpu.dot_dimension_numbers<[1], [0], [0], [1], [0, 0, 1, 1], [], []>} : vector<32x72xf32>, vector<72x128xf32>, vector<32x128xf32> -> vector<32x128xf32>
    %c0_232 = arith.constant 0 : index
    %c0_233 = arith.constant 0 : index
    %263 = vector.load %arg7[%c0_232, %c0_233] : memref<32x72xf32, #tpu.memory_space<vmem>>, vector<32x72xf32>
    %c0_234 = arith.constant 0 : index
    %c0_235 = arith.constant 0 : index
    %264 = vector.load %arg19[%c0_234, %c0_235] : memref<72x128xf32, #tpu.memory_space<vmem>>, vector<72x128xf32>
    %cst_236 = arith.constant dense<0.000000e+00> : vector<32x128xf32>
    %265 = tpu.matmul %263, %264, %cst_236 {dimension_numbers = #tpu.dot_dimension_numbers<[1], [0], [0], [1], [0, 0, 1, 1], [], []>} : vector<32x72xf32>, vector<72x128xf32>, vector<32x128xf32> -> vector<32x128xf32>
    %266 = arith.addf %262, %265 : vector<32x128xf32>
    %267 = arith.addf %266, %22 : vector<32x128xf32>
    %268 = vector.extract_strided_slice %267 {offsets = [0, 0], sizes = [24, 128], strides = [1, 1]} : vector<32x128xf32> to vector<24x128xf32>
    %269 = arith.negf %268 : vector<24x128xf32>
    %270 = math.exp %269 : vector<24x128xf32>
    %cst_237 = arith.constant 1.000000e+00 : f32
    %271 = vector.broadcast %cst_237 : f32 to vector<24x128xf32>
    %272 = arith.addf %271, %270 : vector<24x128xf32>
    %273 = arith.divf %271, %272 : vector<24x128xf32>
    %274 = vector.extract_strided_slice %267 {offsets = [24, 0], sizes = [8, 128], strides = [1, 1]} : vector<32x128xf32> to vector<8x128xf32>
    %275 = math.tanh %274 : vector<8x128xf32>
    %276 = vector.extract_strided_slice %273 {offsets = [0, 0], sizes = [8, 128], strides = [1, 1]} : vector<24x128xf32> to vector<8x128xf32>
    %277 = vector.extract_strided_slice %273 {offsets = [8, 0], sizes = [8, 128], strides = [1, 1]} : vector<24x128xf32> to vector<8x128xf32>
    %278 = vector.extract_strided_slice %273 {offsets = [16, 0], sizes = [8, 128], strides = [1, 1]} : vector<24x128xf32> to vector<8x128xf32>
    %c0_238 = arith.constant 0 : index
    %c0_239 = arith.constant 0 : index
    %279 = vector.load %arg23[%c0_238, %c0_239] : memref<8x128xf32, #tpu.memory_space<vmem>>, vector<8x128xf32>
    %280 = arith.mulf %277, %279 : vector<8x128xf32>
    %281 = arith.mulf %276, %275 : vector<8x128xf32>
    %282 = arith.addf %280, %281 : vector<8x128xf32>
    %c0_240 = arith.constant 0 : index
    %c0_241 = arith.constant 0 : index
    %283 = vector.load %arg23[%c0_240, %c0_241] : memref<8x128xf32, #tpu.memory_space<vmem>>, vector<8x128xf32>
    tpu.vector_store %arg23[%c0_240, %c0_241], %282 {strides = array<i32>} : memref<8x128xf32, #tpu.memory_space<vmem>>, vector<8x128xf32>,
    %284 = math.tanh %282 : vector<8x128xf32>
    %285 = arith.mulf %278, %284 : vector<8x128xf32>
    %286 = vector.broadcast %16 : vector<1x128xf32> to vector<8x128xf32>
    %287 = arith.mulf %286, %285 : vector<8x128xf32>
    %c11_i32_242 = arith.constant 11 : i32
    %288 = tpu.dynamic_rotate %287 by %c11_i32_242 dim 1 : vector<8x128xf32>, i32 -> vector<8x128xf32>
    %c0_243 = arith.constant 0 : index
    %c0_244 = arith.constant 0 : index
    %289 = vector.load %arg19[%c0_243, %c0_244] : memref<72x128xf32, #tpu.memory_space<vmem>>, vector<8x128xf32>
    tpu.vector_store %arg19[%c0_243, %c0_244], %288 {strides = array<i32>} : memref<72x128xf32, #tpu.memory_space<vmem>>, vector<8x128xf32>,
    %c10_i32_245 = arith.constant 10 : i32
    %290 = tpu.dynamic_rotate %287 by %c10_i32_245 dim 1 : vector<8x128xf32>, i32 -> vector<8x128xf32>
    %c8_246 = arith.constant 8 : index
    %c0_247 = arith.constant 0 : index
    %291 = vector.load %arg19[%c8_246, %c0_247] : memref<72x128xf32, #tpu.memory_space<vmem>>, vector<8x128xf32>
    tpu.vector_store %arg19[%c8_246, %c0_247], %290 {strides = array<i32>} : memref<72x128xf32, #tpu.memory_space<vmem>>, vector<8x128xf32>,
    %c9_i32_248 = arith.constant 9 : i32
    %292 = tpu.dynamic_rotate %287 by %c9_i32_248 dim 1 : vector<8x128xf32>, i32 -> vector<8x128xf32>
    %c16_249 = arith.constant 16 : index
    %c0_250 = arith.constant 0 : index
    %293 = vector.load %arg19[%c16_249, %c0_250] : memref<72x128xf32, #tpu.memory_space<vmem>>, vector<8x128xf32>
    tpu.vector_store %arg19[%c16_249, %c0_250], %292 {strides = array<i32>} : memref<72x128xf32, #tpu.memory_space<vmem>>, vector<8x128xf32>,
    %c1_i32_251 = arith.constant 1 : i32
    %294 = tpu.dynamic_rotate %287 by %c1_i32_251 dim 1 : vector<8x128xf32>, i32 -> vector<8x128xf32>
    %c24_252 = arith.constant 24 : index
    %c0_253 = arith.constant 0 : index
    %295 = vector.load %arg19[%c24_252, %c0_253] : memref<72x128xf32, #tpu.memory_space<vmem>>, vector<8x128xf32>
    tpu.vector_store %arg19[%c24_252, %c0_253], %294 {strides = array<i32>} : memref<72x128xf32, #tpu.memory_space<vmem>>, vector<8x128xf32>,
    %c32_254 = arith.constant 32 : index
    %c0_255 = arith.constant 0 : index
    %296 = vector.load %arg19[%c32_254, %c0_255] : memref<72x128xf32, #tpu.memory_space<vmem>>, vector<8x128xf32>
    tpu.vector_store %arg19[%c32_254, %c0_255], %287 {strides = array<i32>} : memref<72x128xf32, #tpu.memory_space<vmem>>, vector<8x128xf32>,
    %c127_i32_256 = arith.constant 127 : i32
    %297 = tpu.dynamic_rotate %287 by %c127_i32_256 dim 1 : vector<8x128xf32>, i32 -> vector<8x128xf32>
    %c40_257 = arith.constant 40 : index
    %c0_258 = arith.constant 0 : index
    %298 = vector.load %arg19[%c40_257, %c0_258] : memref<72x128xf32, #tpu.memory_space<vmem>>, vector<8x128xf32>
    tpu.vector_store %arg19[%c40_257, %c0_258], %297 {strides = array<i32>} : memref<72x128xf32, #tpu.memory_space<vmem>>, vector<8x128xf32>,
    %c119_i32_259 = arith.constant 119 : i32
    %299 = tpu.dynamic_rotate %287 by %c119_i32_259 dim 1 : vector<8x128xf32>, i32 -> vector<8x128xf32>
    %c48_260 = arith.constant 48 : index
    %c0_261 = arith.constant 0 : index
    %300 = vector.load %arg19[%c48_260, %c0_261] : memref<72x128xf32, #tpu.memory_space<vmem>>, vector<8x128xf32>
    tpu.vector_store %arg19[%c48_260, %c0_261], %299 {strides = array<i32>} : memref<72x128xf32, #tpu.memory_space<vmem>>, vector<8x128xf32>,
    %c118_i32_262 = arith.constant 118 : i32
    %301 = tpu.dynamic_rotate %287 by %c118_i32_262 dim 1 : vector<8x128xf32>, i32 -> vector<8x128xf32>
    %c56_263 = arith.constant 56 : index
    %c0_264 = arith.constant 0 : index
    %302 = vector.load %arg19[%c56_263, %c0_264] : memref<72x128xf32, #tpu.memory_space<vmem>>, vector<8x128xf32>
    tpu.vector_store %arg19[%c56_263, %c0_264], %301 {strides = array<i32>} : memref<72x128xf32, #tpu.memory_space<vmem>>, vector<8x128xf32>,
    %c117_i32_265 = arith.constant 117 : i32
    %303 = tpu.dynamic_rotate %287 by %c117_i32_265 dim 1 : vector<8x128xf32>, i32 -> vector<8x128xf32>
    %c64_266 = arith.constant 64 : index
    %c0_267 = arith.constant 0 : index
    %304 = vector.load %arg19[%c64_266, %c0_267] : memref<72x128xf32, #tpu.memory_space<vmem>>, vector<8x128xf32>
    tpu.vector_store %arg19[%c64_266, %c0_267], %303 {strides = array<i32>} : memref<72x128xf32, #tpu.memory_space<vmem>>, vector<8x128xf32>,
    %c0_268 = arith.constant 0 : index
    %c0_269 = arith.constant 0 : index
    %305 = vector.load %arg3[%c0_268, %c0_269] : memref<32x36xf32, #tpu.memory_space<vmem>>, vector<32x36xf32>
    %c0_270 = arith.constant 0 : index
    %c3 = arith.constant 3 : index
    %c0_271 = arith.constant 0 : index
    %c0_272 = arith.constant 0 : index
    %306 = vector.load %arg1[%c0_270, %c3, %c0_271, %c0_272] : memref<1x5x36x128xf32, #tpu.memory_space<vmem>>, vector<1x1x36x128xf32>
    %307 = vector.shape_cast %306 : vector<1x1x36x128xf32> to vector<36x128xf32>
    %cst_273 = arith.constant dense<0.000000e+00> : vector<32x128xf32>
    %308 = tpu.matmul %305, %307, %cst_273 {dimension_numbers = #tpu.dot_dimension_numbers<[1], [0], [0], [1], [0, 0, 1, 1], [], []>} : vector<32x36xf32>, vector<36x128xf32>, vector<32x128xf32> -> vector<32x128xf32>
    %c0_274 = arith.constant 0 : index
    %c0_275 = arith.constant 0 : index
    %309 = vector.load %arg4[%c0_274, %c0_275] : memref<32x72xf32, #tpu.memory_space<vmem>>, vector<32x72xf32>
    %c0_276 = arith.constant 0 : index
    %c0_277 = arith.constant 0 : index
    %310 = vector.load %arg18[%c0_276, %c0_277] : memref<72x128xf32, #tpu.memory_space<vmem>>, vector<72x128xf32>
    %cst_278 = arith.constant dense<0.000000e+00> : vector<32x128xf32>
    %311 = tpu.matmul %309, %310, %cst_278 {dimension_numbers = #tpu.dot_dimension_numbers<[1], [0], [0], [1], [0, 0, 1, 1], [], []>} : vector<32x72xf32>, vector<72x128xf32>, vector<32x128xf32> -> vector<32x128xf32>
    %312 = arith.addf %308, %311 : vector<32x128xf32>
    %313 = arith.addf %312, %19 : vector<32x128xf32>
    %314 = vector.extract_strided_slice %313 {offsets = [0, 0], sizes = [24, 128], strides = [1, 1]} : vector<32x128xf32> to vector<24x128xf32>
    %315 = arith.negf %314 : vector<24x128xf32>
    %316 = math.exp %315 : vector<24x128xf32>
    %cst_279 = arith.constant 1.000000e+00 : f32
    %317 = vector.broadcast %cst_279 : f32 to vector<24x128xf32>
    %318 = arith.addf %317, %316 : vector<24x128xf32>
    %319 = arith.divf %317, %318 : vector<24x128xf32>
    %320 = vector.extract_strided_slice %313 {offsets = [24, 0], sizes = [8, 128], strides = [1, 1]} : vector<32x128xf32> to vector<8x128xf32>
    %321 = math.tanh %320 : vector<8x128xf32>
    %322 = vector.extract_strided_slice %319 {offsets = [0, 0], sizes = [8, 128], strides = [1, 1]} : vector<24x128xf32> to vector<8x128xf32>
    %323 = vector.extract_strided_slice %319 {offsets = [8, 0], sizes = [8, 128], strides = [1, 1]} : vector<24x128xf32> to vector<8x128xf32>
    %324 = vector.extract_strided_slice %319 {offsets = [16, 0], sizes = [8, 128], strides = [1, 1]} : vector<24x128xf32> to vector<8x128xf32>
    %c0_280 = arith.constant 0 : index
    %c0_281 = arith.constant 0 : index
    %325 = vector.load %arg22[%c0_280, %c0_281] : memref<8x128xf32, #tpu.memory_space<vmem>>, vector<8x128xf32>
    %326 = arith.mulf %323, %325 : vector<8x128xf32>
    %327 = arith.mulf %322, %321 : vector<8x128xf32>
    %328 = arith.addf %326, %327 : vector<8x128xf32>
    %c0_282 = arith.constant 0 : index
    %c0_283 = arith.constant 0 : index
    %329 = vector.load %arg22[%c0_282, %c0_283] : memref<8x128xf32, #tpu.memory_space<vmem>>, vector<8x128xf32>
    tpu.vector_store %arg22[%c0_282, %c0_283], %328 {strides = array<i32>} : memref<8x128xf32, #tpu.memory_space<vmem>>, vector<8x128xf32>,
    %330 = math.tanh %328 : vector<8x128xf32>
    %331 = arith.mulf %324, %330 : vector<8x128xf32>
    %332 = vector.broadcast %16 : vector<1x128xf32> to vector<8x128xf32>
    %333 = arith.mulf %332, %331 : vector<8x128xf32>
    %c11_i32_284 = arith.constant 11 : i32
    %334 = tpu.dynamic_rotate %333 by %c11_i32_284 dim 1 : vector<8x128xf32>, i32 -> vector<8x128xf32>
    %c0_285 = arith.constant 0 : index
    %c0_286 = arith.constant 0 : index
    %335 = vector.load %arg18[%c0_285, %c0_286] : memref<72x128xf32, #tpu.memory_space<vmem>>, vector<8x128xf32>
    tpu.vector_store %arg18[%c0_285, %c0_286], %334 {strides = array<i32>} : memref<72x128xf32, #tpu.memory_space<vmem>>, vector<8x128xf32>,
    %c10_i32_287 = arith.constant 10 : i32
    %336 = tpu.dynamic_rotate %333 by %c10_i32_287 dim 1 : vector<8x128xf32>, i32 -> vector<8x128xf32>
    %c8_288 = arith.constant 8 : index
    %c0_289 = arith.constant 0 : index
    %337 = vector.load %arg18[%c8_288, %c0_289] : memref<72x128xf32, #tpu.memory_space<vmem>>, vector<8x128xf32>
    tpu.vector_store %arg18[%c8_288, %c0_289], %336 {strides = array<i32>} : memref<72x128xf32, #tpu.memory_space<vmem>>, vector<8x128xf32>,
    %c9_i32_290 = arith.constant 9 : i32
    %338 = tpu.dynamic_rotate %333 by %c9_i32_290 dim 1 : vector<8x128xf32>, i32 -> vector<8x128xf32>
    %c16_291 = arith.constant 16 : index
    %c0_292 = arith.constant 0 : index
    %339 = vector.load %arg18[%c16_291, %c0_292] : memref<72x128xf32, #tpu.memory_space<vmem>>, vector<8x128xf32>
    tpu.vector_store %arg18[%c16_291, %c0_292], %338 {strides = array<i32>} : memref<72x128xf32, #tpu.memory_space<vmem>>, vector<8x128xf32>,
    %c1_i32_293 = arith.constant 1 : i32
    %340 = tpu.dynamic_rotate %333 by %c1_i32_293 dim 1 : vector<8x128xf32>, i32 -> vector<8x128xf32>
    %c24_294 = arith.constant 24 : index
    %c0_295 = arith.constant 0 : index
    %341 = vector.load %arg18[%c24_294, %c0_295] : memref<72x128xf32, #tpu.memory_space<vmem>>, vector<8x128xf32>
    tpu.vector_store %arg18[%c24_294, %c0_295], %340 {strides = array<i32>} : memref<72x128xf32, #tpu.memory_space<vmem>>, vector<8x128xf32>,
    %c32_296 = arith.constant 32 : index
    %c0_297 = arith.constant 0 : index
    %342 = vector.load %arg18[%c32_296, %c0_297] : memref<72x128xf32, #tpu.memory_space<vmem>>, vector<8x128xf32>
    tpu.vector_store %arg18[%c32_296, %c0_297], %333 {strides = array<i32>} : memref<72x128xf32, #tpu.memory_space<vmem>>, vector<8x128xf32>,
    %c127_i32_298 = arith.constant 127 : i32
    %343 = tpu.dynamic_rotate %333 by %c127_i32_298 dim 1 : vector<8x128xf32>, i32 -> vector<8x128xf32>
    %c40_299 = arith.constant 40 : index
    %c0_300 = arith.constant 0 : index
    %344 = vector.load %arg18[%c40_299, %c0_300] : memref<72x128xf32, #tpu.memory_space<vmem>>, vector<8x128xf32>
    tpu.vector_store %arg18[%c40_299, %c0_300], %343 {strides = array<i32>} : memref<72x128xf32, #tpu.memory_space<vmem>>, vector<8x128xf32>,
    %c119_i32_301 = arith.constant 119 : i32
    %345 = tpu.dynamic_rotate %333 by %c119_i32_301 dim 1 : vector<8x128xf32>, i32 -> vector<8x128xf32>
    %c48_302 = arith.constant 48 : index
    %c0_303 = arith.constant 0 : index
    %346 = vector.load %arg18[%c48_302, %c0_303] : memref<72x128xf32, #tpu.memory_space<vmem>>, vector<8x128xf32>
    tpu.vector_store %arg18[%c48_302, %c0_303], %345 {strides = array<i32>} : memref<72x128xf32, #tpu.memory_space<vmem>>, vector<8x128xf32>,
    %c118_i32_304 = arith.constant 118 : i32
    %347 = tpu.dynamic_rotate %333 by %c118_i32_304 dim 1 : vector<8x128xf32>, i32 -> vector<8x128xf32>
    %c56_305 = arith.constant 56 : index
    %c0_306 = arith.constant 0 : index
    %348 = vector.load %arg18[%c56_305, %c0_306] : memref<72x128xf32, #tpu.memory_space<vmem>>, vector<8x128xf32>
    tpu.vector_store %arg18[%c56_305, %c0_306], %347 {strides = array<i32>} : memref<72x128xf32, #tpu.memory_space<vmem>>, vector<8x128xf32>,
    %c117_i32_307 = arith.constant 117 : i32
    %349 = tpu.dynamic_rotate %333 by %c117_i32_307 dim 1 : vector<8x128xf32>, i32 -> vector<8x128xf32>
    %c64_308 = arith.constant 64 : index
    %c0_309 = arith.constant 0 : index
    %350 = vector.load %arg18[%c64_308, %c0_309] : memref<72x128xf32, #tpu.memory_space<vmem>>, vector<8x128xf32>
    tpu.vector_store %arg18[%c64_308, %c0_309], %349 {strides = array<i32>} : memref<72x128xf32, #tpu.memory_space<vmem>>, vector<8x128xf32>,
    %c0_310 = arith.constant 0 : index
    %c0_311 = arith.constant 0 : index
    %351 = vector.load %arg6[%c0_310, %c0_311] : memref<32x72xf32, #tpu.memory_space<vmem>>, vector<32x72xf32>
    %c0_312 = arith.constant 0 : index
    %c0_313 = arith.constant 0 : index
    %352 = vector.load %arg18[%c0_312, %c0_313] : memref<72x128xf32, #tpu.memory_space<vmem>>, vector<72x128xf32>
    %cst_314 = arith.constant dense<0.000000e+00> : vector<32x128xf32>
    %353 = tpu.matmul %351, %352, %cst_314 {dimension_numbers = #tpu.dot_dimension_numbers<[1], [0], [0], [1], [0, 0, 1, 1], [], []>} : vector<32x72xf32>, vector<72x128xf32>, vector<32x128xf32> -> vector<32x128xf32>
    %c0_315 = arith.constant 0 : index
    %c0_316 = arith.constant 0 : index
    %354 = vector.load %arg7[%c0_315, %c0_316] : memref<32x72xf32, #tpu.memory_space<vmem>>, vector<32x72xf32>
    %c0_317 = arith.constant 0 : index
    %c0_318 = arith.constant 0 : index
    %355 = vector.load %arg19[%c0_317, %c0_318] : memref<72x128xf32, #tpu.memory_space<vmem>>, vector<72x128xf32>
    %cst_319 = arith.constant dense<0.000000e+00> : vector<32x128xf32>
    %356 = tpu.matmul %354, %355, %cst_319 {dimension_numbers = #tpu.dot_dimension_numbers<[1], [0], [0], [1], [0, 0, 1, 1], [], []>} : vector<32x72xf32>, vector<72x128xf32>, vector<32x128xf32> -> vector<32x128xf32>
    %357 = arith.addf %353, %356 : vector<32x128xf32>
    %358 = arith.addf %357, %22 : vector<32x128xf32>
    %359 = vector.extract_strided_slice %358 {offsets = [0, 0], sizes = [24, 128], strides = [1, 1]} : vector<32x128xf32> to vector<24x128xf32>
    %360 = arith.negf %359 : vector<24x128xf32>
    %361 = math.exp %360 : vector<24x128xf32>
    %cst_320 = arith.constant 1.000000e+00 : f32
    %362 = vector.broadcast %cst_320 : f32 to vector<24x128xf32>
    %363 = arith.addf %362, %361 : vector<24x128xf32>
    %364 = arith.divf %362, %363 : vector<24x128xf32>
    %365 = vector.extract_strided_slice %358 {offsets = [24, 0], sizes = [8, 128], strides = [1, 1]} : vector<32x128xf32> to vector<8x128xf32>
    %366 = math.tanh %365 : vector<8x128xf32>
    %367 = vector.extract_strided_slice %364 {offsets = [0, 0], sizes = [8, 128], strides = [1, 1]} : vector<24x128xf32> to vector<8x128xf32>
    %368 = vector.extract_strided_slice %364 {offsets = [8, 0], sizes = [8, 128], strides = [1, 1]} : vector<24x128xf32> to vector<8x128xf32>
    %369 = vector.extract_strided_slice %364 {offsets = [16, 0], sizes = [8, 128], strides = [1, 1]} : vector<24x128xf32> to vector<8x128xf32>
    %c0_321 = arith.constant 0 : index
    %c0_322 = arith.constant 0 : index
    %370 = vector.load %arg23[%c0_321, %c0_322] : memref<8x128xf32, #tpu.memory_space<vmem>>, vector<8x128xf32>
    %371 = arith.mulf %368, %370 : vector<8x128xf32>
    %372 = arith.mulf %367, %366 : vector<8x128xf32>
    %373 = arith.addf %371, %372 : vector<8x128xf32>
    %c0_323 = arith.constant 0 : index
    %c0_324 = arith.constant 0 : index
    %374 = vector.load %arg23[%c0_323, %c0_324] : memref<8x128xf32, #tpu.memory_space<vmem>>, vector<8x128xf32>
    tpu.vector_store %arg23[%c0_323, %c0_324], %373 {strides = array<i32>} : memref<8x128xf32, #tpu.memory_space<vmem>>, vector<8x128xf32>,
    %375 = math.tanh %373 : vector<8x128xf32>
    %376 = arith.mulf %369, %375 : vector<8x128xf32>
    %377 = vector.broadcast %16 : vector<1x128xf32> to vector<8x128xf32>
    %378 = arith.mulf %377, %376 : vector<8x128xf32>
    %c11_i32_325 = arith.constant 11 : i32
    %379 = tpu.dynamic_rotate %378 by %c11_i32_325 dim 1 : vector<8x128xf32>, i32 -> vector<8x128xf32>
    %c0_326 = arith.constant 0 : index
    %c0_327 = arith.constant 0 : index
    %380 = vector.load %arg19[%c0_326, %c0_327] : memref<72x128xf32, #tpu.memory_space<vmem>>, vector<8x128xf32>
    tpu.vector_store %arg19[%c0_326, %c0_327], %379 {strides = array<i32>} : memref<72x128xf32, #tpu.memory_space<vmem>>, vector<8x128xf32>,
    %c10_i32_328 = arith.constant 10 : i32
    %381 = tpu.dynamic_rotate %378 by %c10_i32_328 dim 1 : vector<8x128xf32>, i32 -> vector<8x128xf32>
    %c8_329 = arith.constant 8 : index
    %c0_330 = arith.constant 0 : index
    %382 = vector.load %arg19[%c8_329, %c0_330] : memref<72x128xf32, #tpu.memory_space<vmem>>, vector<8x128xf32>
    tpu.vector_store %arg19[%c8_329, %c0_330], %381 {strides = array<i32>} : memref<72x128xf32, #tpu.memory_space<vmem>>, vector<8x128xf32>,
    %c9_i32_331 = arith.constant 9 : i32
    %383 = tpu.dynamic_rotate %378 by %c9_i32_331 dim 1 : vector<8x128xf32>, i32 -> vector<8x128xf32>
    %c16_332 = arith.constant 16 : index
    %c0_333 = arith.constant 0 : index
    %384 = vector.load %arg19[%c16_332, %c0_333] : memref<72x128xf32, #tpu.memory_space<vmem>>, vector<8x128xf32>
    tpu.vector_store %arg19[%c16_332, %c0_333], %383 {strides = array<i32>} : memref<72x128xf32, #tpu.memory_space<vmem>>, vector<8x128xf32>,
    %c1_i32_334 = arith.constant 1 : i32
    %385 = tpu.dynamic_rotate %378 by %c1_i32_334 dim 1 : vector<8x128xf32>, i32 -> vector<8x128xf32>
    %c24_335 = arith.constant 24 : index
    %c0_336 = arith.constant 0 : index
    %386 = vector.load %arg19[%c24_335, %c0_336] : memref<72x128xf32, #tpu.memory_space<vmem>>, vector<8x128xf32>
    tpu.vector_store %arg19[%c24_335, %c0_336], %385 {strides = array<i32>} : memref<72x128xf32, #tpu.memory_space<vmem>>, vector<8x128xf32>,
    %c32_337 = arith.constant 32 : index
    %c0_338 = arith.constant 0 : index
    %387 = vector.load %arg19[%c32_337, %c0_338] : memref<72x128xf32, #tpu.memory_space<vmem>>, vector<8x128xf32>
    tpu.vector_store %arg19[%c32_337, %c0_338], %378 {strides = array<i32>} : memref<72x128xf32, #tpu.memory_space<vmem>>, vector<8x128xf32>,
    %c127_i32_339 = arith.constant 127 : i32
    %388 = tpu.dynamic_rotate %378 by %c127_i32_339 dim 1 : vector<8x128xf32>, i32 -> vector<8x128xf32>
    %c40_340 = arith.constant 40 : index
    %c0_341 = arith.constant 0 : index
    %389 = vector.load %arg19[%c40_340, %c0_341] : memref<72x128xf32, #tpu.memory_space<vmem>>, vector<8x128xf32>
    tpu.vector_store %arg19[%c40_340, %c0_341], %388 {strides = array<i32>} : memref<72x128xf32, #tpu.memory_space<vmem>>, vector<8x128xf32>,
    %c119_i32_342 = arith.constant 119 : i32
    %390 = tpu.dynamic_rotate %378 by %c119_i32_342 dim 1 : vector<8x128xf32>, i32 -> vector<8x128xf32>
    %c48_343 = arith.constant 48 : index
    %c0_344 = arith.constant 0 : index
    %391 = vector.load %arg19[%c48_343, %c0_344] : memref<72x128xf32, #tpu.memory_space<vmem>>, vector<8x128xf32>
    tpu.vector_store %arg19[%c48_343, %c0_344], %390 {strides = array<i32>} : memref<72x128xf32, #tpu.memory_space<vmem>>, vector<8x128xf32>,
    %c118_i32_345 = arith.constant 118 : i32
    %392 = tpu.dynamic_rotate %378 by %c118_i32_345 dim 1 : vector<8x128xf32>, i32 -> vector<8x128xf32>
    %c56_346 = arith.constant 56 : index
    %c0_347 = arith.constant 0 : index
    %393 = vector.load %arg19[%c56_346, %c0_347] : memref<72x128xf32, #tpu.memory_space<vmem>>, vector<8x128xf32>
    tpu.vector_store %arg19[%c56_346, %c0_347], %392 {strides = array<i32>} : memref<72x128xf32, #tpu.memory_space<vmem>>, vector<8x128xf32>,
    %c117_i32_348 = arith.constant 117 : i32
    %394 = tpu.dynamic_rotate %378 by %c117_i32_348 dim 1 : vector<8x128xf32>, i32 -> vector<8x128xf32>
    %c64_349 = arith.constant 64 : index
    %c0_350 = arith.constant 0 : index
    %395 = vector.load %arg19[%c64_349, %c0_350] : memref<72x128xf32, #tpu.memory_space<vmem>>, vector<8x128xf32>
    tpu.vector_store %arg19[%c64_349, %c0_350], %394 {strides = array<i32>} : memref<72x128xf32, #tpu.memory_space<vmem>>, vector<8x128xf32>,
    %c0_351 = arith.constant 0 : index
    %c0_352 = arith.constant 0 : index
    %396 = vector.load %arg3[%c0_351, %c0_352] : memref<32x36xf32, #tpu.memory_space<vmem>>, vector<32x36xf32>
    %c0_353 = arith.constant 0 : index
    %c4 = arith.constant 4 : index
    %c0_354 = arith.constant 0 : index
    %c0_355 = arith.constant 0 : index
    %397 = vector.load %arg1[%c0_353, %c4, %c0_354, %c0_355] : memref<1x5x36x128xf32, #tpu.memory_space<vmem>>, vector<1x1x36x128xf32>
    %398 = vector.shape_cast %397 : vector<1x1x36x128xf32> to vector<36x128xf32>
    %cst_356 = arith.constant dense<0.000000e+00> : vector<32x128xf32>
    %399 = tpu.matmul %396, %398, %cst_356 {dimension_numbers = #tpu.dot_dimension_numbers<[1], [0], [0], [1], [0, 0, 1, 1], [], []>} : vector<32x36xf32>, vector<36x128xf32>, vector<32x128xf32> -> vector<32x128xf32>
    %c0_357 = arith.constant 0 : index
    %c0_358 = arith.constant 0 : index
    %400 = vector.load %arg4[%c0_357, %c0_358] : memref<32x72xf32, #tpu.memory_space<vmem>>, vector<32x72xf32>
    %c0_359 = arith.constant 0 : index
    %c0_360 = arith.constant 0 : index
    %401 = vector.load %arg18[%c0_359, %c0_360] : memref<72x128xf32, #tpu.memory_space<vmem>>, vector<72x128xf32>
    %cst_361 = arith.constant dense<0.000000e+00> : vector<32x128xf32>
    %402 = tpu.matmul %400, %401, %cst_361 {dimension_numbers = #tpu.dot_dimension_numbers<[1], [0], [0], [1], [0, 0, 1, 1], [], []>} : vector<32x72xf32>, vector<72x128xf32>, vector<32x128xf32> -> vector<32x128xf32>
    %403 = arith.addf %399, %402 : vector<32x128xf32>
    %404 = arith.addf %403, %19 : vector<32x128xf32>
    %405 = vector.extract_strided_slice %404 {offsets = [0, 0], sizes = [24, 128], strides = [1, 1]} : vector<32x128xf32> to vector<24x128xf32>
    %406 = arith.negf %405 : vector<24x128xf32>
    %407 = math.exp %406 : vector<24x128xf32>
    %cst_362 = arith.constant 1.000000e+00 : f32
    %408 = vector.broadcast %cst_362 : f32 to vector<24x128xf32>
    %409 = arith.addf %408, %407 : vector<24x128xf32>
    %410 = arith.divf %408, %409 : vector<24x128xf32>
    %411 = vector.extract_strided_slice %404 {offsets = [24, 0], sizes = [8, 128], strides = [1, 1]} : vector<32x128xf32> to vector<8x128xf32>
    %412 = math.tanh %411 : vector<8x128xf32>
    %413 = vector.extract_strided_slice %410 {offsets = [0, 0], sizes = [8, 128], strides = [1, 1]} : vector<24x128xf32> to vector<8x128xf32>
    %414 = vector.extract_strided_slice %410 {offsets = [8, 0], sizes = [8, 128], strides = [1, 1]} : vector<24x128xf32> to vector<8x128xf32>
    %415 = vector.extract_strided_slice %410 {offsets = [16, 0], sizes = [8, 128], strides = [1, 1]} : vector<24x128xf32> to vector<8x128xf32>
    %c0_363 = arith.constant 0 : index
    %c0_364 = arith.constant 0 : index
    %416 = vector.load %arg22[%c0_363, %c0_364] : memref<8x128xf32, #tpu.memory_space<vmem>>, vector<8x128xf32>
    %417 = arith.mulf %414, %416 : vector<8x128xf32>
    %418 = arith.mulf %413, %412 : vector<8x128xf32>
    %419 = arith.addf %417, %418 : vector<8x128xf32>
    %c0_365 = arith.constant 0 : index
    %c0_366 = arith.constant 0 : index
    %420 = vector.load %arg22[%c0_365, %c0_366] : memref<8x128xf32, #tpu.memory_space<vmem>>, vector<8x128xf32>
    tpu.vector_store %arg22[%c0_365, %c0_366], %419 {strides = array<i32>} : memref<8x128xf32, #tpu.memory_space<vmem>>, vector<8x128xf32>,
    %421 = math.tanh %419 : vector<8x128xf32>
    %422 = arith.mulf %415, %421 : vector<8x128xf32>
    %423 = vector.broadcast %16 : vector<1x128xf32> to vector<8x128xf32>
    %424 = arith.mulf %423, %422 : vector<8x128xf32>
    %c11_i32_367 = arith.constant 11 : i32
    %425 = tpu.dynamic_rotate %424 by %c11_i32_367 dim 1 : vector<8x128xf32>, i32 -> vector<8x128xf32>
    %c0_368 = arith.constant 0 : index
    %c0_369 = arith.constant 0 : index
    %426 = vector.load %arg18[%c0_368, %c0_369] : memref<72x128xf32, #tpu.memory_space<vmem>>, vector<8x128xf32>
    tpu.vector_store %arg18[%c0_368, %c0_369], %425 {strides = array<i32>} : memref<72x128xf32, #tpu.memory_space<vmem>>, vector<8x128xf32>,
    %c10_i32_370 = arith.constant 10 : i32
    %427 = tpu.dynamic_rotate %424 by %c10_i32_370 dim 1 : vector<8x128xf32>, i32 -> vector<8x128xf32>
    %c8_371 = arith.constant 8 : index
    %c0_372 = arith.constant 0 : index
    %428 = vector.load %arg18[%c8_371, %c0_372] : memref<72x128xf32, #tpu.memory_space<vmem>>, vector<8x128xf32>
    tpu.vector_store %arg18[%c8_371, %c0_372], %427 {strides = array<i32>} : memref<72x128xf32, #tpu.memory_space<vmem>>, vector<8x128xf32>,
    %c9_i32_373 = arith.constant 9 : i32
    %429 = tpu.dynamic_rotate %424 by %c9_i32_373 dim 1 : vector<8x128xf32>, i32 -> vector<8x128xf32>
    %c16_374 = arith.constant 16 : index
    %c0_375 = arith.constant 0 : index
    %430 = vector.load %arg18[%c16_374, %c0_375] : memref<72x128xf32, #tpu.memory_space<vmem>>, vector<8x128xf32>
    tpu.vector_store %arg18[%c16_374, %c0_375], %429 {strides = array<i32>} : memref<72x128xf32, #tpu.memory_space<vmem>>, vector<8x128xf32>,
    %c1_i32_376 = arith.constant 1 : i32
    %431 = tpu.dynamic_rotate %424 by %c1_i32_376 dim 1 : vector<8x128xf32>, i32 -> vector<8x128xf32>
    %c24_377 = arith.constant 24 : index
    %c0_378 = arith.constant 0 : index
    %432 = vector.load %arg18[%c24_377, %c0_378] : memref<72x128xf32, #tpu.memory_space<vmem>>, vector<8x128xf32>
    tpu.vector_store %arg18[%c24_377, %c0_378], %431 {strides = array<i32>} : memref<72x128xf32, #tpu.memory_space<vmem>>, vector<8x128xf32>,
    %c32_379 = arith.constant 32 : index
    %c0_380 = arith.constant 0 : index
    %433 = vector.load %arg18[%c32_379, %c0_380] : memref<72x128xf32, #tpu.memory_space<vmem>>, vector<8x128xf32>
    tpu.vector_store %arg18[%c32_379, %c0_380], %424 {strides = array<i32>} : memref<72x128xf32, #tpu.memory_space<vmem>>, vector<8x128xf32>,
    %c127_i32_381 = arith.constant 127 : i32
    %434 = tpu.dynamic_rotate %424 by %c127_i32_381 dim 1 : vector<8x128xf32>, i32 -> vector<8x128xf32>
    %c40_382 = arith.constant 40 : index
    %c0_383 = arith.constant 0 : index
    %435 = vector.load %arg18[%c40_382, %c0_383] : memref<72x128xf32, #tpu.memory_space<vmem>>, vector<8x128xf32>
    tpu.vector_store %arg18[%c40_382, %c0_383], %434 {strides = array<i32>} : memref<72x128xf32, #tpu.memory_space<vmem>>, vector<8x128xf32>,
    %c119_i32_384 = arith.constant 119 : i32
    %436 = tpu.dynamic_rotate %424 by %c119_i32_384 dim 1 : vector<8x128xf32>, i32 -> vector<8x128xf32>
    %c48_385 = arith.constant 48 : index
    %c0_386 = arith.constant 0 : index
    %437 = vector.load %arg18[%c48_385, %c0_386] : memref<72x128xf32, #tpu.memory_space<vmem>>, vector<8x128xf32>
    tpu.vector_store %arg18[%c48_385, %c0_386], %436 {strides = array<i32>} : memref<72x128xf32, #tpu.memory_space<vmem>>, vector<8x128xf32>,
    %c118_i32_387 = arith.constant 118 : i32
    %438 = tpu.dynamic_rotate %424 by %c118_i32_387 dim 1 : vector<8x128xf32>, i32 -> vector<8x128xf32>
    %c56_388 = arith.constant 56 : index
    %c0_389 = arith.constant 0 : index
    %439 = vector.load %arg18[%c56_388, %c0_389] : memref<72x128xf32, #tpu.memory_space<vmem>>, vector<8x128xf32>
    tpu.vector_store %arg18[%c56_388, %c0_389], %438 {strides = array<i32>} : memref<72x128xf32, #tpu.memory_space<vmem>>, vector<8x128xf32>,
    %c117_i32_390 = arith.constant 117 : i32
    %440 = tpu.dynamic_rotate %424 by %c117_i32_390 dim 1 : vector<8x128xf32>, i32 -> vector<8x128xf32>
    %c64_391 = arith.constant 64 : index
    %c0_392 = arith.constant 0 : index
    %441 = vector.load %arg18[%c64_391, %c0_392] : memref<72x128xf32, #tpu.memory_space<vmem>>, vector<8x128xf32>
    tpu.vector_store %arg18[%c64_391, %c0_392], %440 {strides = array<i32>} : memref<72x128xf32, #tpu.memory_space<vmem>>, vector<8x128xf32>,
    %c0_393 = arith.constant 0 : index
    %c0_394 = arith.constant 0 : index
    %442 = vector.load %arg6[%c0_393, %c0_394] : memref<32x72xf32, #tpu.memory_space<vmem>>, vector<32x72xf32>
    %c0_395 = arith.constant 0 : index
    %c0_396 = arith.constant 0 : index
    %443 = vector.load %arg18[%c0_395, %c0_396] : memref<72x128xf32, #tpu.memory_space<vmem>>, vector<72x128xf32>
    %cst_397 = arith.constant dense<0.000000e+00> : vector<32x128xf32>
    %444 = tpu.matmul %442, %443, %cst_397 {dimension_numbers = #tpu.dot_dimension_numbers<[1], [0], [0], [1], [0, 0, 1, 1], [], []>} : vector<32x72xf32>, vector<72x128xf32>, vector<32x128xf32> -> vector<32x128xf32>
    %c0_398 = arith.constant 0 : index
    %c0_399 = arith.constant 0 : index
    %445 = vector.load %arg7[%c0_398, %c0_399] : memref<32x72xf32, #tpu.memory_space<vmem>>, vector<32x72xf32>
    %c0_400 = arith.constant 0 : index
    %c0_401 = arith.constant 0 : index
    %446 = vector.load %arg19[%c0_400, %c0_401] : memref<72x128xf32, #tpu.memory_space<vmem>>, vector<72x128xf32>
    %cst_402 = arith.constant dense<0.000000e+00> : vector<32x128xf32>
    %447 = tpu.matmul %445, %446, %cst_402 {dimension_numbers = #tpu.dot_dimension_numbers<[1], [0], [0], [1], [0, 0, 1, 1], [], []>} : vector<32x72xf32>, vector<72x128xf32>, vector<32x128xf32> -> vector<32x128xf32>
    %448 = arith.addf %444, %447 : vector<32x128xf32>
    %449 = arith.addf %448, %22 : vector<32x128xf32>
    %450 = vector.extract_strided_slice %449 {offsets = [0, 0], sizes = [24, 128], strides = [1, 1]} : vector<32x128xf32> to vector<24x128xf32>
    %451 = arith.negf %450 : vector<24x128xf32>
    %452 = math.exp %451 : vector<24x128xf32>
    %cst_403 = arith.constant 1.000000e+00 : f32
    %453 = vector.broadcast %cst_403 : f32 to vector<24x128xf32>
    %454 = arith.addf %453, %452 : vector<24x128xf32>
    %455 = arith.divf %453, %454 : vector<24x128xf32>
    %456 = vector.extract_strided_slice %449 {offsets = [24, 0], sizes = [8, 128], strides = [1, 1]} : vector<32x128xf32> to vector<8x128xf32>
    %457 = math.tanh %456 : vector<8x128xf32>
    %458 = vector.extract_strided_slice %455 {offsets = [0, 0], sizes = [8, 128], strides = [1, 1]} : vector<24x128xf32> to vector<8x128xf32>
    %459 = vector.extract_strided_slice %455 {offsets = [8, 0], sizes = [8, 128], strides = [1, 1]} : vector<24x128xf32> to vector<8x128xf32>
    %460 = vector.extract_strided_slice %455 {offsets = [16, 0], sizes = [8, 128], strides = [1, 1]} : vector<24x128xf32> to vector<8x128xf32>
    %c0_404 = arith.constant 0 : index
    %c0_405 = arith.constant 0 : index
    %461 = vector.load %arg23[%c0_404, %c0_405] : memref<8x128xf32, #tpu.memory_space<vmem>>, vector<8x128xf32>
    %462 = arith.mulf %459, %461 : vector<8x128xf32>
    %463 = arith.mulf %458, %457 : vector<8x128xf32>
    %464 = arith.addf %462, %463 : vector<8x128xf32>
    %c0_406 = arith.constant 0 : index
    %c0_407 = arith.constant 0 : index
    %465 = vector.load %arg23[%c0_406, %c0_407] : memref<8x128xf32, #tpu.memory_space<vmem>>, vector<8x128xf32>
    tpu.vector_store %arg23[%c0_406, %c0_407], %464 {strides = array<i32>} : memref<8x128xf32, #tpu.memory_space<vmem>>, vector<8x128xf32>,
    %466 = math.tanh %464 : vector<8x128xf32>
    %467 = arith.mulf %460, %466 : vector<8x128xf32>
    %468 = vector.broadcast %16 : vector<1x128xf32> to vector<8x128xf32>
    %469 = arith.mulf %468, %467 : vector<8x128xf32>
    %c11_i32_408 = arith.constant 11 : i32
    %470 = tpu.dynamic_rotate %469 by %c11_i32_408 dim 1 : vector<8x128xf32>, i32 -> vector<8x128xf32>
    %c0_409 = arith.constant 0 : index
    %c0_410 = arith.constant 0 : index
    %471 = vector.load %arg19[%c0_409, %c0_410] : memref<72x128xf32, #tpu.memory_space<vmem>>, vector<8x128xf32>
    tpu.vector_store %arg19[%c0_409, %c0_410], %470 {strides = array<i32>} : memref<72x128xf32, #tpu.memory_space<vmem>>, vector<8x128xf32>,
    %c10_i32_411 = arith.constant 10 : i32
    %472 = tpu.dynamic_rotate %469 by %c10_i32_411 dim 1 : vector<8x128xf32>, i32 -> vector<8x128xf32>
    %c8_412 = arith.constant 8 : index
    %c0_413 = arith.constant 0 : index
    %473 = vector.load %arg19[%c8_412, %c0_413] : memref<72x128xf32, #tpu.memory_space<vmem>>, vector<8x128xf32>
    tpu.vector_store %arg19[%c8_412, %c0_413], %472 {strides = array<i32>} : memref<72x128xf32, #tpu.memory_space<vmem>>, vector<8x128xf32>,
    %c9_i32_414 = arith.constant 9 : i32
    %474 = tpu.dynamic_rotate %469 by %c9_i32_414 dim 1 : vector<8x128xf32>, i32 -> vector<8x128xf32>
    %c16_415 = arith.constant 16 : index
    %c0_416 = arith.constant 0 : index
    %475 = vector.load %arg19[%c16_415, %c0_416] : memref<72x128xf32, #tpu.memory_space<vmem>>, vector<8x128xf32>
    tpu.vector_store %arg19[%c16_415, %c0_416], %474 {strides = array<i32>} : memref<72x128xf32, #tpu.memory_space<vmem>>, vector<8x128xf32>,
    %c1_i32_417 = arith.constant 1 : i32
    %476 = tpu.dynamic_rotate %469 by %c1_i32_417 dim 1 : vector<8x128xf32>, i32 -> vector<8x128xf32>
    %c24_418 = arith.constant 24 : index
    %c0_419 = arith.constant 0 : index
    %477 = vector.load %arg19[%c24_418, %c0_419] : memref<72x128xf32, #tpu.memory_space<vmem>>, vector<8x128xf32>
    tpu.vector_store %arg19[%c24_418, %c0_419], %476 {strides = array<i32>} : memref<72x128xf32, #tpu.memory_space<vmem>>, vector<8x128xf32>,
    %c32_420 = arith.constant 32 : index
    %c0_421 = arith.constant 0 : index
    %478 = vector.load %arg19[%c32_420, %c0_421] : memref<72x128xf32, #tpu.memory_space<vmem>>, vector<8x128xf32>
    tpu.vector_store %arg19[%c32_420, %c0_421], %469 {strides = array<i32>} : memref<72x128xf32, #tpu.memory_space<vmem>>, vector<8x128xf32>,
    %c127_i32_422 = arith.constant 127 : i32
    %479 = tpu.dynamic_rotate %469 by %c127_i32_422 dim 1 : vector<8x128xf32>, i32 -> vector<8x128xf32>
    %c40_423 = arith.constant 40 : index
    %c0_424 = arith.constant 0 : index
    %480 = vector.load %arg19[%c40_423, %c0_424] : memref<72x128xf32, #tpu.memory_space<vmem>>, vector<8x128xf32>
    tpu.vector_store %arg19[%c40_423, %c0_424], %479 {strides = array<i32>} : memref<72x128xf32, #tpu.memory_space<vmem>>, vector<8x128xf32>,
    %c119_i32_425 = arith.constant 119 : i32
    %481 = tpu.dynamic_rotate %469 by %c119_i32_425 dim 1 : vector<8x128xf32>, i32 -> vector<8x128xf32>
    %c48_426 = arith.constant 48 : index
    %c0_427 = arith.constant 0 : index
    %482 = vector.load %arg19[%c48_426, %c0_427] : memref<72x128xf32, #tpu.memory_space<vmem>>, vector<8x128xf32>
    tpu.vector_store %arg19[%c48_426, %c0_427], %481 {strides = array<i32>} : memref<72x128xf32, #tpu.memory_space<vmem>>, vector<8x128xf32>,
    %c118_i32_428 = arith.constant 118 : i32
    %483 = tpu.dynamic_rotate %469 by %c118_i32_428 dim 1 : vector<8x128xf32>, i32 -> vector<8x128xf32>
    %c56_429 = arith.constant 56 : index
    %c0_430 = arith.constant 0 : index
    %484 = vector.load %arg19[%c56_429, %c0_430] : memref<72x128xf32, #tpu.memory_space<vmem>>, vector<8x128xf32>
    tpu.vector_store %arg19[%c56_429, %c0_430], %483 {strides = array<i32>} : memref<72x128xf32, #tpu.memory_space<vmem>>, vector<8x128xf32>,
    %c117_i32_431 = arith.constant 117 : i32
    %485 = tpu.dynamic_rotate %469 by %c117_i32_431 dim 1 : vector<8x128xf32>, i32 -> vector<8x128xf32>
    %c64_432 = arith.constant 64 : index
    %c0_433 = arith.constant 0 : index
    %486 = vector.load %arg19[%c64_432, %c0_433] : memref<72x128xf32, #tpu.memory_space<vmem>>, vector<8x128xf32>
    tpu.vector_store %arg19[%c64_432, %c0_433], %485 {strides = array<i32>} : memref<72x128xf32, #tpu.memory_space<vmem>>, vector<8x128xf32>,
    %c0_434 = arith.constant 0 : index
    %c0_435 = arith.constant 0 : index
    %487 = vector.load %arg19[%c0_434, %c0_435] : memref<72x128xf32, #tpu.memory_space<vmem>>, vector<72x128xf32>
    %c0_436 = arith.constant 0 : index
    %c0_437 = arith.constant 0 : index
    %488 = vector.load %arg9[%c0_436, %c0_437] : memref<32x72xf32, #tpu.memory_space<vmem>>, vector<32x72xf32>
    %cst_438 = arith.constant dense<0.000000e+00> : vector<32x128xf32>
    %489 = tpu.matmul %488, %487, %cst_438 {dimension_numbers = #tpu.dot_dimension_numbers<[1], [0], [0], [1], [0, 0, 1, 1], [], []>} : vector<32x72xf32>, vector<72x128xf32>, vector<32x128xf32> -> vector<32x128xf32>
    %c0_439 = arith.constant 0 : index
    %c0_440 = arith.constant 0 : index
    %490 = vector.load %arg10[%c0_439, %c0_440] : memref<32x72xf32, #tpu.memory_space<vmem>>, vector<32x72xf32>
    %c0_441 = arith.constant 0 : index
    %c0_442 = arith.constant 0 : index
    %491 = vector.load %arg20[%c0_441, %c0_442] : memref<72x128xf32, #tpu.memory_space<vmem>>, vector<72x128xf32>
    %cst_443 = arith.constant dense<0.000000e+00> : vector<32x128xf32>
    %492 = tpu.matmul %490, %491, %cst_443 {dimension_numbers = #tpu.dot_dimension_numbers<[1], [0], [0], [1], [0, 0, 1, 1], [], []>} : vector<32x72xf32>, vector<72x128xf32>, vector<32x128xf32> -> vector<32x128xf32>
    %493 = arith.addf %489, %492 : vector<32x128xf32>
    %494 = arith.addf %493, %25 : vector<32x128xf32>
    %495 = vector.extract_strided_slice %494 {offsets = [0, 0], sizes = [24, 128], strides = [1, 1]} : vector<32x128xf32> to vector<24x128xf32>
    %496 = arith.negf %495 : vector<24x128xf32>
    %497 = math.exp %496 : vector<24x128xf32>
    %cst_444 = arith.constant 1.000000e+00 : f32
    %498 = vector.broadcast %cst_444 : f32 to vector<24x128xf32>
    %499 = arith.addf %498, %497 : vector<24x128xf32>
    %500 = arith.divf %498, %499 : vector<24x128xf32>
    %501 = vector.extract_strided_slice %494 {offsets = [24, 0], sizes = [8, 128], strides = [1, 1]} : vector<32x128xf32> to vector<8x128xf32>
    %502 = math.tanh %501 : vector<8x128xf32>
    %503 = vector.extract_strided_slice %500 {offsets = [0, 0], sizes = [8, 128], strides = [1, 1]} : vector<24x128xf32> to vector<8x128xf32>
    %504 = vector.extract_strided_slice %500 {offsets = [8, 0], sizes = [8, 128], strides = [1, 1]} : vector<24x128xf32> to vector<8x128xf32>
    %505 = vector.extract_strided_slice %500 {offsets = [16, 0], sizes = [8, 128], strides = [1, 1]} : vector<24x128xf32> to vector<8x128xf32>
    %c0_445 = arith.constant 0 : index
    %c0_446 = arith.constant 0 : index
    %506 = vector.load %arg24[%c0_445, %c0_446] : memref<8x128xf32, #tpu.memory_space<vmem>>, vector<8x128xf32>
    %507 = arith.mulf %504, %506 : vector<8x128xf32>
    %508 = arith.mulf %503, %502 : vector<8x128xf32>
    %509 = arith.addf %507, %508 : vector<8x128xf32>
    %c0_447 = arith.constant 0 : index
    %c0_448 = arith.constant 0 : index
    %510 = vector.load %arg24[%c0_447, %c0_448] : memref<8x128xf32, #tpu.memory_space<vmem>>, vector<8x128xf32>
    tpu.vector_store %arg24[%c0_447, %c0_448], %509 {strides = array<i32>} : memref<8x128xf32, #tpu.memory_space<vmem>>, vector<8x128xf32>,
    %511 = math.tanh %509 : vector<8x128xf32>
    %512 = arith.mulf %505, %511 : vector<8x128xf32>
    %513 = vector.broadcast %16 : vector<1x128xf32> to vector<8x128xf32>
    %514 = arith.mulf %513, %512 : vector<8x128xf32>
    %c11_i32_449 = arith.constant 11 : i32
    %515 = tpu.dynamic_rotate %514 by %c11_i32_449 dim 1 : vector<8x128xf32>, i32 -> vector<8x128xf32>
    %c0_450 = arith.constant 0 : index
    %c0_451 = arith.constant 0 : index
    %516 = vector.load %arg20[%c0_450, %c0_451] : memref<72x128xf32, #tpu.memory_space<vmem>>, vector<8x128xf32>
    tpu.vector_store %arg20[%c0_450, %c0_451], %515 {strides = array<i32>} : memref<72x128xf32, #tpu.memory_space<vmem>>, vector<8x128xf32>,
    %c10_i32_452 = arith.constant 10 : i32
    %517 = tpu.dynamic_rotate %514 by %c10_i32_452 dim 1 : vector<8x128xf32>, i32 -> vector<8x128xf32>
    %c8_453 = arith.constant 8 : index
    %c0_454 = arith.constant 0 : index
    %518 = vector.load %arg20[%c8_453, %c0_454] : memref<72x128xf32, #tpu.memory_space<vmem>>, vector<8x128xf32>
    tpu.vector_store %arg20[%c8_453, %c0_454], %517 {strides = array<i32>} : memref<72x128xf32, #tpu.memory_space<vmem>>, vector<8x128xf32>,
    %c9_i32_455 = arith.constant 9 : i32
    %519 = tpu.dynamic_rotate %514 by %c9_i32_455 dim 1 : vector<8x128xf32>, i32 -> vector<8x128xf32>
    %c16_456 = arith.constant 16 : index
    %c0_457 = arith.constant 0 : index
    %520 = vector.load %arg20[%c16_456, %c0_457] : memref<72x128xf32, #tpu.memory_space<vmem>>, vector<8x128xf32>
    tpu.vector_store %arg20[%c16_456, %c0_457], %519 {strides = array<i32>} : memref<72x128xf32, #tpu.memory_space<vmem>>, vector<8x128xf32>,
    %c1_i32_458 = arith.constant 1 : i32
    %521 = tpu.dynamic_rotate %514 by %c1_i32_458 dim 1 : vector<8x128xf32>, i32 -> vector<8x128xf32>
    %c24_459 = arith.constant 24 : index
    %c0_460 = arith.constant 0 : index
    %522 = vector.load %arg20[%c24_459, %c0_460] : memref<72x128xf32, #tpu.memory_space<vmem>>, vector<8x128xf32>
    tpu.vector_store %arg20[%c24_459, %c0_460], %521 {strides = array<i32>} : memref<72x128xf32, #tpu.memory_space<vmem>>, vector<8x128xf32>,
    %c32_461 = arith.constant 32 : index
    %c0_462 = arith.constant 0 : index
    %523 = vector.load %arg20[%c32_461, %c0_462] : memref<72x128xf32, #tpu.memory_space<vmem>>, vector<8x128xf32>
    tpu.vector_store %arg20[%c32_461, %c0_462], %514 {strides = array<i32>} : memref<72x128xf32, #tpu.memory_space<vmem>>, vector<8x128xf32>,
    %c127_i32_463 = arith.constant 127 : i32
    %524 = tpu.dynamic_rotate %514 by %c127_i32_463 dim 1 : vector<8x128xf32>, i32 -> vector<8x128xf32>
    %c40_464 = arith.constant 40 : index
    %c0_465 = arith.constant 0 : index
    %525 = vector.load %arg20[%c40_464, %c0_465] : memref<72x128xf32, #tpu.memory_space<vmem>>, vector<8x128xf32>
    tpu.vector_store %arg20[%c40_464, %c0_465], %524 {strides = array<i32>} : memref<72x128xf32, #tpu.memory_space<vmem>>, vector<8x128xf32>,
    %c119_i32_466 = arith.constant 119 : i32
    %526 = tpu.dynamic_rotate %514 by %c119_i32_466 dim 1 : vector<8x128xf32>, i32 -> vector<8x128xf32>
    %c48_467 = arith.constant 48 : index
    %c0_468 = arith.constant 0 : index
    %527 = vector.load %arg20[%c48_467, %c0_468] : memref<72x128xf32, #tpu.memory_space<vmem>>, vector<8x128xf32>
    tpu.vector_store %arg20[%c48_467, %c0_468], %526 {strides = array<i32>} : memref<72x128xf32, #tpu.memory_space<vmem>>, vector<8x128xf32>,
    %c118_i32_469 = arith.constant 118 : i32
    %528 = tpu.dynamic_rotate %514 by %c118_i32_469 dim 1 : vector<8x128xf32>, i32 -> vector<8x128xf32>
    %c56_470 = arith.constant 56 : index
    %c0_471 = arith.constant 0 : index
    %529 = vector.load %arg20[%c56_470, %c0_471] : memref<72x128xf32, #tpu.memory_space<vmem>>, vector<8x128xf32>
    tpu.vector_store %arg20[%c56_470, %c0_471], %528 {strides = array<i32>} : memref<72x128xf32, #tpu.memory_space<vmem>>, vector<8x128xf32>,
    %c117_i32_472 = arith.constant 117 : i32
    %530 = tpu.dynamic_rotate %514 by %c117_i32_472 dim 1 : vector<8x128xf32>, i32 -> vector<8x128xf32>
    %c64_473 = arith.constant 64 : index
    %c0_474 = arith.constant 0 : index
    %531 = vector.load %arg20[%c64_473, %c0_474] : memref<72x128xf32, #tpu.memory_space<vmem>>, vector<8x128xf32>
    tpu.vector_store %arg20[%c64_473, %c0_474], %530 {strides = array<i32>} : memref<72x128xf32, #tpu.memory_space<vmem>>, vector<8x128xf32>,
    %c0_475 = arith.constant 0 : index
    %c0_476 = arith.constant 0 : index
    %532 = vector.load %arg12[%c0_475, %c0_476] : memref<32x72xf32, #tpu.memory_space<vmem>>, vector<32x72xf32>
    %c0_477 = arith.constant 0 : index
    %c0_478 = arith.constant 0 : index
    %533 = vector.load %arg20[%c0_477, %c0_478] : memref<72x128xf32, #tpu.memory_space<vmem>>, vector<72x128xf32>
    %cst_479 = arith.constant dense<0.000000e+00> : vector<32x128xf32>
    %534 = tpu.matmul %532, %533, %cst_479 {dimension_numbers = #tpu.dot_dimension_numbers<[1], [0], [0], [1], [0, 0, 1, 1], [], []>} : vector<32x72xf32>, vector<72x128xf32>, vector<32x128xf32> -> vector<32x128xf32>
    %c0_480 = arith.constant 0 : index
    %c0_481 = arith.constant 0 : index
    %535 = vector.load %arg13[%c0_480, %c0_481] : memref<32x72xf32, #tpu.memory_space<vmem>>, vector<32x72xf32>
    %c0_482 = arith.constant 0 : index
    %c0_483 = arith.constant 0 : index
    %536 = vector.load %arg21[%c0_482, %c0_483] : memref<72x128xf32, #tpu.memory_space<vmem>>, vector<72x128xf32>
    %cst_484 = arith.constant dense<0.000000e+00> : vector<32x128xf32>
    %537 = tpu.matmul %535, %536, %cst_484 {dimension_numbers = #tpu.dot_dimension_numbers<[1], [0], [0], [1], [0, 0, 1, 1], [], []>} : vector<32x72xf32>, vector<72x128xf32>, vector<32x128xf32> -> vector<32x128xf32>
    %538 = arith.addf %534, %537 : vector<32x128xf32>
    %539 = arith.addf %538, %28 : vector<32x128xf32>
    %540 = vector.extract_strided_slice %539 {offsets = [0, 0], sizes = [24, 128], strides = [1, 1]} : vector<32x128xf32> to vector<24x128xf32>
    %541 = arith.negf %540 : vector<24x128xf32>
    %542 = math.exp %541 : vector<24x128xf32>
    %cst_485 = arith.constant 1.000000e+00 : f32
    %543 = vector.broadcast %cst_485 : f32 to vector<24x128xf32>
    %544 = arith.addf %543, %542 : vector<24x128xf32>
    %545 = arith.divf %543, %544 : vector<24x128xf32>
    %546 = vector.extract_strided_slice %539 {offsets = [24, 0], sizes = [8, 128], strides = [1, 1]} : vector<32x128xf32> to vector<8x128xf32>
    %547 = math.tanh %546 : vector<8x128xf32>
    %548 = vector.extract_strided_slice %545 {offsets = [0, 0], sizes = [8, 128], strides = [1, 1]} : vector<24x128xf32> to vector<8x128xf32>
    %549 = vector.extract_strided_slice %545 {offsets = [8, 0], sizes = [8, 128], strides = [1, 1]} : vector<24x128xf32> to vector<8x128xf32>
    %550 = vector.extract_strided_slice %545 {offsets = [16, 0], sizes = [8, 128], strides = [1, 1]} : vector<24x128xf32> to vector<8x128xf32>
    %c0_486 = arith.constant 0 : index
    %c0_487 = arith.constant 0 : index
    %551 = vector.load %arg25[%c0_486, %c0_487] : memref<8x128xf32, #tpu.memory_space<vmem>>, vector<8x128xf32>
    %552 = arith.mulf %549, %551 : vector<8x128xf32>
    %553 = arith.mulf %548, %547 : vector<8x128xf32>
    %554 = arith.addf %552, %553 : vector<8x128xf32>
    %c0_488 = arith.constant 0 : index
    %c0_489 = arith.constant 0 : index
    %555 = vector.load %arg25[%c0_488, %c0_489] : memref<8x128xf32, #tpu.memory_space<vmem>>, vector<8x128xf32>
    tpu.vector_store %arg25[%c0_488, %c0_489], %554 {strides = array<i32>} : memref<8x128xf32, #tpu.memory_space<vmem>>, vector<8x128xf32>,
    %556 = math.tanh %554 : vector<8x128xf32>
    %557 = arith.mulf %550, %556 : vector<8x128xf32>
    %558 = vector.broadcast %16 : vector<1x128xf32> to vector<8x128xf32>
    %559 = arith.mulf %558, %557 : vector<8x128xf32>
    %c11_i32_490 = arith.constant 11 : i32
    %560 = tpu.dynamic_rotate %559 by %c11_i32_490 dim 1 : vector<8x128xf32>, i32 -> vector<8x128xf32>
    %c0_491 = arith.constant 0 : index
    %c0_492 = arith.constant 0 : index
    %561 = vector.load %arg21[%c0_491, %c0_492] : memref<72x128xf32, #tpu.memory_space<vmem>>, vector<8x128xf32>
    tpu.vector_store %arg21[%c0_491, %c0_492], %560 {strides = array<i32>} : memref<72x128xf32, #tpu.memory_space<vmem>>, vector<8x128xf32>,
    %c10_i32_493 = arith.constant 10 : i32
    %562 = tpu.dynamic_rotate %559 by %c10_i32_493 dim 1 : vector<8x128xf32>, i32 -> vector<8x128xf32>
    %c8_494 = arith.constant 8 : index
    %c0_495 = arith.constant 0 : index
    %563 = vector.load %arg21[%c8_494, %c0_495] : memref<72x128xf32, #tpu.memory_space<vmem>>, vector<8x128xf32>
    tpu.vector_store %arg21[%c8_494, %c0_495], %562 {strides = array<i32>} : memref<72x128xf32, #tpu.memory_space<vmem>>, vector<8x128xf32>,
    %c9_i32_496 = arith.constant 9 : i32
    %564 = tpu.dynamic_rotate %559 by %c9_i32_496 dim 1 : vector<8x128xf32>, i32 -> vector<8x128xf32>
    %c16_497 = arith.constant 16 : index
    %c0_498 = arith.constant 0 : index
    %565 = vector.load %arg21[%c16_497, %c0_498] : memref<72x128xf32, #tpu.memory_space<vmem>>, vector<8x128xf32>
    tpu.vector_store %arg21[%c16_497, %c0_498], %564 {strides = array<i32>} : memref<72x128xf32, #tpu.memory_space<vmem>>, vector<8x128xf32>,
    %c1_i32_499 = arith.constant 1 : i32
    %566 = tpu.dynamic_rotate %559 by %c1_i32_499 dim 1 : vector<8x128xf32>, i32 -> vector<8x128xf32>
    %c24_500 = arith.constant 24 : index
    %c0_501 = arith.constant 0 : index
    %567 = vector.load %arg21[%c24_500, %c0_501] : memref<72x128xf32, #tpu.memory_space<vmem>>, vector<8x128xf32>
    tpu.vector_store %arg21[%c24_500, %c0_501], %566 {strides = array<i32>} : memref<72x128xf32, #tpu.memory_space<vmem>>, vector<8x128xf32>,
    %c32_502 = arith.constant 32 : index
    %c0_503 = arith.constant 0 : index
    %568 = vector.load %arg21[%c32_502, %c0_503] : memref<72x128xf32, #tpu.memory_space<vmem>>, vector<8x128xf32>
    tpu.vector_store %arg21[%c32_502, %c0_503], %559 {strides = array<i32>} : memref<72x128xf32, #tpu.memory_space<vmem>>, vector<8x128xf32>,
    %c127_i32_504 = arith.constant 127 : i32
    %569 = tpu.dynamic_rotate %559 by %c127_i32_504 dim 1 : vector<8x128xf32>, i32 -> vector<8x128xf32>
    %c40_505 = arith.constant 40 : index
    %c0_506 = arith.constant 0 : index
    %570 = vector.load %arg21[%c40_505, %c0_506] : memref<72x128xf32, #tpu.memory_space<vmem>>, vector<8x128xf32>
    tpu.vector_store %arg21[%c40_505, %c0_506], %569 {strides = array<i32>} : memref<72x128xf32, #tpu.memory_space<vmem>>, vector<8x128xf32>,
    %c119_i32_507 = arith.constant 119 : i32
    %571 = tpu.dynamic_rotate %559 by %c119_i32_507 dim 1 : vector<8x128xf32>, i32 -> vector<8x128xf32>
    %c48_508 = arith.constant 48 : index
    %c0_509 = arith.constant 0 : index
    %572 = vector.load %arg21[%c48_508, %c0_509] : memref<72x128xf32, #tpu.memory_space<vmem>>, vector<8x128xf32>
    tpu.vector_store %arg21[%c48_508, %c0_509], %571 {strides = array<i32>} : memref<72x128xf32, #tpu.memory_space<vmem>>, vector<8x128xf32>,
    %c118_i32_510 = arith.constant 118 : i32
    %573 = tpu.dynamic_rotate %559 by %c118_i32_510 dim 1 : vector<8x128xf32>, i32 -> vector<8x128xf32>
    %c56_511 = arith.constant 56 : index
    %c0_512 = arith.constant 0 : index
    %574 = vector.load %arg21[%c56_511, %c0_512] : memref<72x128xf32, #tpu.memory_space<vmem>>, vector<8x128xf32>
    tpu.vector_store %arg21[%c56_511, %c0_512], %573 {strides = array<i32>} : memref<72x128xf32, #tpu.memory_space<vmem>>, vector<8x128xf32>,
    %c117_i32_513 = arith.constant 117 : i32
    %575 = tpu.dynamic_rotate %559 by %c117_i32_513 dim 1 : vector<8x128xf32>, i32 -> vector<8x128xf32>
    %c64_514 = arith.constant 64 : index
    %c0_515 = arith.constant 0 : index
    %576 = vector.load %arg21[%c64_514, %c0_515] : memref<72x128xf32, #tpu.memory_space<vmem>>, vector<8x128xf32>
    tpu.vector_store %arg21[%c64_514, %c0_515], %575 {strides = array<i32>} : memref<72x128xf32, #tpu.memory_space<vmem>>, vector<8x128xf32>,
    %c0_516 = arith.constant 0 : index
    %c0_517 = arith.constant 0 : index
    %577 = vector.load %arg21[%c0_516, %c0_517] : memref<72x128xf32, #tpu.memory_space<vmem>>, vector<72x128xf32>
    %c0_518 = arith.constant 0 : index
    %c0_519 = arith.constant 0 : index
    %578 = vector.load %arg15[%c0_518, %c0_519] : memref<32x72xf32, #tpu.memory_space<vmem>>, vector<32x72xf32>
    %cst_520 = arith.constant dense<0.000000e+00> : vector<32x128xf32>
    %579 = tpu.matmul %578, %577, %cst_520 {dimension_numbers = #tpu.dot_dimension_numbers<[1], [0], [0], [1], [0, 0, 1, 1], [], []>} : vector<32x72xf32>, vector<72x128xf32>, vector<32x128xf32> -> vector<32x128xf32>
    %580 = arith.addf %579, %31 : vector<32x128xf32>
    %581 = arith.negf %580 : vector<32x128xf32>
    %582 = math.exp %581 : vector<32x128xf32>
    %cst_521 = arith.constant 1.000000e+00 : f32
    %583 = vector.broadcast %cst_521 : f32 to vector<32x128xf32>
    %584 = arith.addf %583, %582 : vector<32x128xf32>
    %585 = arith.divf %583, %584 : vector<32x128xf32>
    %c0_522 = arith.constant 0 : index
    %c0_523 = arith.constant 0 : index
    %c0_524 = arith.constant 0 : index
    %c0_525 = arith.constant 0 : index
    %586 = vector.load %arg17[%c0_522, %c0_523, %c0_524, %c0_525] : memref<1x4x32x128xf32, #tpu.memory_space<vmem>>, vector<1x1x32x128xf32>
    %587 = vector.shape_cast %586 : vector<1x1x32x128xf32> to vector<32x128xf32>
    %588 = vector.shape_cast %585 : vector<32x128xf32> to vector<1x1x32x128xf32>
    tpu.vector_store %arg17[%c0_522, %c0_523, %c0_524, %c0_525], %588 {strides = array<i32>} : memref<1x4x32x128xf32, #tpu.memory_space<vmem>>, vector<1x1x32x128xf32>,
    %c0_526 = arith.constant 0 : index
    %c0_527 = arith.constant 0 : index
    %589 = vector.load %arg9[%c0_526, %c0_527] : memref<32x72xf32, #tpu.memory_space<vmem>>, vector<32x72xf32>
    %cst_528 = arith.constant dense<0.000000e+00> : vector<32x128xf32>
    %590 = tpu.matmul %589, %577, %cst_528 {dimension_numbers = #tpu.dot_dimension_numbers<[1], [0], [0], [1], [0, 0, 1, 1], [], []>} : vector<32x72xf32>, vector<72x128xf32>, vector<32x128xf32> -> vector<32x128xf32>
    %c0_529 = arith.constant 0 : index
    %c0_530 = arith.constant 0 : index
    %591 = vector.load %arg10[%c0_529, %c0_530] : memref<32x72xf32, #tpu.memory_space<vmem>>, vector<32x72xf32>
    %c0_531 = arith.constant 0 : index
    %c0_532 = arith.constant 0 : index
    %592 = vector.load %arg20[%c0_531, %c0_532] : memref<72x128xf32, #tpu.memory_space<vmem>>, vector<72x128xf32>
    %cst_533 = arith.constant dense<0.000000e+00> : vector<32x128xf32>
    %593 = tpu.matmul %591, %592, %cst_533 {dimension_numbers = #tpu.dot_dimension_numbers<[1], [0], [0], [1], [0, 0, 1, 1], [], []>} : vector<32x72xf32>, vector<72x128xf32>, vector<32x128xf32> -> vector<32x128xf32>
    %594 = arith.addf %590, %593 : vector<32x128xf32>
    %595 = arith.addf %594, %25 : vector<32x128xf32>
    %596 = vector.extract_strided_slice %595 {offsets = [0, 0], sizes = [24, 128], strides = [1, 1]} : vector<32x128xf32> to vector<24x128xf32>
    %597 = arith.negf %596 : vector<24x128xf32>
    %598 = math.exp %597 : vector<24x128xf32>
    %cst_534 = arith.constant 1.000000e+00 : f32
    %599 = vector.broadcast %cst_534 : f32 to vector<24x128xf32>
    %600 = arith.addf %599, %598 : vector<24x128xf32>
    %601 = arith.divf %599, %600 : vector<24x128xf32>
    %602 = vector.extract_strided_slice %595 {offsets = [24, 0], sizes = [8, 128], strides = [1, 1]} : vector<32x128xf32> to vector<8x128xf32>
    %603 = math.tanh %602 : vector<8x128xf32>
    %604 = vector.extract_strided_slice %601 {offsets = [0, 0], sizes = [8, 128], strides = [1, 1]} : vector<24x128xf32> to vector<8x128xf32>
    %605 = vector.extract_strided_slice %601 {offsets = [8, 0], sizes = [8, 128], strides = [1, 1]} : vector<24x128xf32> to vector<8x128xf32>
    %606 = vector.extract_strided_slice %601 {offsets = [16, 0], sizes = [8, 128], strides = [1, 1]} : vector<24x128xf32> to vector<8x128xf32>
    %c0_535 = arith.constant 0 : index
    %c0_536 = arith.constant 0 : index
    %607 = vector.load %arg24[%c0_535, %c0_536] : memref<8x128xf32, #tpu.memory_space<vmem>>, vector<8x128xf32>
    %608 = arith.mulf %605, %607 : vector<8x128xf32>
    %609 = arith.mulf %604, %603 : vector<8x128xf32>
    %610 = arith.addf %608, %609 : vector<8x128xf32>
    %c0_537 = arith.constant 0 : index
    %c0_538 = arith.constant 0 : index
    %611 = vector.load %arg24[%c0_537, %c0_538] : memref<8x128xf32, #tpu.memory_space<vmem>>, vector<8x128xf32>
    tpu.vector_store %arg24[%c0_537, %c0_538], %610 {strides = array<i32>} : memref<8x128xf32, #tpu.memory_space<vmem>>, vector<8x128xf32>,
    %612 = math.tanh %610 : vector<8x128xf32>
    %613 = arith.mulf %606, %612 : vector<8x128xf32>
    %614 = vector.broadcast %16 : vector<1x128xf32> to vector<8x128xf32>
    %615 = arith.mulf %614, %613 : vector<8x128xf32>
    %c11_i32_539 = arith.constant 11 : i32
    %616 = tpu.dynamic_rotate %615 by %c11_i32_539 dim 1 : vector<8x128xf32>, i32 -> vector<8x128xf32>
    %c0_540 = arith.constant 0 : index
    %c0_541 = arith.constant 0 : index
    %617 = vector.load %arg20[%c0_540, %c0_541] : memref<72x128xf32, #tpu.memory_space<vmem>>, vector<8x128xf32>
    tpu.vector_store %arg20[%c0_540, %c0_541], %616 {strides = array<i32>} : memref<72x128xf32, #tpu.memory_space<vmem>>, vector<8x128xf32>,
    %c10_i32_542 = arith.constant 10 : i32
    %618 = tpu.dynamic_rotate %615 by %c10_i32_542 dim 1 : vector<8x128xf32>, i32 -> vector<8x128xf32>
    %c8_543 = arith.constant 8 : index
    %c0_544 = arith.constant 0 : index
    %619 = vector.load %arg20[%c8_543, %c0_544] : memref<72x128xf32, #tpu.memory_space<vmem>>, vector<8x128xf32>
    tpu.vector_store %arg20[%c8_543, %c0_544], %618 {strides = array<i32>} : memref<72x128xf32, #tpu.memory_space<vmem>>, vector<8x128xf32>,
    %c9_i32_545 = arith.constant 9 : i32
    %620 = tpu.dynamic_rotate %615 by %c9_i32_545 dim 1 : vector<8x128xf32>, i32 -> vector<8x128xf32>
    %c16_546 = arith.constant 16 : index
    %c0_547 = arith.constant 0 : index
    %621 = vector.load %arg20[%c16_546, %c0_547] : memref<72x128xf32, #tpu.memory_space<vmem>>, vector<8x128xf32>
    tpu.vector_store %arg20[%c16_546, %c0_547], %620 {strides = array<i32>} : memref<72x128xf32, #tpu.memory_space<vmem>>, vector<8x128xf32>,
    %c1_i32_548 = arith.constant 1 : i32
    %622 = tpu.dynamic_rotate %615 by %c1_i32_548 dim 1 : vector<8x128xf32>, i32 -> vector<8x128xf32>
    %c24_549 = arith.constant 24 : index
    %c0_550 = arith.constant 0 : index
    %623 = vector.load %arg20[%c24_549, %c0_550] : memref<72x128xf32, #tpu.memory_space<vmem>>, vector<8x128xf32>
    tpu.vector_store %arg20[%c24_549, %c0_550], %622 {strides = array<i32>} : memref<72x128xf32, #tpu.memory_space<vmem>>, vector<8x128xf32>,
    %c32_551 = arith.constant 32 : index
    %c0_552 = arith.constant 0 : index
    %624 = vector.load %arg20[%c32_551, %c0_552] : memref<72x128xf32, #tpu.memory_space<vmem>>, vector<8x128xf32>
    tpu.vector_store %arg20[%c32_551, %c0_552], %615 {strides = array<i32>} : memref<72x128xf32, #tpu.memory_space<vmem>>, vector<8x128xf32>,
    %c127_i32_553 = arith.constant 127 : i32
    %625 = tpu.dynamic_rotate %615 by %c127_i32_553 dim 1 : vector<8x128xf32>, i32 -> vector<8x128xf32>
    %c40_554 = arith.constant 40 : index
    %c0_555 = arith.constant 0 : index
    %626 = vector.load %arg20[%c40_554, %c0_555] : memref<72x128xf32, #tpu.memory_space<vmem>>, vector<8x128xf32>
    tpu.vector_store %arg20[%c40_554, %c0_555], %625 {strides = array<i32>} : memref<72x128xf32, #tpu.memory_space<vmem>>, vector<8x128xf32>,
    %c119_i32_556 = arith.constant 119 : i32
    %627 = tpu.dynamic_rotate %615 by %c119_i32_556 dim 1 : vector<8x128xf32>, i32 -> vector<8x128xf32>
    %c48_557 = arith.constant 48 : index
    %c0_558 = arith.constant 0 : index
    %628 = vector.load %arg20[%c48_557, %c0_558] : memref<72x128xf32, #tpu.memory_space<vmem>>, vector<8x128xf32>
    tpu.vector_store %arg20[%c48_557, %c0_558], %627 {strides = array<i32>} : memref<72x128xf32, #tpu.memory_space<vmem>>, vector<8x128xf32>,
    %c118_i32_559 = arith.constant 118 : i32
    %629 = tpu.dynamic_rotate %615 by %c118_i32_559 dim 1 : vector<8x128xf32>, i32 -> vector<8x128xf32>
    %c56_560 = arith.constant 56 : index
    %c0_561 = arith.constant 0 : index
    %630 = vector.load %arg20[%c56_560, %c0_561] : memref<72x128xf32, #tpu.memory_space<vmem>>, vector<8x128xf32>
    tpu.vector_store %arg20[%c56_560, %c0_561], %629 {strides = array<i32>} : memref<72x128xf32, #tpu.memory_space<vmem>>, vector<8x128xf32>,
    %c117_i32_562 = arith.constant 117 : i32
    %631 = tpu.dynamic_rotate %615 by %c117_i32_562 dim 1 : vector<8x128xf32>, i32 -> vector<8x128xf32>
    %c64_563 = arith.constant 64 : index
    %c0_564 = arith.constant 0 : index
    %632 = vector.load %arg20[%c64_563, %c0_564] : memref<72x128xf32, #tpu.memory_space<vmem>>, vector<8x128xf32>
    tpu.vector_store %arg20[%c64_563, %c0_564], %631 {strides = array<i32>} : memref<72x128xf32, #tpu.memory_space<vmem>>, vector<8x128xf32>,
    %c0_565 = arith.constant 0 : index
    %c0_566 = arith.constant 0 : index
    %633 = vector.load %arg12[%c0_565, %c0_566] : memref<32x72xf32, #tpu.memory_space<vmem>>, vector<32x72xf32>
    %c0_567 = arith.constant 0 : index
    %c0_568 = arith.constant 0 : index
    %634 = vector.load %arg20[%c0_567, %c0_568] : memref<72x128xf32, #tpu.memory_space<vmem>>, vector<72x128xf32>
    %cst_569 = arith.constant dense<0.000000e+00> : vector<32x128xf32>
    %635 = tpu.matmul %633, %634, %cst_569 {dimension_numbers = #tpu.dot_dimension_numbers<[1], [0], [0], [1], [0, 0, 1, 1], [], []>} : vector<32x72xf32>, vector<72x128xf32>, vector<32x128xf32> -> vector<32x128xf32>
    %c0_570 = arith.constant 0 : index
    %c0_571 = arith.constant 0 : index
    %636 = vector.load %arg13[%c0_570, %c0_571] : memref<32x72xf32, #tpu.memory_space<vmem>>, vector<32x72xf32>
    %c0_572 = arith.constant 0 : index
    %c0_573 = arith.constant 0 : index
    %637 = vector.load %arg21[%c0_572, %c0_573] : memref<72x128xf32, #tpu.memory_space<vmem>>, vector<72x128xf32>
    %cst_574 = arith.constant dense<0.000000e+00> : vector<32x128xf32>
    %638 = tpu.matmul %636, %637, %cst_574 {dimension_numbers = #tpu.dot_dimension_numbers<[1], [0], [0], [1], [0, 0, 1, 1], [], []>} : vector<32x72xf32>, vector<72x128xf32>, vector<32x128xf32> -> vector<32x128xf32>
    %639 = arith.addf %635, %638 : vector<32x128xf32>
    %640 = arith.addf %639, %28 : vector<32x128xf32>
    %641 = vector.extract_strided_slice %640 {offsets = [0, 0], sizes = [24, 128], strides = [1, 1]} : vector<32x128xf32> to vector<24x128xf32>
    %642 = arith.negf %641 : vector<24x128xf32>
    %643 = math.exp %642 : vector<24x128xf32>
    %cst_575 = arith.constant 1.000000e+00 : f32
    %644 = vector.broadcast %cst_575 : f32 to vector<24x128xf32>
    %645 = arith.addf %644, %643 : vector<24x128xf32>
    %646 = arith.divf %644, %645 : vector<24x128xf32>
    %647 = vector.extract_strided_slice %640 {offsets = [24, 0], sizes = [8, 128], strides = [1, 1]} : vector<32x128xf32> to vector<8x128xf32>
    %648 = math.tanh %647 : vector<8x128xf32>
    %649 = vector.extract_strided_slice %646 {offsets = [0, 0], sizes = [8, 128], strides = [1, 1]} : vector<24x128xf32> to vector<8x128xf32>
    %650 = vector.extract_strided_slice %646 {offsets = [8, 0], sizes = [8, 128], strides = [1, 1]} : vector<24x128xf32> to vector<8x128xf32>
    %651 = vector.extract_strided_slice %646 {offsets = [16, 0], sizes = [8, 128], strides = [1, 1]} : vector<24x128xf32> to vector<8x128xf32>
    %c0_576 = arith.constant 0 : index
    %c0_577 = arith.constant 0 : index
    %652 = vector.load %arg25[%c0_576, %c0_577] : memref<8x128xf32, #tpu.memory_space<vmem>>, vector<8x128xf32>
    %653 = arith.mulf %650, %652 : vector<8x128xf32>
    %654 = arith.mulf %649, %648 : vector<8x128xf32>
    %655 = arith.addf %653, %654 : vector<8x128xf32>
    %c0_578 = arith.constant 0 : index
    %c0_579 = arith.constant 0 : index
    %656 = vector.load %arg25[%c0_578, %c0_579] : memref<8x128xf32, #tpu.memory_space<vmem>>, vector<8x128xf32>
    tpu.vector_store %arg25[%c0_578, %c0_579], %655 {strides = array<i32>} : memref<8x128xf32, #tpu.memory_space<vmem>>, vector<8x128xf32>,
    %657 = math.tanh %655 : vector<8x128xf32>
    %658 = arith.mulf %651, %657 : vector<8x128xf32>
    %659 = vector.broadcast %16 : vector<1x128xf32> to vector<8x128xf32>
    %660 = arith.mulf %659, %658 : vector<8x128xf32>
    %c11_i32_580 = arith.constant 11 : i32
    %661 = tpu.dynamic_rotate %660 by %c11_i32_580 dim 1 : vector<8x128xf32>, i32 -> vector<8x128xf32>
    %c0_581 = arith.constant 0 : index
    %c0_582 = arith.constant 0 : index
    %662 = vector.load %arg21[%c0_581, %c0_582] : memref<72x128xf32, #tpu.memory_space<vmem>>, vector<8x128xf32>
    tpu.vector_store %arg21[%c0_581, %c0_582], %661 {strides = array<i32>} : memref<72x128xf32, #tpu.memory_space<vmem>>, vector<8x128xf32>,
    %c10_i32_583 = arith.constant 10 : i32
    %663 = tpu.dynamic_rotate %660 by %c10_i32_583 dim 1 : vector<8x128xf32>, i32 -> vector<8x128xf32>
    %c8_584 = arith.constant 8 : index
    %c0_585 = arith.constant 0 : index
    %664 = vector.load %arg21[%c8_584, %c0_585] : memref<72x128xf32, #tpu.memory_space<vmem>>, vector<8x128xf32>
    tpu.vector_store %arg21[%c8_584, %c0_585], %663 {strides = array<i32>} : memref<72x128xf32, #tpu.memory_space<vmem>>, vector<8x128xf32>,
    %c9_i32_586 = arith.constant 9 : i32
    %665 = tpu.dynamic_rotate %660 by %c9_i32_586 dim 1 : vector<8x128xf32>, i32 -> vector<8x128xf32>
    %c16_587 = arith.constant 16 : index
    %c0_588 = arith.constant 0 : index
    %666 = vector.load %arg21[%c16_587, %c0_588] : memref<72x128xf32, #tpu.memory_space<vmem>>, vector<8x128xf32>
    tpu.vector_store %arg21[%c16_587, %c0_588], %665 {strides = array<i32>} : memref<72x128xf32, #tpu.memory_space<vmem>>, vector<8x128xf32>,
    %c1_i32_589 = arith.constant 1 : i32
    %667 = tpu.dynamic_rotate %660 by %c1_i32_589 dim 1 : vector<8x128xf32>, i32 -> vector<8x128xf32>
    %c24_590 = arith.constant 24 : index
    %c0_591 = arith.constant 0 : index
    %668 = vector.load %arg21[%c24_590, %c0_591] : memref<72x128xf32, #tpu.memory_space<vmem>>, vector<8x128xf32>
    tpu.vector_store %arg21[%c24_590, %c0_591], %667 {strides = array<i32>} : memref<72x128xf32, #tpu.memory_space<vmem>>, vector<8x128xf32>,
    %c32_592 = arith.constant 32 : index
    %c0_593 = arith.constant 0 : index
    %669 = vector.load %arg21[%c32_592, %c0_593] : memref<72x128xf32, #tpu.memory_space<vmem>>, vector<8x128xf32>
    tpu.vector_store %arg21[%c32_592, %c0_593], %660 {strides = array<i32>} : memref<72x128xf32, #tpu.memory_space<vmem>>, vector<8x128xf32>,
    %c127_i32_594 = arith.constant 127 : i32
    %670 = tpu.dynamic_rotate %660 by %c127_i32_594 dim 1 : vector<8x128xf32>, i32 -> vector<8x128xf32>
    %c40_595 = arith.constant 40 : index
    %c0_596 = arith.constant 0 : index
    %671 = vector.load %arg21[%c40_595, %c0_596] : memref<72x128xf32, #tpu.memory_space<vmem>>, vector<8x128xf32>
    tpu.vector_store %arg21[%c40_595, %c0_596], %670 {strides = array<i32>} : memref<72x128xf32, #tpu.memory_space<vmem>>, vector<8x128xf32>,
    %c119_i32_597 = arith.constant 119 : i32
    %672 = tpu.dynamic_rotate %660 by %c119_i32_597 dim 1 : vector<8x128xf32>, i32 -> vector<8x128xf32>
    %c48_598 = arith.constant 48 : index
    %c0_599 = arith.constant 0 : index
    %673 = vector.load %arg21[%c48_598, %c0_599] : memref<72x128xf32, #tpu.memory_space<vmem>>, vector<8x128xf32>
    tpu.vector_store %arg21[%c48_598, %c0_599], %672 {strides = array<i32>} : memref<72x128xf32, #tpu.memory_space<vmem>>, vector<8x128xf32>,
    %c118_i32_600 = arith.constant 118 : i32
    %674 = tpu.dynamic_rotate %660 by %c118_i32_600 dim 1 : vector<8x128xf32>, i32 -> vector<8x128xf32>
    %c56_601 = arith.constant 56 : index
    %c0_602 = arith.constant 0 : index
    %675 = vector.load %arg21[%c56_601, %c0_602] : memref<72x128xf32, #tpu.memory_space<vmem>>, vector<8x128xf32>
    tpu.vector_store %arg21[%c56_601, %c0_602], %674 {strides = array<i32>} : memref<72x128xf32, #tpu.memory_space<vmem>>, vector<8x128xf32>,
    %c117_i32_603 = arith.constant 117 : i32
    %676 = tpu.dynamic_rotate %660 by %c117_i32_603 dim 1 : vector<8x128xf32>, i32 -> vector<8x128xf32>
    %c64_604 = arith.constant 64 : index
    %c0_605 = arith.constant 0 : index
    %677 = vector.load %arg21[%c64_604, %c0_605] : memref<72x128xf32, #tpu.memory_space<vmem>>, vector<8x128xf32>
    tpu.vector_store %arg21[%c64_604, %c0_605], %676 {strides = array<i32>} : memref<72x128xf32, #tpu.memory_space<vmem>>, vector<8x128xf32>,
    %c0_606 = arith.constant 0 : index
    %c0_607 = arith.constant 0 : index
    %678 = vector.load %arg21[%c0_606, %c0_607] : memref<72x128xf32, #tpu.memory_space<vmem>>, vector<72x128xf32>
    %c0_608 = arith.constant 0 : index
    %c0_609 = arith.constant 0 : index
    %679 = vector.load %arg15[%c0_608, %c0_609] : memref<32x72xf32, #tpu.memory_space<vmem>>, vector<32x72xf32>
    %cst_610 = arith.constant dense<0.000000e+00> : vector<32x128xf32>
    %680 = tpu.matmul %679, %678, %cst_610 {dimension_numbers = #tpu.dot_dimension_numbers<[1], [0], [0], [1], [0, 0, 1, 1], [], []>} : vector<32x72xf32>, vector<72x128xf32>, vector<32x128xf32> -> vector<32x128xf32>
    %681 = arith.addf %680, %31 : vector<32x128xf32>
    %682 = arith.negf %681 : vector<32x128xf32>
    %683 = math.exp %682 : vector<32x128xf32>
    %cst_611 = arith.constant 1.000000e+00 : f32
    %684 = vector.broadcast %cst_611 : f32 to vector<32x128xf32>
    %685 = arith.addf %684, %683 : vector<32x128xf32>
    %686 = arith.divf %684, %685 : vector<32x128xf32>
    %c0_612 = arith.constant 0 : index
    %c1_613 = arith.constant 1 : index
    %c0_614 = arith.constant 0 : index
    %c0_615 = arith.constant 0 : index
    %687 = vector.load %arg17[%c0_612, %c1_613, %c0_614, %c0_615] : memref<1x4x32x128xf32, #tpu.memory_space<vmem>>, vector<1x1x32x128xf32>
    %688 = vector.shape_cast %687 : vector<1x1x32x128xf32> to vector<32x128xf32>
    %689 = vector.shape_cast %686 : vector<32x128xf32> to vector<1x1x32x128xf32>
    tpu.vector_store %arg17[%c0_612, %c1_613, %c0_614, %c0_615], %689 {strides = array<i32>} : memref<1x4x32x128xf32, #tpu.memory_space<vmem>>, vector<1x1x32x128xf32>,
    %c0_616 = arith.constant 0 : index
    %c0_617 = arith.constant 0 : index
    %690 = vector.load %arg9[%c0_616, %c0_617] : memref<32x72xf32, #tpu.memory_space<vmem>>, vector<32x72xf32>
    %cst_618 = arith.constant dense<0.000000e+00> : vector<32x128xf32>
    %691 = tpu.matmul %690, %678, %cst_618 {dimension_numbers = #tpu.dot_dimension_numbers<[1], [0], [0], [1], [0, 0, 1, 1], [], []>} : vector<32x72xf32>, vector<72x128xf32>, vector<32x128xf32> -> vector<32x128xf32>
    %c0_619 = arith.constant 0 : index
    %c0_620 = arith.constant 0 : index
    %692 = vector.load %arg10[%c0_619, %c0_620] : memref<32x72xf32, #tpu.memory_space<vmem>>, vector<32x72xf32>
    %c0_621 = arith.constant 0 : index
    %c0_622 = arith.constant 0 : index
    %693 = vector.load %arg20[%c0_621, %c0_622] : memref<72x128xf32, #tpu.memory_space<vmem>>, vector<72x128xf32>
    %cst_623 = arith.constant dense<0.000000e+00> : vector<32x128xf32>
    %694 = tpu.matmul %692, %693, %cst_623 {dimension_numbers = #tpu.dot_dimension_numbers<[1], [0], [0], [1], [0, 0, 1, 1], [], []>} : vector<32x72xf32>, vector<72x128xf32>, vector<32x128xf32> -> vector<32x128xf32>
    %695 = arith.addf %691, %694 : vector<32x128xf32>
    %696 = arith.addf %695, %25 : vector<32x128xf32>
    %697 = vector.extract_strided_slice %696 {offsets = [0, 0], sizes = [24, 128], strides = [1, 1]} : vector<32x128xf32> to vector<24x128xf32>
    %698 = arith.negf %697 : vector<24x128xf32>
    %699 = math.exp %698 : vector<24x128xf32>
    %cst_624 = arith.constant 1.000000e+00 : f32
    %700 = vector.broadcast %cst_624 : f32 to vector<24x128xf32>
    %701 = arith.addf %700, %699 : vector<24x128xf32>
    %702 = arith.divf %700, %701 : vector<24x128xf32>
    %703 = vector.extract_strided_slice %696 {offsets = [24, 0], sizes = [8, 128], strides = [1, 1]} : vector<32x128xf32> to vector<8x128xf32>
    %704 = math.tanh %703 : vector<8x128xf32>
    %705 = vector.extract_strided_slice %702 {offsets = [0, 0], sizes = [8, 128], strides = [1, 1]} : vector<24x128xf32> to vector<8x128xf32>
    %706 = vector.extract_strided_slice %702 {offsets = [8, 0], sizes = [8, 128], strides = [1, 1]} : vector<24x128xf32> to vector<8x128xf32>
    %707 = vector.extract_strided_slice %702 {offsets = [16, 0], sizes = [8, 128], strides = [1, 1]} : vector<24x128xf32> to vector<8x128xf32>
    %c0_625 = arith.constant 0 : index
    %c0_626 = arith.constant 0 : index
    %708 = vector.load %arg24[%c0_625, %c0_626] : memref<8x128xf32, #tpu.memory_space<vmem>>, vector<8x128xf32>
    %709 = arith.mulf %706, %708 : vector<8x128xf32>
    %710 = arith.mulf %705, %704 : vector<8x128xf32>
    %711 = arith.addf %709, %710 : vector<8x128xf32>
    %c0_627 = arith.constant 0 : index
    %c0_628 = arith.constant 0 : index
    %712 = vector.load %arg24[%c0_627, %c0_628] : memref<8x128xf32, #tpu.memory_space<vmem>>, vector<8x128xf32>
    tpu.vector_store %arg24[%c0_627, %c0_628], %711 {strides = array<i32>} : memref<8x128xf32, #tpu.memory_space<vmem>>, vector<8x128xf32>,
    %713 = math.tanh %711 : vector<8x128xf32>
    %714 = arith.mulf %707, %713 : vector<8x128xf32>
    %715 = vector.broadcast %16 : vector<1x128xf32> to vector<8x128xf32>
    %716 = arith.mulf %715, %714 : vector<8x128xf32>
    %c11_i32_629 = arith.constant 11 : i32
    %717 = tpu.dynamic_rotate %716 by %c11_i32_629 dim 1 : vector<8x128xf32>, i32 -> vector<8x128xf32>
    %c0_630 = arith.constant 0 : index
    %c0_631 = arith.constant 0 : index
    %718 = vector.load %arg20[%c0_630, %c0_631] : memref<72x128xf32, #tpu.memory_space<vmem>>, vector<8x128xf32>
    tpu.vector_store %arg20[%c0_630, %c0_631], %717 {strides = array<i32>} : memref<72x128xf32, #tpu.memory_space<vmem>>, vector<8x128xf32>,
    %c10_i32_632 = arith.constant 10 : i32
    %719 = tpu.dynamic_rotate %716 by %c10_i32_632 dim 1 : vector<8x128xf32>, i32 -> vector<8x128xf32>
    %c8_633 = arith.constant 8 : index
    %c0_634 = arith.constant 0 : index
    %720 = vector.load %arg20[%c8_633, %c0_634] : memref<72x128xf32, #tpu.memory_space<vmem>>, vector<8x128xf32>
    tpu.vector_store %arg20[%c8_633, %c0_634], %719 {strides = array<i32>} : memref<72x128xf32, #tpu.memory_space<vmem>>, vector<8x128xf32>,
    %c9_i32_635 = arith.constant 9 : i32
    %721 = tpu.dynamic_rotate %716 by %c9_i32_635 dim 1 : vector<8x128xf32>, i32 -> vector<8x128xf32>
    %c16_636 = arith.constant 16 : index
    %c0_637 = arith.constant 0 : index
    %722 = vector.load %arg20[%c16_636, %c0_637] : memref<72x128xf32, #tpu.memory_space<vmem>>, vector<8x128xf32>
    tpu.vector_store %arg20[%c16_636, %c0_637], %721 {strides = array<i32>} : memref<72x128xf32, #tpu.memory_space<vmem>>, vector<8x128xf32>,
    %c1_i32_638 = arith.constant 1 : i32
    %723 = tpu.dynamic_rotate %716 by %c1_i32_638 dim 1 : vector<8x128xf32>, i32 -> vector<8x128xf32>
    %c24_639 = arith.constant 24 : index
    %c0_640 = arith.constant 0 : index
    %724 = vector.load %arg20[%c24_639, %c0_640] : memref<72x128xf32, #tpu.memory_space<vmem>>, vector<8x128xf32>
    tpu.vector_store %arg20[%c24_639, %c0_640], %723 {strides = array<i32>} : memref<72x128xf32, #tpu.memory_space<vmem>>, vector<8x128xf32>,
    %c32_641 = arith.constant 32 : index
    %c0_642 = arith.constant 0 : index
    %725 = vector.load %arg20[%c32_641, %c0_642] : memref<72x128xf32, #tpu.memory_space<vmem>>, vector<8x128xf32>
    tpu.vector_store %arg20[%c32_641, %c0_642], %716 {strides = array<i32>} : memref<72x128xf32, #tpu.memory_space<vmem>>, vector<8x128xf32>,
    %c127_i32_643 = arith.constant 127 : i32
    %726 = tpu.dynamic_rotate %716 by %c127_i32_643 dim 1 : vector<8x128xf32>, i32 -> vector<8x128xf32>
    %c40_644 = arith.constant 40 : index
    %c0_645 = arith.constant 0 : index
    %727 = vector.load %arg20[%c40_644, %c0_645] : memref<72x128xf32, #tpu.memory_space<vmem>>, vector<8x128xf32>
    tpu.vector_store %arg20[%c40_644, %c0_645], %726 {strides = array<i32>} : memref<72x128xf32, #tpu.memory_space<vmem>>, vector<8x128xf32>,
    %c119_i32_646 = arith.constant 119 : i32
    %728 = tpu.dynamic_rotate %716 by %c119_i32_646 dim 1 : vector<8x128xf32>, i32 -> vector<8x128xf32>
    %c48_647 = arith.constant 48 : index
    %c0_648 = arith.constant 0 : index
    %729 = vector.load %arg20[%c48_647, %c0_648] : memref<72x128xf32, #tpu.memory_space<vmem>>, vector<8x128xf32>
    tpu.vector_store %arg20[%c48_647, %c0_648], %728 {strides = array<i32>} : memref<72x128xf32, #tpu.memory_space<vmem>>, vector<8x128xf32>,
    %c118_i32_649 = arith.constant 118 : i32
    %730 = tpu.dynamic_rotate %716 by %c118_i32_649 dim 1 : vector<8x128xf32>, i32 -> vector<8x128xf32>
    %c56_650 = arith.constant 56 : index
    %c0_651 = arith.constant 0 : index
    %731 = vector.load %arg20[%c56_650, %c0_651] : memref<72x128xf32, #tpu.memory_space<vmem>>, vector<8x128xf32>
    tpu.vector_store %arg20[%c56_650, %c0_651], %730 {strides = array<i32>} : memref<72x128xf32, #tpu.memory_space<vmem>>, vector<8x128xf32>,
    %c117_i32_652 = arith.constant 117 : i32
    %732 = tpu.dynamic_rotate %716 by %c117_i32_652 dim 1 : vector<8x128xf32>, i32 -> vector<8x128xf32>
    %c64_653 = arith.constant 64 : index
    %c0_654 = arith.constant 0 : index
    %733 = vector.load %arg20[%c64_653, %c0_654] : memref<72x128xf32, #tpu.memory_space<vmem>>, vector<8x128xf32>
    tpu.vector_store %arg20[%c64_653, %c0_654], %732 {strides = array<i32>} : memref<72x128xf32, #tpu.memory_space<vmem>>, vector<8x128xf32>,
    %c0_655 = arith.constant 0 : index
    %c0_656 = arith.constant 0 : index
    %734 = vector.load %arg12[%c0_655, %c0_656] : memref<32x72xf32, #tpu.memory_space<vmem>>, vector<32x72xf32>
    %c0_657 = arith.constant 0 : index
    %c0_658 = arith.constant 0 : index
    %735 = vector.load %arg20[%c0_657, %c0_658] : memref<72x128xf32, #tpu.memory_space<vmem>>, vector<72x128xf32>
    %cst_659 = arith.constant dense<0.000000e+00> : vector<32x128xf32>
    %736 = tpu.matmul %734, %735, %cst_659 {dimension_numbers = #tpu.dot_dimension_numbers<[1], [0], [0], [1], [0, 0, 1, 1], [], []>} : vector<32x72xf32>, vector<72x128xf32>, vector<32x128xf32> -> vector<32x128xf32>
    %c0_660 = arith.constant 0 : index
    %c0_661 = arith.constant 0 : index
    %737 = vector.load %arg13[%c0_660, %c0_661] : memref<32x72xf32, #tpu.memory_space<vmem>>, vector<32x72xf32>
    %c0_662 = arith.constant 0 : index
    %c0_663 = arith.constant 0 : index
    %738 = vector.load %arg21[%c0_662, %c0_663] : memref<72x128xf32, #tpu.memory_space<vmem>>, vector<72x128xf32>
    %cst_664 = arith.constant dense<0.000000e+00> : vector<32x128xf32>
    %739 = tpu.matmul %737, %738, %cst_664 {dimension_numbers = #tpu.dot_dimension_numbers<[1], [0], [0], [1], [0, 0, 1, 1], [], []>} : vector<32x72xf32>, vector<72x128xf32>, vector<32x128xf32> -> vector<32x128xf32>
    %740 = arith.addf %736, %739 : vector<32x128xf32>
    %741 = arith.addf %740, %28 : vector<32x128xf32>
    %742 = vector.extract_strided_slice %741 {offsets = [0, 0], sizes = [24, 128], strides = [1, 1]} : vector<32x128xf32> to vector<24x128xf32>
    %743 = arith.negf %742 : vector<24x128xf32>
    %744 = math.exp %743 : vector<24x128xf32>
    %cst_665 = arith.constant 1.000000e+00 : f32
    %745 = vector.broadcast %cst_665 : f32 to vector<24x128xf32>
    %746 = arith.addf %745, %744 : vector<24x128xf32>
    %747 = arith.divf %745, %746 : vector<24x128xf32>
    %748 = vector.extract_strided_slice %741 {offsets = [24, 0], sizes = [8, 128], strides = [1, 1]} : vector<32x128xf32> to vector<8x128xf32>
    %749 = math.tanh %748 : vector<8x128xf32>
    %750 = vector.extract_strided_slice %747 {offsets = [0, 0], sizes = [8, 128], strides = [1, 1]} : vector<24x128xf32> to vector<8x128xf32>
    %751 = vector.extract_strided_slice %747 {offsets = [8, 0], sizes = [8, 128], strides = [1, 1]} : vector<24x128xf32> to vector<8x128xf32>
    %752 = vector.extract_strided_slice %747 {offsets = [16, 0], sizes = [8, 128], strides = [1, 1]} : vector<24x128xf32> to vector<8x128xf32>
    %c0_666 = arith.constant 0 : index
    %c0_667 = arith.constant 0 : index
    %753 = vector.load %arg25[%c0_666, %c0_667] : memref<8x128xf32, #tpu.memory_space<vmem>>, vector<8x128xf32>
    %754 = arith.mulf %751, %753 : vector<8x128xf32>
    %755 = arith.mulf %750, %749 : vector<8x128xf32>
    %756 = arith.addf %754, %755 : vector<8x128xf32>
    %c0_668 = arith.constant 0 : index
    %c0_669 = arith.constant 0 : index
    %757 = vector.load %arg25[%c0_668, %c0_669] : memref<8x128xf32, #tpu.memory_space<vmem>>, vector<8x128xf32>
    tpu.vector_store %arg25[%c0_668, %c0_669], %756 {strides = array<i32>} : memref<8x128xf32, #tpu.memory_space<vmem>>, vector<8x128xf32>,
    %758 = math.tanh %756 : vector<8x128xf32>
    %759 = arith.mulf %752, %758 : vector<8x128xf32>
    %760 = vector.broadcast %16 : vector<1x128xf32> to vector<8x128xf32>
    %761 = arith.mulf %760, %759 : vector<8x128xf32>
    %c11_i32_670 = arith.constant 11 : i32
    %762 = tpu.dynamic_rotate %761 by %c11_i32_670 dim 1 : vector<8x128xf32>, i32 -> vector<8x128xf32>
    %c0_671 = arith.constant 0 : index
    %c0_672 = arith.constant 0 : index
    %763 = vector.load %arg21[%c0_671, %c0_672] : memref<72x128xf32, #tpu.memory_space<vmem>>, vector<8x128xf32>
    tpu.vector_store %arg21[%c0_671, %c0_672], %762 {strides = array<i32>} : memref<72x128xf32, #tpu.memory_space<vmem>>, vector<8x128xf32>,
    %c10_i32_673 = arith.constant 10 : i32
    %764 = tpu.dynamic_rotate %761 by %c10_i32_673 dim 1 : vector<8x128xf32>, i32 -> vector<8x128xf32>
    %c8_674 = arith.constant 8 : index
    %c0_675 = arith.constant 0 : index
    %765 = vector.load %arg21[%c8_674, %c0_675] : memref<72x128xf32, #tpu.memory_space<vmem>>, vector<8x128xf32>
    tpu.vector_store %arg21[%c8_674, %c0_675], %764 {strides = array<i32>} : memref<72x128xf32, #tpu.memory_space<vmem>>, vector<8x128xf32>,
    %c9_i32_676 = arith.constant 9 : i32
    %766 = tpu.dynamic_rotate %761 by %c9_i32_676 dim 1 : vector<8x128xf32>, i32 -> vector<8x128xf32>
    %c16_677 = arith.constant 16 : index
    %c0_678 = arith.constant 0 : index
    %767 = vector.load %arg21[%c16_677, %c0_678] : memref<72x128xf32, #tpu.memory_space<vmem>>, vector<8x128xf32>
    tpu.vector_store %arg21[%c16_677, %c0_678], %766 {strides = array<i32>} : memref<72x128xf32, #tpu.memory_space<vmem>>, vector<8x128xf32>,
    %c1_i32_679 = arith.constant 1 : i32
    %768 = tpu.dynamic_rotate %761 by %c1_i32_679 dim 1 : vector<8x128xf32>, i32 -> vector<8x128xf32>
    %c24_680 = arith.constant 24 : index
    %c0_681 = arith.constant 0 : index
    %769 = vector.load %arg21[%c24_680, %c0_681] : memref<72x128xf32, #tpu.memory_space<vmem>>, vector<8x128xf32>
    tpu.vector_store %arg21[%c24_680, %c0_681], %768 {strides = array<i32>} : memref<72x128xf32, #tpu.memory_space<vmem>>, vector<8x128xf32>,
    %c32_682 = arith.constant 32 : index
    %c0_683 = arith.constant 0 : index
    %770 = vector.load %arg21[%c32_682, %c0_683] : memref<72x128xf32, #tpu.memory_space<vmem>>, vector<8x128xf32>
    tpu.vector_store %arg21[%c32_682, %c0_683], %761 {strides = array<i32>} : memref<72x128xf32, #tpu.memory_space<vmem>>, vector<8x128xf32>,
    %c127_i32_684 = arith.constant 127 : i32
    %771 = tpu.dynamic_rotate %761 by %c127_i32_684 dim 1 : vector<8x128xf32>, i32 -> vector<8x128xf32>
    %c40_685 = arith.constant 40 : index
    %c0_686 = arith.constant 0 : index
    %772 = vector.load %arg21[%c40_685, %c0_686] : memref<72x128xf32, #tpu.memory_space<vmem>>, vector<8x128xf32>
    tpu.vector_store %arg21[%c40_685, %c0_686], %771 {strides = array<i32>} : memref<72x128xf32, #tpu.memory_space<vmem>>, vector<8x128xf32>,
    %c119_i32_687 = arith.constant 119 : i32
    %773 = tpu.dynamic_rotate %761 by %c119_i32_687 dim 1 : vector<8x128xf32>, i32 -> vector<8x128xf32>
    %c48_688 = arith.constant 48 : index
    %c0_689 = arith.constant 0 : index
    %774 = vector.load %arg21[%c48_688, %c0_689] : memref<72x128xf32, #tpu.memory_space<vmem>>, vector<8x128xf32>
    tpu.vector_store %arg21[%c48_688, %c0_689], %773 {strides = array<i32>} : memref<72x128xf32, #tpu.memory_space<vmem>>, vector<8x128xf32>,
    %c118_i32_690 = arith.constant 118 : i32
    %775 = tpu.dynamic_rotate %761 by %c118_i32_690 dim 1 : vector<8x128xf32>, i32 -> vector<8x128xf32>
    %c56_691 = arith.constant 56 : index
    %c0_692 = arith.constant 0 : index
    %776 = vector.load %arg21[%c56_691, %c0_692] : memref<72x128xf32, #tpu.memory_space<vmem>>, vector<8x128xf32>
    tpu.vector_store %arg21[%c56_691, %c0_692], %775 {strides = array<i32>} : memref<72x128xf32, #tpu.memory_space<vmem>>, vector<8x128xf32>,
    %c117_i32_693 = arith.constant 117 : i32
    %777 = tpu.dynamic_rotate %761 by %c117_i32_693 dim 1 : vector<8x128xf32>, i32 -> vector<8x128xf32>
    %c64_694 = arith.constant 64 : index
    %c0_695 = arith.constant 0 : index
    %778 = vector.load %arg21[%c64_694, %c0_695] : memref<72x128xf32, #tpu.memory_space<vmem>>, vector<8x128xf32>
    tpu.vector_store %arg21[%c64_694, %c0_695], %777 {strides = array<i32>} : memref<72x128xf32, #tpu.memory_space<vmem>>, vector<8x128xf32>,
    %c0_696 = arith.constant 0 : index
    %c0_697 = arith.constant 0 : index
    %779 = vector.load %arg21[%c0_696, %c0_697] : memref<72x128xf32, #tpu.memory_space<vmem>>, vector<72x128xf32>
    %c0_698 = arith.constant 0 : index
    %c0_699 = arith.constant 0 : index
    %780 = vector.load %arg15[%c0_698, %c0_699] : memref<32x72xf32, #tpu.memory_space<vmem>>, vector<32x72xf32>
    %cst_700 = arith.constant dense<0.000000e+00> : vector<32x128xf32>
    %781 = tpu.matmul %780, %779, %cst_700 {dimension_numbers = #tpu.dot_dimension_numbers<[1], [0], [0], [1], [0, 0, 1, 1], [], []>} : vector<32x72xf32>, vector<72x128xf32>, vector<32x128xf32> -> vector<32x128xf32>
    %782 = arith.addf %781, %31 : vector<32x128xf32>
    %783 = arith.negf %782 : vector<32x128xf32>
    %784 = math.exp %783 : vector<32x128xf32>
    %cst_701 = arith.constant 1.000000e+00 : f32
    %785 = vector.broadcast %cst_701 : f32 to vector<32x128xf32>
    %786 = arith.addf %785, %784 : vector<32x128xf32>
    %787 = arith.divf %785, %786 : vector<32x128xf32>
    %c0_702 = arith.constant 0 : index
    %c2_703 = arith.constant 2 : index
    %c0_704 = arith.constant 0 : index
    %c0_705 = arith.constant 0 : index
    %788 = vector.load %arg17[%c0_702, %c2_703, %c0_704, %c0_705] : memref<1x4x32x128xf32, #tpu.memory_space<vmem>>, vector<1x1x32x128xf32>
    %789 = vector.shape_cast %788 : vector<1x1x32x128xf32> to vector<32x128xf32>
    %790 = vector.shape_cast %787 : vector<32x128xf32> to vector<1x1x32x128xf32>
    tpu.vector_store %arg17[%c0_702, %c2_703, %c0_704, %c0_705], %790 {strides = array<i32>} : memref<1x4x32x128xf32, #tpu.memory_space<vmem>>, vector<1x1x32x128xf32>,
    %c0_706 = arith.constant 0 : index
    %c0_707 = arith.constant 0 : index
    %791 = vector.load %arg9[%c0_706, %c0_707] : memref<32x72xf32, #tpu.memory_space<vmem>>, vector<32x72xf32>
    %cst_708 = arith.constant dense<0.000000e+00> : vector<32x128xf32>
    %792 = tpu.matmul %791, %779, %cst_708 {dimension_numbers = #tpu.dot_dimension_numbers<[1], [0], [0], [1], [0, 0, 1, 1], [], []>} : vector<32x72xf32>, vector<72x128xf32>, vector<32x128xf32> -> vector<32x128xf32>
    %c0_709 = arith.constant 0 : index
    %c0_710 = arith.constant 0 : index
    %793 = vector.load %arg10[%c0_709, %c0_710] : memref<32x72xf32, #tpu.memory_space<vmem>>, vector<32x72xf32>
    %c0_711 = arith.constant 0 : index
    %c0_712 = arith.constant 0 : index
    %794 = vector.load %arg20[%c0_711, %c0_712] : memref<72x128xf32, #tpu.memory_space<vmem>>, vector<72x128xf32>
    %cst_713 = arith.constant dense<0.000000e+00> : vector<32x128xf32>
    %795 = tpu.matmul %793, %794, %cst_713 {dimension_numbers = #tpu.dot_dimension_numbers<[1], [0], [0], [1], [0, 0, 1, 1], [], []>} : vector<32x72xf32>, vector<72x128xf32>, vector<32x128xf32> -> vector<32x128xf32>
    %796 = arith.addf %792, %795 : vector<32x128xf32>
    %797 = arith.addf %796, %25 : vector<32x128xf32>
    %798 = vector.extract_strided_slice %797 {offsets = [0, 0], sizes = [24, 128], strides = [1, 1]} : vector<32x128xf32> to vector<24x128xf32>
    %799 = arith.negf %798 : vector<24x128xf32>
    %800 = math.exp %799 : vector<24x128xf32>
    %cst_714 = arith.constant 1.000000e+00 : f32
    %801 = vector.broadcast %cst_714 : f32 to vector<24x128xf32>
    %802 = arith.addf %801, %800 : vector<24x128xf32>
    %803 = arith.divf %801, %802 : vector<24x128xf32>
    %804 = vector.extract_strided_slice %797 {offsets = [24, 0], sizes = [8, 128], strides = [1, 1]} : vector<32x128xf32> to vector<8x128xf32>
    %805 = math.tanh %804 : vector<8x128xf32>
    %806 = vector.extract_strided_slice %803 {offsets = [0, 0], sizes = [8, 128], strides = [1, 1]} : vector<24x128xf32> to vector<8x128xf32>
    %807 = vector.extract_strided_slice %803 {offsets = [8, 0], sizes = [8, 128], strides = [1, 1]} : vector<24x128xf32> to vector<8x128xf32>
    %808 = vector.extract_strided_slice %803 {offsets = [16, 0], sizes = [8, 128], strides = [1, 1]} : vector<24x128xf32> to vector<8x128xf32>
    %c0_715 = arith.constant 0 : index
    %c0_716 = arith.constant 0 : index
    %809 = vector.load %arg24[%c0_715, %c0_716] : memref<8x128xf32, #tpu.memory_space<vmem>>, vector<8x128xf32>
    %810 = arith.mulf %807, %809 : vector<8x128xf32>
    %811 = arith.mulf %806, %805 : vector<8x128xf32>
    %812 = arith.addf %810, %811 : vector<8x128xf32>
    %c0_717 = arith.constant 0 : index
    %c0_718 = arith.constant 0 : index
    %813 = vector.load %arg24[%c0_717, %c0_718] : memref<8x128xf32, #tpu.memory_space<vmem>>, vector<8x128xf32>
    tpu.vector_store %arg24[%c0_717, %c0_718], %812 {strides = array<i32>} : memref<8x128xf32, #tpu.memory_space<vmem>>, vector<8x128xf32>,
    %814 = math.tanh %812 : vector<8x128xf32>
    %815 = arith.mulf %808, %814 : vector<8x128xf32>
    %816 = vector.broadcast %16 : vector<1x128xf32> to vector<8x128xf32>
    %817 = arith.mulf %816, %815 : vector<8x128xf32>
    %c11_i32_719 = arith.constant 11 : i32
    %818 = tpu.dynamic_rotate %817 by %c11_i32_719 dim 1 : vector<8x128xf32>, i32 -> vector<8x128xf32>
    %c0_720 = arith.constant 0 : index
    %c0_721 = arith.constant 0 : index
    %819 = vector.load %arg20[%c0_720, %c0_721] : memref<72x128xf32, #tpu.memory_space<vmem>>, vector<8x128xf32>
    tpu.vector_store %arg20[%c0_720, %c0_721], %818 {strides = array<i32>} : memref<72x128xf32, #tpu.memory_space<vmem>>, vector<8x128xf32>,
    %c10_i32_722 = arith.constant 10 : i32
    %820 = tpu.dynamic_rotate %817 by %c10_i32_722 dim 1 : vector<8x128xf32>, i32 -> vector<8x128xf32>
    %c8_723 = arith.constant 8 : index
    %c0_724 = arith.constant 0 : index
    %821 = vector.load %arg20[%c8_723, %c0_724] : memref<72x128xf32, #tpu.memory_space<vmem>>, vector<8x128xf32>
    tpu.vector_store %arg20[%c8_723, %c0_724], %820 {strides = array<i32>} : memref<72x128xf32, #tpu.memory_space<vmem>>, vector<8x128xf32>,
    %c9_i32_725 = arith.constant 9 : i32
    %822 = tpu.dynamic_rotate %817 by %c9_i32_725 dim 1 : vector<8x128xf32>, i32 -> vector<8x128xf32>
    %c16_726 = arith.constant 16 : index
    %c0_727 = arith.constant 0 : index
    %823 = vector.load %arg20[%c16_726, %c0_727] : memref<72x128xf32, #tpu.memory_space<vmem>>, vector<8x128xf32>
    tpu.vector_store %arg20[%c16_726, %c0_727], %822 {strides = array<i32>} : memref<72x128xf32, #tpu.memory_space<vmem>>, vector<8x128xf32>,
    %c1_i32_728 = arith.constant 1 : i32
    %824 = tpu.dynamic_rotate %817 by %c1_i32_728 dim 1 : vector<8x128xf32>, i32 -> vector<8x128xf32>
    %c24_729 = arith.constant 24 : index
    %c0_730 = arith.constant 0 : index
    %825 = vector.load %arg20[%c24_729, %c0_730] : memref<72x128xf32, #tpu.memory_space<vmem>>, vector<8x128xf32>
    tpu.vector_store %arg20[%c24_729, %c0_730], %824 {strides = array<i32>} : memref<72x128xf32, #tpu.memory_space<vmem>>, vector<8x128xf32>,
    %c32_731 = arith.constant 32 : index
    %c0_732 = arith.constant 0 : index
    %826 = vector.load %arg20[%c32_731, %c0_732] : memref<72x128xf32, #tpu.memory_space<vmem>>, vector<8x128xf32>
    tpu.vector_store %arg20[%c32_731, %c0_732], %817 {strides = array<i32>} : memref<72x128xf32, #tpu.memory_space<vmem>>, vector<8x128xf32>,
    %c127_i32_733 = arith.constant 127 : i32
    %827 = tpu.dynamic_rotate %817 by %c127_i32_733 dim 1 : vector<8x128xf32>, i32 -> vector<8x128xf32>
    %c40_734 = arith.constant 40 : index
    %c0_735 = arith.constant 0 : index
    %828 = vector.load %arg20[%c40_734, %c0_735] : memref<72x128xf32, #tpu.memory_space<vmem>>, vector<8x128xf32>
    tpu.vector_store %arg20[%c40_734, %c0_735], %827 {strides = array<i32>} : memref<72x128xf32, #tpu.memory_space<vmem>>, vector<8x128xf32>,
    %c119_i32_736 = arith.constant 119 : i32
    %829 = tpu.dynamic_rotate %817 by %c119_i32_736 dim 1 : vector<8x128xf32>, i32 -> vector<8x128xf32>
    %c48_737 = arith.constant 48 : index
    %c0_738 = arith.constant 0 : index
    %830 = vector.load %arg20[%c48_737, %c0_738] : memref<72x128xf32, #tpu.memory_space<vmem>>, vector<8x128xf32>
    tpu.vector_store %arg20[%c48_737, %c0_738], %829 {strides = array<i32>} : memref<72x128xf32, #tpu.memory_space<vmem>>, vector<8x128xf32>,
    %c118_i32_739 = arith.constant 118 : i32
    %831 = tpu.dynamic_rotate %817 by %c118_i32_739 dim 1 : vector<8x128xf32>, i32 -> vector<8x128xf32>
    %c56_740 = arith.constant 56 : index
    %c0_741 = arith.constant 0 : index
    %832 = vector.load %arg20[%c56_740, %c0_741] : memref<72x128xf32, #tpu.memory_space<vmem>>, vector<8x128xf32>
    tpu.vector_store %arg20[%c56_740, %c0_741], %831 {strides = array<i32>} : memref<72x128xf32, #tpu.memory_space<vmem>>, vector<8x128xf32>,
    %c117_i32_742 = arith.constant 117 : i32
    %833 = tpu.dynamic_rotate %817 by %c117_i32_742 dim 1 : vector<8x128xf32>, i32 -> vector<8x128xf32>
    %c64_743 = arith.constant 64 : index
    %c0_744 = arith.constant 0 : index
    %834 = vector.load %arg20[%c64_743, %c0_744] : memref<72x128xf32, #tpu.memory_space<vmem>>, vector<8x128xf32>
    tpu.vector_store %arg20[%c64_743, %c0_744], %833 {strides = array<i32>} : memref<72x128xf32, #tpu.memory_space<vmem>>, vector<8x128xf32>,
    %c0_745 = arith.constant 0 : index
    %c0_746 = arith.constant 0 : index
    %835 = vector.load %arg12[%c0_745, %c0_746] : memref<32x72xf32, #tpu.memory_space<vmem>>, vector<32x72xf32>
    %c0_747 = arith.constant 0 : index
    %c0_748 = arith.constant 0 : index
    %836 = vector.load %arg20[%c0_747, %c0_748] : memref<72x128xf32, #tpu.memory_space<vmem>>, vector<72x128xf32>
    %cst_749 = arith.constant dense<0.000000e+00> : vector<32x128xf32>
    %837 = tpu.matmul %835, %836, %cst_749 {dimension_numbers = #tpu.dot_dimension_numbers<[1], [0], [0], [1], [0, 0, 1, 1], [], []>} : vector<32x72xf32>, vector<72x128xf32>, vector<32x128xf32> -> vector<32x128xf32>
    %c0_750 = arith.constant 0 : index
    %c0_751 = arith.constant 0 : index
    %838 = vector.load %arg13[%c0_750, %c0_751] : memref<32x72xf32, #tpu.memory_space<vmem>>, vector<32x72xf32>
    %c0_752 = arith.constant 0 : index
    %c0_753 = arith.constant 0 : index
    %839 = vector.load %arg21[%c0_752, %c0_753] : memref<72x128xf32, #tpu.memory_space<vmem>>, vector<72x128xf32>
    %cst_754 = arith.constant dense<0.000000e+00> : vector<32x128xf32>
    %840 = tpu.matmul %838, %839, %cst_754 {dimension_numbers = #tpu.dot_dimension_numbers<[1], [0], [0], [1], [0, 0, 1, 1], [], []>} : vector<32x72xf32>, vector<72x128xf32>, vector<32x128xf32> -> vector<32x128xf32>
    %841 = arith.addf %837, %840 : vector<32x128xf32>
    %842 = arith.addf %841, %28 : vector<32x128xf32>
    %843 = vector.extract_strided_slice %842 {offsets = [0, 0], sizes = [24, 128], strides = [1, 1]} : vector<32x128xf32> to vector<24x128xf32>
    %844 = arith.negf %843 : vector<24x128xf32>
    %845 = math.exp %844 : vector<24x128xf32>
    %cst_755 = arith.constant 1.000000e+00 : f32
    %846 = vector.broadcast %cst_755 : f32 to vector<24x128xf32>
    %847 = arith.addf %846, %845 : vector<24x128xf32>
    %848 = arith.divf %846, %847 : vector<24x128xf32>
    %849 = vector.extract_strided_slice %842 {offsets = [24, 0], sizes = [8, 128], strides = [1, 1]} : vector<32x128xf32> to vector<8x128xf32>
    %850 = math.tanh %849 : vector<8x128xf32>
    %851 = vector.extract_strided_slice %848 {offsets = [0, 0], sizes = [8, 128], strides = [1, 1]} : vector<24x128xf32> to vector<8x128xf32>
    %852 = vector.extract_strided_slice %848 {offsets = [8, 0], sizes = [8, 128], strides = [1, 1]} : vector<24x128xf32> to vector<8x128xf32>
    %853 = vector.extract_strided_slice %848 {offsets = [16, 0], sizes = [8, 128], strides = [1, 1]} : vector<24x128xf32> to vector<8x128xf32>
    %c0_756 = arith.constant 0 : index
    %c0_757 = arith.constant 0 : index
    %854 = vector.load %arg25[%c0_756, %c0_757] : memref<8x128xf32, #tpu.memory_space<vmem>>, vector<8x128xf32>
    %855 = arith.mulf %852, %854 : vector<8x128xf32>
    %856 = arith.mulf %851, %850 : vector<8x128xf32>
    %857 = arith.addf %855, %856 : vector<8x128xf32>
    %c0_758 = arith.constant 0 : index
    %c0_759 = arith.constant 0 : index
    %858 = vector.load %arg25[%c0_758, %c0_759] : memref<8x128xf32, #tpu.memory_space<vmem>>, vector<8x128xf32>
    tpu.vector_store %arg25[%c0_758, %c0_759], %857 {strides = array<i32>} : memref<8x128xf32, #tpu.memory_space<vmem>>, vector<8x128xf32>,
    %859 = math.tanh %857 : vector<8x128xf32>
    %860 = arith.mulf %853, %859 : vector<8x128xf32>
    %861 = vector.broadcast %16 : vector<1x128xf32> to vector<8x128xf32>
    %862 = arith.mulf %861, %860 : vector<8x128xf32>
    %c11_i32_760 = arith.constant 11 : i32
    %863 = tpu.dynamic_rotate %862 by %c11_i32_760 dim 1 : vector<8x128xf32>, i32 -> vector<8x128xf32>
    %c0_761 = arith.constant 0 : index
    %c0_762 = arith.constant 0 : index
    %864 = vector.load %arg21[%c0_761, %c0_762] : memref<72x128xf32, #tpu.memory_space<vmem>>, vector<8x128xf32>
    tpu.vector_store %arg21[%c0_761, %c0_762], %863 {strides = array<i32>} : memref<72x128xf32, #tpu.memory_space<vmem>>, vector<8x128xf32>,
    %c10_i32_763 = arith.constant 10 : i32
    %865 = tpu.dynamic_rotate %862 by %c10_i32_763 dim 1 : vector<8x128xf32>, i32 -> vector<8x128xf32>
    %c8_764 = arith.constant 8 : index
    %c0_765 = arith.constant 0 : index
    %866 = vector.load %arg21[%c8_764, %c0_765] : memref<72x128xf32, #tpu.memory_space<vmem>>, vector<8x128xf32>
    tpu.vector_store %arg21[%c8_764, %c0_765], %865 {strides = array<i32>} : memref<72x128xf32, #tpu.memory_space<vmem>>, vector<8x128xf32>,
    %c9_i32_766 = arith.constant 9 : i32
    %867 = tpu.dynamic_rotate %862 by %c9_i32_766 dim 1 : vector<8x128xf32>, i32 -> vector<8x128xf32>
    %c16_767 = arith.constant 16 : index
    %c0_768 = arith.constant 0 : index
    %868 = vector.load %arg21[%c16_767, %c0_768] : memref<72x128xf32, #tpu.memory_space<vmem>>, vector<8x128xf32>
    tpu.vector_store %arg21[%c16_767, %c0_768], %867 {strides = array<i32>} : memref<72x128xf32, #tpu.memory_space<vmem>>, vector<8x128xf32>,
    %c1_i32_769 = arith.constant 1 : i32
    %869 = tpu.dynamic_rotate %862 by %c1_i32_769 dim 1 : vector<8x128xf32>, i32 -> vector<8x128xf32>
    %c24_770 = arith.constant 24 : index
    %c0_771 = arith.constant 0 : index
    %870 = vector.load %arg21[%c24_770, %c0_771] : memref<72x128xf32, #tpu.memory_space<vmem>>, vector<8x128xf32>
    tpu.vector_store %arg21[%c24_770, %c0_771], %869 {strides = array<i32>} : memref<72x128xf32, #tpu.memory_space<vmem>>, vector<8x128xf32>,
    %c32_772 = arith.constant 32 : index
    %c0_773 = arith.constant 0 : index
    %871 = vector.load %arg21[%c32_772, %c0_773] : memref<72x128xf32, #tpu.memory_space<vmem>>, vector<8x128xf32>
    tpu.vector_store %arg21[%c32_772, %c0_773], %862 {strides = array<i32>} : memref<72x128xf32, #tpu.memory_space<vmem>>, vector<8x128xf32>,
    %c127_i32_774 = arith.constant 127 : i32
    %872 = tpu.dynamic_rotate %862 by %c127_i32_774 dim 1 : vector<8x128xf32>, i32 -> vector<8x128xf32>
    %c40_775 = arith.constant 40 : index
    %c0_776 = arith.constant 0 : index
    %873 = vector.load %arg21[%c40_775, %c0_776] : memref<72x128xf32, #tpu.memory_space<vmem>>, vector<8x128xf32>
    tpu.vector_store %arg21[%c40_775, %c0_776], %872 {strides = array<i32>} : memref<72x128xf32, #tpu.memory_space<vmem>>, vector<8x128xf32>,
    %c119_i32_777 = arith.constant 119 : i32
    %874 = tpu.dynamic_rotate %862 by %c119_i32_777 dim 1 : vector<8x128xf32>, i32 -> vector<8x128xf32>
    %c48_778 = arith.constant 48 : index
    %c0_779 = arith.constant 0 : index
    %875 = vector.load %arg21[%c48_778, %c0_779] : memref<72x128xf32, #tpu.memory_space<vmem>>, vector<8x128xf32>
    tpu.vector_store %arg21[%c48_778, %c0_779], %874 {strides = array<i32>} : memref<72x128xf32, #tpu.memory_space<vmem>>, vector<8x128xf32>,
    %c118_i32_780 = arith.constant 118 : i32
    %876 = tpu.dynamic_rotate %862 by %c118_i32_780 dim 1 : vector<8x128xf32>, i32 -> vector<8x128xf32>
    %c56_781 = arith.constant 56 : index
    %c0_782 = arith.constant 0 : index
    %877 = vector.load %arg21[%c56_781, %c0_782] : memref<72x128xf32, #tpu.memory_space<vmem>>, vector<8x128xf32>
    tpu.vector_store %arg21[%c56_781, %c0_782], %876 {strides = array<i32>} : memref<72x128xf32, #tpu.memory_space<vmem>>, vector<8x128xf32>,
    %c117_i32_783 = arith.constant 117 : i32
    %878 = tpu.dynamic_rotate %862 by %c117_i32_783 dim 1 : vector<8x128xf32>, i32 -> vector<8x128xf32>
    %c64_784 = arith.constant 64 : index
    %c0_785 = arith.constant 0 : index
    %879 = vector.load %arg21[%c64_784, %c0_785] : memref<72x128xf32, #tpu.memory_space<vmem>>, vector<8x128xf32>
    tpu.vector_store %arg21[%c64_784, %c0_785], %878 {strides = array<i32>} : memref<72x128xf32, #tpu.memory_space<vmem>>, vector<8x128xf32>,
    %c0_786 = arith.constant 0 : index
    %c0_787 = arith.constant 0 : index
    %880 = vector.load %arg21[%c0_786, %c0_787] : memref<72x128xf32, #tpu.memory_space<vmem>>, vector<72x128xf32>
    %c0_788 = arith.constant 0 : index
    %c0_789 = arith.constant 0 : index
    %881 = vector.load %arg15[%c0_788, %c0_789] : memref<32x72xf32, #tpu.memory_space<vmem>>, vector<32x72xf32>
    %cst_790 = arith.constant dense<0.000000e+00> : vector<32x128xf32>
    %882 = tpu.matmul %881, %880, %cst_790 {dimension_numbers = #tpu.dot_dimension_numbers<[1], [0], [0], [1], [0, 0, 1, 1], [], []>} : vector<32x72xf32>, vector<72x128xf32>, vector<32x128xf32> -> vector<32x128xf32>
    %883 = arith.addf %882, %31 : vector<32x128xf32>
    %884 = arith.negf %883 : vector<32x128xf32>
    %885 = math.exp %884 : vector<32x128xf32>
    %cst_791 = arith.constant 1.000000e+00 : f32
    %886 = vector.broadcast %cst_791 : f32 to vector<32x128xf32>
    %887 = arith.addf %886, %885 : vector<32x128xf32>
    %888 = arith.divf %886, %887 : vector<32x128xf32>
    %c0_792 = arith.constant 0 : index
    %c3_793 = arith.constant 3 : index
    %c0_794 = arith.constant 0 : index
    %c0_795 = arith.constant 0 : index
    %889 = vector.load %arg17[%c0_792, %c3_793, %c0_794, %c0_795] : memref<1x4x32x128xf32, #tpu.memory_space<vmem>>, vector<1x1x32x128xf32>
    %890 = vector.shape_cast %889 : vector<1x1x32x128xf32> to vector<32x128xf32>
    %891 = vector.shape_cast %888 : vector<32x128xf32> to vector<1x1x32x128xf32>
    tpu.vector_store %arg17[%c0_792, %c3_793, %c0_794, %c0_795], %891 {strides = array<i32>} : memref<1x4x32x128xf32, #tpu.memory_space<vmem>>, vector<1x1x32x128xf32>,
    return
  }
  func.func @transform_0(%arg0: i32) -> (i32, i32, i32, i32) {
    %c0_i32 = arith.constant 0 : i32
    %c0_i32_0 = arith.constant 0 : i32
    %c0_i32_1 = arith.constant 0 : i32
    %c0_i32_2 = arith.constant 0 : i32
    return %arg0, %c0_i32, %c0_i32_0, %c0_i32_1 : i32, i32, i32, i32
  }
  func.func @transform_1(%arg0: i32) -> (i32, i32) {
    %c0_i32 = arith.constant 0 : i32
    %c0_i32_0 = arith.constant 0 : i32
    %c0_i32_1 = arith.constant 0 : i32
    return %c0_i32, %c0_i32_0 : i32, i32
  }
  func.func @transform_2(%arg0: i32) -> (i32, i32) {
    %c0_i32 = arith.constant 0 : i32
    %c0_i32_0 = arith.constant 0 : i32
    %c0_i32_1 = arith.constant 0 : i32
    return %c0_i32, %c0_i32_0 : i32, i32
  }
  func.func @transform_3(%arg0: i32) -> (i32, i32) {
    %c0_i32 = arith.constant 0 : i32
    %c0_i32_0 = arith.constant 0 : i32
    %c0_i32_1 = arith.constant 0 : i32
    return %c0_i32, %c0_i32_0 : i32, i32
  }
  func.func @transform_4(%arg0: i32) -> (i32, i32) {
    %c0_i32 = arith.constant 0 : i32
    %c0_i32_0 = arith.constant 0 : i32
    %c0_i32_1 = arith.constant 0 : i32
    return %c0_i32, %c0_i32_0 : i32, i32
  }
  func.func @transform_5(%arg0: i32) -> (i32, i32) {
    %c0_i32 = arith.constant 0 : i32
    %c0_i32_0 = arith.constant 0 : i32
    %c0_i32_1 = arith.constant 0 : i32
    return %c0_i32, %c0_i32_0 : i32, i32
  }
  func.func @transform_6(%arg0: i32) -> (i32, i32) {
    %c0_i32 = arith.constant 0 : i32
    %c0_i32_0 = arith.constant 0 : i32
    %c0_i32_1 = arith.constant 0 : i32
    return %c0_i32, %c0_i32_0 : i32, i32
  }
  func.func @transform_7(%arg0: i32) -> (i32, i32) {
    %c0_i32 = arith.constant 0 : i32
    %c0_i32_0 = arith.constant 0 : i32
    %c0_i32_1 = arith.constant 0 : i32
    return %c0_i32, %c0_i32_0 : i32, i32
  }
  func.func @transform_8(%arg0: i32) -> (i32, i32) {
    %c0_i32 = arith.constant 0 : i32
    %c0_i32_0 = arith.constant 0 : i32
    %c0_i32_1 = arith.constant 0 : i32
    return %c0_i32, %c0_i32_0 : i32, i32
  }
  func.func @transform_9(%arg0: i32) -> (i32, i32) {
    %c0_i32 = arith.constant 0 : i32
    %c0_i32_0 = arith.constant 0 : i32
    %c0_i32_1 = arith.constant 0 : i32
    return %c0_i32, %c0_i32_0 : i32, i32
  }
  func.func @transform_10(%arg0: i32) -> (i32, i32) {
    %c0_i32 = arith.constant 0 : i32
    %c0_i32_0 = arith.constant 0 : i32
    %c0_i32_1 = arith.constant 0 : i32
    return %c0_i32, %c0_i32_0 : i32, i32
  }
  func.func @transform_11(%arg0: i32) -> (i32, i32) {
    %c0_i32 = arith.constant 0 : i32
    %c0_i32_0 = arith.constant 0 : i32
    %c0_i32_1 = arith.constant 0 : i32
    return %c0_i32, %c0_i32_0 : i32, i32
  }
  func.func @transform_12(%arg0: i32) -> (i32, i32) {
    %c0_i32 = arith.constant 0 : i32
    %c0_i32_0 = arith.constant 0 : i32
    %c0_i32_1 = arith.constant 0 : i32
    return %c0_i32, %c0_i32_0 : i32, i32
  }
  func.func @transform_13(%arg0: i32) -> (i32, i32) {
    %c0_i32 = arith.constant 0 : i32
    %c0_i32_0 = arith.constant 0 : i32
    %c0_i32_1 = arith.constant 0 : i32
    return %c0_i32, %c0_i32_0 : i32, i32
  }
  func.func @transform_14(%arg0: i32) -> (i32, i32) {
    %c0_i32 = arith.constant 0 : i32
    %c0_i32_0 = arith.constant 0 : i32
    %c0_i32_1 = arith.constant 0 : i32
    return %c0_i32, %c0_i32_0 : i32, i32
  }
  func.func @transform_15(%arg0: i32) -> (i32, i32) {
    %c0_i32 = arith.constant 0 : i32
    %c0_i32_0 = arith.constant 0 : i32
    %c0_i32_1 = arith.constant 0 : i32
    return %c0_i32, %c0_i32_0 : i32, i32
  }
  func.func @transform_16(%arg0: i32) -> (i32, i32, i32, i32) {
    %c0_i32 = arith.constant 0 : i32
    %c0_i32_0 = arith.constant 0 : i32
    %c0_i32_1 = arith.constant 0 : i32
    %c0_i32_2 = arith.constant 0 : i32
    return %arg0, %c0_i32, %c0_i32_0, %c0_i32_1 : i32, i32, i32, i32
  }
}

</mosaic_0001>

<bundles_post_ra>
// kernel: tpu_custom_call.1
= control target key start
LH: loop header
LB: loop body
LE: loop exit
PB: predicated region body
PF: predicated region fallthrough
CT: control target
= control target key end

     0   :  { %s9793_s0 = inlined_call_operand.vmem [shape: f32[2,5,36,128], index: 0, kind: input, shape index: {}]   ;;  %s9794_s1 = inlined_call_operand.vmem [shape: f32[1,128], index: 1, kind: input, shape index: {}]   ;;  %s9795_s2 = inlined_call_operand.vmem [shape: f32[32,36], index: 2, kind: input, shape index: {}]   ;;  %s9796_s3 = inlined_call_operand.vmem [shape: f32[32,72], index: 3, kind: input, shape index: {}]   ;;  %s9797_s4 = inlined_call_operand.vmem [shape: f32[32,1], index: 4, kind: input, shape index: {}]   ;;  %s9798_s5 = inlined_call_operand.vmem [shape: f32[32,72], index: 5, kind: input, shape index: {}]   ;;  %s9799_s6 = inlined_call_operand.vmem [shape: f32[32,72], index: 6, kind: input, shape index: {}]   ;;  %s9800_s7 = inlined_call_operand.vmem [shape: f32[32,1], index: 7, kind: input, shape index: {}]   ;;  %s9801_s8 = inlined_call_operand.vmem [shape: f32[32,72], index: 8, kind: input, shape index: {}]   ;;  %s9802_s9 = inlined_call_operand.vmem [shape: f32[32,72], index: 9, kind: input, shape index: {}]   ;;  %s9803_s10 = inlined_call_operand.vmem [shape: f32[32,1], index: 10, kind: input, shape index: {}]   ;;  %s9804_s11 = inlined_call_operand.vmem [shape: f32[32,72], index: 11, kind: input, shape index: {}]   ;;  %s9805_s12 = inlined_call_operand.vmem [shape: f32[32,72], index: 12, kind: input, shape index: {}]   ;;  %s9806_s13 = inlined_call_operand.vmem [shape: f32[32,1], index: 13, kind: input, shape index: {}]   ;;  %s9807_s14 = inlined_call_operand.vmem [shape: f32[32,72], index: 14, kind: input, shape index: {}]   ;;  %s9808_s15 = inlined_call_operand.vmem [shape: f32[32,1], index: 15, kind: input, shape index: {}]   ;;  %s9809_s16 = inlined_call_operand.hbm [shape: f32[2,4,32,128], index: 16, kind: output, shape index: {}]  }
   0x1   :  { %9831 = sst [smem:[#allocation18_spill]] %s9793_s0 }
   0x2   :  { %9832 = sst [smem:[#allocation19_spill]] %s9795_s2 }
   0x3   :  { %9833 = sst [smem:[#allocation20_spill]] %s9796_s3 }
   0x4   :  { %9834 = sst [smem:[#allocation21_spill]] %s9797_s4 }
   0x5   :  { %9835 = sst [smem:[#allocation22_spill]] %s9798_s5 }
   0x6   :  { %9836 = sst [smem:[#allocation23_spill]] %s9800_s7 }
   0x7   :  { %21 = vsyncpa [#allocation11], 0 }
   0x8   :  { %23 = vsyncpa [#allocation11 + $0x1], 0  ;;  %s8435_s21 = smov 0   ;;  %s8437_s22 = smov 0  }
   0x9   :  { %s8439_s23 = smov 0   ;;  %s8441_s24 = smov 0  }
   0xa LB: > { %9837 = sst [smem:[#allocation13_spill]] %s8323_s21  ;;  %s8456_s25 = sadd.s32 4294967295, %s8335_s24   ;;  %s8335_s24 = sphi %s8441_s24, %s9860_s24   ;;  %s8331_s23 = sphi %s8439_s23, %s9862_s23   ;;  %s8327_s22 = sphi %s8437_s22, %s9864_s22   ;;  %s8323_s21 = sphi %s8435_s21, %s9863_s21  }
   0xb   : > { %9838 = sst [smem:[#allocation14_spill]] %s8331_s23  ;;  %s6261_s26 = sadd.s32 4294967294, %s8335_s24  }
   0xc   : > { %s8460_s27 = sadd.s32 1, %s8335_s24   ;;  %s377_s28 = sadd.s32 1, %s8331_s23 }
   0xd   : > { %9839 = sst [smem:[#allocation15_spill]] %s8460_s27  ;;  %s374_s29 = ssub.s32 %s8335_s24, %s8460_s27 }
   0xe   : > { %p387_p0 = scmp.ne.s32.totalorder %s8331_s23, %s8327_s22  ;;  %p375_p1 = scmp.eq.s32.totalorder %s374_s29, 0 }
   0xf   : > { %p388_p2 = scmp.eq.s32.totalorder %s8456_s25, 1  ;;  %p393_p3 = scmp.ne.s32.totalorder %s8327_s22, %s8323_s21 }
  0x10   : > { %p394_p4 = scmp.eq.s32.totalorder %s6261_s26, 1  ;;  %p6264_p7 = scmp.ge.s32.totalorder %s8335_s24, 1 }
  0x11   : > { %s8471_s30 = scalar_select %p375_p1, %s8331_s23, %s377_s28  }
  0x12   : > { %p8473_p5 = por %p388_p2, %p387_p0  ;;  %p8477_p6 = por %p394_p4, %p393_p3 }
  0x13   : > { %9840 = sst [smem:[#allocation16_spill]] %s8471_s30  ;;  %p465_p8 = scmp.lt.s32.totalorder %s8335_s24, 3 }
  0x14   : > { %s9842_s17 = scalar_select %p8477_p6, 1, 0 }
  0x15   : > { %p466_p9 = pnand %p6264_p7, %p465_p8 }
  0x16   : > { %9843 = sst [smem:[#allocation17_spill]] %s9842_s17  ;;  %p515_p10 = scmp.lt.s32.totalorder (!%p466_p9), %s8456_s25, 1 }
  0x17   : > { %469 = sbr.rel (%p466_p9) target bundleno = 5829 (0x16c5), region = 84  ;;  %s9844_s3 = sld [smem:[#allocation20_spill]] (!%p466_p9) }
  0x18   : > { %s9845_s2 = sld [smem:[#allocation19_spill]] (!%p466_p9)  ;;  %s9822_s23 = smov (!%p466_p9), 118  }
  0x19   : > { %s9846_s4 = sld [smem:[#allocation21_spill]] (!%p466_p9)  ;;  %s9818_s27 = smov (!%p466_p9), 117  }
  0x1a   : > { %s9848_s5 = sld [smem:[#allocation22_spill]] (!%p466_p9)  ;;  %s9816_s19 = smov (!%p466_p9), 119  }
  0x1b   : > { %s9820_s30 = smov (!%p466_p9), 9   ;;  %s9824_s26 = smov (!%p466_p9), 1  }
  0x1c   : > { %vm703_vm0 = vcmask 588800   ;;  %v8337_v2 = vmov 0.0   ;;  %vm801_vm1 = vcmask 293888   ;;  %s516_s20 = scalar_select %p515_p10, %s8456_s25, 1  ;;  %v8338_v5 = vmov 0   ;;  %v8574_v19 = vld [vmem:[%s9799_s6] sm:$0xff] }
  0x1d   : > { %v8487_v0 = vld [vmem:[%s9844_s3] sm:$0xff]  ;;  %v8492_v1 = vld [vmem:[%s9844_s3 + $0x8] sm:$0xff]  ;;  %7009 = vmatprep.subr.mxu0 %v8337_v2  ;;  %v8505_v4 = vld [vmem:[%s9844_s3 + $0x10] sm:$0xff]  ;;  %7917 = vset.pattern.permute.xlu0 %v8338_v5  ;;  %vm814_vm2 = vcmask 1043456   ;;  %s9828_s17 = smov 10   ;;  %s9849_s7 = sld [smem:[#allocation23_spill]] }
  0x1e   : > { %7011 = vmatprep.mubr.msk.f32.mxu0 %vm703_vm0, %v8487_v0  ;;  %v8500_v3 = vld [vmem:[%s9845_s2] sm:$0xff]  ;;  %7010 = vmatpush3.msra.mxu0 %v8337_v2  ;;  %s7865_s18 = smul.u32 200, %s516_s20  ;;  %v8524_v8 = vld [vmem:[%s9844_s3 + $0x18] sm:$0xff]  ;;  %s9847_s20 = sld [smem:[#allocation18_spill]]  ;;  %v8551_v16 = vld [vmem:[%s9845_s2 + $0x8] sm:$0xff] }
  0x1f   : > { %7027 = vmatprep.mubr.msk.f32.mxu1 %vm801_vm1, %v8500_v3  ;;  %7012 = vmatmul.mubr.msk.f32.vlgmr.msra.gmra.mxu0 %vm703_vm0, %v8492_v1  ;;  %v561_v6 = vld [vmem:[%s9846_s4] sm:$0xff]  ;;  %v563_v7 = vld [vmem:[%s9846_s4 + $0x10] sm:$0xff]  ;;  %v562_v9 = vld [vmem:[%s9846_s4 + $0x8] sm:$0xff]  ;;  %s9851_s29 = smov 117  }
  0x20   : > { %7014 = vmatprep.mubr.msk.f32.mxu0 %vm703_vm0, %v8505_v4  ;;  %567 = vperm.xlu0 %7917, %v561_v6   ;;  %v564_v12 = vld [vmem:[%s9846_s4 + $0x18] sm:$0xff]  ;;  %v8556_v17 = vld [vmem:[%s9845_s2 + $0x10] sm:$0xff]  ;;  %v8579_v20 = vld [vmem:[%s9799_s6 + $0x8] sm:$0xff]  ;;  %s9852_s4 = smov 127  }
  0x21   : > { %7918 = vset.pattern.permute.xlu1 %v8338_v5  ;;  %7033 = vmatprep.subr.mxu0 %v8337_v2  ;;  %v8565_v18 = vld [vmem:[%s9845_s2 + $0x18] sm:$0xff]  ;;  %v8603_v58 = vld [vmem:[%s9794_s1] ss:$0 sm:$0xff]  ;;  %v8609_v61 = vld [vmem:[%s9799_s6 + $0x10] sm:$0xff] }
  0x22   : > { %577 = vperm.xlu1 %7918, %v563_v7   ;;  %7034 = vmatpush3.msra.mxu0 %v8337_v2  ;;  %v8616_v62 = vld [vmem:[%s9799_s6 + $0x18] sm:$0xff]  ;;  %v8625_v63 = vld [vmem:[%s9848_s5] sm:$0xff] }
  0x23   : > { %7015 = vmatmul.mubr.msk.f32.gmra.mxu0 %vm703_vm0, %v8524_v8  ;;  %v586_v5 = vld [vmem:[%s9849_s7 + $0x8] sm:$0xff]  ;;  %v585_v6 = vld [vmem:[%s9849_s7] sm:$0xff]  ;;  %v588_v7 = vld [vmem:[%s9849_s7 + $0x18] sm:$0xff] }
  0x24   : > { %s8533_s28 = scalar_lea.vmem %s9847_s20, %s7865_s18  ;;  %572 = vperm.xlu0 %7917, %v562_v9   ;;  %7035 = vmatprep.mubr.msk.f32.mxu0 %vm703_vm0, %v8574_v19  ;;  %s9814_s18 = smov 127   ;;  %v587_v9 = vld [vmem:[%s9849_s7 + $0x10] sm:$0xff] }
  0x25   : > { %v689_v10 = vld [vmem:[%s8533_s28 + $0x20] sm:$0xf]  ;;  %v688_v11 = vld [vmem:[%s8533_s28 + $0x18] sm:$0xff]  ;;  %v687_v13 = vld [vmem:[%s8533_s28 + $0x10] sm:$0xff]  ;;  %s9826_s20 = smov 11  }
  0x26   : > { %7017 = vmatprep.subr.msk.mxu1 %vm814_vm2, %v689_v10  ;;  %582 = vperm.xlu1 %7918, %v564_v12   ;;  %v686_v14 = vld [vmem:[%s8533_s28 + $0x8] sm:$0xff]  ;;  %v685_v15 = vld [vmem:[%s8533_s28] sm:$0xff] }
  0x27   : > { %7018 = vmatpush3.msk.msra.mxu1 %vm814_vm2, %v689_v10  ;;  %7036 = vmatmul.mubr.msk.f32.vlgmr.msra.gmra.mxu0 %vm703_vm0, %v8579_v20 }
  0x28   : > { %7019 = vmatprep.subr.mxu1 %v688_v11  ;;  %7038 = vmatprep.mubr.msk.f32.mxu0 %vm703_vm0, %v8609_v61 }
  0x29   : > { %7020 = vmatpush3.msra.mxu1 %v688_v11 }
  0x2a   : > { %7021 = vmatprep.subr.mxu1 %v687_v13 }
  0x2b   : > { %7022 = vmatpush3.msra.mxu1 %v687_v13  ;;  %7039 = vmatmul.mubr.msk.f32.gmra.mxu0 %vm703_vm0, %v8616_v62 }
  0x2c   : > { %7023 = vmatprep.subr.mxu1 %v686_v14  ;;  %7059 = vmatprep.mubr.msk.f32.mxu0 %vm703_vm0, %v8625_v63 }
  0x2d   : > { %7024 = vmatpush3.msra.mxu1 %v686_v14 }
  0x2e   : > { %7025 = vmatprep.subr.mxu1 %v685_v15 }
  0x2f   : > { %7026 = vmatpush3.msra.mxu1 %v685_v15 }
  0x30   : > { %7028 = vmatmul.mubr.msk.f32.vlgmr.msra.gmra.mxu1 %vm801_vm1, %v8551_v16 }
  0x31   : > { %7030 = vmatprep.mubr.msk.f32.mxu1 %vm801_vm1, %v8556_v17 }
  0x34   : > { %7031 = vmatmul.mubr.msk.f32.gmra.mxu1 %vm801_vm1, %v8565_v18 }
  0x35   : > { %7083 = vmatprep.mubr.msk.f32.mxu1 %vm703_vm0, %v8487_v0 }
  0x9b   : > { %v8585_v21 = vpop.permute.xlu0 %567 }
  0x9d   : > { %v8591_v38 = vpop.permute.xlu1 %577 }
  0x9f   : > { %v8587_v26 = vpop.permute.xlu0 %572 }
  0xa1   : > { %v8594_v41 = vpop.permute.xlu1 %582 }
  0xdf   : > { %v7013_v22 = vpop.f32.mrf.mxu0 }
  0xe1   : > { %v782_v24 = vpop.f32.mrf.mxu0 }
  0xe3   : > { %v7016_v30 = vpop.f32.mrf.mxu0 }
  0xe5   : > { %v792_v35 = vpop.f32.mrf.mxu0 }
  0xf0   : > { %v7029_v23 = vpop.f32.mrf.mxu1 }
  0xf1   : > { %v890_v25 = vadd.f32 %v7029_v23, %v7013_v22 }
  0xf2   : > { %v884_v27 = vpop.f32.mrf.mxu1 }
  0xf3   : > { %v904_v28 = vadd.f32 %v890_v25, %v8587_v26  ;;  %v885_v29 = vadd.f32 %v884_v27, %v782_v24  ;;  %v8650_v24 = vld [vmem:[%s9848_s5 + $0x8] sm:$0xff]  ;;  %v8656_v27 = vld [vmem:[%s9848_s5 + $0x10] sm:$0xff] }
  0xf4   : > { %v7032_v31 = vpop.f32.mrf.mxu1  ;;  %v6295_v25 = vld [vmem:[%s8533_s28 + $0x48] sm:$0xf] }
  0xf5   : > { %v6277_v32 = vmul.f32 -1.442695, %v904_v28  ;;  %v903_v33 = vadd.f32 %v885_v29, %v8585_v21  ;;  %v900_v40 = vadd.f32 %v7032_v31, %v7016_v30  ;;  %v6294_v28 = vld [vmem:[%s8533_s28 + $0x40] sm:$0xff]  ;;  %v8668_v29 = vld [vmem:[%s9848_s5 + $0x18] sm:$0xff]  ;;  %v6292_v31 = vld [vmem:[%s8533_s28 + $0x30] sm:$0xff] }
  0xf6   : > { %v894_v36 = vpop.f32.mrf.mxu1  ;;  %v6293_v30 = vld [vmem:[%s8533_s28 + $0x38] sm:$0xff] }
  0xf7   : > { %7919 = vpow2.f32 %v6277_v32  ;;  %v6276_v34 = vmul.f32 -1.442695, %v903_v33  ;;  %v895_v37 = vadd.f32 %v894_v36, %v792_v35  ;;  %v906_v44 = vadd.f32 %v900_v40, %v8594_v41  ;;  %v6291_v32 = vld [vmem:[%s8533_s28 + $0x28] sm:$0xff]  ;;  %v7037_v33 = vpop.f32.mrf.mxu0 }
  0xf9   : > { %7921 = vpow2.f32 %v6276_v34  ;;  %v905_v39 = vadd.f32 %v895_v37, %v8591_v38  ;;  %v1069_v34 = vpop.f32.mrf.mxu0 }
  0xfb   : > { %v6278_v42 = vmul.f32 -1.442695, %v905_v39  ;;  %v7040_v35 = vpop.f32.mrf.mxu0 }
  0xfd   : > { %7923 = vpow2.f32 %v6278_v42  ;;  %v1079_v36 = vpop.f32.mrf.mxu0 }
 0x104   : > { %v7920_v43 = vpop.eup %7919 }
 0x105   : > { %v917_v45 = vadd.f32 1.0, %v7920_v43 }
 0x106   : > { %v7922_v46 = vpop.eup %7921 }
 0x107   : > { %7925 = vrcp.f32 %v917_v45  ;;  %v916_v47 = vadd.f32 1.0, %v7922_v46 }
 0x108   : > { %7927 = vtanh.f32 %v906_v44 }
 0x109   : > { %7929 = vrcp.f32 %v916_v47 }
 0x10a   : > { %v7924_v48 = vpop.eup %7923 }
 0x10b   : > { %v918_v52 = vadd.f32 1.0, %v7924_v48 }
 0x10d   : > { %7931 = vrcp.f32 %v918_v52 }
 0x114   : > { %v7926_v49 = vpop.eup %7925 }
 0x115   : > { %v7928_v50 = vpop.eup %7927  ;;  %v927_v53 = vmul.f32 0.0, %v7926_v49 }
 0x116   : > { %v7930_v51 = vpop.eup %7929 }
 0x117   : > { %v928_v54 = vmul.f32 %v7930_v51, %v7928_v50 }
 0x119   : > { %v8597_v55 = vadd.f32 %v928_v54, %v927_v53 }
 0x11a   : > { %v7932_v56 = vpop.eup %7931 }
 0x11b   : > { %7933 = vtanh.f32 %v8597_v55 }
 0x128   : > { %v7934_v57 = vpop.eup %7933 }
 0x129   : > { %v932_v59 = vmul.f32 %v7934_v57, %v7932_v56 }
 0x12b   : > { %v939_v60 = vmul.f32 %v8603_v58, %v932_v59 }
 0x12d   : > { %959 = vrot.lane.b32.xlu1 %v939_v60, %s9822_s23  ;;  %962 = vrot.lane.b32.xlu0 %v939_v60, %s9818_s27  ;;  %s9853_s23 = smov 119   ;;  %s9854_s27 = smov 1  }
 0x131   : > { %953 = vrot.lane.b32.xlu1 %v939_v60, %s9814_s18  ;;  %956 = vrot.lane.b32.xlu0 %v939_v60, %s9816_s19  ;;  %s9855_s18 = smov 9  }
 0x135   : > { %946 = vrot.lane.b32.xlu1 %v939_v60, %s9820_s30  ;;  %949 = vrot.lane.b32.xlu0 %v939_v60, %s9824_s26  ;;  %s9850_s26 = smov 118   ;;  %s512_s30 = sand.u32 1, %s8327_s22  }
 0x139   : > { %940 = vrot.lane.b32.xlu1 %v939_v60, %s9826_s20  ;;  %943 = vrot.lane.b32.xlu0 %v939_v60, %s9828_s17 }
 0x13d   : > { %596 = vperm.xlu1 %7918, %v586_v5   ;;  %591 = vperm.xlu0 %7917, %v585_v6  }
 0x141   : > { %606 = vperm.xlu1 %7918, %v588_v7   ;;  %601 = vperm.xlu0 %7917, %v587_v9  }
 0x19f   : > { %v960_v10 = vpop.permute.xlu1 %959  ;;  %v963_v11 = vpop.permute.xlu0 %962 }
 0x1a0   : > { %7041 = vmatprep.subr.mxu0 %v963_v11  ;;  %7065 = vmatprep.subr.mxu1 %v963_v11 }
 0x1a1   : > { %7042 = vmatpush3.msra.mxu0 %v963_v11  ;;  %7066 = vmatpush3.msra.mxu1 %v963_v11 }
 0x1a2   : > { %7043 = vmatprep.subr.mxu0 %v960_v10  ;;  %7067 = vmatprep.subr.mxu1 %v960_v10 }
 0x1a3   : > { %v954_v12 = vpop.permute.xlu1 %953  ;;  %7044 = vmatpush3.msra.mxu0 %v960_v10  ;;  %7068 = vmatpush3.msra.mxu1 %v960_v10  ;;  %v957_v13 = vpop.permute.xlu0 %956 }
 0x1a4   : > { %7045 = vmatprep.subr.mxu0 %v957_v13  ;;  %7069 = vmatprep.subr.mxu1 %v957_v13 }
 0x1a5   : > { %7046 = vmatpush3.msra.mxu0 %v957_v13  ;;  %7070 = vmatpush3.msra.mxu1 %v957_v13 }
 0x1a6   : > { %7047 = vmatprep.subr.mxu0 %v954_v12  ;;  %7071 = vmatprep.subr.mxu1 %v954_v12 }
 0x1a7   : > { %7048 = vmatpush3.msra.mxu0 %v954_v12  ;;  %7072 = vmatpush3.msra.mxu1 %v954_v12  ;;  %v950_v14 = vpop.permute.xlu0 %949  ;;  %v947_v15 = vpop.permute.xlu1 %946 }
 0x1a8   : > { %7049 = vmatprep.subr.mxu0 %v939_v60  ;;  %7073 = vmatprep.subr.mxu1 %v939_v60 }
 0x1a9   : > { %7050 = vmatpush3.msra.mxu0 %v939_v60  ;;  %7074 = vmatpush3.msra.mxu1 %v939_v60 }
 0x1aa   : > { %7051 = vmatprep.subr.mxu0 %v950_v14  ;;  %7075 = vmatprep.subr.mxu1 %v950_v14 }
 0x1ab   : > { %7052 = vmatpush3.msra.mxu0 %v950_v14  ;;  %7076 = vmatpush3.msra.mxu1 %v950_v14  ;;  %v944_v22 = vpop.permute.xlu0 %943  ;;  %v941_v23 = vpop.permute.xlu1 %940 }
 0x1ac   : > { %7053 = vmatprep.subr.mxu0 %v947_v15  ;;  %7077 = vmatprep.subr.mxu1 %v947_v15 }
 0x1ad   : > { %7054 = vmatpush3.msra.mxu0 %v947_v15  ;;  %7078 = vmatpush3.msra.mxu1 %v947_v15 }
 0x1ae   : > { %7055 = vmatprep.subr.mxu0 %v944_v22  ;;  %7079 = vmatprep.subr.mxu1 %v944_v22 }
 0x1af   : > { %7056 = vmatpush3.msra.mxu0 %v944_v22  ;;  %7080 = vmatpush3.msra.mxu1 %v944_v22 }
 0x1b0   : > { %7057 = vmatprep.subr.mxu0 %v941_v23  ;;  %7081 = vmatprep.subr.mxu1 %v941_v23 }
 0x1b1   : > { %7058 = vmatpush3.msra.mxu0 %v941_v23  ;;  %7082 = vmatpush3.msra.mxu1 %v941_v23 }
 0x1b2   : > { %7060 = vmatmul.mubr.msk.f32.vlgmr.msra.gmra.mxu0 %vm703_vm0, %v8650_v24  ;;  %7089 = vmatprep.subr.msk.mxu0 %vm814_vm2, %v6295_v25 }
 0x1b3   : > { %7090 = vmatpush3.msk.msra.mxu0 %vm814_vm2, %v6295_v25  ;;  %7062 = vmatprep.mubr.msk.f32.mxu0 %vm703_vm0, %v8656_v27 }
 0x1b4   : > { %7091 = vmatprep.subr.mxu0 %v6294_v28  ;;  %7084 = vmatmul.mubr.msk.f32.vlgmr.msra.gmra.mxu1 %vm703_vm0, %v8492_v1 }
 0x1b5   : > { %7092 = vmatpush3.msra.mxu0 %v6294_v28  ;;  %7086 = vmatprep.mubr.msk.f32.mxu1 %vm703_vm0, %v8505_v4 }
 0x1b6   : > { %7063 = vmatmul.mubr.msk.f32.gmra.mxu0 %vm703_vm0, %v8668_v29  ;;  %7093 = vmatprep.subr.mxu0 %v6293_v30 }
 0x1b7   : > { %7094 = vmatpush3.msra.mxu0 %v6293_v30  ;;  %7099 = vmatprep.mubr.msk.f32.mxu0 %vm801_vm1, %v8500_v3 }
 0x1b8   : > { %7095 = vmatprep.subr.mxu0 %v6292_v31  ;;  %7087 = vmatmul.mubr.msk.f32.gmra.mxu1 %vm703_vm0, %v8524_v8  ;;  %v8693_v40 = vpop.permute.xlu1 %596  ;;  %v8696_v45 = vpop.permute.xlu0 %591 }
 0x1b9   : > { %7096 = vmatpush3.msra.mxu0 %v6292_v31  ;;  %7123 = vmatprep.mubr.msk.f32.mxu1 %vm703_vm0, %v8574_v19 }
 0x1ba   : > { %7097 = vmatprep.subr.mxu0 %v6291_v32 }
 0x1bb   : > { %7098 = vmatpush3.msra.mxu0 %v6291_v32 }
 0x1bc   : > { %7100 = vmatmul.mubr.msk.f32.vlgmr.msra.gmra.mxu0 %vm801_vm1, %v8551_v16  ;;  %v8699_v59 = vpop.permute.xlu0 %601  ;;  %v8704_v23 = vpop.permute.xlu1 %606 }
 0x1bd   : > { %7102 = vmatprep.mubr.msk.f32.mxu0 %vm801_vm1, %v8556_v17 }
 0x1c0   : > { %7103 = vmatmul.mubr.msk.f32.gmra.mxu0 %vm801_vm1, %v8565_v18 }
 0x1c1   : > { %7147 = vmatprep.mubr.msk.f32.mxu0 %vm703_vm0, %v8625_v63 }
 0x272   : > { %v7061_v37 = vpop.f32.mrf.mxu0 }
 0x273   : > { %v1172_v39 = vadd.f32 %v7061_v37, %v7037_v33 }
 0x274   : > { %v1166_v42 = vpop.f32.mrf.mxu0  ;;  %v7085_v51 = vpop.f32.mrf.mxu1 }
 0x275   : > { %v1186_v43 = vadd.f32 %v1172_v39, %v8693_v40  ;;  %v1167_v44 = vadd.f32 %v1166_v42, %v1069_v34 }
 0x276   : > { %v7064_v46 = vpop.f32.mrf.mxu0  ;;  %v1342_v54 = vpop.f32.mrf.mxu1 }
 0x277   : > { %v6289_v47 = vmul.f32 -1.442695, %v1186_v43  ;;  %v1185_v48 = vadd.f32 %v1167_v44, %v8696_v45  ;;  %v1182_v12 = vadd.f32 %v7064_v46, %v7040_v35 }
 0x278   : > { %v1176_v50 = vpop.f32.mrf.mxu0  ;;  %v7088_v6 = vpop.f32.mrf.mxu1 }
 0x279   : > { %7935 = vpow2.f32 %v6289_v47  ;;  %v6288_v49 = vmul.f32 -1.442695, %v1185_v48  ;;  %v1177_v52 = vadd.f32 %v1176_v50, %v1079_v36  ;;  %v1188_v28 = vadd.f32 %v1182_v12, %v8704_v23 }
 0x27a   : > { %v1352_v14 = vpop.f32.mrf.mxu1 }
 0x27b   : > { %7937 = vpow2.f32 %v6288_v49  ;;  %v1187_v7 = vadd.f32 %v1177_v52, %v8699_v59 }
 0x27c   : > { %v7101_v53 = vpop.f32.mrf.mxu0 }
 0x27d   : > { %v1448_v56 = vadd.f32 %v7101_v53, %v7085_v51  ;;  %v6290_v22 = vmul.f32 -1.442695, %v1187_v7 }
 0x27e   : > { %v1442_v57 = vpop.f32.mrf.mxu0 }
 0x27f   : > { %v1462_v60 = vadd.f32 %v1448_v56, %v8587_v26  ;;  %v1443_v5 = vadd.f32 %v1442_v57, %v1342_v54 }
 0x280   : > { %v7104_v9 = vpop.f32.mrf.mxu0 }
 0x281   : > { %v6306_v10 = vmul.f32 -1.442695, %v1462_v60  ;;  %v1461_v11 = vadd.f32 %v1443_v5, %v8585_v21  ;;  %v1458_v35 = vadd.f32 %v7104_v9, %v7088_v6 }
 0x282   : > { %v1452_v15 = vpop.f32.mrf.mxu0 }
 0x283   : > { %7939 = vpow2.f32 %v6306_v10  ;;  %v6305_v13 = vmul.f32 -1.442695, %v1461_v11  ;;  %v1453_v30 = vadd.f32 %v1452_v15, %v1352_v14  ;;  %v1464_v39 = vadd.f32 %v1458_v35, %v8594_v41 }
 0x285   : > { %7941 = vpow2.f32 %v6305_v13  ;;  %v1463_v34 = vadd.f32 %v1453_v30, %v8591_v38 }
 0x286   : > { %v7936_v25 = vpop.eup %7935  ;;  %7943 = vpow2.f32 %v6290_v22 }
 0x287   : > { %v1199_v31 = vadd.f32 1.0, %v7936_v25  ;;  %v6307_v36 = vmul.f32 -1.442695, %v1463_v34 }
 0x288   : > { %v7938_v32 = vpop.eup %7937 }
 0x289   : > { %7945 = vrcp.f32 %v1199_v31  ;;  %v1198_v33 = vadd.f32 1.0, %v7938_v32 }
 0x28a   : > { %7947 = vtanh.f32 %v1188_v28 }
 0x28b   : > { %7949 = vrcp.f32 %v1198_v33 }
 0x28c   : > { %7951 = vpow2.f32 %v6307_v36 }
 0x290   : > { %v7940_v37 = vpop.eup %7939 }
 0x291   : > { %v1475_v42 = vadd.f32 1.0, %v7940_v37 }
 0x292   : > { %v7942_v43 = vpop.eup %7941 }
 0x293   : > { %7953 = vrcp.f32 %v1475_v42  ;;  %v1474_v44 = vadd.f32 1.0, %v7942_v43  ;;  %v7944_v46 = vpop.eup %7943 }
 0x294   : > { %7955 = vtanh.f32 %v1464_v39  ;;  %v1200_v50 = vadd.f32 1.0, %v7944_v46 }
 0x295   : > { %7957 = vrcp.f32 %v1474_v44 }
 0x296   : > { %v7946_v47 = vpop.eup %7945  ;;  %7959 = vrcp.f32 %v1200_v50  ;;  %v6321_v50 = vld [vmem:[%s8533_s28 + $0x60] sm:$0xff] }
 0x297   : > { %v7948_v48 = vpop.eup %7947  ;;  %v1209_v51 = vmul.f32 0.0, %v7946_v47 }
 0x298   : > { %v7950_v49 = vpop.eup %7949 }
 0x299   : > { %v1210_v52 = vmul.f32 %v7950_v49, %v7948_v48  ;;  %v7952_v54 = vpop.eup %7951  ;;  %v6323_v48 = vld [vmem:[%s8533_s28 + $0x70] sm:$0xf]  ;;  %v6322_v49 = vld [vmem:[%s8533_s28 + $0x68] sm:$0xff] }
 0x29a   : > { %v1476_v5 = vadd.f32 1.0, %v7952_v54 }
 0x29b   : > { %v8709_v53 = vadd.f32 %v1210_v52, %v1209_v51  ;;  %v6320_v51 = vld [vmem:[%s8533_s28 + $0x58] sm:$0xff]  ;;  %v6319_v52 = vld [vmem:[%s8533_s28 + $0x50] sm:$0xff] }
 0x29d   : > { %7961 = vtanh.f32 %v8709_v53 }
 0x29e   : > { %7963 = vrcp.f32 %v1476_v5 }
 0x2a0   : > { %v7954_v56 = vpop.eup %7953 }
 0x2a1   : > { %v7956_v57 = vpop.eup %7955  ;;  %v1485_v6 = vmul.f32 %v7954_v56, %v8597_v55 }
 0x2a2   : > { %v7958_v60 = vpop.eup %7957 }
 0x2a3   : > { %v1486_v7 = vmul.f32 %v7958_v60, %v7956_v57  ;;  %v7960_v10 = vpop.eup %7959 }
 0x2a5   : > { %v8713_v9 = vadd.f32 %v1486_v7, %v1485_v6 }
 0x2a7   : > { %7965 = vtanh.f32 %v8713_v9 }
 0x2aa   : > { %v7962_v11 = vpop.eup %7961 }
 0x2ab   : > { %v1214_v12 = vmul.f32 %v7962_v11, %v7960_v10  ;;  %v7964_v14 = vpop.eup %7963 }
 0x2ad   : > { %v1215_v13 = vmul.f32 %v8603_v58, %v1214_v12 }
 0x2af   : > { %1235 = vrot.lane.b32.xlu1 %v1215_v13, %s9850_s26  ;;  %1238 = vrot.lane.b32.xlu0 %v1215_v13, %s9851_s29 }
 0x2b3   : > { %1229 = vrot.lane.b32.xlu1 %v1215_v13, %s9852_s4  ;;  %1232 = vrot.lane.b32.xlu0 %v1215_v13, %s9853_s23 }
 0x2b4   : > { %v7966_v55 = vpop.eup %7965 }
 0x2b5   : > { %v1490_v15 = vmul.f32 %v7966_v55, %v7964_v14 }
 0x2b7   : > { %v8722_v22 = vmul.f32 %v8603_v58, %v1490_v15  ;;  %1225 = vrot.lane.b32.xlu1 %v1215_v13, %s9854_s27 }
 0x2b9   : > { %1514 = vrot.lane.b32.xlu0 %v8722_v22, %s9851_s29 }
 0x2bb   : > { %1222 = vrot.lane.b32.xlu1 %v1215_v13, %s9855_s18 }
 0x2bd   : > { %1511 = vrot.lane.b32.xlu0 %v8722_v22, %s9850_s26 }
 0x2bf   : > { %1219 = vrot.lane.b32.xlu1 %v1215_v13, %s9828_s17 }
 0x2c1   : > { %1508 = vrot.lane.b32.xlu0 %v8722_v22, %s9853_s23 }
 0x2c3   : > { %1216 = vrot.lane.b32.xlu1 %v1215_v13, %s9826_s20 }
 0x2c5   : > { %1505 = vrot.lane.b32.xlu0 %v8722_v22, %s9852_s4 }
 0x2c7   : > { %1498 = vrot.lane.b32.xlu1 %v8722_v22, %s9855_s18 }
 0x2c9   : > { %1501 = vrot.lane.b32.xlu0 %v8722_v22, %s9854_s27 }
 0x2cb   : > { %1492 = vrot.lane.b32.xlu1 %v8722_v22, %s9826_s20 }
 0x2cd   : > { %1495 = vrot.lane.b32.xlu0 %v8722_v22, %s9828_s17 }
 0x321   : > { %v1236_v25 = vpop.permute.xlu1 %1235  ;;  %v1239_v28 = vpop.permute.xlu0 %1238 }
 0x322   : > { %7105 = vmatprep.subr.mxu1 %v1239_v28 }
 0x323   : > { %7106 = vmatpush3.msra.mxu1 %v1239_v28 }
 0x324   : > { %7107 = vmatprep.subr.mxu1 %v1236_v25 }
 0x325   : > { %v1230_v30 = vpop.permute.xlu1 %1229  ;;  %7108 = vmatpush3.msra.mxu1 %v1236_v25  ;;  %v1233_v31 = vpop.permute.xlu0 %1232 }
 0x326   : > { %7109 = vmatprep.subr.mxu1 %v1233_v31 }
 0x327   : > { %7110 = vmatpush3.msra.mxu1 %v1233_v31 }
 0x328   : > { %7111 = vmatprep.subr.mxu1 %v1230_v30 }
 0x329   : > { %v1226_v32 = vpop.permute.xlu1 %1225  ;;  %7112 = vmatpush3.msra.mxu1 %v1230_v30 }
 0x32a   : > { %7113 = vmatprep.subr.mxu1 %v1215_v13 }
 0x32b   : > { %7114 = vmatpush3.msra.mxu1 %v1215_v13  ;;  %v1515_v33 = vpop.permute.xlu0 %1514 }
 0x32c   : > { %7115 = vmatprep.subr.mxu1 %v1226_v32  ;;  %7129 = vmatprep.subr.mxu0 %v1515_v33 }
 0x32d   : > { %v1223_v34 = vpop.permute.xlu1 %1222  ;;  %7116 = vmatpush3.msra.mxu1 %v1226_v32  ;;  %7130 = vmatpush3.msra.mxu0 %v1515_v33 }
 0x32e   : > { %7117 = vmatprep.subr.mxu1 %v1223_v34 }
 0x32f   : > { %7118 = vmatpush3.msra.mxu1 %v1223_v34  ;;  %v1512_v35 = vpop.permute.xlu0 %1511 }
 0x330   : > { %7131 = vmatprep.subr.mxu0 %v1512_v35 }
 0x331   : > { %v1220_v36 = vpop.permute.xlu1 %1219  ;;  %7132 = vmatpush3.msra.mxu0 %v1512_v35 }
 0x332   : > { %7119 = vmatprep.subr.mxu1 %v1220_v36 }
 0x333   : > { %7120 = vmatpush3.msra.mxu1 %v1220_v36  ;;  %v1509_v37 = vpop.permute.xlu0 %1508 }
 0x334   : > { %7133 = vmatprep.subr.mxu0 %v1509_v37 }
 0x335   : > { %v1217_v39 = vpop.permute.xlu1 %1216  ;;  %7134 = vmatpush3.msra.mxu0 %v1509_v37 }
 0x336   : > { %7121 = vmatprep.subr.mxu1 %v1217_v39 }
 0x337   : > { %7122 = vmatpush3.msra.mxu1 %v1217_v39  ;;  %v1506_v42 = vpop.permute.xlu0 %1505 }
 0x338   : > { %7135 = vmatprep.subr.mxu0 %v1506_v42  ;;  %7153 = vmatprep.subr.mxu1 %v1515_v33 }
 0x339   : > { %7124 = vmatmul.mubr.msk.f32.vlgmr.msra.gmra.mxu1 %vm703_vm0, %v8579_v20  ;;  %7136 = vmatpush3.msra.mxu0 %v1506_v42  ;;  %v1499_v43 = vpop.permute.xlu1 %1498 }
 0x33a   : > { %7154 = vmatpush3.msra.mxu1 %v1515_v33  ;;  %7137 = vmatprep.subr.mxu0 %v8722_v22 }
 0x33b   : > { %7155 = vmatprep.subr.mxu1 %v1512_v35  ;;  %7138 = vmatpush3.msra.mxu0 %v8722_v22  ;;  %v1502_v44 = vpop.permute.xlu0 %1501 }
 0x33c   : > { %7156 = vmatpush3.msra.mxu1 %v1512_v35  ;;  %7139 = vmatprep.subr.mxu0 %v1502_v44 }
 0x33d   : > { %7157 = vmatprep.subr.mxu1 %v1509_v37  ;;  %7140 = vmatpush3.msra.mxu0 %v1502_v44  ;;  %v1493_v47 = vpop.permute.xlu1 %1492 }
 0x33e   : > { %7158 = vmatpush3.msra.mxu1 %v1509_v37  ;;  %7141 = vmatprep.subr.mxu0 %v1499_v43 }
 0x33f   : > { %7159 = vmatprep.subr.mxu1 %v1506_v42  ;;  %7142 = vmatpush3.msra.mxu0 %v1499_v43  ;;  %v1496_v46 = vpop.permute.xlu0 %1495 }
 0x340   : > { %7160 = vmatpush3.msra.mxu1 %v1506_v42  ;;  %7143 = vmatprep.subr.mxu0 %v1496_v46 }
 0x341   : > { %7161 = vmatprep.subr.mxu1 %v8722_v22  ;;  %7144 = vmatpush3.msra.mxu0 %v1496_v46 }
 0x342   : > { %7162 = vmatpush3.msra.mxu1 %v8722_v22  ;;  %7145 = vmatprep.subr.mxu0 %v1493_v47 }
 0x343   : > { %7163 = vmatprep.subr.mxu1 %v1502_v44  ;;  %7146 = vmatpush3.msra.mxu0 %v1493_v47 }
 0x344   : > { %7164 = vmatpush3.msra.mxu1 %v1502_v44  ;;  %7148 = vmatmul.mubr.msk.f32.vlgmr.msra.gmra.mxu0 %vm703_vm0, %v8650_v24 }
 0x345   : > { %7165 = vmatprep.subr.mxu1 %v1499_v43  ;;  %7177 = vmatprep.subr.msk.mxu0 %vm814_vm2, %v6323_v48 }
 0x346   : > { %7166 = vmatpush3.msra.mxu1 %v1499_v43  ;;  %7178 = vmatpush3.msk.msra.mxu0 %vm814_vm2, %v6323_v48 }
 0x347   : > { %7167 = vmatprep.subr.mxu1 %v1496_v46  ;;  %7179 = vmatprep.subr.mxu0 %v6322_v49 }
 0x348   : > { %7126 = vmatprep.mubr.msk.f32.mxu1 %vm703_vm0, %v8609_v61  ;;  %7150 = vmatprep.mubr.msk.f32.mxu0 %vm703_vm0, %v8656_v27 }
 0x349   : > { %7168 = vmatpush3.msra.mxu1 %v1496_v46  ;;  %7180 = vmatpush3.msra.mxu0 %v6322_v49 }
 0x34a   : > { %7127 = vmatmul.mubr.msk.f32.gmra.mxu1 %vm703_vm0, %v8616_v62  ;;  %7151 = vmatmul.mubr.msk.f32.gmra.mxu0 %vm703_vm0, %v8668_v29 }
 0x34b   : > { %7169 = vmatprep.subr.mxu1 %v1493_v47  ;;  %7181 = vmatprep.subr.mxu0 %v6321_v50 }
 0x34c   : > { %7170 = vmatpush3.msra.mxu1 %v1493_v47  ;;  %7182 = vmatpush3.msra.mxu0 %v6321_v50 }
 0x34d   : > { %7183 = vmatprep.subr.mxu0 %v6320_v51  ;;  %7171 = vmatprep.mubr.msk.f32.mxu1 %vm703_vm0, %v8487_v0 }
 0x34e   : > { %7184 = vmatpush3.msra.mxu0 %v6320_v51  ;;  %7172 = vmatmul.mubr.msk.f32.vlgmr.msra.gmra.mxu1 %vm703_vm0, %v8492_v1 }
 0x34f   : > { %7185 = vmatprep.subr.mxu0 %v6319_v52  ;;  %7187 = vmatprep.mubr.msk.f32.mxu0 %vm801_vm1, %v8500_v3 }
 0x350   : > { %7186 = vmatpush3.msra.mxu0 %v6319_v52  ;;  %7174 = vmatprep.mubr.msk.f32.mxu1 %vm703_vm0, %v8505_v4 }
 0x351   : > { %7188 = vmatmul.mubr.msk.f32.vlgmr.msra.gmra.mxu0 %vm801_vm1, %v8551_v16 }
 0x352   : > { %7190 = vmatprep.mubr.msk.f32.mxu0 %vm801_vm1, %v8556_v17  ;;  %7175 = vmatmul.mubr.msk.f32.gmra.mxu1 %vm703_vm0, %v8524_v8 }
 0x353   : > { %7211 = vmatprep.mubr.msk.f32.mxu1 %vm703_vm0, %v8574_v19 }
 0x355   : > { %7191 = vmatmul.mubr.msk.f32.gmra.mxu0 %vm801_vm1, %v8565_v18 }
 0x356   : > { %7235 = vmatprep.mubr.msk.f32.mxu0 %vm703_vm0, %v8625_v63 }
 0x3f9   : > { %v7125_v0 = vpop.f32.mrf.mxu1 }
 0x3fb   : > { %v1621_v4 = vpop.f32.mrf.mxu1 }
 0x404   : > { %v7149_v1 = vpop.f32.mrf.mxu0 }
 0x405   : > { %v1724_v3 = vadd.f32 %v7149_v1, %v7125_v0 }
 0x406   : > { %v1718_v16 = vpop.f32.mrf.mxu0 }
 0x407   : > { %v1738_v54 = vadd.f32 %v1724_v3, %v8693_v40  ;;  %v1719_v17 = vadd.f32 %v1718_v16, %v1621_v4 }
 0x409   : > { %v6317_v56 = vmul.f32 -1.442695, %v1738_v54  ;;  %v1737_v8 = vadd.f32 %v1719_v17, %v8696_v45 }
 0x40a   : > { %v7128_v57 = vpop.f32.mrf.mxu1  ;;  %v7152_v60 = vpop.f32.mrf.mxu0 }
 0x40b   : > { %7967 = vpow2.f32 %v6317_v56  ;;  %v6316_v19 = vmul.f32 -1.442695, %v1737_v8  ;;  %v1734_v14 = vadd.f32 %v7152_v60, %v7128_v57 }
 0x40c   : > { %v1631_v5 = vpop.f32.mrf.mxu1  ;;  %v1728_v18 = vpop.f32.mrf.mxu0 }
 0x40d   : > { %7969 = vpow2.f32 %v6316_v19  ;;  %v1729_v6 = vadd.f32 %v1728_v18, %v1631_v5  ;;  %v1740_v33 = vadd.f32 %v1734_v14, %v8704_v23 }
 0x40e   : > { %v7173_v63 = vpop.f32.mrf.mxu1 }
 0x40f   : > { %v1739_v7 = vadd.f32 %v1729_v6, %v8699_v59 }
 0x410   : > { %v1894_v11 = vpop.f32.mrf.mxu1 }
 0x411   : > { %v7189_v10 = vpop.f32.mrf.mxu0  ;;  %v6318_v25 = vmul.f32 -1.442695, %v1739_v7 }
 0x412   : > { %v2000_v12 = vadd.f32 %v7189_v10, %v7173_v63  ;;  %v7176_v22 = vpop.f32.mrf.mxu1 }
 0x413   : > { %v1994_v13 = vpop.f32.mrf.mxu0 }
 0x414   : > { %v2014_v55 = vadd.f32 %v2000_v12, %v8587_v26  ;;  %v1995_v15 = vadd.f32 %v1994_v13, %v1894_v11  ;;  %v1904_v35 = vpop.f32.mrf.mxu1 }
 0x415   : > { %v7192_v28 = vpop.f32.mrf.mxu0 }
 0x416   : > { %v6334_v30 = vmul.f32 -1.442695, %v2014_v55  ;;  %v2013_v31 = vadd.f32 %v1995_v15, %v8585_v21  ;;  %v2010_v46 = vadd.f32 %v7192_v28, %v7176_v22 }
 0x417   : > { %v2004_v36 = vpop.f32.mrf.mxu0 }
 0x418   : > { %v7968_v32 = vpop.eup %7967  ;;  %7971 = vpow2.f32 %v6334_v30  ;;  %v6333_v34 = vmul.f32 -1.442695, %v2013_v31  ;;  %v2005_v43 = vadd.f32 %v2004_v36, %v1904_v35  ;;  %v2016_v49 = vadd.f32 %v2010_v46, %v8594_v41  ;;  %v6347_v46 = vld [vmem:[%s8533_s28 + $0x78] sm:$0xff] }
 0x419   : > { %v1751_v37 = vadd.f32 1.0, %v7968_v32  ;;  %7973 = vpow2.f32 %v6318_v25 }
 0x41a   : > { %v7970_v39 = vpop.eup %7969  ;;  %7975 = vpow2.f32 %v6333_v34  ;;  %v2015_v44 = vadd.f32 %v2005_v43, %v8591_v38  ;;  %v6349_v43 = vld [vmem:[%s8533_s28 + $0x88] sm:$0xff] }
 0x41b   : > { %7977 = vrcp.f32 %v1751_v37  ;;  %v1750_v42 = vadd.f32 1.0, %v7970_v39  ;;  %v6351_v39 = vld [vmem:[%s8533_s28 + $0x98] sm:$0xf] }
 0x41c   : > { %7979 = vtanh.f32 %v1740_v33  ;;  %v6335_v47 = vmul.f32 -1.442695, %v2015_v44  ;;  %v8856_v44 = vld [vmem:[%s9844_s3] sm:$0xff] }
 0x41d   : > { %7981 = vrcp.f32 %v1750_v42  ;;  %v6350_v42 = vld [vmem:[%s8533_s28 + $0x90] sm:$0xff] }
 0x41e   : > { %7983 = vpow2.f32 %v6335_v47  ;;  %v8881_v47 = vld [vmem:[%s9845_s2 + $0x8] sm:$0xff] }
 0x425   : > { %v7972_v48 = vpop.eup %7971 }
 0x426   : > { %v7974_v50 = vpop.eup %7973  ;;  %v2027_v51 = vadd.f32 1.0, %v7972_v48  ;;  %v8888_v48 = vld [vmem:[%s9845_s2 + $0x10] sm:$0xff] }
 0x427   : > { %v7976_v52 = vpop.eup %7975  ;;  %v1752_v16 = vadd.f32 1.0, %v7974_v50  ;;  %v8906_v50 = vld [vmem:[%s9845_s2 + $0x18] sm:$0xff] }
 0x428   : > { %v7978_v0 = vpop.eup %7977  ;;  %7985 = vrcp.f32 %v2027_v51  ;;  %v2026_v1 = vadd.f32 1.0, %v7976_v52 }
 0x429   : > { %v7980_v3 = vpop.eup %7979  ;;  %7987 = vtanh.f32 %v2016_v49  ;;  %v1761_v54 = vmul.f32 %v7978_v0, %v8709_v53  ;;  %v8893_v49 = vld [vmem:[%s9844_s3 + $0x18] sm:$0xff] }
 0x42a   : > { %v7982_v4 = vpop.eup %7981  ;;  %7989 = vrcp.f32 %v2026_v1 }
 0x42b   : > { %v1762_v17 = vmul.f32 %v7982_v4, %v7980_v3  ;;  %7991 = vrcp.f32 %v1752_v16  ;;  %v7984_v8 = vpop.eup %7983 }
 0x42c   : > { %v2028_v5 = vadd.f32 1.0, %v7984_v8 }
 0x42d   : > { %v8796_v56 = vadd.f32 %v1762_v17, %v1761_v54 }
 0x42f   : > { %7993 = vtanh.f32 %v8796_v56 }
 0x430   : > { %7995 = vrcp.f32 %v2028_v5 }
 0x435   : > { %v7986_v57 = vpop.eup %7985 }
 0x436   : > { %v7988_v60 = vpop.eup %7987  ;;  %v2037_v18 = vmul.f32 %v7986_v57, %v8713_v9 }
 0x437   : > { %v7990_v19 = vpop.eup %7989 }
 0x438   : > { %v2038_v6 = vmul.f32 %v7990_v19, %v7988_v60  ;;  %v7992_v7 = vpop.eup %7991 }
 0x43a   : > { %v8800_v63 = vadd.f32 %v2038_v6, %v2037_v18 }
 0x43c   : > { %v7994_v10 = vpop.eup %7993  ;;  %7997 = vtanh.f32 %v8800_v63 }
 0x43d   : > { %v1766_v53 = vmul.f32 %v7994_v10, %v7992_v7  ;;  %v7996_v9 = vpop.eup %7995 }
 0x43f   : > { %v1767_v11 = vmul.f32 %v8603_v58, %v1766_v53 }
 0x441   : > { %1787 = vrot.lane.b32.xlu1 %v1767_v11, %s9850_s26  ;;  %1790 = vrot.lane.b32.xlu0 %v1767_v11, %s9851_s29 }
 0x445   : > { %1781 = vrot.lane.b32.xlu1 %v1767_v11, %s9852_s4  ;;  %1784 = vrot.lane.b32.xlu0 %v1767_v11, %s9853_s23 }
 0x449   : > { %v7998_v12 = vpop.eup %7997  ;;  %1777 = vrot.lane.b32.xlu1 %v1767_v11, %s9854_s27 }
 0x44a   : > { %v2042_v13 = vmul.f32 %v7998_v12, %v7996_v9 }
 0x44c   : > { %v8810_v14 = vmul.f32 %v8603_v58, %v2042_v13 }
 0x44d   : > { %1774 = vrot.lane.b32.xlu1 %v1767_v11, %s9855_s18 }
 0x44e   : > { %2066 = vrot.lane.b32.xlu0 %v8810_v14, %s9851_s29 }
 0x451   : > { %1771 = vrot.lane.b32.xlu1 %v1767_v11, %s9828_s17 }
 0x452   : > { %2063 = vrot.lane.b32.xlu0 %v8810_v14, %s9850_s26 }
 0x455   : > { %1768 = vrot.lane.b32.xlu1 %v1767_v11, %s9826_s20 }
 0x456   : > { %2060 = vrot.lane.b32.xlu0 %v8810_v14, %s9853_s23 }
 0x459   : > { %2050 = vrot.lane.b32.xlu1 %v8810_v14, %s9855_s18 }
 0x45a   : > { %2057 = vrot.lane.b32.xlu0 %v8810_v14, %s9852_s4 }
 0x45d   : > { %2044 = vrot.lane.b32.xlu1 %v8810_v14, %s9826_s20  ;;  %s9856_s20 = smov 10  }
 0x45e   : > { %2053 = vrot.lane.b32.xlu0 %v8810_v14, %s9854_s27 }
 0x462   : > { %2047 = vrot.lane.b32.xlu0 %v8810_v14, %s9828_s17  ;;  %s9857_s17 = smov 11  }
 0x4b3   : > { %v1788_v58 = vpop.permute.xlu1 %1787  ;;  %v1791_v55 = vpop.permute.xlu0 %1790 }
 0x4b4   : > { %7193 = vmatprep.subr.mxu1 %v1791_v55 }
 0x4b5   : > { %7194 = vmatpush3.msra.mxu1 %v1791_v55 }
 0x4b6   : > { %7195 = vmatprep.subr.mxu1 %v1788_v58 }
 0x4b7   : > { %v1782_v15 = vpop.permute.xlu1 %1781  ;;  %7196 = vmatpush3.msra.mxu1 %v1788_v58  ;;  %v1785_v22 = vpop.permute.xlu0 %1784 }
 0x4b8   : > { %7197 = vmatprep.subr.mxu1 %v1785_v22 }
 0x4b9   : > { %7198 = vmatpush3.msra.mxu1 %v1785_v22 }
 0x4ba   : > { %7199 = vmatprep.subr.mxu1 %v1782_v15 }
 0x4bb   : > { %v1778_v25 = vpop.permute.xlu1 %1777  ;;  %7200 = vmatpush3.msra.mxu1 %v1782_v15 }
 0x4bc   : > { %7201 = vmatprep.subr.mxu1 %v1767_v11 }
 0x4bd   : > { %7202 = vmatpush3.msra.mxu1 %v1767_v11 }
 0x4be   : > { %7203 = vmatprep.subr.mxu1 %v1778_v25 }
 0x4bf   : > { %v1775_v28 = vpop.permute.xlu1 %1774  ;;  %7204 = vmatpush3.msra.mxu1 %v1778_v25 }
 0x4c0   : > { %v2067_v30 = vpop.permute.xlu0 %2066  ;;  %7205 = vmatprep.subr.mxu1 %v1775_v28 }
 0x4c1   : > { %7217 = vmatprep.subr.mxu0 %v2067_v30  ;;  %7206 = vmatpush3.msra.mxu1 %v1775_v28 }
 0x4c2   : > { %7218 = vmatpush3.msra.mxu0 %v2067_v30 }
 0x4c3   : > { %v1772_v31 = vpop.permute.xlu1 %1771 }
 0x4c4   : > { %v2064_v32 = vpop.permute.xlu0 %2063  ;;  %7207 = vmatprep.subr.mxu1 %v1772_v31 }
 0x4c5   : > { %7219 = vmatprep.subr.mxu0 %v2064_v32  ;;  %7208 = vmatpush3.msra.mxu1 %v1772_v31 }
 0x4c6   : > { %7220 = vmatpush3.msra.mxu0 %v2064_v32 }
 0x4c7   : > { %v1769_v33 = vpop.permute.xlu1 %1768 }
 0x4c8   : > { %v2061_v34 = vpop.permute.xlu0 %2060  ;;  %7209 = vmatprep.subr.mxu1 %v1769_v33 }
 0x4c9   : > { %7221 = vmatprep.subr.mxu0 %v2061_v34  ;;  %7210 = vmatpush3.msra.mxu1 %v1769_v33 }
 0x4ca   : > { %7222 = vmatpush3.msra.mxu0 %v2061_v34  ;;  %7241 = vmatprep.subr.mxu1 %v2067_v30 }
 0x4cb   : > { %7212 = vmatmul.mubr.msk.f32.vlgmr.msra.gmra.mxu1 %vm703_vm0, %v8579_v20  ;;  %v2051_v36 = vpop.permute.xlu1 %2050 }
 0x4cc   : > { %v2058_v35 = vpop.permute.xlu0 %2057  ;;  %7242 = vmatpush3.msra.mxu1 %v2067_v30  ;;  %7214 = vmatprep.mubr.msk.f32.mxu1 %vm703_vm0, %v8609_v61 }
 0x4cd   : > { %7223 = vmatprep.subr.mxu0 %v2058_v35  ;;  %7243 = vmatprep.subr.mxu1 %v2064_v32 }
 0x4ce   : > { %7224 = vmatpush3.msra.mxu0 %v2058_v35  ;;  %7244 = vmatpush3.msra.mxu1 %v2064_v32 }
 0x4cf   : > { %7225 = vmatprep.subr.mxu0 %v8810_v14  ;;  %7245 = vmatprep.subr.mxu1 %v2061_v34  ;;  %v2045_v61 = vpop.permute.xlu1 %2044 }
 0x4d0   : > { %7226 = vmatpush3.msra.mxu0 %v8810_v14  ;;  %v2054_v37 = vpop.permute.xlu0 %2053  ;;  %7246 = vmatpush3.msra.mxu1 %v2061_v34 }
 0x4d1   : > { %7227 = vmatprep.subr.mxu0 %v2054_v37  ;;  %7247 = vmatprep.subr.mxu1 %v2058_v35 }
 0x4d2   : > { %7228 = vmatpush3.msra.mxu0 %v2054_v37  ;;  %7248 = vmatpush3.msra.mxu1 %v2058_v35 }
 0x4d3   : > { %7229 = vmatprep.subr.mxu0 %v2051_v36  ;;  %7249 = vmatprep.subr.mxu1 %v8810_v14 }
 0x4d4   : > { %7230 = vmatpush3.msra.mxu0 %v2051_v36  ;;  %v2048_v20 = vpop.permute.xlu0 %2047  ;;  %7250 = vmatpush3.msra.mxu1 %v8810_v14 }
 0x4d5   : > { %7231 = vmatprep.subr.mxu0 %v2048_v20  ;;  %7251 = vmatprep.subr.mxu1 %v2054_v37 }
 0x4d6   : > { %7232 = vmatpush3.msra.mxu0 %v2048_v20  ;;  %7252 = vmatpush3.msra.mxu1 %v2054_v37 }
 0x4d7   : > { %7233 = vmatprep.subr.mxu0 %v2045_v61  ;;  %7253 = vmatprep.subr.mxu1 %v2051_v36 }
 0x4d8   : > { %7234 = vmatpush3.msra.mxu0 %v2045_v61  ;;  %7254 = vmatpush3.msra.mxu1 %v2051_v36 }
 0x4d9   : > { %7236 = vmatmul.mubr.msk.f32.vlgmr.msra.gmra.mxu0 %vm703_vm0, %v8650_v24  ;;  %7265 = vmatprep.subr.msk.mxu0 %vm814_vm2, %v6351_v39  ;;  %v6348_v24 = vld [vmem:[%s8533_s28 + $0x80] sm:$0xff] }
 0x4da   : > { %7266 = vmatpush3.msk.msra.mxu0 %vm814_vm2, %v6351_v39  ;;  %7255 = vmatprep.subr.mxu1 %v2048_v20 }
 0x4db   : > { %7267 = vmatprep.subr.mxu0 %v6350_v42  ;;  %7238 = vmatprep.mubr.msk.f32.mxu0 %vm703_vm0, %v8656_v27  ;;  %v8861_v27 = vld [vmem:[%s9844_s3 + $0x8] sm:$0xff] }
 0x4dc   : > { %7256 = vmatpush3.msra.mxu1 %v2048_v20  ;;  %7268 = vmatpush3.msra.mxu0 %v6350_v42 }
 0x4dd   : > { %7215 = vmatmul.mubr.msk.f32.gmra.mxu1 %vm703_vm0, %v8616_v62  ;;  %7239 = vmatmul.mubr.msk.f32.gmra.mxu0 %vm703_vm0, %v8668_v29  ;;  %v8867_v62 = vld [vmem:[%s9845_s2] sm:$0xff]  ;;  %v8874_v29 = vld [vmem:[%s9844_s3 + $0x10] sm:$0xff]  ;;  %s6265_s2 = sshll.u32 %s512_s30, 7 }
 0x4de   : > { %7257 = vmatprep.subr.mxu1 %v2045_v61  ;;  %7269 = vmatprep.subr.mxu0 %v6349_v43 }
 0x4df   : > { %7258 = vmatpush3.msra.mxu1 %v2045_v61  ;;  %7270 = vmatpush3.msra.mxu0 %v6349_v43 }
 0x4e0   : > { %7271 = vmatprep.subr.mxu0 %v6348_v24  ;;  %7259 = vmatprep.mubr.msk.f32.mxu1 %vm703_vm0, %v8856_v44 }
 0x4e1   : > { %7272 = vmatpush3.msra.mxu0 %v6348_v24  ;;  %7260 = vmatmul.mubr.msk.f32.vlgmr.msra.gmra.mxu1 %vm703_vm0, %v8861_v27 }
 0x4e2   : > { %7273 = vmatprep.subr.mxu0 %v6347_v46  ;;  %7275 = vmatprep.mubr.msk.f32.mxu0 %vm801_vm1, %v8867_v62 }
 0x4e3   : > { %7274 = vmatpush3.msra.mxu0 %v6347_v46  ;;  %7262 = vmatprep.mubr.msk.f32.mxu1 %vm703_vm0, %v8874_v29 }
 0x4e4   : > { %7276 = vmatmul.mubr.msk.f32.vlgmr.msra.gmra.mxu0 %vm801_vm1, %v8881_v47 }
 0x4e5   : > { %7278 = vmatprep.mubr.msk.f32.mxu0 %vm801_vm1, %v8888_v48  ;;  %7263 = vmatmul.mubr.msk.f32.gmra.mxu1 %vm703_vm0, %v8893_v49 }
 0x4e8   : > { %7279 = vmatmul.mubr.msk.f32.gmra.mxu0 %vm801_vm1, %v8906_v50 }
 0x58b   : > { %v7213_v51 = vpop.f32.mrf.mxu1 }
 0x58d   : > { %v2173_v1 = vpop.f32.mrf.mxu1 }
 0x599   : > { %v7237_v52 = vpop.f32.mrf.mxu0 }
 0x59a   : > { %v2276_v0 = vadd.f32 %v7237_v52, %v7213_v51 }
 0x59b   : > { %v2270_v3 = vpop.f32.mrf.mxu0 }
 0x59c   : > { %v2290_v4 = vadd.f32 %v2276_v0, %v8693_v40  ;;  %v2271_v16 = vadd.f32 %v2270_v3, %v2173_v1 }
 0x59d   : > { %v7216_v54 = vpop.f32.mrf.mxu1  ;;  %v7240_v17 = vpop.f32.mrf.mxu0 }
 0x59e   : > { %v6345_v8 = vmul.f32 -1.442695, %v2290_v4  ;;  %v2289_v57 = vadd.f32 %v2271_v16, %v8696_v45  ;;  %v2286_v55 = vadd.f32 %v7240_v17, %v7216_v54 }
 0x59f   : > { %v2183_v60 = vpop.f32.mrf.mxu1  ;;  %v2280_v5 = vpop.f32.mrf.mxu0 }
 0x5a0   : > { %7999 = vpow2.f32 %v6345_v8  ;;  %v6344_v19 = vmul.f32 -1.442695, %v2289_v57  ;;  %v2281_v6 = vadd.f32 %v2280_v5, %v2183_v60  ;;  %v2292_v33 = vadd.f32 %v2286_v55, %v8704_v23  ;;  %v8959_v55 = vld [vmem:[%s9848_s5] sm:$0xff] }
 0x5a1   : > { %v7261_v18 = vpop.f32.mrf.mxu1  ;;  %7323 = vmatprep.mubr.msk.f32.mxu1 %vm703_vm0, %v8959_v55 }
 0x5a2   : > { %8001 = vpow2.f32 %v6344_v19  ;;  %v2291_v9 = vadd.f32 %v2281_v6, %v8699_v59 }
 0x5a3   : > { %v2446_v10 = vpop.f32.mrf.mxu1 }
 0x5a4   : > { %v7277_v7 = vpop.f32.mrf.mxu0  ;;  %v6346_v25 = vmul.f32 -1.442695, %v2291_v9 }
 0x5a5   : > { %v2552_v53 = vadd.f32 %v7277_v7, %v7261_v18  ;;  %v7264_v14 = vpop.f32.mrf.mxu1 }
 0x5a6   : > { %v2546_v11 = vpop.f32.mrf.mxu0 }
 0x5a7   : > { %v2566_v12 = vadd.f32 %v2552_v53, %v8587_v26  ;;  %v2547_v13 = vadd.f32 %v2546_v11, %v2446_v10  ;;  %v2456_v30 = vpop.f32.mrf.mxu1  ;;  %v8929_v11 = vld [vmem:[%s9794_s1] ss:$0 sm:$0xff] }
 0x5a8   : > { %v7280_v58 = vpop.f32.mrf.mxu0 }
 0x5a9   : > { %v6362_v15 = vmul.f32 -1.442695, %v2566_v12  ;;  %v2565_v22 = vadd.f32 %v2547_v13, %v8585_v21  ;;  %v2562_v61 = vadd.f32 %v7280_v58, %v7264_v14  ;;  %v8943_v58 = vld [vmem:[%s9799_s6] sm:$0xff] }
 0x5aa   : > { %v2556_v31 = vpop.f32.mrf.mxu0  ;;  %7299 = vmatprep.mubr.msk.f32.mxu0 %vm703_vm0, %v8943_v58 }
 0x5ab   : > { %8003 = vpow2.f32 %v6362_v15  ;;  %v6361_v28 = vmul.f32 -1.442695, %v2565_v22  ;;  %v2557_v35 = vadd.f32 %v2556_v31, %v2456_v30  ;;  %v2568_v43 = vadd.f32 %v2562_v61, %v8594_v41 }
 0x5ad   : > { %v8000_v32 = vpop.eup %7999  ;;  %8005 = vpow2.f32 %v6361_v28  ;;  %v2567_v20 = vadd.f32 %v2557_v35, %v8591_v38 }
 0x5ae   : > { %v2303_v34 = vadd.f32 1.0, %v8000_v32  ;;  %8007 = vpow2.f32 %v6346_v25 }
 0x5af   : > { %v8002_v36 = vpop.eup %8001  ;;  %v6363_v39 = vmul.f32 -1.442695, %v2567_v20 }
 0x5b0   : > { %8009 = vrcp.f32 %v2303_v34  ;;  %v2302_v37 = vadd.f32 1.0, %v8002_v36 }
 0x5b1   : > { %8011 = vtanh.f32 %v2292_v33 }
 0x5b2   : > { %8013 = vrcp.f32 %v2302_v37  ;;  %v8976_v37 = vld [vmem:[%s9799_s6 + $0x8] sm:$0xff] }
 0x5b3   : > { %8015 = vpow2.f32 %v6363_v39 }
 0x5b8   : > { %v8004_v42 = vpop.eup %8003 }
 0x5b9   : > { %v2579_v24 = vadd.f32 1.0, %v8004_v42 }
 0x5ba   : > { %v8006_v46 = vpop.eup %8005 }
 0x5bb   : > { %8017 = vrcp.f32 %v2579_v24  ;;  %v2578_v51 = vadd.f32 1.0, %v8006_v46  ;;  %v8008_v52 = vpop.eup %8007  ;;  %v8987_v24 = vld [vmem:[%s9848_s5 + $0x8] sm:$0xff]  ;;  %v6379_v46 = vld [vmem:[%s8533_s28 + $0xc0] sm:$0xf] }
 0x5bc   : > { %8019 = vtanh.f32 %v2568_v43  ;;  %v2304_v4 = vadd.f32 1.0, %v8008_v52  ;;  %v8997_v52 = vld [vmem:[%s9799_s6 + $0x10] sm:$0xff] }
 0x5bd   : > { %v8010_v0 = vpop.eup %8009  ;;  %8021 = vrcp.f32 %v2578_v51  ;;  %v6378_v51 = vld [vmem:[%s8533_s28 + $0xb8] sm:$0xff] }
 0x5be   : > { %v8012_v1 = vpop.eup %8011  ;;  %v2313_v16 = vmul.f32 %v8010_v0, %v8796_v56  ;;  %8023 = vrcp.f32 %v2304_v4  ;;  %v9002_v0 = vld [vmem:[%s9848_s5 + $0x10] sm:$0xff] }
 0x5bf   : > { %v8014_v3 = vpop.eup %8013  ;;  %v6377_v4 = vld [vmem:[%s8533_s28 + $0xb0] sm:$0xff] }
 0x5c0   : > { %v2314_v54 = vmul.f32 %v8014_v3, %v8012_v1  ;;  %v8016_v8 = vpop.eup %8015  ;;  %v9008_v1 = vld [vmem:[%s9799_s6 + $0x18] sm:$0xff] }
 0x5c1   : > { %v2580_v5 = vadd.f32 1.0, %v8016_v8  ;;  %v9013_v3 = vld [vmem:[%s9848_s5 + $0x18] sm:$0xff] }
 0x5c2   : > { %v8919_v17 = vadd.f32 %v2314_v54, %v2313_v16  ;;  %v6376_v16 = vld [vmem:[%s8533_s28 + $0xa8] sm:$0xff]  ;;  %v6375_v54 = vld [vmem:[%s8533_s28 + $0xa0] sm:$0xff] }
 0x5c4   : > { %8025 = vtanh.f32 %v8919_v17 }
 0x5c5   : > { %8027 = vrcp.f32 %v2580_v5 }
 0x5c8   : > { %v8018_v57 = vpop.eup %8017 }
 0x5c9   : > { %v8020_v60 = vpop.eup %8019  ;;  %v2589_v18 = vmul.f32 %v8018_v57, %v8800_v63 }
 0x5ca   : > { %v8022_v19 = vpop.eup %8021 }
 0x5cb   : > { %v2590_v6 = vmul.f32 %v8022_v19, %v8020_v60  ;;  %v8024_v56 = vpop.eup %8023 }
 0x5cd   : > { %v8923_v7 = vadd.f32 %v2590_v6, %v2589_v18 }
 0x5cf   : > { %8029 = vtanh.f32 %v8923_v7 }
 0x5d1   : > { %v8026_v10 = vpop.eup %8025 }
 0x5d2   : > { %v2318_v53 = vmul.f32 %v8026_v10, %v8024_v56  ;;  %v8028_v63 = vpop.eup %8027 }
 0x5d4   : > { %v2319_v9 = vmul.f32 %v8929_v11, %v2318_v53 }
 0x5d6   : > { %2339 = vrot.lane.b32.xlu1 %v2319_v9, %s9850_s26  ;;  %2342 = vrot.lane.b32.xlu0 %v2319_v9, %s9851_s29 }
 0x5da   : > { %2333 = vrot.lane.b32.xlu1 %v2319_v9, %s9852_s4  ;;  %2336 = vrot.lane.b32.xlu0 %v2319_v9, %s9853_s23 }
 0x5dc   : > { %v8030_v12 = vpop.eup %8029 }
 0x5dd   : > { %v2594_v13 = vmul.f32 %v8030_v12, %v8028_v63 }
 0x5de   : > { %2329 = vrot.lane.b32.xlu1 %v2319_v9, %s9854_s27 }
 0x5df   : > { %v8938_v14 = vmul.f32 %v8929_v11, %v2594_v13 }
 0x5e1   : > { %2618 = vrot.lane.b32.xlu0 %v8938_v14, %s9851_s29 }
 0x5e2   : > { %2326 = vrot.lane.b32.xlu1 %v2319_v9, %s9855_s18 }
 0x5e5   : > { %2615 = vrot.lane.b32.xlu0 %v8938_v14, %s9850_s26 }
 0x5e6   : > { %2323 = vrot.lane.b32.xlu1 %v2319_v9, %s9856_s20 }
 0x5e9   : > { %2612 = vrot.lane.b32.xlu0 %v8938_v14, %s9853_s23 }
 0x5ea   : > { %2320 = vrot.lane.b32.xlu1 %v2319_v9, %s9857_s17 }
 0x5ed   : > { %2609 = vrot.lane.b32.xlu0 %v8938_v14, %s9852_s4 }
 0x5ee   : > { %2602 = vrot.lane.b32.xlu1 %v8938_v14, %s9855_s18 }
 0x5f1   : > { %2605 = vrot.lane.b32.xlu0 %v8938_v14, %s9854_s27 }
 0x5f2   : > { %2596 = vrot.lane.b32.xlu1 %v8938_v14, %s9857_s17 }
 0x5f5   : > { %2599 = vrot.lane.b32.xlu0 %v8938_v14, %s9856_s20 }
 0x648   : > { %v2340_v15 = vpop.permute.xlu1 %2339  ;;  %v2343_v22 = vpop.permute.xlu0 %2342 }
 0x649   : > { %7281 = vmatprep.subr.mxu0 %v2343_v22 }
 0x64a   : > { %7282 = vmatpush3.msra.mxu0 %v2343_v22 }
 0x64b   : > { %7283 = vmatprep.subr.mxu0 %v2340_v15 }
 0x64c   : > { %v2334_v25 = vpop.permute.xlu1 %2333  ;;  %7284 = vmatpush3.msra.mxu0 %v2340_v15  ;;  %v2337_v28 = vpop.permute.xlu0 %2336 }
 0x64d   : > { %7285 = vmatprep.subr.mxu0 %v2337_v28 }
 0x64e   : > { %7286 = vmatpush3.msra.mxu0 %v2337_v28 }
 0x64f   : > { %7287 = vmatprep.subr.mxu0 %v2334_v25 }
 0x650   : > { %v2330_v30 = vpop.permute.xlu1 %2329  ;;  %7288 = vmatpush3.msra.mxu0 %v2334_v25 }
 0x651   : > { %7289 = vmatprep.subr.mxu0 %v2319_v9 }
 0x652   : > { %7290 = vmatpush3.msra.mxu0 %v2319_v9 }
 0x653   : > { %v2619_v31 = vpop.permute.xlu0 %2618  ;;  %7291 = vmatprep.subr.mxu0 %v2330_v30 }
 0x654   : > { %7305 = vmatprep.subr.mxu1 %v2619_v31  ;;  %v2327_v32 = vpop.permute.xlu1 %2326  ;;  %7292 = vmatpush3.msra.mxu0 %v2330_v30 }
 0x655   : > { %7306 = vmatpush3.msra.mxu1 %v2619_v31  ;;  %7293 = vmatprep.subr.mxu0 %v2327_v32 }
 0x656   : > { %7294 = vmatpush3.msra.mxu0 %v2327_v32 }
 0x657   : > { %v2616_v33 = vpop.permute.xlu0 %2615 }
 0x658   : > { %7307 = vmatprep.subr.mxu1 %v2616_v33  ;;  %v2324_v34 = vpop.permute.xlu1 %2323 }
 0x659   : > { %7308 = vmatpush3.msra.mxu1 %v2616_v33  ;;  %7295 = vmatprep.subr.mxu0 %v2324_v34 }
 0x65a   : > { %7296 = vmatpush3.msra.mxu0 %v2324_v34 }
 0x65b   : > { %v2613_v35 = vpop.permute.xlu0 %2612 }
 0x65c   : > { %7309 = vmatprep.subr.mxu1 %v2613_v35  ;;  %v2321_v36 = vpop.permute.xlu1 %2320 }
 0x65d   : > { %7310 = vmatpush3.msra.mxu1 %v2613_v35  ;;  %7297 = vmatprep.subr.mxu0 %v2321_v36 }
 0x65e   : > { %7298 = vmatpush3.msra.mxu0 %v2321_v36 }
 0x65f   : > { %v2610_v20 = vpop.permute.xlu0 %2609  ;;  %7329 = vmatprep.subr.mxu0 %v2619_v31  ;;  %7300 = vmatmul.mubr.msk.f32.vlgmr.msra.gmra.mxu0 %vm703_vm0, %v8976_v37 }
 0x660   : > { %7311 = vmatprep.subr.mxu1 %v2610_v20  ;;  %7330 = vmatpush3.msra.mxu0 %v2619_v31  ;;  %v2603_v61 = vpop.permute.xlu1 %2602 }
 0x661   : > { %7312 = vmatpush3.msra.mxu1 %v2610_v20  ;;  %7331 = vmatprep.subr.mxu0 %v2616_v33 }
 0x662   : > { %7313 = vmatprep.subr.mxu1 %v8938_v14  ;;  %7332 = vmatpush3.msra.mxu0 %v2616_v33 }
 0x663   : > { %7314 = vmatpush3.msra.mxu1 %v8938_v14  ;;  %v2606_v39 = vpop.permute.xlu0 %2605  ;;  %7333 = vmatprep.subr.mxu0 %v2613_v35 }
 0x664   : > { %7315 = vmatprep.subr.mxu1 %v2606_v39  ;;  %7334 = vmatpush3.msra.mxu0 %v2613_v35  ;;  %v2597_v43 = vpop.permute.xlu1 %2596 }
 0x665   : > { %7316 = vmatpush3.msra.mxu1 %v2606_v39  ;;  %7335 = vmatprep.subr.mxu0 %v2610_v20 }
 0x666   : > { %7317 = vmatprep.subr.mxu1 %v2603_v61  ;;  %7336 = vmatpush3.msra.mxu0 %v2610_v20 }
 0x667   : > { %7318 = vmatpush3.msra.mxu1 %v2603_v61  ;;  %v2600_v42 = vpop.permute.xlu0 %2599  ;;  %7337 = vmatprep.subr.mxu0 %v8938_v14 }
 0x668   : > { %7319 = vmatprep.subr.mxu1 %v2600_v42  ;;  %7338 = vmatpush3.msra.mxu0 %v8938_v14 }
 0x669   : > { %7320 = vmatpush3.msra.mxu1 %v2600_v42  ;;  %7339 = vmatprep.subr.mxu0 %v2606_v39 }
 0x66a   : > { %7321 = vmatprep.subr.mxu1 %v2597_v43  ;;  %7340 = vmatpush3.msra.mxu0 %v2606_v39 }
 0x66b   : > { %7322 = vmatpush3.msra.mxu1 %v2597_v43  ;;  %7341 = vmatprep.subr.mxu0 %v2603_v61 }
 0x66c   : > { %7324 = vmatmul.mubr.msk.f32.vlgmr.msra.gmra.mxu1 %vm703_vm0, %v8987_v24  ;;  %7353 = vmatprep.subr.msk.mxu1 %vm814_vm2, %v6379_v46 }
 0x66d   : > { %7342 = vmatpush3.msra.mxu0 %v2603_v61  ;;  %7354 = vmatpush3.msk.msra.mxu1 %vm814_vm2, %v6379_v46 }
 0x66e   : > { %7343 = vmatprep.subr.mxu0 %v2600_v42  ;;  %7355 = vmatprep.subr.mxu1 %v6378_v51 }
 0x66f   : > { %7302 = vmatprep.mubr.msk.f32.mxu0 %vm703_vm0, %v8997_v52  ;;  %7326 = vmatprep.mubr.msk.f32.mxu1 %vm703_vm0, %v9002_v0 }
 0x670   : > { %7344 = vmatpush3.msra.mxu0 %v2600_v42  ;;  %7356 = vmatpush3.msra.mxu1 %v6378_v51 }
 0x671   : > { %7303 = vmatmul.mubr.msk.f32.gmra.mxu0 %vm703_vm0, %v9008_v1  ;;  %7327 = vmatmul.mubr.msk.f32.gmra.mxu1 %vm703_vm0, %v9013_v3 }
 0x672   : > { %7345 = vmatprep.subr.mxu0 %v2597_v43  ;;  %7357 = vmatprep.subr.mxu1 %v6377_v4 }
 0x673   : > { %7346 = vmatpush3.msra.mxu0 %v2597_v43  ;;  %7358 = vmatpush3.msra.mxu1 %v6377_v4 }
 0x674   : > { %7359 = vmatprep.subr.mxu1 %v6376_v16  ;;  %7347 = vmatprep.mubr.msk.f32.mxu0 %vm703_vm0, %v8856_v44 }
 0x675   : > { %7360 = vmatpush3.msra.mxu1 %v6376_v16  ;;  %7348 = vmatmul.mubr.msk.f32.vlgmr.msra.gmra.mxu0 %vm703_vm0, %v8861_v27 }
 0x676   : > { %7361 = vmatprep.subr.mxu1 %v6375_v54  ;;  %7363 = vmatprep.mubr.msk.f32.mxu1 %vm801_vm1, %v8867_v62 }
 0x677   : > { %7362 = vmatpush3.msra.mxu1 %v6375_v54  ;;  %7350 = vmatprep.mubr.msk.f32.mxu0 %vm703_vm0, %v8874_v29 }
 0x678   : > { %7364 = vmatmul.mubr.msk.f32.vlgmr.msra.gmra.mxu1 %vm801_vm1, %v8881_v47 }
 0x679   : > { %7366 = vmatprep.mubr.msk.f32.mxu1 %vm801_vm1, %v8888_v48  ;;  %7351 = vmatmul.mubr.msk.f32.gmra.mxu0 %vm703_vm0, %v8893_v49 }
 0x67a   : > { %7411 = vmatprep.mubr.msk.f32.mxu0 %vm703_vm0, %v8959_v55 }
 0x67c   : > { %7367 = vmatmul.mubr.msk.f32.gmra.mxu1 %vm801_vm1, %v8906_v50 }
 0x67d   : > { %7387 = vmatprep.mubr.msk.f32.mxu1 %vm703_vm0, %v8943_v58 }
 0x71f   : > { %v7301_v44 = vpop.f32.mrf.mxu0 }
 0x721   : > { %v2725_v29 = vpop.f32.mrf.mxu0 }
 0x72c   : > { %v7325_v27 = vpop.f32.mrf.mxu1 }
 0x72d   : > { %v2828_v62 = vadd.f32 %v7325_v27, %v7301_v44 }
 0x72e   : > { %v2822_v47 = vpop.f32.mrf.mxu1 }
 0x72f   : > { %v2842_v8 = vadd.f32 %v2828_v62, %v8693_v40  ;;  %v2823_v48 = vadd.f32 %v2822_v47, %v2725_v29 }
 0x731   : > { %v6373_v57 = vmul.f32 -1.442695, %v2842_v8  ;;  %v2841_v49 = vadd.f32 %v2823_v48, %v8696_v45  ;;  %v7304_v60 = vpop.f32.mrf.mxu0  ;;  %v7328_v19 = vpop.f32.mrf.mxu1 }
 0x732   : > { %v2838_v55 = vadd.f32 %v7328_v19, %v7304_v60 }
 0x733   : > { %8031 = vpow2.f32 %v6373_v57  ;;  %v6372_v5 = vmul.f32 -1.442695, %v2841_v49  ;;  %v2735_v18 = vpop.f32.mrf.mxu0  ;;  %v2832_v50 = vpop.f32.mrf.mxu1 }
 0x734   : > { %v2833_v56 = vadd.f32 %v2832_v50, %v2735_v18  ;;  %v2844_v34 = vadd.f32 %v2838_v55, %v8704_v23 }
 0x735   : > { %8033 = vpow2.f32 %v6372_v5  ;;  %v7349_v6 = vpop.f32.mrf.mxu0 }
 0x736   : > { %v2843_v63 = vadd.f32 %v2833_v56, %v8699_v59 }
 0x737   : > { %v2998_v53 = vpop.f32.mrf.mxu0 }
 0x738   : > { %v7365_v10 = vpop.f32.mrf.mxu1  ;;  %v6374_v28 = vmul.f32 -1.442695, %v2843_v63 }
 0x739   : > { %v3104_v9 = vadd.f32 %v7365_v10, %v7349_v6  ;;  %v7352_v58 = vpop.f32.mrf.mxu0 }
 0x73a   : > { %v3098_v12 = vpop.f32.mrf.mxu1 }
 0x73b   : > { %v3118_v13 = vadd.f32 %v3104_v9, %v8587_v26  ;;  %v3099_v14 = vadd.f32 %v3098_v12, %v2998_v53  ;;  %v3008_v31 = vpop.f32.mrf.mxu0 }
 0x73c   : > { %v7368_v15 = vpop.f32.mrf.mxu1 }
 0x73d   : > { %v6390_v22 = vmul.f32 -1.442695, %v3118_v13  ;;  %v3117_v25 = vadd.f32 %v3099_v14, %v8585_v21  ;;  %v3114_v21 = vadd.f32 %v7368_v15, %v7352_v58 }
 0x73e   : > { %v3108_v32 = vpop.f32.mrf.mxu1 }
 0x73f   : > { %8035 = vpow2.f32 %v6390_v22  ;;  %v6389_v30 = vmul.f32 -1.442695, %v3117_v25  ;;  %v3109_v26 = vadd.f32 %v3108_v32, %v3008_v31  ;;  %v3120_v43 = vadd.f32 %v3114_v21, %v8594_v41 }
 0x740   : > { %v8032_v33 = vpop.eup %8031 }
 0x741   : > { %v2855_v35 = vadd.f32 1.0, %v8032_v33  ;;  %8037 = vpow2.f32 %v6389_v30  ;;  %v3119_v61 = vadd.f32 %v3109_v26, %v8591_v38 }
 0x742   : > { %v8034_v36 = vpop.eup %8033  ;;  %8039 = vpow2.f32 %v6374_v28 }
 0x743   : > { %8041 = vrcp.f32 %v2855_v35  ;;  %v2854_v20 = vadd.f32 1.0, %v8034_v36  ;;  %v6391_v39 = vmul.f32 -1.442695, %v3119_v61 }
 0x744   : > { %8043 = vtanh.f32 %v2844_v34 }
 0x745   : > { %8045 = vrcp.f32 %v2854_v20 }
 0x746   : > { %8047 = vpow2.f32 %v6391_v39 }
 0x74c   : > { %v8036_v42 = vpop.eup %8035 }
 0x74d   : > { %v3131_v46 = vadd.f32 1.0, %v8036_v42 }
 0x74e   : > { %v8038_v51 = vpop.eup %8037 }
 0x74f   : > { %v8040_v4 = vpop.eup %8039  ;;  %8049 = vrcp.f32 %v3131_v46  ;;  %v3130_v16 = vadd.f32 1.0, %v8038_v51 }
 0x750   : > { %v8042_v54 = vpop.eup %8041  ;;  %8051 = vtanh.f32 %v3120_v43  ;;  %v2856_v62 = vadd.f32 1.0, %v8040_v4 }
 0x751   : > { %v8044_v44 = vpop.eup %8043  ;;  %8053 = vrcp.f32 %v3130_v16  ;;  %v2865_v29 = vmul.f32 %v8042_v54, %v8919_v17 }
 0x752   : > { %v8046_v27 = vpop.eup %8045  ;;  %8055 = vrcp.f32 %v2856_v62 }
 0x753   : > { %v2866_v38 = vmul.f32 %v8046_v27, %v8044_v44  ;;  %v8048_v41 = vpop.eup %8047 }
 0x754   : > { %v3132_v49 = vadd.f32 1.0, %v8048_v41 }
 0x755   : > { %v9055_v47 = vadd.f32 %v2866_v38, %v2865_v29 }
 0x757   : > { %8057 = vtanh.f32 %v9055_v47 }
 0x758   : > { %8059 = vrcp.f32 %v3132_v49 }
 0x75c   : > { %v8050_v8 = vpop.eup %8049 }
 0x75d   : > { %v8052_v48 = vpop.eup %8051  ;;  %v3141_v60 = vmul.f32 %v8050_v8, %v8923_v7 }
 0x75e   : > { %v8054_v57 = vpop.eup %8053 }
 0x75f   : > { %v3142_v19 = vmul.f32 %v8054_v57, %v8052_v48  ;;  %v8056_v18 = vpop.eup %8055 }
 0x761   : > { %v3143_v5 = vadd.f32 %v3142_v19, %v3141_v60  ;;  %v9115_v19 = vld [vmem:[%s9802_s9 + $0x10] sm:$0xff] }
 0x763   : > { %8061 = vtanh.f32 %v3143_v5 }
 0x764   : > { %v8058_v50 = vpop.eup %8057 }
 0x765   : > { %v2870_v17 = vmul.f32 %v8058_v50, %v8056_v18  ;;  %v8060_v56 = vpop.eup %8059  ;;  %v9134_v18 = vld [vmem:[%s9801_s8] sm:$0xff]  ;;  %v610_v50 = vld [vmem:[%s9803_s10 + $0x8] sm:$0xff] }
 0x767   : > { %v2871_v6 = vmul.f32 %v8929_v11, %v2870_v17  ;;  %v609_v17 = vld [vmem:[%s9803_s10] sm:$0xff] }
 0x769   : > { %2894 = vrot.lane.b32.xlu0 %v2871_v6, %s9851_s29 }
 0x76d   : > { %2891 = vrot.lane.b32.xlu0 %v2871_v6, %s9850_s26 }
 0x770   : > { %v8062_v10 = vpop.eup %8061 }
 0x771   : > { %v3146_v53 = vmul.f32 %v8062_v10, %v8060_v56  ;;  %2888 = vrot.lane.b32.xlu0 %v2871_v6, %s9853_s23  ;;  %v611_v56 = vld [vmem:[%s9803_s10 + $0x10] sm:$0xff] }
 0x773   : > { %v3147_v7 = vmul.f32 %v8929_v11, %v3146_v53 }
 0x775   : > { %3170 = vrot.lane.b32.xlu1 %v3147_v7, %s9851_s29  ;;  %2885 = vrot.lane.b32.xlu0 %v2871_v6, %s9852_s4 }
 0x779   : > { %3167 = vrot.lane.b32.xlu1 %v3147_v7, %s9850_s26  ;;  %2881 = vrot.lane.b32.xlu0 %v2871_v6, %s9854_s27 }
 0x77d   : > { %3164 = vrot.lane.b32.xlu1 %v3147_v7, %s9853_s23  ;;  %2878 = vrot.lane.b32.xlu0 %v2871_v6, %s9855_s18 }
 0x781   : > { %3161 = vrot.lane.b32.xlu1 %v3147_v7, %s9852_s4  ;;  %2875 = vrot.lane.b32.xlu0 %v2871_v6, %s9856_s20 }
 0x785   : > { %3157 = vrot.lane.b32.xlu1 %v3147_v7, %s9854_s27  ;;  %2872 = vrot.lane.b32.xlu0 %v2871_v6, %s9857_s17 }
 0x789   : > { %3154 = vrot.lane.b32.xlu1 %v3147_v7, %s9855_s18 }
 0x78d   : > { %3151 = vrot.lane.b32.xlu1 %v3147_v7, %s9856_s20 }
 0x791   : > { %3148 = vrot.lane.b32.xlu1 %v3147_v7, %s9857_s17 }
 0x7db   : > { %v2895_v9 = vpop.permute.xlu0 %2894 }
 0x7dc   : > { %7369 = vmatprep.subr.mxu1 %v2895_v9 }
 0x7dd   : > { %7370 = vmatpush3.msra.mxu1 %v2895_v9 }
 0x7df   : > { %v2892_v63 = vpop.permute.xlu0 %2891 }
 0x7e0   : > { %7371 = vmatprep.subr.mxu1 %v2892_v63 }
 0x7e1   : > { %7372 = vmatpush3.msra.mxu1 %v2892_v63 }
 0x7e3   : > { %v2889_v12 = vpop.permute.xlu0 %2888 }
 0x7e4   : > { %7373 = vmatprep.subr.mxu1 %v2889_v12 }
 0x7e5   : > { %7374 = vmatpush3.msra.mxu1 %v2889_v12 }
 0x7e7   : > { %v3171_v13 = vpop.permute.xlu1 %3170  ;;  %v2886_v14 = vpop.permute.xlu0 %2885 }
 0x7e8   : > { %7393 = vmatprep.subr.mxu0 %v3171_v13  ;;  %7375 = vmatprep.subr.mxu1 %v2886_v14 }
 0x7e9   : > { %7394 = vmatpush3.msra.mxu0 %v3171_v13  ;;  %7376 = vmatpush3.msra.mxu1 %v2886_v14 }
 0x7ea   : > { %7377 = vmatprep.subr.mxu1 %v2871_v6 }
 0x7eb   : > { %v3168_v58 = vpop.permute.xlu1 %3167  ;;  %7378 = vmatpush3.msra.mxu1 %v2871_v6  ;;  %v2882_v55 = vpop.permute.xlu0 %2881  ;;  %v612_v6 = vld [vmem:[%s9803_s10 + $0x18] sm:$0xff] }
 0x7ec   : > { %7395 = vmatprep.subr.mxu0 %v3168_v58  ;;  %7379 = vmatprep.subr.mxu1 %v2882_v55 }
 0x7ed   : > { %7396 = vmatpush3.msra.mxu0 %v3168_v58  ;;  %7380 = vmatpush3.msra.mxu1 %v2882_v55  ;;  %v9157_v58 = vld [vmem:[%s9801_s8 + $0x8] sm:$0xff]  ;;  %v9162_v55 = vld [vmem:[%s9801_s8 + $0x10] sm:$0xff] }
 0x7ef   : > { %v3165_v15 = vpop.permute.xlu1 %3164  ;;  %v2879_v22 = vpop.permute.xlu0 %2878 }
 0x7f0   : > { %7397 = vmatprep.subr.mxu0 %v3165_v15  ;;  %7381 = vmatprep.subr.mxu1 %v2879_v22 }
 0x7f1   : > { %7398 = vmatpush3.msra.mxu0 %v3165_v15  ;;  %7382 = vmatpush3.msra.mxu1 %v2879_v22  ;;  %v9171_v15 = vld [vmem:[%s9801_s8 + $0x18] sm:$0xff]  ;;  %v9178_v22 = vld [vmem:[%s9805_s12] sm:$0xff] }
 0x7f3   : > { %v3162_v25 = vpop.permute.xlu1 %3161  ;;  %v2876_v28 = vpop.permute.xlu0 %2875 }
 0x7f4   : > { %7399 = vmatprep.subr.mxu0 %v3162_v25  ;;  %7383 = vmatprep.subr.mxu1 %v2876_v28 }
 0x7f5   : > { %7400 = vmatpush3.msra.mxu0 %v3162_v25  ;;  %7384 = vmatpush3.msra.mxu1 %v2876_v28  ;;  %v9183_v25 = vld [vmem:[%s9805_s12 + $0x8] sm:$0xff] }
 0x7f6   : > { %7401 = vmatprep.subr.mxu0 %v3147_v7 }
 0x7f7   : > { %7402 = vmatpush3.msra.mxu0 %v3147_v7  ;;  %v3158_v30 = vpop.permute.xlu1 %3157  ;;  %v2873_v31 = vpop.permute.xlu0 %2872 }
 0x7f8   : > { %7403 = vmatprep.subr.mxu0 %v3158_v30  ;;  %7385 = vmatprep.subr.mxu1 %v2873_v31 }
 0x7f9   : > { %7404 = vmatpush3.msra.mxu0 %v3158_v30  ;;  %7386 = vmatpush3.msra.mxu1 %v2873_v31 }
 0x7fa   : > { %7388 = vmatmul.mubr.msk.f32.vlgmr.msra.gmra.mxu1 %vm703_vm0, %v8976_v37  ;;  %7449 = vmatprep.subr.mxu1 %v8337_v2  ;;  %v9096_v37 = vld [vmem:[%s9802_s9] sm:$0xff] }
 0x7fb   : > { %v3155_v32 = vpop.permute.xlu1 %3154  ;;  %7390 = vmatprep.mubr.msk.f32.mxu1 %vm703_vm0, %v8997_v52  ;;  %7450 = vmatpush3.msra.mxu1 %v8337_v2  ;;  %v9101_v52 = vld [vmem:[%s9802_s9 + $0x8] sm:$0xff] }
 0x7fc   : > { %7405 = vmatprep.subr.mxu0 %v3155_v32 }
 0x7fd   : > { %7406 = vmatpush3.msra.mxu0 %v3155_v32 }
 0x7fe   : > { %7391 = vmatmul.mubr.msk.f32.gmra.mxu1 %vm703_vm0, %v9008_v1 }
 0x7ff   : > { %v3152_v33 = vpop.permute.xlu1 %3151  ;;  %7451 = vmatprep.mubr.msk.f32.mxu1 %vm703_vm0, %v9178_v22 }
 0x800   : > { %7407 = vmatprep.subr.mxu0 %v3152_v33 }
 0x801   : > { %7408 = vmatpush3.msra.mxu0 %v3152_v33 }
 0x802   : > { %7452 = vmatmul.mubr.msk.f32.vlgmr.msra.gmra.mxu1 %vm703_vm0, %v9183_v25 }
 0x803   : > { %v3149_v34 = vpop.permute.xlu1 %3148 }
 0x804   : > { %7409 = vmatprep.subr.mxu0 %v3149_v34 }
 0x805   : > { %7410 = vmatpush3.msra.mxu0 %v3149_v34 }
 0x806   : > { %7412 = vmatmul.mubr.msk.f32.vlgmr.msra.gmra.mxu0 %vm703_vm0, %v8987_v24  ;;  %7417 = vmatprep.subr.mxu0 %v8337_v2 }
 0x807   : > { %7414 = vmatprep.mubr.msk.f32.mxu0 %vm703_vm0, %v9002_v0  ;;  %7418 = vmatpush3.msra.mxu0 %v8337_v2 }
 0x80a   : > { %7415 = vmatmul.mubr.msk.f32.gmra.mxu0 %vm703_vm0, %v9013_v3 }
 0x80b   : > { %7419 = vmatprep.mubr.msk.f32.mxu0 %vm703_vm0, %v9096_v37 }
 0x80e   : > { %7420 = vmatmul.mubr.msk.f32.vlgmr.msra.gmra.mxu0 %vm703_vm0, %v9101_v52 }
 0x80f   : > { %7422 = vmatprep.mubr.msk.f32.mxu0 %vm703_vm0, %v9115_v19 }
 0x8ba   : > { %v7389_v2 = vpop.f32.mrf.mxu1 }
 0x8bc   : > { %v3277_v0 = vpop.f32.mrf.mxu1 }
 0x8be   : > { %v7392_v26 = vpop.f32.mrf.mxu1 }
 0x8c0   : > { %v3287_v42 = vpop.f32.mrf.mxu1 }
 0x8c6   : > { %v7413_v24 = vpop.f32.mrf.mxu0 }
 0x8c7   : > { %v3380_v1 = vadd.f32 %v7413_v24, %v7389_v2 }
 0x8c8   : > { %v3374_v3 = vpop.f32.mrf.mxu0 }
 0x8c9   : > { %v3394_v35 = vadd.f32 %v3380_v1, %v8693_v40  ;;  %v3375_v36 = vadd.f32 %v3374_v3, %v3277_v0 }
 0x8ca   : > { %v7416_v20 = vpop.f32.mrf.mxu0 }
 0x8cb   : > { %v6401_v61 = vmul.f32 -1.442695, %v3394_v35  ;;  %v3393_v21 = vadd.f32 %v3375_v36, %v8696_v45  ;;  %v3390_v4 = vadd.f32 %v7416_v20, %v7392_v26 }
 0x8cc   : > { %v3384_v43 = vpop.f32.mrf.mxu0 }
 0x8cd   : > { %8063 = vpow2.f32 %v6401_v61  ;;  %v6400_v39 = vmul.f32 -1.442695, %v3393_v21  ;;  %v3385_v46 = vadd.f32 %v3384_v43, %v3287_v42  ;;  %v3396_v44 = vadd.f32 %v3390_v4, %v8704_v23 }
 0x8ce   : > { %v7421_v28 = vpop.f32.mrf.mxu0 }
 0x8cf   : > { %8065 = vpow2.f32 %v6400_v39  ;;  %v3395_v51 = vadd.f32 %v3385_v46, %v8699_v59 }
 0x8d0   : > { %v3553_v30 = vpop.f32.mrf.mxu0 }
 0x8d1   : > { %v6402_v16 = vmul.f32 -1.442695, %v3395_v51 }
 0x8d3   : > { %8067 = vpow2.f32 %v6402_v16 }
 0x8da   : > { %v8064_v54 = vpop.eup %8063 }
 0x8db   : > { %v3407_v40 = vadd.f32 1.0, %v8064_v54 }
 0x8dc   : > { %v8066_v27 = vpop.eup %8065 }
 0x8dd   : > { %8069 = vrcp.f32 %v3407_v40  ;;  %v3406_v62 = vadd.f32 1.0, %v8066_v27 }
 0x8de   : > { %8071 = vtanh.f32 %v3396_v44 }
 0x8df   : > { %8073 = vrcp.f32 %v3406_v62 }
 0x8e0   : > { %v8068_v45 = vpop.eup %8067 }
 0x8e1   : > { %v3408_v8 = vadd.f32 1.0, %v8068_v45 }
 0x8e3   : > { %8075 = vrcp.f32 %v3408_v8 }
 0x8ea   : > { %v8070_v29 = vpop.eup %8069 }
 0x8eb   : > { %v8072_v38 = vpop.eup %8071  ;;  %v3417_v48 = vmul.f32 %v8070_v29, %v9055_v47  ;;  %v9123_v47 = vld [vmem:[%s9802_s9 + $0x18] sm:$0xff] }
 0x8ec   : > { %v8074_v41 = vpop.eup %8073  ;;  %7423 = vmatmul.mubr.msk.f32.gmra.mxu0 %vm703_vm0, %v9123_v47 }
 0x8ed   : > { %v3418_v59 = vmul.f32 %v8074_v41, %v8072_v38  ;;  %7443 = vmatprep.mubr.msk.f32.mxu0 %vm703_vm0, %v9134_v18 }
 0x8ef   : > { %v3419_v57 = vadd.f32 %v3418_v59, %v3417_v48 }
 0x8f0   : > { %v8076_v49 = vpop.eup %8075 }
 0x8f1   : > { %8077 = vtanh.f32 %v3419_v57 }
 0x8fe   : > { %v8078_v23 = vpop.eup %8077 }
 0x8ff   : > { %v3422_v60 = vmul.f32 %v8078_v23, %v8076_v49  ;;  %v9207_v23 = vld [vmem:[%s9805_s12 + $0x10] sm:$0xff] }
 0x900   : > { %7454 = vmatprep.mubr.msk.f32.mxu1 %vm703_vm0, %v9207_v23 }
 0x901   : > { %v3423_v5 = vmul.f32 %v8929_v11, %v3422_v60 }
 0x903   : > { %3443 = vrot.lane.b32.xlu1 %v3423_v5, %s9850_s26  ;;  %3446 = vrot.lane.b32.xlu0 %v3423_v5, %s9851_s29 }
 0x907   : > { %3437 = vrot.lane.b32.xlu1 %v3423_v5, %s9852_s4  ;;  %3440 = vrot.lane.b32.xlu0 %v3423_v5, %s9853_s23 }
 0x90b   : > { %3430 = vrot.lane.b32.xlu1 %v3423_v5, %s9855_s18  ;;  %3433 = vrot.lane.b32.xlu0 %v3423_v5, %s9854_s27 }
 0x90f   : > { %3424 = vrot.lane.b32.xlu1 %v3423_v5, %s9857_s17  ;;  %3427 = vrot.lane.b32.xlu0 %v3423_v5, %s9856_s20 }
 0x913   : > { %620 = vperm.xlu1 %7918, %v610_v50   ;;  %615 = vperm.xlu0 %7917, %v609_v17   ;;  %v634_v50 = vld [vmem:[%s9806_s13 + $0x8] sm:$0xff]  ;;  %v633_v17 = vld [vmem:[%s9806_s13] sm:$0xff] }
 0x917   : > { %630 = vperm.xlu1 %7918, %v612_v6   ;;  %625 = vperm.xlu0 %7917, %v611_v56   ;;  %v636_v6 = vld [vmem:[%s9806_s13 + $0x18] sm:$0xff]  ;;  %v635_v56 = vld [vmem:[%s9806_s13 + $0x10] sm:$0xff] }
 0x975   : > { %v3444_v10 = vpop.permute.xlu1 %3443  ;;  %v3447_v53 = vpop.permute.xlu0 %3446 }
 0x976   : > { %7425 = vmatprep.subr.mxu0 %v3447_v53 }
 0x977   : > { %7426 = vmatpush3.msra.mxu0 %v3447_v53 }
 0x978   : > { %7427 = vmatprep.subr.mxu0 %v3444_v10 }
 0x979   : > { %v3438_v7 = vpop.permute.xlu1 %3437  ;;  %7428 = vmatpush3.msra.mxu0 %v3444_v10  ;;  %v3441_v9 = vpop.permute.xlu0 %3440 }
 0x97a   : > { %7429 = vmatprep.subr.mxu0 %v3441_v9 }
 0x97b   : > { %7430 = vmatpush3.msra.mxu0 %v3441_v9 }
 0x97c   : > { %7431 = vmatprep.subr.mxu0 %v3438_v7 }
 0x97d   : > { %7432 = vmatpush3.msra.mxu0 %v3438_v7  ;;  %v3434_v63 = vpop.permute.xlu0 %3433  ;;  %v3431_v12 = vpop.permute.xlu1 %3430 }
 0x97e   : > { %7433 = vmatprep.subr.mxu0 %v3423_v5 }
 0x97f   : > { %7434 = vmatpush3.msra.mxu0 %v3423_v5  ;;  %v9217_v5 = vld [vmem:[%s9805_s12 + $0x18] sm:$0xff] }
 0x980   : > { %7435 = vmatprep.subr.mxu0 %v3434_v63  ;;  %7455 = vmatmul.mubr.msk.f32.gmra.mxu1 %vm703_vm0, %v9217_v5 }
 0x981   : > { %7436 = vmatpush3.msra.mxu0 %v3434_v63  ;;  %v3428_v13 = vpop.permute.xlu0 %3427  ;;  %v3425_v14 = vpop.permute.xlu1 %3424 }
 0x982   : > { %7437 = vmatprep.subr.mxu0 %v3431_v12 }
 0x983   : > { %7438 = vmatpush3.msra.mxu0 %v3431_v12 }
 0x984   : > { %7439 = vmatprep.subr.mxu0 %v3428_v13 }
 0x985   : > { %7440 = vmatpush3.msra.mxu0 %v3428_v13 }
 0x986   : > { %7441 = vmatprep.subr.mxu0 %v3425_v14 }
 0x987   : > { %7442 = vmatpush3.msra.mxu0 %v3425_v14 }
 0x988   : > { %7444 = vmatmul.mubr.msk.f32.vlgmr.msra.gmra.mxu0 %vm703_vm0, %v9157_v58 }
 0x989   : > { %7446 = vmatprep.mubr.msk.f32.mxu0 %vm703_vm0, %v9162_v55 }
 0x98c   : > { %7447 = vmatmul.mubr.msk.f32.gmra.mxu0 %vm703_vm0, %v9171_v15 }
 0x98e   : > { %v9189_v2 = vpop.permute.xlu1 %620  ;;  %v9192_v3 = vpop.permute.xlu0 %615 }
 0x992   : > { %v9195_v39 = vpop.permute.xlu0 %625  ;;  %v9198_v51 = vpop.permute.xlu1 %630 }
 0x9ac   : > { %v7424_v31 = vpop.f32.mrf.mxu0 }
 0x9ae   : > { %v3563_v32 = vpop.f32.mrf.mxu0 }
 0xa48   : > { %v7445_v33 = vpop.f32.mrf.mxu0 }
 0xa49   : > { %v3656_v34 = vadd.f32 %v7445_v33, %v7421_v28  ;;  %v9261_v28 = vld [vmem:[%s9804_s11 + $0x8] sm:$0xff] }
 0xa4a   : > { %v3650_v24 = vpop.f32.mrf.mxu0 }
 0xa4b   : > { %v3670_v0 = vadd.f32 %v3656_v34, %v9189_v2  ;;  %v3651_v1 = vadd.f32 %v3650_v24, %v3553_v30  ;;  %v9266_v30 = vld [vmem:[%s9804_s11 + $0x10] sm:$0xff] }
 0xa4c   : > { %v7448_v35 = vpop.f32.mrf.mxu0 }
 0xa4d   : > { %v6412_v36 = vmul.f32 -1.442695, %v3670_v0  ;;  %v3669_v26 = vadd.f32 %v3651_v1, %v9192_v3  ;;  %v3666_v43 = vadd.f32 %v7448_v35, %v7424_v31  ;;  %v9275_v31 = vld [vmem:[%s9804_s11 + $0x18] sm:$0xff] }
 0xa4e   : > { %v3660_v61 = vpop.f32.mrf.mxu0 }
 0xa4f   : > { %8079 = vpow2.f32 %v6412_v36  ;;  %v6411_v20 = vmul.f32 -1.442695, %v3669_v26  ;;  %v3661_v21 = vadd.f32 %v3660_v61, %v3563_v32  ;;  %v3672_v16 = vadd.f32 %v3666_v43, %v9198_v51  ;;  %v7453_v32 = vpop.f32.mrf.mxu1 }
 0xa51   : > { %8081 = vpow2.f32 %v6411_v20  ;;  %v3671_v42 = vadd.f32 %v3661_v21, %v9195_v39  ;;  %v3829_v33 = vpop.f32.mrf.mxu1 }
 0xa53   : > { %v6413_v46 = vmul.f32 -1.442695, %v3671_v42  ;;  %v7456_v34 = vpop.f32.mrf.mxu1 }
 0xa55   : > { %8083 = vpow2.f32 %v6413_v46  ;;  %v3839_v24 = vpop.f32.mrf.mxu1 }
 0xa5c   : > { %v8080_v4 = vpop.eup %8079 }
 0xa5d   : > { %v3683_v54 = vadd.f32 1.0, %v8080_v4 }
 0xa5e   : > { %v8082_v44 = vpop.eup %8081 }
 0xa5f   : > { %8085 = vrcp.f32 %v3683_v54  ;;  %v3682_v40 = vadd.f32 1.0, %v8082_v44 }
 0xa60   : > { %8087 = vtanh.f32 %v3672_v16 }
 0xa61   : > { %8089 = vrcp.f32 %v3682_v40 }
 0xa62   : > { %v8084_v27 = vpop.eup %8083 }
 0xa63   : > { %v3684_v38 = vadd.f32 1.0, %v8084_v27 }
 0xa65   : > { %8091 = vrcp.f32 %v3684_v38 }
 0xa6c   : > { %v8086_v62 = vpop.eup %8085 }
 0xa6d   : > { %v8088_v45 = vpop.eup %8087  ;;  %v3693_v41 = vmul.f32 0.0, %v8086_v62 }
 0xa6e   : > { %v8090_v29 = vpop.eup %8089 }
 0xa6f   : > { %v3694_v8 = vmul.f32 %v8090_v29, %v8088_v45 }
 0xa71   : > { %v9201_v48 = vadd.f32 %v3694_v8, %v3693_v41 }
 0xa72   : > { %v8092_v59 = vpop.eup %8091 }
 0xa73   : > { %8093 = vtanh.f32 %v9201_v48 }
 0xa80   : > { %v8094_v57 = vpop.eup %8093 }
 0xa81   : > { %v3698_v49 = vmul.f32 %v8094_v57, %v8092_v59 }
 0xa83   : > { %v9210_v60 = vmul.f32 %v8929_v11, %v3698_v49  ;;  %v9232_v11 = vld [vmem:[%s9804_s11] sm:$0xff] }
 0xa84   : > { %7475 = vmatprep.mubr.msk.f32.mxu1 %vm703_vm0, %v9232_v11 }
 0xa85   : > { %3719 = vrot.lane.b32.xlu1 %v9210_v60, %s9850_s26  ;;  %3722 = vrot.lane.b32.xlu0 %v9210_v60, %s9851_s29 }
 0xa89   : > { %3713 = vrot.lane.b32.xlu1 %v9210_v60, %s9852_s4  ;;  %3716 = vrot.lane.b32.xlu0 %v9210_v60, %s9853_s23 }
 0xa8d   : > { %3706 = vrot.lane.b32.xlu1 %v9210_v60, %s9855_s18  ;;  %3709 = vrot.lane.b32.xlu0 %v9210_v60, %s9854_s27 }
 0xa91   : > { %3700 = vrot.lane.b32.xlu1 %v9210_v60, %s9857_s17  ;;  %3703 = vrot.lane.b32.xlu0 %v9210_v60, %s9856_s20 }
 0xa95   : > { %644 = vperm.xlu1 %7918, %v634_v50   ;;  %639 = vperm.xlu0 %7917, %v633_v17  }
 0xa99   : > { %654 = vperm.xlu1 %7918, %v636_v6   ;;  %649 = vperm.xlu0 %7917, %v635_v56  }
 0xaf7   : > { %v3720_v10 = vpop.permute.xlu1 %3719  ;;  %v3723_v53 = vpop.permute.xlu0 %3722 }
 0xaf8   : > { %7457 = vmatprep.subr.mxu1 %v3723_v53 }
 0xaf9   : > { %7458 = vmatpush3.msra.mxu1 %v3723_v53 }
 0xafa   : > { %7459 = vmatprep.subr.mxu1 %v3720_v10 }
 0xafb   : > { %v3714_v7 = vpop.permute.xlu1 %3713  ;;  %7460 = vmatpush3.msra.mxu1 %v3720_v10  ;;  %v3717_v9 = vpop.permute.xlu0 %3716 }
 0xafc   : > { %7461 = vmatprep.subr.mxu1 %v3717_v9 }
 0xafd   : > { %7462 = vmatpush3.msra.mxu1 %v3717_v9 }
 0xafe   : > { %7463 = vmatprep.subr.mxu1 %v3714_v7 }
 0xaff   : > { %7464 = vmatpush3.msra.mxu1 %v3714_v7  ;;  %v3710_v63 = vpop.permute.xlu0 %3709  ;;  %v3707_v12 = vpop.permute.xlu1 %3706 }
 0xb00   : > { %7465 = vmatprep.subr.mxu1 %v9210_v60 }
 0xb01   : > { %7466 = vmatpush3.msra.mxu1 %v9210_v60 }
 0xb02   : > { %7467 = vmatprep.subr.mxu1 %v3710_v63 }
 0xb03   : > { %7468 = vmatpush3.msra.mxu1 %v3710_v63  ;;  %v3704_v13 = vpop.permute.xlu0 %3703  ;;  %v3701_v14 = vpop.permute.xlu1 %3700 }
 0xb04   : > { %7469 = vmatprep.subr.mxu1 %v3707_v12 }
 0xb05   : > { %7470 = vmatpush3.msra.mxu1 %v3707_v12 }
 0xb06   : > { %7471 = vmatprep.subr.mxu1 %v3704_v13 }
 0xb07   : > { %7472 = vmatpush3.msra.mxu1 %v3704_v13 }
 0xb08   : > { %7473 = vmatprep.subr.mxu1 %v3701_v14 }
 0xb09   : > { %7474 = vmatpush3.msra.mxu1 %v3701_v14 }
 0xb0a   : > { %7476 = vmatmul.mubr.msk.f32.vlgmr.msra.gmra.mxu1 %vm703_vm0, %v9261_v28  ;;  %7505 = vmatprep.subr.mxu1 %v3723_v53 }
 0xb0b   : > { %7506 = vmatpush3.msra.mxu1 %v3723_v53  ;;  %7478 = vmatprep.mubr.msk.f32.mxu1 %vm703_vm0, %v9266_v30 }
 0xb0c   : > { %7507 = vmatprep.subr.mxu1 %v3720_v10 }
 0xb0d   : > { %7508 = vmatpush3.msra.mxu1 %v3720_v10 }
 0xb0e   : > { %7479 = vmatmul.mubr.msk.f32.gmra.mxu1 %vm703_vm0, %v9275_v31  ;;  %7509 = vmatprep.subr.mxu1 %v3717_v9 }
 0xb0f   : > { %7510 = vmatpush3.msra.mxu1 %v3717_v9  ;;  %7523 = vmatprep.mubr.msk.f32.mxu1 %vm703_vm0, %v9096_v37  ;;  %v9309_v9 = vld [vmem:[%s9794_s1] ss:$0 sm:$0xff] }
 0xb10   : > { %7511 = vmatprep.subr.mxu1 %v3714_v7  ;;  %v9291_v35 = vpop.permute.xlu1 %644  ;;  %v9294_v61 = vpop.permute.xlu0 %639 }
 0xb11   : > { %7512 = vmatpush3.msra.mxu1 %v3714_v7 }
 0xb12   : > { %7513 = vmatprep.subr.mxu1 %v9210_v60 }
 0xb13   : > { %7514 = vmatpush3.msra.mxu1 %v9210_v60 }
 0xb14   : > { %7515 = vmatprep.subr.mxu1 %v3710_v63  ;;  %v9297_v54 = vpop.permute.xlu0 %649  ;;  %v9300_v62 = vpop.permute.xlu1 %654 }
 0xb15   : > { %7516 = vmatpush3.msra.mxu1 %v3710_v63 }
 0xb16   : > { %7517 = vmatprep.subr.mxu1 %v3707_v12 }
 0xb17   : > { %7518 = vmatpush3.msra.mxu1 %v3707_v12  ;;  %v9325_v12 = vld [vmem:[%s9807_s14] sm:$0xff] }
 0xb18   : > { %7519 = vmatprep.subr.mxu1 %v3704_v13  ;;  %7499 = vmatprep.mubr.msk.f32.mxu0 %vm703_vm0, %v9325_v12 }
 0xb19   : > { %7520 = vmatpush3.msra.mxu1 %v3704_v13 }
 0xb1a   : > { %7521 = vmatprep.subr.mxu1 %v3701_v14 }
 0xb1b   : > { %7522 = vmatpush3.msra.mxu1 %v3701_v14 }
 0xb1c   : > { %7524 = vmatmul.mubr.msk.f32.vlgmr.msra.gmra.mxu1 %vm703_vm0, %v9101_v52 }
 0xb1d   : > { %7526 = vmatprep.mubr.msk.f32.mxu1 %vm703_vm0, %v9115_v19 }
 0xb20   : > { %7527 = vmatmul.mubr.msk.f32.gmra.mxu1 %vm703_vm0, %v9123_v47 }
 0xb21   : > { %7571 = vmatprep.mubr.msk.f32.mxu1 %vm703_vm0, %v9178_v22 }
 0xbca   : > { %v7477_v0 = vpop.f32.mrf.mxu1 }
 0xbcb   : > { %v3932_v1 = vadd.f32 %v7477_v0, %v7453_v32 }
 0xbcc   : > { %v3926_v36 = vpop.f32.mrf.mxu1 }
 0xbcd   : > { %v3946_v26 = vadd.f32 %v3932_v1, %v9291_v35  ;;  %v3927_v20 = vadd.f32 %v3926_v36, %v3829_v33  ;;  %v9344_v36 = vld [vmem:[%s9807_s14 + $0x8] sm:$0xff] }
 0xbce   : > { %v7480_v21 = vpop.f32.mrf.mxu1 }
 0xbcf   : > { %v6423_v42 = vmul.f32 -1.442695, %v3946_v26  ;;  %v3945_v43 = vadd.f32 %v3927_v20, %v9294_v61  ;;  %v3942_v40 = vadd.f32 %v7480_v21, %v7456_v34  ;;  %v9349_v26 = vld [vmem:[%s9807_s14 + $0x10] sm:$0xff]  ;;  %v9358_v20 = vld [vmem:[%s9807_s14 + $0x18] sm:$0xff] }
 0xbd0   : > { %v3936_v4 = vpop.f32.mrf.mxu1 }
 0xbd1   : > { %8095 = vpow2.f32 %v6423_v42  ;;  %v6422_v46 = vmul.f32 -1.442695, %v3945_v43  ;;  %v3937_v16 = vadd.f32 %v3936_v4, %v3839_v24  ;;  %v3948_v29 = vadd.f32 %v3942_v40, %v9300_v62 }
 0xbd3   : > { %8097 = vpow2.f32 %v6422_v46  ;;  %v3947_v44 = vadd.f32 %v3937_v16, %v9297_v54 }
 0xbd5   : > { %v6424_v27 = vmul.f32 -1.442695, %v3947_v44 }
 0xbd7   : > { %8099 = vpow2.f32 %v6424_v27 }
 0xbdc   : > { %v7525_v43 = vpop.f32.mrf.mxu1 }
 0xbde   : > { %v8096_v45 = vpop.eup %8095  ;;  %v4234_v16 = vpop.f32.mrf.mxu1 }
 0xbdf   : > { %v3959_v38 = vadd.f32 1.0, %v8096_v45 }
 0xbe0   : > { %v8098_v41 = vpop.eup %8097 }
 0xbe1   : > { %8101 = vrcp.f32 %v3959_v38  ;;  %v3958_v8 = vadd.f32 1.0, %v8098_v41 }
 0xbe2   : > { %8103 = vtanh.f32 %v3948_v29  ;;  %v7528_v29 = vpop.f32.mrf.mxu1 }
 0xbe3   : > { %8105 = vrcp.f32 %v3958_v8 }
 0xbe4   : > { %v8100_v59 = vpop.eup %8099 }
 0xbe5   : > { %v3960_v50 = vadd.f32 1.0, %v8100_v59 }
 0xbe7   : > { %8107 = vrcp.f32 %v3960_v50 }
 0xbee   : > { %v8102_v57 = vpop.eup %8101 }
 0xbef   : > { %v8104_v49 = vpop.eup %8103  ;;  %v3969_v17 = vmul.f32 0.0, %v8102_v57  ;;  %v4244_v57 = vpop.f32.mrf.mxu1 }
 0xbf0   : > { %v8106_v60 = vpop.eup %8105 }
 0xbf1   : > { %v3970_v6 = vmul.f32 %v8106_v60, %v8104_v49 }
 0xbf3   : > { %v9303_v56 = vadd.f32 %v3970_v6, %v3969_v17 }
 0xbf4   : > { %v8108_v10 = vpop.eup %8107 }
 0xbf5   : > { %8109 = vtanh.f32 %v9303_v56 }
 0xc02   : > { %v8110_v53 = vpop.eup %8109 }
 0xc03   : > { %v3974_v7 = vmul.f32 %v8110_v53, %v8108_v10 }
 0xc05   : > { %v9312_v63 = vmul.f32 %v9309_v9, %v3974_v7 }
 0xc07   : > { %3995 = vrot.lane.b32.xlu1 %v9312_v63, %s9850_s26  ;;  %3998 = vrot.lane.b32.xlu0 %v9312_v63, %s9851_s29 }
 0xc0b   : > { %3989 = vrot.lane.b32.xlu1 %v9312_v63, %s9852_s4  ;;  %3992 = vrot.lane.b32.xlu0 %v9312_v63, %s9853_s23 }
 0xc0f   : > { %3982 = vrot.lane.b32.xlu1 %v9312_v63, %s9855_s18  ;;  %3985 = vrot.lane.b32.xlu0 %v9312_v63, %s9854_s27 }
 0xc13   : > { %3976 = vrot.lane.b32.xlu1 %v9312_v63, %s9857_s17  ;;  %3979 = vrot.lane.b32.xlu0 %v9312_v63, %s9856_s20 }
 0xc79   : > { %v3996_v13 = vpop.permute.xlu1 %3995  ;;  %v3999_v14 = vpop.permute.xlu0 %3998 }
 0xc7a   : > { %7481 = vmatprep.subr.mxu0 %v3999_v14  ;;  %7553 = vmatprep.subr.mxu1 %v3999_v14 }
 0xc7b   : > { %7482 = vmatpush3.msra.mxu0 %v3999_v14  ;;  %7554 = vmatpush3.msra.mxu1 %v3999_v14 }
 0xc7c   : > { %7483 = vmatprep.subr.mxu0 %v3996_v13  ;;  %7555 = vmatprep.subr.mxu1 %v3996_v13 }
 0xc7d   : > { %v3990_v32 = vpop.permute.xlu1 %3989  ;;  %7484 = vmatpush3.msra.mxu0 %v3996_v13  ;;  %7556 = vmatpush3.msra.mxu1 %v3996_v13  ;;  %v3993_v33 = vpop.permute.xlu0 %3992 }
 0xc7e   : > { %7485 = vmatprep.subr.mxu0 %v3993_v33  ;;  %7557 = vmatprep.subr.mxu1 %v3993_v33 }
 0xc7f   : > { %7486 = vmatpush3.msra.mxu0 %v3993_v33  ;;  %7558 = vmatpush3.msra.mxu1 %v3993_v33 }
 0xc80   : > { %7487 = vmatprep.subr.mxu0 %v3990_v32  ;;  %7559 = vmatprep.subr.mxu1 %v3990_v32 }
 0xc81   : > { %7488 = vmatpush3.msra.mxu0 %v3990_v32  ;;  %7560 = vmatpush3.msra.mxu1 %v3990_v32  ;;  %v3986_v34 = vpop.permute.xlu0 %3985  ;;  %v3983_v24 = vpop.permute.xlu1 %3982 }
 0xc82   : > { %7489 = vmatprep.subr.mxu0 %v9312_v63  ;;  %7561 = vmatprep.subr.mxu1 %v9312_v63 }
 0xc83   : > { %7490 = vmatpush3.msra.mxu0 %v9312_v63  ;;  %7562 = vmatpush3.msra.mxu1 %v9312_v63 }
 0xc84   : > { %7491 = vmatprep.subr.mxu0 %v3986_v34  ;;  %7563 = vmatprep.subr.mxu1 %v3986_v34 }
 0xc85   : > { %7492 = vmatpush3.msra.mxu0 %v3986_v34  ;;  %7564 = vmatpush3.msra.mxu1 %v3986_v34  ;;  %v3980_v0 = vpop.permute.xlu0 %3979  ;;  %v3977_v1 = vpop.permute.xlu1 %3976 }
 0xc86   : > { %7493 = vmatprep.subr.mxu0 %v3983_v24  ;;  %7565 = vmatprep.subr.mxu1 %v3983_v24 }
 0xc87   : > { %7494 = vmatpush3.msra.mxu0 %v3983_v24  ;;  %7566 = vmatpush3.msra.mxu1 %v3983_v24 }
 0xc88   : > { %7495 = vmatprep.subr.mxu0 %v3980_v0  ;;  %7567 = vmatprep.subr.mxu1 %v3980_v0 }
 0xc89   : > { %7496 = vmatpush3.msra.mxu0 %v3980_v0  ;;  %7568 = vmatpush3.msra.mxu1 %v3980_v0 }
 0xc8a   : > { %7497 = vmatprep.subr.mxu0 %v3977_v1  ;;  %7569 = vmatprep.subr.mxu1 %v3977_v1 }
 0xc8b   : > { %7498 = vmatpush3.msra.mxu0 %v3977_v1  ;;  %7570 = vmatpush3.msra.mxu1 %v3977_v1 }
 0xc8c   : > { %7500 = vmatmul.mubr.msk.f32.vlgmr.msra.gmra.mxu0 %vm703_vm0, %v9344_v36  ;;  %7529 = vmatprep.subr.mxu0 %v3999_v14 }
 0xc8d   : > { %7530 = vmatpush3.msra.mxu0 %v3999_v14  ;;  %7502 = vmatprep.mubr.msk.f32.mxu0 %vm703_vm0, %v9349_v26 }
 0xc8e   : > { %7531 = vmatprep.subr.mxu0 %v3996_v13  ;;  %7572 = vmatmul.mubr.msk.f32.vlgmr.msra.gmra.mxu1 %vm703_vm0, %v9183_v25 }
 0xc8f   : > { %7532 = vmatpush3.msra.mxu0 %v3996_v13  ;;  %7574 = vmatprep.mubr.msk.f32.mxu1 %vm703_vm0, %v9207_v23 }
 0xc90   : > { %7533 = vmatprep.subr.mxu0 %v3993_v33  ;;  %7503 = vmatmul.mubr.msk.f32.gmra.mxu0 %vm703_vm0, %v9358_v20 }
 0xc91   : > { %7534 = vmatpush3.msra.mxu0 %v3993_v33  ;;  %7547 = vmatprep.mubr.msk.f32.mxu0 %vm703_vm0, %v9134_v18 }
 0xc92   : > { %7535 = vmatprep.subr.mxu0 %v3990_v32  ;;  %7575 = vmatmul.mubr.msk.f32.gmra.mxu1 %vm703_vm0, %v9217_v5 }
 0xc93   : > { %7536 = vmatpush3.msra.mxu0 %v3990_v32  ;;  %7619 = vmatprep.mubr.msk.f32.mxu1 %vm703_vm0, %v9325_v12 }
 0xc94   : > { %7537 = vmatprep.subr.mxu0 %v9312_v63 }
 0xc95   : > { %7538 = vmatpush3.msra.mxu0 %v9312_v63 }
 0xc96   : > { %7539 = vmatprep.subr.mxu0 %v3986_v34 }
 0xc97   : > { %7540 = vmatpush3.msra.mxu0 %v3986_v34 }
 0xc98   : > { %7541 = vmatprep.subr.mxu0 %v3983_v24 }
 0xc99   : > { %7542 = vmatpush3.msra.mxu0 %v3983_v24 }
 0xc9a   : > { %7543 = vmatprep.subr.mxu0 %v3980_v0 }
 0xc9b   : > { %7544 = vmatpush3.msra.mxu0 %v3980_v0 }
 0xc9c   : > { %7545 = vmatprep.subr.mxu0 %v3977_v1 }
 0xc9d   : > { %7546 = vmatpush3.msra.mxu0 %v3977_v1 }
 0xc9e   : > { %7548 = vmatmul.mubr.msk.f32.vlgmr.msra.gmra.mxu0 %vm703_vm0, %v9157_v58 }
 0xc9f   : > { %7550 = vmatprep.mubr.msk.f32.mxu0 %vm703_vm0, %v9162_v55 }
 0xca2   : > { %7551 = vmatmul.mubr.msk.f32.gmra.mxu0 %vm703_vm0, %v9171_v15 }
 0xca3   : > { %7595 = vmatprep.mubr.msk.f32.mxu0 %vm703_vm0, %v9232_v11 }
 0xd4c   : > { %v9382_v18 = vpop.f32.mrf.mxu0 }
 0xd4e   : > { %v9384_v21 = vpop.f32.mrf.mxu0 }
 0xd50   : > { %v9386_v42 = vpop.f32.mrf.mxu0 }
 0xd52   : > { %v9388_v46 = vpop.f32.mrf.mxu0 }
 0xd5e   : > { %v7549_v4 = vpop.f32.mrf.mxu0 }
 0xd5f   : > { %v4337_v44 = vadd.f32 %v7549_v4, %v7525_v43 }
 0xd60   : > { %v4331_v40 = vpop.f32.mrf.mxu0 }
 0xd61   : > { %v4351_v27 = vadd.f32 %v4337_v44, %v9189_v2  ;;  %v4332_v45 = vadd.f32 %v4331_v40, %v4234_v16 }
 0xd62   : > { %v7552_v38 = vpop.f32.mrf.mxu0 }
 0xd63   : > { %v6442_v41 = vmul.f32 -1.442695, %v4351_v27  ;;  %v4350_v8 = vadd.f32 %v4332_v45, %v9192_v3  ;;  %v4347_v17 = vadd.f32 %v7552_v38, %v7528_v29 }
 0xd64   : > { %v4341_v49 = vpop.f32.mrf.mxu0 }
 0xd65   : > { %8111 = vpow2.f32 %v6442_v41  ;;  %v6441_v59 = vmul.f32 -1.442695, %v4350_v8  ;;  %v4342_v60 = vadd.f32 %v4341_v49, %v4244_v57  ;;  %v4353_v53 = vadd.f32 %v4347_v17, %v9198_v51 }
 0xd67   : > { %8113 = vpow2.f32 %v6441_v59  ;;  %v4352_v50 = vadd.f32 %v4342_v60, %v9195_v39 }
 0xd69   : > { %v6443_v6 = vmul.f32 -1.442695, %v4352_v50 }
 0xd6b   : > { %8115 = vpow2.f32 %v6443_v6 }
 0xd72   : > { %v8112_v10 = vpop.eup %8111 }
 0xd73   : > { %v4364_v7 = vadd.f32 1.0, %v8112_v10 }
 0xd74   : > { %v8114_v63 = vpop.eup %8113 }
 0xd75   : > { %8117 = vrcp.f32 %v4364_v7  ;;  %v4363_v13 = vadd.f32 1.0, %v8114_v63 }
 0xd76   : > { %8119 = vtanh.f32 %v4353_v53 }
 0xd77   : > { %8121 = vrcp.f32 %v4363_v13 }
 0xd78   : > { %v8116_v14 = vpop.eup %8115 }
 0xd79   : > { %v4365_v24 = vadd.f32 1.0, %v8116_v14 }
 0xd7b   : > { %8123 = vrcp.f32 %v4365_v24 }
 0xd82   : > { %v8118_v32 = vpop.eup %8117 }
 0xd83   : > { %v8120_v33 = vpop.eup %8119  ;;  %v4374_v0 = vmul.f32 %v8118_v32, %v9201_v48 }
 0xd84   : > { %v8122_v34 = vpop.eup %8121 }
 0xd85   : > { %v4375_v1 = vmul.f32 %v8122_v34, %v8120_v33 }
 0xd87   : > { %v9395_v43 = vadd.f32 %v4375_v1, %v4374_v0 }
 0xd88   : > { %v8124_v4 = vpop.eup %8123 }
 0xd89   : > { %8125 = vtanh.f32 %v9395_v43 }
 0xd96   : > { %v8126_v16 = vpop.eup %8125 }
 0xd97   : > { %v4379_v44 = vmul.f32 %v8126_v16, %v8124_v4 }
 0xd99   : > { %v4380_v40 = vmul.f32 %v9309_v9, %v4379_v44 }
 0xd9b   : > { %4400 = vrot.lane.b32.xlu1 %v4380_v40, %s9850_s26  ;;  %4403 = vrot.lane.b32.xlu0 %v4380_v40, %s9851_s29 }
 0xd9f   : > { %4394 = vrot.lane.b32.xlu1 %v4380_v40, %s9852_s4  ;;  %4397 = vrot.lane.b32.xlu0 %v4380_v40, %s9853_s23 }
 0xda3   : > { %4387 = vrot.lane.b32.xlu1 %v4380_v40, %s9855_s18  ;;  %4390 = vrot.lane.b32.xlu0 %v4380_v40, %s9854_s27 }
 0xda7   : > { %4381 = vrot.lane.b32.xlu1 %v4380_v40, %s9857_s17  ;;  %4384 = vrot.lane.b32.xlu0 %v4380_v40, %s9856_s20 }
 0xe0d   : > { %v4401_v48 = vpop.permute.xlu1 %4400  ;;  %v4404_v27 = vpop.permute.xlu0 %4403 }
 0xe0e   : > { %7577 = vmatprep.subr.mxu0 %v4404_v27 }
 0xe0f   : > { %7578 = vmatpush3.msra.mxu0 %v4404_v27 }
 0xe10   : > { %7579 = vmatprep.subr.mxu0 %v4401_v48 }
 0xe11   : > { %v4395_v45 = vpop.permute.xlu1 %4394  ;;  %7580 = vmatpush3.msra.mxu0 %v4401_v48  ;;  %v4398_v29 = vpop.permute.xlu0 %4397 }
 0xe12   : > { %7581 = vmatprep.subr.mxu0 %v4398_v29 }
 0xe13   : > { %7582 = vmatpush3.msra.mxu0 %v4398_v29 }
 0xe14   : > { %7583 = vmatprep.subr.mxu0 %v4395_v45 }
 0xe15   : > { %7584 = vmatpush3.msra.mxu0 %v4395_v45  ;;  %v4391_v38 = vpop.permute.xlu0 %4390  ;;  %v4388_v41 = vpop.permute.xlu1 %4387 }
 0xe16   : > { %7585 = vmatprep.subr.mxu0 %v4380_v40 }
 0xe17   : > { %7586 = vmatpush3.msra.mxu0 %v4380_v40 }
 0xe18   : > { %7587 = vmatprep.subr.mxu0 %v4391_v38 }
 0xe19   : > { %7588 = vmatpush3.msra.mxu0 %v4391_v38  ;;  %v4385_v8 = vpop.permute.xlu0 %4384  ;;  %v4382_v59 = vpop.permute.xlu1 %4381 }
 0xe1a   : > { %7589 = vmatprep.subr.mxu0 %v4388_v41 }
 0xe1b   : > { %7590 = vmatpush3.msra.mxu0 %v4388_v41 }
 0xe1c   : > { %7591 = vmatprep.subr.mxu0 %v4385_v8 }
 0xe1d   : > { %7592 = vmatpush3.msra.mxu0 %v4385_v8 }
 0xe1e   : > { %7593 = vmatprep.subr.mxu0 %v4382_v59 }
 0xe1f   : > { %7594 = vmatpush3.msra.mxu0 %v4382_v59 }
 0xe20   : > { %7596 = vmatmul.mubr.msk.f32.vlgmr.msra.gmra.mxu0 %vm703_vm0, %v9261_v28  ;;  %7625 = vmatprep.subr.mxu0 %v4404_v27 }
 0xe21   : > { %7626 = vmatpush3.msra.mxu0 %v4404_v27  ;;  %7598 = vmatprep.mubr.msk.f32.mxu0 %vm703_vm0, %v9266_v30 }
 0xe22   : > { %7627 = vmatprep.subr.mxu0 %v4401_v48 }
 0xe23   : > { %7628 = vmatpush3.msra.mxu0 %v4401_v48 }
 0xe24   : > { %7599 = vmatmul.mubr.msk.f32.gmra.mxu0 %vm703_vm0, %v9275_v31  ;;  %7629 = vmatprep.subr.mxu0 %v4398_v29 }
 0xe25   : > { %7630 = vmatpush3.msra.mxu0 %v4398_v29  ;;  %7643 = vmatprep.mubr.msk.f32.mxu0 %vm703_vm0, %v9096_v37  ;;  %v7573_v37 = vpop.f32.mrf.mxu1 }
 0xe26   : > { %7631 = vmatprep.subr.mxu0 %v4395_v45 }
 0xe27   : > { %7632 = vmatpush3.msra.mxu0 %v4395_v45  ;;  %v4510_v49 = vpop.f32.mrf.mxu1 }
 0xe28   : > { %7633 = vmatprep.subr.mxu0 %v4380_v40 }
 0xe29   : > { %7634 = vmatpush3.msra.mxu0 %v4380_v40  ;;  %v7576_v10 = vpop.f32.mrf.mxu1 }
 0xe2a   : > { %7635 = vmatprep.subr.mxu0 %v4391_v38 }
 0xe2b   : > { %7636 = vmatpush3.msra.mxu0 %v4391_v38  ;;  %v4520_v63 = vpop.f32.mrf.mxu1 }
 0xe2c   : > { %7637 = vmatprep.subr.mxu0 %v4388_v41 }
 0xe2d   : > { %7638 = vmatpush3.msra.mxu0 %v4388_v41 }
 0xe2e   : > { %7639 = vmatprep.subr.mxu0 %v4385_v8 }
 0xe2f   : > { %7640 = vmatpush3.msra.mxu0 %v4385_v8 }
 0xe30   : > { %7641 = vmatprep.subr.mxu0 %v4382_v59 }
 0xe31   : > { %7642 = vmatpush3.msra.mxu0 %v4382_v59 }
 0xe32   : > { %7644 = vmatmul.mubr.msk.f32.vlgmr.msra.gmra.mxu0 %vm703_vm0, %v9101_v52 }
 0xe33   : > { %7646 = vmatprep.mubr.msk.f32.mxu0 %vm703_vm0, %v9115_v19 }
 0xe36   : > { %7647 = vmatmul.mubr.msk.f32.gmra.mxu0 %vm703_vm0, %v9123_v47 }
 0xe37   : > { %7691 = vmatprep.mubr.msk.f32.mxu0 %vm703_vm0, %v9178_v22 }
 0xee0   : > { %v7597_v57 = vpop.f32.mrf.mxu0 }
 0xee1   : > { %v4613_v60 = vadd.f32 %v7597_v57, %v7573_v37 }
 0xee2   : > { %v4607_v50 = vpop.f32.mrf.mxu0 }
 0xee3   : > { %v4627_v17 = vadd.f32 %v4613_v60, %v9291_v35  ;;  %v4608_v6 = vadd.f32 %v4607_v50, %v4510_v49 }
 0xee4   : > { %v7600_v53 = vpop.f32.mrf.mxu0 }
 0xee5   : > { %v6453_v52 = vmul.f32 -1.442695, %v4627_v17  ;;  %v4626_v7 = vadd.f32 %v4608_v6, %v9294_v61  ;;  %v4623_v14 = vadd.f32 %v7600_v53, %v7576_v10  ;;  %v8273_v10 = vld [vmem:[%s9801_s8] sm:$0xff] }
 0xee6   : > { %v4617_v47 = vpop.f32.mrf.mxu0 }
 0xee7   : > { %8127 = vpow2.f32 %v6453_v52  ;;  %v6452_v19 = vmul.f32 -1.442695, %v4626_v7  ;;  %v4618_v13 = vadd.f32 %v4617_v47, %v4520_v63  ;;  %v4629_v34 = vadd.f32 %v4623_v14, %v9300_v62 }
 0xee9   : > { %8129 = vpow2.f32 %v6452_v19  ;;  %v4628_v22 = vadd.f32 %v4618_v13, %v9297_v54 }
 0xeeb   : > { %v6454_v32 = vmul.f32 -1.442695, %v4628_v22 }
 0xeed   : > { %8131 = vpow2.f32 %v6454_v32 }
 0xef4   : > { %v8128_v33 = vpop.eup %8127 }
 0xef5   : > { %v4640_v24 = vadd.f32 1.0, %v8128_v33 }
 0xef6   : > { %v8130_v0 = vpop.eup %8129 }
 0xef7   : > { %8133 = vrcp.f32 %v4640_v24  ;;  %v4639_v1 = vadd.f32 1.0, %v8130_v0 }
 0xef8   : > { %8135 = vtanh.f32 %v4629_v34 }
 0xef9   : > { %8137 = vrcp.f32 %v4639_v1 }
 0xefa   : > { %v8132_v4 = vpop.eup %8131 }
 0xefb   : > { %v4641_v48 = vadd.f32 1.0, %v8132_v4 }
 0xefd   : > { %8139 = vrcp.f32 %v4641_v48 }
 0xf04   : > { %v8134_v16 = vpop.eup %8133 }
 0xf05   : > { %v8136_v44 = vpop.eup %8135  ;;  %v4650_v27 = vmul.f32 %v8134_v16, %v9303_v56 }
 0xf06   : > { %v8138_v40 = vpop.eup %8137 }
 0xf07   : > { %v4651_v45 = vmul.f32 %v8138_v40, %v8136_v44 }
 0xf09   : > { %v9428_v29 = vadd.f32 %v4651_v45, %v4650_v27 }
 0xf0a   : > { %v8140_v38 = vpop.eup %8139 }
 0xf0b   : > { %8141 = vtanh.f32 %v9428_v29 }
 0xf18   : > { %v8142_v41 = vpop.eup %8141 }
 0xf19   : > { %v4655_v8 = vmul.f32 %v8142_v41, %v8140_v38 }
 0xf1b   : > { %v9432_v59 = vmul.f32 %v9309_v9, %v4655_v8 }
 0xf1d   : > { %4676 = vrot.lane.b32.xlu1 %v9432_v59, %s9850_s26  ;;  %4679 = vrot.lane.b32.xlu0 %v9432_v59, %s9851_s29 }
 0xf21   : > { %4670 = vrot.lane.b32.xlu1 %v9432_v59, %s9852_s4  ;;  %4673 = vrot.lane.b32.xlu0 %v9432_v59, %s9853_s23 }
 0xf25   : > { %4663 = vrot.lane.b32.xlu1 %v9432_v59, %s9855_s18  ;;  %4666 = vrot.lane.b32.xlu0 %v9432_v59, %s9854_s27 }
 0xf29   : > { %4657 = vrot.lane.b32.xlu1 %v9432_v59, %s9857_s17  ;;  %4660 = vrot.lane.b32.xlu0 %v9432_v59, %s9856_s20 }
 0xf8f   : > { %v4677_v56 = vpop.permute.xlu1 %4676  ;;  %v4680_v37 = vpop.permute.xlu0 %4679 }
 0xf90   : > { %7601 = vmatprep.subr.mxu1 %v4680_v37  ;;  %7673 = vmatprep.subr.mxu0 %v4680_v37 }
 0xf91   : > { %7602 = vmatpush3.msra.mxu1 %v4680_v37  ;;  %7674 = vmatpush3.msra.mxu0 %v4680_v37 }
 0xf92   : > { %7603 = vmatprep.subr.mxu1 %v4677_v56  ;;  %7675 = vmatprep.subr.mxu0 %v4677_v56 }
 0xf93   : > { %v4671_v57 = vpop.permute.xlu1 %4670  ;;  %7604 = vmatpush3.msra.mxu1 %v4677_v56  ;;  %7676 = vmatpush3.msra.mxu0 %v4677_v56  ;;  %v4674_v49 = vpop.permute.xlu0 %4673 }
 0xf94   : > { %7605 = vmatprep.subr.mxu1 %v4674_v49  ;;  %7677 = vmatprep.subr.mxu0 %v4674_v49 }
 0xf95   : > { %7606 = vmatpush3.msra.mxu1 %v4674_v49  ;;  %7678 = vmatpush3.msra.mxu0 %v4674_v49 }
 0xf96   : > { %7607 = vmatprep.subr.mxu1 %v4671_v57  ;;  %7679 = vmatprep.subr.mxu0 %v4671_v57 }
 0xf97   : > { %7608 = vmatpush3.msra.mxu1 %v4671_v57  ;;  %7680 = vmatpush3.msra.mxu0 %v4671_v57  ;;  %v4667_v60 = vpop.permute.xlu0 %4666  ;;  %v4664_v50 = vpop.permute.xlu1 %4663 }
 0xf98   : > { %7609 = vmatprep.subr.mxu1 %v9432_v59  ;;  %7681 = vmatprep.subr.mxu0 %v9432_v59 }
 0xf99   : > { %7610 = vmatpush3.msra.mxu1 %v9432_v59  ;;  %7682 = vmatpush3.msra.mxu0 %v9432_v59 }
 0xf9a   : > { %7611 = vmatprep.subr.mxu1 %v4667_v60  ;;  %7683 = vmatprep.subr.mxu0 %v4667_v60 }
 0xf9b   : > { %7612 = vmatpush3.msra.mxu1 %v4667_v60  ;;  %7684 = vmatpush3.msra.mxu0 %v4667_v60  ;;  %v4661_v17 = vpop.permute.xlu0 %4660  ;;  %v4658_v6 = vpop.permute.xlu1 %4657 }
 0xf9c   : > { %7613 = vmatprep.subr.mxu1 %v4664_v50  ;;  %7685 = vmatprep.subr.mxu0 %v4664_v50 }
 0xf9d   : > { %7614 = vmatpush3.msra.mxu1 %v4664_v50  ;;  %7686 = vmatpush3.msra.mxu0 %v4664_v50 }
 0xf9e   : > { %7615 = vmatprep.subr.mxu1 %v4661_v17  ;;  %7687 = vmatprep.subr.mxu0 %v4661_v17 }
 0xf9f   : > { %7616 = vmatpush3.msra.mxu1 %v4661_v17  ;;  %7688 = vmatpush3.msra.mxu0 %v4661_v17 }
 0xfa0   : > { %7617 = vmatprep.subr.mxu1 %v4658_v6  ;;  %7689 = vmatprep.subr.mxu0 %v4658_v6 }
 0xfa1   : > { %7618 = vmatpush3.msra.mxu1 %v4658_v6  ;;  %7690 = vmatpush3.msra.mxu0 %v4658_v6 }
 0xfa2   : > { %7620 = vmatmul.mubr.msk.f32.vlgmr.msra.gmra.mxu1 %vm703_vm0, %v9344_v36  ;;  %7649 = vmatprep.subr.mxu1 %v4680_v37 }
 0xfa3   : > { %7650 = vmatpush3.msra.mxu1 %v4680_v37  ;;  %7622 = vmatprep.mubr.msk.f32.mxu1 %vm703_vm0, %v9349_v26 }
 0xfa4   : > { %7651 = vmatprep.subr.mxu1 %v4677_v56  ;;  %7692 = vmatmul.mubr.msk.f32.vlgmr.msra.gmra.mxu0 %vm703_vm0, %v9183_v25 }
 0xfa5   : > { %7652 = vmatpush3.msra.mxu1 %v4677_v56  ;;  %7694 = vmatprep.mubr.msk.f32.mxu0 %vm703_vm0, %v9207_v23 }
 0xfa6   : > { %7653 = vmatprep.subr.mxu1 %v4674_v49  ;;  %7623 = vmatmul.mubr.msk.f32.gmra.mxu1 %vm703_vm0, %v9358_v20 }
 0xfa7   : > { %7654 = vmatpush3.msra.mxu1 %v4674_v49  ;;  %7667 = vmatprep.mubr.msk.f32.mxu1 %vm703_vm0, %v8273_v10 }
 0xfa8   : > { %7655 = vmatprep.subr.mxu1 %v4671_v57  ;;  %7695 = vmatmul.mubr.msk.f32.gmra.mxu0 %vm703_vm0, %v9217_v5 }
 0xfa9   : > { %7656 = vmatpush3.msra.mxu1 %v4671_v57  ;;  %7739 = vmatprep.mubr.msk.f32.mxu0 %vm703_vm0, %v9325_v12  ;;  %v7645_v12 = vpop.f32.mrf.mxu0 }
 0xfaa   : > { %7657 = vmatprep.subr.mxu1 %v9432_v59 }
 0xfab   : > { %7658 = vmatpush3.msra.mxu1 %v9432_v59 }
 0xfac   : > { %7659 = vmatprep.subr.mxu1 %v4667_v60 }
 0xfad   : > { %7660 = vmatpush3.msra.mxu1 %v4667_v60 }
 0xfae   : > { %7661 = vmatprep.subr.mxu1 %v4664_v50 }
 0xfaf   : > { %7662 = vmatpush3.msra.mxu1 %v4664_v50 }
 0xfb0   : > { %7663 = vmatprep.subr.mxu1 %v4661_v17 }
 0xfb1   : > { %7664 = vmatpush3.msra.mxu1 %v4661_v17 }
 0xfb2   : > { %7665 = vmatprep.subr.mxu1 %v4658_v6 }
 0xfb3   : > { %7666 = vmatpush3.msra.mxu1 %v4658_v6 }
 0xfb4   : > { %7668 = vmatmul.mubr.msk.f32.vlgmr.msra.gmra.mxu1 %vm703_vm0, %v9157_v58  ;;  %v4916_v58 = vpop.f32.mrf.mxu0 }
 0xfb5   : > { %7670 = vmatprep.mubr.msk.f32.mxu1 %vm703_vm0, %v9162_v55 }
 0xfb8   : > { %7671 = vmatmul.mubr.msk.f32.gmra.mxu1 %vm703_vm0, %v9171_v15  ;;  %v7648_v15 = vpop.f32.mrf.mxu0 }
 0xfb9   : > { %7715 = vmatprep.mubr.msk.f32.mxu1 %vm703_vm0, %v9232_v11 }
 0xfba   : > { %v4926_v14 = vpop.f32.mrf.mxu0 }
0x1062   : > { %v9482_v25 = vpop.f32.mrf.mxu1 }
0x1064   : > { %v9484_v23 = vpop.f32.mrf.mxu1 }
0x1066   : > { %v9486_v5 = vpop.f32.mrf.mxu1 }
0x1068   : > { %v9488_v53 = vpop.f32.mrf.mxu1 }
0x1074   : > { %v7669_v52 = vpop.f32.mrf.mxu1 }
0x1075   : > { %v5019_v7 = vadd.f32 %v7669_v52, %v7645_v12 }
0x1076   : > { %v5013_v19 = vpop.f32.mrf.mxu1 }
0x1077   : > { %v5033_v55 = vadd.f32 %v5019_v7, %v9189_v2  ;;  %v5014_v63 = vadd.f32 %v5013_v19, %v4916_v58 }
0x1078   : > { %v7672_v47 = vpop.f32.mrf.mxu1 }
0x1079   : > { %v6476_v13 = vmul.f32 -1.442695, %v5033_v55  ;;  %v5032_v11 = vadd.f32 %v5014_v63, %v9192_v3  ;;  %v5029_v24 = vadd.f32 %v7672_v47, %v7648_v15 }
0x107a   : > { %v5023_v32 = vpop.f32.mrf.mxu1 }
0x107b   : > { %8143 = vpow2.f32 %v6476_v13  ;;  %v6475_v22 = vmul.f32 -1.442695, %v5032_v11  ;;  %v5024_v33 = vadd.f32 %v5023_v32, %v4926_v14  ;;  %v5035_v4 = vadd.f32 %v5029_v24, %v9198_v51 }
0x107d   : > { %8145 = vpow2.f32 %v6475_v22  ;;  %v5034_v34 = vadd.f32 %v5024_v33, %v9195_v39 }
0x107f   : > { %v6477_v0 = vmul.f32 -1.442695, %v5034_v34 }
0x1081   : > { %8147 = vpow2.f32 %v6477_v0 }
0x1088   : > { %v8144_v1 = vpop.eup %8143 }
0x1089   : > { %v5046_v16 = vadd.f32 1.0, %v8144_v1 }
0x108a   : > { %v8146_v44 = vpop.eup %8145 }
0x108b   : > { %8149 = vrcp.f32 %v5046_v16  ;;  %v5045_v40 = vadd.f32 1.0, %v8146_v44 }
0x108c   : > { %8151 = vtanh.f32 %v5035_v4 }
0x108d   : > { %8153 = vrcp.f32 %v5045_v40 }
0x108e   : > { %v8148_v48 = vpop.eup %8147 }
0x108f   : > { %v5047_v41 = vadd.f32 1.0, %v8148_v48 }
0x1091   : > { %8155 = vrcp.f32 %v5047_v41 }
0x1098   : > { %v8150_v27 = vpop.eup %8149 }
0x1099   : > { %v8152_v45 = vpop.eup %8151  ;;  %v5056_v8 = vmul.f32 %v8150_v27, %v9395_v43 }
0x109a   : > { %v8154_v38 = vpop.eup %8153 }
0x109b   : > { %v5057_v59 = vmul.f32 %v8154_v38, %v8152_v45 }
0x109d   : > { %v9495_v56 = vadd.f32 %v5057_v59, %v5056_v8 }
0x109e   : > { %v8156_v37 = vpop.eup %8155 }
0x109f   : > { %8157 = vtanh.f32 %v9495_v56 }
0x10ac   : > { %v8158_v57 = vpop.eup %8157 }
0x10ad   : > { %v5061_v49 = vmul.f32 %v8158_v57, %v8156_v37  ;;  %v5507_v57 = vld [vmem:[%s9802_s9] sm:$0xff] }
0x10af   : > { %v5062_v60 = vmul.f32 %v9309_v9, %v5061_v49  ;;  %v5508_v49 = vld [vmem:[%s9802_s9 + $0x8] sm:$0xff] }
0x10b1   : > { %5082 = vrot.lane.b32.xlu1 %v5062_v60, %s9850_s26  ;;  %5085 = vrot.lane.b32.xlu0 %v5062_v60, %s9851_s29 }
0x10b5   : > { %5076 = vrot.lane.b32.xlu1 %v5062_v60, %s9852_s4  ;;  %5079 = vrot.lane.b32.xlu0 %v5062_v60, %s9853_s23 }
0x10b9   : > { %5069 = vrot.lane.b32.xlu1 %v5062_v60, %s9855_s18  ;;  %5072 = vrot.lane.b32.xlu0 %v5062_v60, %s9854_s27 }
0x10bd   : > { %5063 = vrot.lane.b32.xlu1 %v5062_v60, %s9857_s17  ;;  %5066 = vrot.lane.b32.xlu0 %v5062_v60, %s9856_s20 }
0x1123   : > { %v5083_v43 = vpop.permute.xlu1 %5082  ;;  %v5086_v50 = vpop.permute.xlu0 %5085 }
0x1124   : > { %7697 = vmatprep.subr.mxu1 %v5086_v50 }
0x1125   : > { %7698 = vmatpush3.msra.mxu1 %v5086_v50 }
0x1126   : > { %7699 = vmatprep.subr.mxu1 %v5083_v43 }
0x1127   : > { %v5077_v17 = vpop.permute.xlu1 %5076  ;;  %7700 = vmatpush3.msra.mxu1 %v5083_v43  ;;  %v5080_v6 = vpop.permute.xlu0 %5079 }
0x1128   : > { %7701 = vmatprep.subr.mxu1 %v5080_v6 }
0x1129   : > { %7702 = vmatpush3.msra.mxu1 %v5080_v6 }
0x112a   : > { %7703 = vmatprep.subr.mxu1 %v5077_v17 }
0x112b   : > { %7704 = vmatpush3.msra.mxu1 %v5077_v17  ;;  %v5073_v10 = vpop.permute.xlu0 %5072  ;;  %v5070_v12 = vpop.permute.xlu1 %5069 }
0x112c   : > { %7705 = vmatprep.subr.mxu1 %v5062_v60 }
0x112d   : > { %7706 = vmatpush3.msra.mxu1 %v5062_v60 }
0x112e   : > { %7707 = vmatprep.subr.mxu1 %v5073_v10 }
0x112f   : > { %7708 = vmatpush3.msra.mxu1 %v5073_v10  ;;  %v5067_v52 = vpop.permute.xlu0 %5066  ;;  %v5064_v58 = vpop.permute.xlu1 %5063 }
0x1130   : > { %7709 = vmatprep.subr.mxu1 %v5070_v12 }
0x1131   : > { %7710 = vmatpush3.msra.mxu1 %v5070_v12 }
0x1132   : > { %7711 = vmatprep.subr.mxu1 %v5067_v52 }
0x1133   : > { %7712 = vmatpush3.msra.mxu1 %v5067_v52 }
0x1134   : > { %7713 = vmatprep.subr.mxu1 %v5064_v58 }
0x1135   : > { %7714 = vmatpush3.msra.mxu1 %v5064_v58 }
0x1136   : > { %7716 = vmatmul.mubr.msk.f32.vlgmr.msra.gmra.mxu1 %vm703_vm0, %v9261_v28  ;;  %7745 = vmatprep.subr.mxu1 %v5086_v50  ;;  %v7693_v28 = vpop.f32.mrf.mxu0 }
0x1137   : > { %7746 = vmatpush3.msra.mxu1 %v5086_v50  ;;  %7718 = vmatprep.mubr.msk.f32.mxu1 %vm703_vm0, %v9266_v30 }
0x1138   : > { %7747 = vmatprep.subr.mxu1 %v5083_v43  ;;  %v5192_v7 = vpop.f32.mrf.mxu0 }
0x1139   : > { %7748 = vmatpush3.msra.mxu1 %v5083_v43 }
0x113a   : > { %7719 = vmatmul.mubr.msk.f32.gmra.mxu1 %vm703_vm0, %v9275_v31  ;;  %7749 = vmatprep.subr.mxu1 %v5080_v6  ;;  %v7696_v15 = vpop.f32.mrf.mxu0 }
0x113b   : > { %7750 = vmatpush3.msra.mxu1 %v5080_v6  ;;  %7763 = vmatprep.mubr.msk.f32.mxu1 %vm703_vm0, %v5507_v57 }
0x113c   : > { %7751 = vmatprep.subr.mxu1 %v5077_v17  ;;  %v5202_v14 = vpop.f32.mrf.mxu0 }
0x113d   : > { %7752 = vmatpush3.msra.mxu1 %v5077_v17  ;;  %v5510_v17 = vld [vmem:[%s9802_s9 + $0x18] sm:$0xff] }
0x113e   : > { %7753 = vmatprep.subr.mxu1 %v5062_v60 }
0x113f   : > { %7754 = vmatpush3.msra.mxu1 %v5062_v60 }
0x1140   : > { %7755 = vmatprep.subr.mxu1 %v5073_v10 }
0x1141   : > { %7756 = vmatpush3.msra.mxu1 %v5073_v10 }
0x1142   : > { %7757 = vmatprep.subr.mxu1 %v5070_v12 }
0x1143   : > { %7758 = vmatpush3.msra.mxu1 %v5070_v12 }
0x1144   : > { %7759 = vmatprep.subr.mxu1 %v5067_v52 }
0x1145   : > { %7760 = vmatpush3.msra.mxu1 %v5067_v52 }
0x1146   : > { %7761 = vmatprep.subr.mxu1 %v5064_v58 }
0x1147   : > { %7762 = vmatpush3.msra.mxu1 %v5064_v58 }
0x1148   : > { %7764 = vmatmul.mubr.msk.f32.vlgmr.msra.gmra.mxu1 %vm703_vm0, %v5508_v49 }
0x11f6   : > { %v7717_v30 = vpop.f32.mrf.mxu1 }
0x11f7   : > { %v5295_v19 = vadd.f32 %v7717_v30, %v7693_v28 }
0x11f8   : > { %v5289_v55 = vpop.f32.mrf.mxu1 }
0x11f9   : > { %v5309_v31 = vadd.f32 %v5295_v19, %v9291_v35  ;;  %v5290_v63 = vadd.f32 %v5289_v55, %v5192_v7  ;;  %v5503_v19 = vld [vmem:[%s9801_s8] sm:$0xff] }
0x11fa   : > { %v7720_v47 = vpop.f32.mrf.mxu1 }
0x11fb   : > { %v6487_v13 = vmul.f32 -1.442695, %v5309_v31  ;;  %v5308_v11 = vadd.f32 %v5290_v63, %v9294_v61  ;;  %v5305_v24 = vadd.f32 %v7720_v47, %v7696_v15 }
0x11fc   : > { %v5299_v32 = vpop.f32.mrf.mxu1 }
0x11fd   : > { %8159 = vpow2.f32 %v6487_v13  ;;  %v6486_v22 = vmul.f32 -1.442695, %v5308_v11  ;;  %v5300_v33 = vadd.f32 %v5299_v32, %v5202_v14  ;;  %v5311_v4 = vadd.f32 %v5305_v24, %v9300_v62 }
0x11ff   : > { %8161 = vpow2.f32 %v6486_v22  ;;  %v5310_v34 = vadd.f32 %v5300_v33, %v9297_v54 }
0x1201   : > { %v6488_v0 = vmul.f32 -1.442695, %v5310_v34 }
0x1203   : > { %8163 = vpow2.f32 %v6488_v0 }
0x1208   : > { %v7765_v15 = vpop.f32.mrf.mxu1 }
0x120a   : > { %v8160_v1 = vpop.eup %8159  ;;  %v5598_v11 = vpop.f32.mrf.mxu1 }
0x120b   : > { %v5322_v16 = vadd.f32 1.0, %v8160_v1 }
0x120c   : > { %v8162_v44 = vpop.eup %8161 }
0x120d   : > { %8165 = vrcp.f32 %v5322_v16  ;;  %v5321_v40 = vadd.f32 1.0, %v8162_v44 }
0x120e   : > { %8167 = vtanh.f32 %v5311_v4 }
0x120f   : > { %8169 = vrcp.f32 %v5321_v40 }
0x1210   : > { %v8164_v48 = vpop.eup %8163 }
0x1211   : > { %v5323_v41 = vadd.f32 1.0, %v8164_v48 }
0x1213   : > { %8171 = vrcp.f32 %v5323_v41 }
0x121a   : > { %v8166_v27 = vpop.eup %8165 }
0x121b   : > { %v8168_v45 = vpop.eup %8167  ;;  %v5332_v8 = vmul.f32 %v8166_v27, %v9428_v29 }
0x121c   : > { %v8170_v38 = vpop.eup %8169 }
0x121d   : > { %v5333_v59 = vmul.f32 %v8170_v38, %v8168_v45 }
0x121f   : > { %v9518_v37 = vadd.f32 %v5333_v59, %v5332_v8 }
0x1220   : > { %v8172_v60 = vpop.eup %8171 }
0x1221   : > { %8173 = vtanh.f32 %v9518_v37 }
0x122e   : > { %v8174_v29 = vpop.eup %8173 }
0x122f   : > { %v5337_v43 = vmul.f32 %v8174_v29, %v8172_v60 }
0x1231   : > { %v9530_v50 = vmul.f32 %v9309_v9, %v5337_v43  ;;  %v5509_v9 = vld [vmem:[%s9802_s9 + $0x10] sm:$0xff] }
0x1232   : > { %7766 = vmatprep.mubr.msk.f32.mxu1 %vm703_vm0, %v5509_v9 }
0x1233   : > { %5358 = vrot.lane.b32.xlu1 %v9530_v50, %s9850_s26  ;;  %5361 = vrot.lane.b32.xlu0 %v9530_v50, %s9851_s29 }
0x1234   : > { %7767 = vmatmul.mubr.msk.f32.gmra.mxu1 %vm703_vm0, %v5510_v17 }
0x1237   : > { %5352 = vrot.lane.b32.xlu1 %v9530_v50, %s9852_s4  ;;  %5355 = vrot.lane.b32.xlu0 %v9530_v50, %s9853_s23 }
0x123b   : > { %5345 = vrot.lane.b32.xlu1 %v9530_v50, %s9855_s18  ;;  %5348 = vrot.lane.b32.xlu0 %v9530_v50, %s9854_s27 }
0x123f   : > { %5339 = vrot.lane.b32.xlu1 %v9530_v50, %s9857_s17  ;;  %5342 = vrot.lane.b32.xlu0 %v9530_v50, %s9856_s20 }
0x12a5   : > { %v5359_v6 = vpop.permute.xlu1 %5358  ;;  %v5362_v10 = vpop.permute.xlu0 %5361 }
0x12a6   : > { %7721 = vmatprep.subr.mxu0 %v5362_v10  ;;  %7793 = vmatprep.subr.mxu1 %v5362_v10 }
0x12a7   : > { %7722 = vmatpush3.msra.mxu0 %v5362_v10  ;;  %7794 = vmatpush3.msra.mxu1 %v5362_v10 }
0x12a8   : > { %7723 = vmatprep.subr.mxu0 %v5359_v6  ;;  %7795 = vmatprep.subr.mxu1 %v5359_v6 }
0x12a9   : > { %v5353_v12 = vpop.permute.xlu1 %5352  ;;  %7724 = vmatpush3.msra.mxu0 %v5359_v6  ;;  %7796 = vmatpush3.msra.mxu1 %v5359_v6  ;;  %v5356_v52 = vpop.permute.xlu0 %5355 }
0x12aa   : > { %7725 = vmatprep.subr.mxu0 %v5356_v52  ;;  %7797 = vmatprep.subr.mxu1 %v5356_v52 }
0x12ab   : > { %7726 = vmatpush3.msra.mxu0 %v5356_v52  ;;  %7798 = vmatpush3.msra.mxu1 %v5356_v52 }
0x12ac   : > { %7727 = vmatprep.subr.mxu0 %v5353_v12  ;;  %7799 = vmatprep.subr.mxu1 %v5353_v12 }
0x12ad   : > { %7728 = vmatpush3.msra.mxu0 %v5353_v12  ;;  %7800 = vmatpush3.msra.mxu1 %v5353_v12  ;;  %v5349_v58 = vpop.permute.xlu0 %5348  ;;  %v5346_v28 = vpop.permute.xlu1 %5345 }
0x12ae   : > { %7729 = vmatprep.subr.mxu0 %v9530_v50  ;;  %7801 = vmatprep.subr.mxu1 %v9530_v50 }
0x12af   : > { %7730 = vmatpush3.msra.mxu0 %v9530_v50  ;;  %7802 = vmatpush3.msra.mxu1 %v9530_v50 }
0x12b0   : > { %7731 = vmatprep.subr.mxu0 %v5349_v58  ;;  %7803 = vmatprep.subr.mxu1 %v5349_v58 }
0x12b1   : > { %7732 = vmatpush3.msra.mxu0 %v5349_v58  ;;  %7804 = vmatpush3.msra.mxu1 %v5349_v58  ;;  %v5343_v30 = vpop.permute.xlu0 %5342  ;;  %v5340_v7 = vpop.permute.xlu1 %5339 }
0x12b2   : > { %7733 = vmatprep.subr.mxu0 %v5346_v28  ;;  %7805 = vmatprep.subr.mxu1 %v5346_v28 }
0x12b3   : > { %7734 = vmatpush3.msra.mxu0 %v5346_v28  ;;  %7806 = vmatpush3.msra.mxu1 %v5346_v28 }
0x12b4   : > { %7735 = vmatprep.subr.mxu0 %v5343_v30  ;;  %7807 = vmatprep.subr.mxu1 %v5343_v30 }
0x12b5   : > { %7736 = vmatpush3.msra.mxu0 %v5343_v30  ;;  %7808 = vmatpush3.msra.mxu1 %v5343_v30 }
0x12b6   : > { %7737 = vmatprep.subr.mxu0 %v5340_v7  ;;  %7809 = vmatprep.subr.mxu1 %v5340_v7 }
0x12b7   : > { %7738 = vmatpush3.msra.mxu0 %v5340_v7  ;;  %7810 = vmatpush3.msra.mxu1 %v5340_v7 }
0x12b8   : > { %7740 = vmatmul.mubr.msk.f32.vlgmr.msra.gmra.mxu0 %vm703_vm0, %v9344_v36  ;;  %7769 = vmatprep.subr.mxu0 %v5362_v10  ;;  %v5504_v36 = vld [vmem:[%s9801_s8 + $0x8] sm:$0xff] }
0x12b9   : > { %7770 = vmatpush3.msra.mxu0 %v5362_v10  ;;  %7742 = vmatprep.mubr.msk.f32.mxu0 %vm703_vm0, %v9349_v26  ;;  %v5505_v26 = vld [vmem:[%s9801_s8 + $0x10] sm:$0xff] }
0x12ba   : > { %7771 = vmatprep.subr.mxu0 %v5359_v6 }
0x12bb   : > { %7772 = vmatpush3.msra.mxu0 %v5359_v6  ;;  %v9600_v6 = vld [vmem:[%s9794_s1] ss:$0 sm:$0xff] }
0x12bc   : > { %7773 = vmatprep.subr.mxu0 %v5356_v52  ;;  %7743 = vmatmul.mubr.msk.f32.gmra.mxu0 %vm703_vm0, %v9358_v20  ;;  %v5506_v20 = vld [vmem:[%s9801_s8 + $0x18] sm:$0xff] }
0x12bd   : > { %7774 = vmatpush3.msra.mxu0 %v5356_v52  ;;  %7787 = vmatprep.mubr.msk.f32.mxu0 %vm703_vm0, %v5503_v19  ;;  %v5770_v52 = vld [vmem:[%s9804_s11] sm:$0xff] }
0x12be   : > { %7775 = vmatprep.subr.mxu0 %v5353_v12 }
0x12bf   : > { %7776 = vmatpush3.msra.mxu0 %v5353_v12  ;;  %v5784_v12 = vld [vmem:[%s9805_s12 + $0x8] sm:$0xff] }
0x12c0   : > { %7777 = vmatprep.subr.mxu0 %v9530_v50 }
0x12c1   : > { %7778 = vmatpush3.msra.mxu0 %v9530_v50 }
0x12c2   : > { %7779 = vmatprep.subr.mxu0 %v5349_v58 }
0x12c3   : > { %7780 = vmatpush3.msra.mxu0 %v5349_v58  ;;  %v5785_v58 = vld [vmem:[%s9805_s12 + $0x10] sm:$0xff] }
0x12c4   : > { %7781 = vmatprep.subr.mxu0 %v5346_v28 }
0x12c5   : > { %7782 = vmatpush3.msra.mxu0 %v5346_v28  ;;  %v5786_v28 = vld [vmem:[%s9805_s12 + $0x18] sm:$0xff] }
0x12c6   : > { %7783 = vmatprep.subr.mxu0 %v5343_v30 }
0x12c7   : > { %7784 = vmatpush3.msra.mxu0 %v5343_v30 }
0x12c8   : > { %7785 = vmatprep.subr.mxu0 %v5340_v7 }
0x12c9   : > { %7786 = vmatpush3.msra.mxu0 %v5340_v7 }
0x12ca   : > { %7788 = vmatmul.mubr.msk.f32.vlgmr.msra.gmra.mxu0 %vm703_vm0, %v5504_v36 }
0x12cb   : > { %7790 = vmatprep.mubr.msk.f32.mxu0 %vm703_vm0, %v5505_v26 }
0x12ce   : > { %7791 = vmatmul.mubr.msk.f32.gmra.mxu0 %vm703_vm0, %v5506_v20 }
0x12cf   : > { %7835 = vmatprep.mubr.msk.f32.mxu0 %vm703_vm0, %v5770_v52  ;;  %v660_v52 = vld [vmem:[%s9808_s15 + $0x18] sm:$0xff] }
0x12f4   : > { %v7768_v34 = vpop.f32.mrf.mxu1 }
0x12f6   : > { %v5608_v16 = vpop.f32.mrf.mxu1 }
0x1378   : > { %v9584_v55 = vpop.f32.mrf.mxu0 }
0x137a   : > { %v9586_v31 = vpop.f32.mrf.mxu0 }
0x137c   : > { %v9588_v63 = vpop.f32.mrf.mxu0 }
0x137e   : > { %v9590_v47 = vpop.f32.mrf.mxu0 }
0x138a   : > { %v7789_v13 = vpop.f32.mrf.mxu0 }
0x138b   : > { %v5701_v22 = vadd.f32 %v7789_v13, %v7765_v15 }
0x138c   : > { %v5695_v14 = vpop.f32.mrf.mxu0 }
0x138d   : > { %v5715_v32 = vadd.f32 %v5701_v22, %v9189_v2  ;;  %v5696_v33 = vadd.f32 %v5695_v14, %v5598_v11  ;;  %v5771_v11 = vld [vmem:[%s9804_s11 + $0x8] sm:$0xff]  ;;  %v5772_v22 = vld [vmem:[%s9804_s11 + $0x10] sm:$0xff]  ;;  %v5773_v14 = vld [vmem:[%s9804_s11 + $0x18] sm:$0xff] }
0x138e   : > { %v7792_v24 = vpop.f32.mrf.mxu0 }
0x138f   : > { %v6510_v0 = vmul.f32 -1.442695, %v5715_v32  ;;  %v5714_v1 = vadd.f32 %v5696_v33, %v9192_v3  ;;  %v5711_v27 = vadd.f32 %v7792_v24, %v7768_v34 }
0x1390   : > { %v5705_v44 = vpop.f32.mrf.mxu0 }
0x1391   : > { %8175 = vpow2.f32 %v6510_v0  ;;  %v6509_v4 = vmul.f32 -1.442695, %v5714_v1  ;;  %v5706_v40 = vadd.f32 %v5705_v44, %v5608_v16  ;;  %v5717_v41 = vadd.f32 %v5711_v27, %v9198_v51 }
0x1393   : > { %8177 = vpow2.f32 %v6509_v4  ;;  %v5716_v48 = vadd.f32 %v5706_v40, %v9195_v39 }
0x1395   : > { %v6511_v45 = vmul.f32 -1.442695, %v5716_v48 }
0x1397   : > { %8179 = vpow2.f32 %v6511_v45 }
0x139e   : > { %v8176_v38 = vpop.eup %8175 }
0x139f   : > { %v5728_v2 = vadd.f32 1.0, %v8176_v38 }
0x13a0   : > { %v8178_v8 = vpop.eup %8177 }
0x13a1   : > { %8181 = vrcp.f32 %v5728_v2  ;;  %v5727_v59 = vadd.f32 1.0, %v8178_v8 }
0x13a2   : > { %8183 = vtanh.f32 %v5717_v41 }
0x13a3   : > { %8185 = vrcp.f32 %v5727_v59 }
0x13a4   : > { %v8180_v3 = vpop.eup %8179 }
0x13a5   : > { %v5729_v29 = vadd.f32 1.0, %v8180_v3 }
0x13a7   : > { %8187 = vrcp.f32 %v5729_v29 }
0x13ae   : > { %v8182_v57 = vpop.eup %8181 }
0x13af   : > { %v8184_v49 = vpop.eup %8183  ;;  %v5738_v43 = vmul.f32 %v8182_v57, %v9495_v56  ;;  %v5783_v56 = vld [vmem:[%s9805_s12] sm:$0xff] }
0x13b0   : > { %v8186_v60 = vpop.eup %8185  ;;  %7811 = vmatprep.mubr.msk.f32.mxu1 %vm703_vm0, %v5783_v56 }
0x13b1   : > { %v5739_v39 = vmul.f32 %v8186_v60, %v8184_v49  ;;  %7812 = vmatmul.mubr.msk.f32.vlgmr.msra.gmra.mxu1 %vm703_vm0, %v5784_v12  ;;  %v657_v12 = vld [vmem:[%s9808_s15] sm:$0xff] }
0x13b2   : > { %7814 = vmatprep.mubr.msk.f32.mxu1 %vm703_vm0, %v5785_v58  ;;  %v659_v58 = vld [vmem:[%s9808_s15 + $0x10] sm:$0xff] }
0x13b3   : > { %v5740_v50 = vadd.f32 %v5739_v39, %v5738_v43 }
0x13b4   : > { %v8188_v9 = vpop.eup %8187 }
0x13b5   : > { %8189 = vtanh.f32 %v5740_v50  ;;  %7815 = vmatmul.mubr.msk.f32.gmra.mxu1 %vm703_vm0, %v5786_v28 }
0x13c2   : > { %v8190_v51 = vpop.eup %8189 }
0x13c3   : > { %v5743_v17 = vmul.f32 %v8190_v51, %v8188_v9 }
0x13c5   : > { %v5744_v10 = vmul.f32 %v9600_v6, %v5743_v17 }
0x13c7   : > { %5764 = vrot.lane.b32.xlu1 %v5744_v10, %s9850_s26  ;;  %5767 = vrot.lane.b32.xlu0 %v5744_v10, %s9851_s29 }
0x13cb   : > { %5758 = vrot.lane.b32.xlu1 %v5744_v10, %s9852_s4  ;;  %5761 = vrot.lane.b32.xlu0 %v5744_v10, %s9853_s23 }
0x13cf   : > { %5751 = vrot.lane.b32.xlu1 %v5744_v10, %s9855_s18  ;;  %5754 = vrot.lane.b32.xlu0 %v5744_v10, %s9854_s27 }
0x13d3   : > { %5745 = vrot.lane.b32.xlu1 %v5744_v10, %s9857_s17  ;;  %5748 = vrot.lane.b32.xlu0 %v5744_v10, %s9856_s20 }
0x1439   : > { %v5765_v30 = vpop.permute.xlu1 %5764  ;;  %v5768_v7 = vpop.permute.xlu0 %5767 }
0x143a   : > { %7817 = vmatprep.subr.mxu0 %v5768_v7 }
0x143b   : > { %7818 = vmatpush3.msra.mxu0 %v5768_v7 }
0x143c   : > { %7819 = vmatprep.subr.mxu0 %v5765_v30 }
0x143d   : > { %v5759_v19 = vpop.permute.xlu1 %5758  ;;  %7820 = vmatpush3.msra.mxu0 %v5765_v30  ;;  %v5762_v36 = vpop.permute.xlu0 %5761 }
0x143e   : > { %7821 = vmatprep.subr.mxu0 %v5762_v36 }
0x143f   : > { %7822 = vmatpush3.msra.mxu0 %v5762_v36 }
0x1440   : > { %7823 = vmatprep.subr.mxu0 %v5759_v19 }
0x1441   : > { %7824 = vmatpush3.msra.mxu0 %v5759_v19  ;;  %v5755_v26 = vpop.permute.xlu0 %5754  ;;  %v5752_v20 = vpop.permute.xlu1 %5751 }
0x1442   : > { %7825 = vmatprep.subr.mxu0 %v5744_v10 }
0x1443   : > { %7826 = vmatpush3.msra.mxu0 %v5744_v10 }
0x1444   : > { %7827 = vmatprep.subr.mxu0 %v5755_v26 }
0x1445   : > { %7828 = vmatpush3.msra.mxu0 %v5755_v26  ;;  %v5749_v15 = vpop.permute.xlu0 %5748  ;;  %v5746_v13 = vpop.permute.xlu1 %5745 }
0x1446   : > { %7829 = vmatprep.subr.mxu0 %v5752_v20 }
0x1447   : > { %7830 = vmatpush3.msra.mxu0 %v5752_v20 }
0x1448   : > { %7831 = vmatprep.subr.mxu0 %v5749_v15 }
0x1449   : > { %7832 = vmatpush3.msra.mxu0 %v5749_v15 }
0x144a   : > { %7833 = vmatprep.subr.mxu0 %v5746_v13 }
0x144b   : > { %7834 = vmatpush3.msra.mxu0 %v5746_v13  ;;  %v6056_v13 = vld [vmem:[%s9807_s14 + $0x8] sm:$0xff] }
0x144c   : > { %7836 = vmatmul.mubr.msk.f32.vlgmr.msra.gmra.mxu0 %vm703_vm0, %v5771_v11  ;;  %v6057_v11 = vld [vmem:[%s9807_s14 + $0x10] sm:$0xff] }
0x144d   : > { %7838 = vmatprep.mubr.msk.f32.mxu0 %vm703_vm0, %v5772_v22  ;;  %v6058_v22 = vld [vmem:[%s9807_s14 + $0x18] sm:$0xff] }
0x1450   : > { %7839 = vmatmul.mubr.msk.f32.gmra.mxu0 %vm703_vm0, %v5773_v14 }
0x1471   : > { %v7813_v32 = vpop.f32.mrf.mxu1 }
0x1473   : > { %v5874_v34 = vpop.f32.mrf.mxu1 }
0x1475   : > { %v7816_v16 = vpop.f32.mrf.mxu1 }
0x1477   : > { %v5884_v45 = vpop.f32.mrf.mxu1 }
0x150c   : > { %v7837_v33 = vpop.f32.mrf.mxu0 }
0x150d   : > { %v5977_v24 = vadd.f32 %v7837_v33, %v7813_v32 }
0x150e   : > { %v5971_v0 = vpop.f32.mrf.mxu0 }
0x150f   : > { %v5991_v1 = vadd.f32 %v5977_v24, %v9291_v35  ;;  %v5972_v4 = vadd.f32 %v5971_v0, %v5874_v34 }
0x1510   : > { %v7840_v44 = vpop.f32.mrf.mxu0 }
0x1511   : > { %v6521_v40 = vmul.f32 -1.442695, %v5991_v1  ;;  %v5990_v48 = vadd.f32 %v5972_v4, %v9294_v61  ;;  %v5987_v8 = vadd.f32 %v7840_v44, %v7816_v16 }
0x1512   : > { %v5981_v38 = vpop.f32.mrf.mxu0 }
0x1513   : > { %8191 = vpow2.f32 %v6521_v40  ;;  %v6520_v27 = vmul.f32 -1.442695, %v5990_v48  ;;  %v5982_v41 = vadd.f32 %v5981_v38, %v5884_v45  ;;  %v5993_v57 = vadd.f32 %v5987_v8, %v9300_v62 }
0x1515   : > { %8193 = vpow2.f32 %v6520_v27  ;;  %v5992_v2 = vadd.f32 %v5982_v41, %v9297_v54 }
0x1517   : > { %v6522_v59 = vmul.f32 -1.442695, %v5992_v2 }
0x1519   : > { %8195 = vpow2.f32 %v6522_v59 }
0x1520   : > { %v8192_v3 = vpop.eup %8191 }
0x1521   : > { %v6004_v35 = vadd.f32 1.0, %v8192_v3 }
0x1522   : > { %v8194_v49 = vpop.eup %8193 }
0x1523   : > { %8197 = vrcp.f32 %v6004_v35  ;;  %v6003_v60 = vadd.f32 1.0, %v8194_v49 }
0x1524   : > { %8199 = vtanh.f32 %v5993_v57 }
0x1525   : > { %8201 = vrcp.f32 %v6003_v60 }
0x1526   : > { %v8196_v61 = vpop.eup %8195 }
0x1527   : > { %v6005_v50 = vadd.f32 1.0, %v8196_v61 }
0x1529   : > { %8203 = vrcp.f32 %v6005_v50 }
0x1530   : > { %v8198_v29 = vpop.eup %8197 }
0x1531   : > { %v8200_v43 = vpop.eup %8199  ;;  %v6014_v9 = vmul.f32 %v8198_v29, %v9518_v37  ;;  %v6055_v37 = vld [vmem:[%s9807_s14] sm:$0xff] }
0x1532   : > { %v8202_v39 = vpop.eup %8201  ;;  %7859 = vmatprep.mubr.msk.f32.mxu1 %vm703_vm0, %v6055_v37 }
0x1533   : > { %v6015_v54 = vmul.f32 %v8202_v39, %v8200_v43 }
0x1535   : > { %v6016_v51 = vadd.f32 %v6015_v54, %v6014_v9 }
0x1536   : > { %v8204_v17 = vpop.eup %8203 }
0x1537   : > { %8205 = vtanh.f32 %v6016_v51 }
0x1544   : > { %v8206_v62 = vpop.eup %8205 }
0x1545   : > { %v6019_v10 = vmul.f32 %v8206_v62, %v8204_v17 }
0x1547   : > { %v6020_v56 = vmul.f32 %v9600_v6, %v6019_v10  ;;  %v658_v6 = vld [vmem:[%s9808_s15 + $0x8] sm:$0xff] }
0x1549   : > { %6040 = vrot.lane.b32.xlu1 %v6020_v56, %s9850_s26  ;;  %6043 = vrot.lane.b32.xlu0 %v6020_v56, %s9851_s29  ;;  %s9720_s26 = scalar_lea.vmem [#allocation10], %s6265_s2  ;;  %s6540_s29 = sshll.u32 %s8456_s25, 11 }
0x154a   : > { %s9745_s28 = scalar_lea.hbm %s9809_s16, %s6540_s29 }
0x154d   : > { %6034 = vrot.lane.b32.xlu1 %v6020_v56, %s9852_s4  ;;  %6037 = vrot.lane.b32.xlu0 %v6020_v56, %s9853_s23  ;;  %s6199_s4 = sshll.u32 %s9720_s26, 4  ;;  %s9747_s4 = int_to_ptr.vmem [resolvable:$true] %s6199_s4 }
0x154e   : > { %s8275_s25 = scalar_lea.vmem %s9747_s4, 2048 }
0x154f   : > { %p8276_p11 = scmp.ne.s32.totalorder %s9747_s4, %s8275_s25 }
0x1551   : > { %6027 = vrot.lane.b32.xlu1 %v6020_v56, %s9855_s18  ;;  %6030 = vrot.lane.b32.xlu0 %v6020_v56, %s9854_s27  ;;  %s9753_s18 = scalar_lea.sflag [#allocation11], %s512_s30  ;;  %p8277_p12 = pnand %p8276_p11, %p8473_p5 }
0x1552   : > { %s8347_s27 = smov [#allocation10]  }
0x1553   : > { %p8278_p13 = pneg %p8277_p12 }
0x1555   : > { %6021 = vrot.lane.b32.xlu1 %v6020_v56, %s9857_s17  ;;  %6024 = vrot.lane.b32.xlu0 %v6020_v56, %s9856_s20  ;;  %s8279_s20 = sshll.u32 %s8347_s27, 4  ;;  %s8280_s20 = int_to_ptr.vmem [resolvable:$false] %s8279_s20 }
0x1556   : > { %s8281_s17 = scalar_lea.vmem %s8280_s20, 4096  ;;  %p8282_p0 = scmp.lt.s32.totalorder %s9747_s4, %s8280_s20 }
0x1557   : > { %p8283_p1 = scmp.lt.s32.totalorder %s8281_s17, %s8275_s25 }
0x1559   : > { %668 = vperm.xlu1 %7918, %v658_v6   ;;  %663 = vperm.xlu0 %7917, %v657_v12   ;;  %p8284_p2 = por %p8283_p1, %p8282_p0 }
0x155b   : > { %p8285_p3 = pnand %p8284_p2, %p8278_p13 }
0x155d   : > { %678 = vperm.xlu1 %7918, %v660_v52   ;;  %673 = vperm.xlu0 %7917, %v659_v58  }
0x15bb   : > { %v6041_v28 = vpop.permute.xlu1 %6040  ;;  %v6044_v30 = vpop.permute.xlu0 %6043 }
0x15bc   : > { %7841 = vmatprep.subr.mxu1 %v6044_v30 }
0x15bd   : > { %7842 = vmatpush3.msra.mxu1 %v6044_v30 }
0x15be   : > { %7843 = vmatprep.subr.mxu1 %v6041_v28 }
0x15bf   : > { %v6035_v7 = vpop.permute.xlu1 %6034  ;;  %7844 = vmatpush3.msra.mxu1 %v6041_v28  ;;  %v6038_v19 = vpop.permute.xlu0 %6037 }
0x15c0   : > { %7845 = vmatprep.subr.mxu1 %v6038_v19 }
0x15c1   : > { %7846 = vmatpush3.msra.mxu1 %v6038_v19 }
0x15c2   : > { %7847 = vmatprep.subr.mxu1 %v6035_v7 }
0x15c3   : > { %7848 = vmatpush3.msra.mxu1 %v6035_v7  ;;  %v6031_v36 = vpop.permute.xlu0 %6030  ;;  %v6028_v26 = vpop.permute.xlu1 %6027 }
0x15c4   : > { %7849 = vmatprep.subr.mxu1 %v6020_v56 }
0x15c5   : > { %7850 = vmatpush3.msra.mxu1 %v6020_v56 }
0x15c6   : > { %7851 = vmatprep.subr.mxu1 %v6031_v36 }
0x15c7   : > { %7852 = vmatpush3.msra.mxu1 %v6031_v36  ;;  %v6025_v20 = vpop.permute.xlu0 %6024  ;;  %v6022_v15 = vpop.permute.xlu1 %6021 }
0x15c8   : > { %7853 = vmatprep.subr.mxu1 %v6028_v26 }
0x15c9   : > { %7854 = vmatpush3.msra.mxu1 %v6028_v26 }
0x15ca   : > { %7855 = vmatprep.subr.mxu1 %v6025_v20 }
0x15cb   : > { %7856 = vmatpush3.msra.mxu1 %v6025_v20 }
0x15cc   : > { %7857 = vmatprep.subr.mxu1 %v6022_v15 }
0x15cd   : > { %7858 = vmatpush3.msra.mxu1 %v6022_v15 }
0x15ce   : > { %7860 = vmatmul.mubr.msk.f32.vlgmr.msra.gmra.mxu1 %vm703_vm0, %v6056_v13 }
0x15cf   : > { %7862 = vmatprep.mubr.msk.f32.mxu1 %vm703_vm0, %v6057_v11 }
0x15d2   : > { %7863 = vmatmul.mubr.msk.f32.gmra.mxu1 %vm703_vm0, %v6058_v22 }
0x15d4   : > { %v9685_v14 = vpop.permute.xlu1 %668  ;;  %v9687_v32 = vpop.permute.xlu0 %663 }
0x15d5   : > { %v4098_v33 = vadd.f32 %v9382_v18, %v9685_v14  ;;  %v4779_v34 = vadd.f32 %v9482_v25, %v9685_v14  ;;  %v5461_v24 = vadd.f32 %v9584_v55, %v9685_v14  ;;  %v4093_v0 = vadd.f32 %v9384_v21, %v9687_v32 }
0x15d6   : > { %v4774_v1 = vadd.f32 %v9484_v23, %v9687_v32  ;;  %v5456_v4 = vadd.f32 %v9586_v31, %v9687_v32 }
0x15d7   : > { %v6430_v16 = vmul.f32 -1.442695, %v4098_v33  ;;  %v6460_v44 = vmul.f32 -1.442695, %v4779_v34  ;;  %v6494_v40 = vmul.f32 -1.442695, %v5461_v24 }
0x15d8   : > { %v6429_v48 = vmul.f32 -1.442695, %v4093_v0  ;;  %v6459_v18 = vmul.f32 -1.442695, %v4774_v1  ;;  %v9701_v27 = vpop.permute.xlu1 %678  ;;  %v9703_v25 = vpop.permute.xlu0 %673  ;;  %v6493_v31 = vmul.f32 -1.442695, %v5456_v4 }
0x15d9   : > { %8207 = vpow2.f32 %v6430_v16  ;;  %v4108_v55 = vadd.f32 %v9386_v42, %v9701_v27  ;;  %v4789_v21 = vadd.f32 %v9486_v5, %v9701_v27  ;;  %v5471_v23 = vadd.f32 %v9588_v63, %v9701_v27 }
0x15da   : > { %8209 = vpow2.f32 %v6460_v44  ;;  %v4103_v45 = vadd.f32 %v9388_v46, %v9703_v25  ;;  %v4784_v41 = vadd.f32 %v9488_v53, %v9703_v25  ;;  %v5466_v42 = vadd.f32 %v9590_v47, %v9703_v25 }
0x15db   : > { %8211 = vpow2.f32 %v6494_v40  ;;  %v6432_v38 = vmul.f32 -1.442695, %v4108_v55  ;;  %v6462_v2 = vmul.f32 -1.442695, %v4789_v21  ;;  %v6496_v5 = vmul.f32 -1.442695, %v5471_v23 }
0x15dc   : > { %8213 = vpow2.f32 %v6429_v48  ;;  %v6431_v8 = vmul.f32 -1.442695, %v4103_v45  ;;  %v6461_v63 = vmul.f32 -1.442695, %v4784_v41  ;;  %v6495_v59 = vmul.f32 -1.442695, %v5466_v42 }
0x15dd   : > { %8215 = vpow2.f32 %v6459_v18 }
0x15de   : > { %8217 = vpow2.f32 %v6493_v31 }
0x15df   : > { %8219 = vpow2.f32 %v6432_v38 }
0x15e0   : > { %8221 = vpow2.f32 %v6462_v2 }
0x15e1   : > { %8223 = vpow2.f32 %v6496_v5 }
0x15e2   : > { %8225 = vpow2.f32 %v6431_v8 }
0x15e3   : > { %8227 = vpow2.f32 %v6461_v63 }
0x15e4   : > { %8229 = vpow2.f32 %v6495_v59 }
0x15e6   : > { %v8208_v46 = vpop.eup %8207 }
0x15e7   : > { %v8210_v3 = vpop.eup %8209  ;;  %v4124_v53 = vadd.f32 1.0, %v8208_v46 }
0x15e8   : > { %v8212_v57 = vpop.eup %8211  ;;  %v4805_v35 = vadd.f32 1.0, %v8210_v3 }
0x15e9   : > { %v8214_v49 = vpop.eup %8213  ;;  %8231 = vrcp.f32 %v4124_v53  ;;  %v5487_v47 = vadd.f32 1.0, %v8212_v57 }
0x15ea   : > { %v8216_v60 = vpop.eup %8215  ;;  %8233 = vrcp.f32 %v4805_v35  ;;  %v4123_v61 = vadd.f32 1.0, %v8214_v49 }
0x15eb   : > { %v8218_v29 = vpop.eup %8217  ;;  %8235 = vrcp.f32 %v5487_v47  ;;  %v4804_v43 = vadd.f32 1.0, %v8216_v60 }
0x15ec   : > { %v8220_v39 = vpop.eup %8219  ;;  %8237 = vrcp.f32 %v4123_v61  ;;  %v5486_v50 = vadd.f32 1.0, %v8218_v29 }
0x15ed   : > { %v8222_v9 = vpop.eup %8221  ;;  %8239 = vrcp.f32 %v4804_v43  ;;  %v4126_v54 = vadd.f32 1.0, %v8220_v39 }
0x15ee   : > { %v8224_v51 = vpop.eup %8223  ;;  %8241 = vrcp.f32 %v5486_v50  ;;  %v4807_v17 = vadd.f32 1.0, %v8222_v9 }
0x15ef   : > { %v8226_v62 = vpop.eup %8225  ;;  %8243 = vrcp.f32 %v4126_v54  ;;  %v5489_v10 = vadd.f32 1.0, %v8224_v51 }
0x15f0   : > { %v8228_v56 = vpop.eup %8227  ;;  %8245 = vrcp.f32 %v4807_v17  ;;  %v4125_v37 = vadd.f32 1.0, %v8226_v62 }
0x15f1   : > { %v8230_v6 = vpop.eup %8229  ;;  %8247 = vrcp.f32 %v5489_v10  ;;  %v4806_v12 = vadd.f32 1.0, %v8228_v56 }
0x15f2   : > { %8249 = vrcp.f32 %v4125_v37  ;;  %v5488_v52 = vadd.f32 1.0, %v8230_v6 }
0x15f3   : > { %8251 = vrcp.f32 %v4806_v12 }
0x15f4   : > { %8253 = vrcp.f32 %v5488_v52 }
0x15f6   : > { %v8232_v58 = vpop.eup %8231 }
0x15f7   : > { %v8234_v28 = vpop.eup %8233  ;;  %4136 = vst [vmem:[%s9720_s26 + $0x8] sm:$0xff] %v8232_v58 }
0x15f8   : > { %v8236_v30 = vpop.eup %8235  ;;  %6464 = vst [vmem:[%s9720_s26 + $0x28] sm:$0xff] %v8234_v28 }
0x15f9   : > { %v8238_v7 = vpop.eup %8237  ;;  %6498 = vst [vmem:[%s9720_s26 + $0x48] sm:$0xff] %v8236_v30 }
0x15fa   : > { %v8240_v19 = vpop.eup %8239  ;;  %4135 = vst [vmem:[%s9720_s26] sm:$0xff] %v8238_v7 }
0x15fb   : > { %v8242_v36 = vpop.eup %8241  ;;  %6463 = vst [vmem:[%s9720_s26 + $0x20] sm:$0xff] %v8240_v19 }
0x15fc   : > { %v8244_v26 = vpop.eup %8243  ;;  %6497 = vst [vmem:[%s9720_s26 + $0x40] sm:$0xff] %v8242_v36 }
0x15fd   : > { %v8246_v20 = vpop.eup %8245  ;;  %4138 = vst [vmem:[%s9720_s26 + $0x18] sm:$0xff] %v8244_v26 }
0x15fe   : > { %v8248_v15 = vpop.eup %8247  ;;  %6466 = vst [vmem:[%s9720_s26 + $0x38] sm:$0xff] %v8246_v20 }
0x15ff   : > { %v8250_v13 = vpop.eup %8249  ;;  %6500 = vst [vmem:[%s9720_s26 + $0x58] sm:$0xff] %v8248_v15 }
0x1600   : > { %v8252_v11 = vpop.eup %8251  ;;  %4137 = vst [vmem:[%s9720_s26 + $0x10] sm:$0xff] %v8250_v13 }
0x1601   : > { %v8254_v22 = vpop.eup %8253  ;;  %6465 = vst [vmem:[%s9720_s26 + $0x30] sm:$0xff] %v8252_v11 }
0x1602   : > { %6499 = vst [vmem:[%s9720_s26 + $0x50] sm:$0xff] %v8254_v22 }
0x168e   : > { %v7861_v33 = vpop.f32.mrf.mxu1 }
0x168f   : > { %v6143_v34 = vadd.f32 %v7861_v33, %v9685_v14 }
0x1690   : > { %v6137_v24 = vpop.f32.mrf.mxu1 }
0x1691   : > { %v6528_v0 = vmul.f32 -1.442695, %v6143_v34  ;;  %v6138_v1 = vadd.f32 %v6137_v24, %v9687_v32 }
0x1692   : > { %v7864_v4 = vpop.f32.mrf.mxu1 }
0x1693   : > { %8255 = vpow2.f32 %v6528_v0  ;;  %v6527_v16 = vmul.f32 -1.442695, %v6138_v1  ;;  %v6153_v44 = vadd.f32 %v7864_v4, %v9701_v27 }
0x1694   : > { %v6147_v40 = vpop.f32.mrf.mxu1 }
0x1695   : > { %8257 = vpow2.f32 %v6527_v16  ;;  %v6530_v48 = vmul.f32 -1.442695, %v6153_v44  ;;  %v6148_v18 = vadd.f32 %v6147_v40, %v9703_v25 }
0x1697   : > { %8259 = vpow2.f32 %v6530_v48  ;;  %v6529_v55 = vmul.f32 -1.442695, %v6148_v18 }
0x1699   : > { %8261 = vpow2.f32 %v6529_v55 }
0x16a0   : > { %v8256_v14 = vpop.eup %8255 }
0x16a1   : > { %v6169_v21 = vadd.f32 1.0, %v8256_v14 }
0x16a2   : > { %v8258_v32 = vpop.eup %8257 }
0x16a3   : > { %8263 = vrcp.f32 %v6169_v21  ;;  %v6168_v23 = vadd.f32 1.0, %v8258_v32 }
0x16a4   : > { %v8260_v31 = vpop.eup %8259 }
0x16a5   : > { %8265 = vrcp.f32 %v6168_v23  ;;  %v6171_v27 = vadd.f32 1.0, %v8260_v31 }
0x16a6   : > { %v8262_v45 = vpop.eup %8261 }
0x16a7   : > { %8267 = vrcp.f32 %v6171_v27  ;;  %v6170_v25 = vadd.f32 1.0, %v8262_v45 }
0x16a9   : > { %8269 = vrcp.f32 %v6170_v25 }
0x16b0   : > { %v8264_v38 = vpop.eup %8263 }
0x16b1   : > { %6532 = vst [vmem:[%s9720_s26 + $0x68] sm:$0xff] %v8264_v38 }
0x16b2   : > { %v8266_v41 = vpop.eup %8265 }
0x16b3   : > { %6531 = vst [vmem:[%s9720_s26 + $0x60] sm:$0xff] %v8266_v41 }
0x16b4   : > { %v8268_v2 = vpop.eup %8267 }
0x16b5   : > { %6534 = vst [vmem:[%s9720_s26 + $0x78] sm:$0xff] %v8268_v2 }
0x16b6   : > { %v8270_v42 = vpop.eup %8269 }
0x16b7   : > { %6533 = vst [vmem:[%s9720_s26 + $0x70] sm:$0xff] %v8270_v42 }
0x16b8   : > { %8288 = shalt.err (!%p8285_p3)
}
0x16b9   : > { %s8289_s5 = scalar_lea.hbm %s9745_s28, 2048  ;;  %s8293_s19 = scalar_lea.hbm %s9809_s16, 4096 }
0x16ba   : > { %p8290_p4 = scmp.ne.s32.totalorder %s9745_s28, %s8289_s5  ;;  %p8294_p9 = scmp.lt.s32.totalorder %s9745_s28, %s9809_s16 }
0x16bb   : > { %p8295_p10 = scmp.lt.s32.totalorder %s8293_s19, %s8289_s5 }
0x16bc   : > { %p8291_p7 = pnand %p8290_p4, %p8473_p5 }
0x16bd   : > { %p8296_p11 = por %p8295_p10, %p8294_p9 }
0x16be   : > { %p8292_p8 = pneg %p8291_p7 }
0x16c0   : > { %p8297_p12 = pnand %p8296_p11, %p8292_p8 }
0x16c2   : > { %8300 = shalt.err (!%p8297_p12)
}
0x16c3   : > { %s8348_s26 = smov 128   ;;  %s8349_s29 = smov 8  }
0x16c4   : > { %7866 = dma.vmem_to_hbm [thread:$0]  (%p8473_p5), %s9747_s4, 2048, %s9745_s28, %s9753_s18, %s8348_s26, %s8348_s26, %s8349_s29  }
0x16c5 PF: > { %s9858_s23 = sld [smem:[#allocation13_spill]]  ;;  %p7872_p13 = scmp.ge.s32.totalorder %s8335_s24, 2 }
0x16c7   : > { %p7869_p0 = pnand %p7872_p13, %p8477_p6 }
0x16c9   : > { %p7870_p1 = pneg %p7869_p0 }
0x16cb   : > { %s6214_s25 = sand.u32 1, %s9858_s23  }
0x16cc   : > { %s6215_s27 = scalar_lea.sflag [#allocation11], %s6214_s25 }
0x16cd   : > { %8318 = dma.done.wait (%p7870_p1), %s6215_s27, 2048  }
0x16ce   : > { %8320 = vsyncadd (%p7870_p1), %s6215_s27, 4294965248  ;;  %s9860_s24 = sld [smem:[#allocation15_spill]]  ;;  %s9863_s21 = smov %s8327_s22 }
0x16cf   : > { %s9861_s20 = sld [smem:[#allocation14_spill]] }
0x16d0   : > { %s9862_s23 = sld [smem:[#allocation16_spill]] }
0x16d4   : > { %p26_p2 = scmp.ge.s32.totalorder %s9860_s24, 4  }
0x16d5   : > { %s9864_s22 = smov %s9861_s20 }
0x16d6   :  { %28 = sbr.rel (!%p26_p2) target bundleno = 10 (0xa), region = 126 }
0x16db   :  { %6220 = vsyncpa [#allocation11], 1 }
0x16dc   :  { %6222 = vsyncpa [#allocation11 + $0x1], 1 }

</bundles_post_ra>
